<compile_context>
chip_gen: v6e
topology: v6e:2x2x1
jax: 0.10.0
libtpu: 0.0.40
codegen_flags: <defaults>
</compile_context>

<pallas_src>
import jax
import jax.numpy as jnp
from jax import lax
from jax.experimental import pallas as pl
from jax.experimental.pallas import tpu as pltpu


# ----------------------------------------------------------------------------
# In-kernel helpers (operate on VMEM values / refs)
# ----------------------------------------------------------------------------
def _conv3x3_bn_relu(xp, w_ref, scale_ref, shift_ref, H, W):
    """3x3 conv (stride 1) + folded BN + ReLU on an already zero-padded value.

    xp:        (H+2, W+2, Cin) fp32 value (halo already zero-filled).
    w_ref:     (9*Cin, Cout)   bf16 ref  (HWIO weights flattened over ky,kx,Cin).
    scale_ref: (1, Cout) fp32, shift_ref: (1, Cout) fp32.
    returns    (H*W, Cout) fp32.
    """
    Cin = xp.shape[-1]
    # im2col: concatenate the 9 shifted taps along the channel (lane) axis so the
    # whole conv is a single MXU matmul with K = 9*Cin instead of 9 tiny-K dots.
    taps = [xp[dy:dy + H, dx:dx + W, :] for dy in range(3) for dx in range(3)]
    patches = jnp.concatenate(taps, axis=-1).reshape(H * W, 9 * Cin)
    acc = jnp.dot(patches.astype(jnp.bfloat16), w_ref[...],
                  preferred_element_type=jnp.float32)       # fp32 accumulation
    y = acc * scale_ref[...] + shift_ref[...]                # fp32 epilogue
    return jnp.maximum(y, 0.0)


def _maxpool2x2(y):
    """2x2 / stride-2 max pool of an (H, W, C) fp32 value, kept in registers/VMEM."""
    H, W, C = y.shape
    yh = y.reshape(H // 2, 2, W, C)               # split of the outer dim: free
    ph = jnp.maximum(yh[:, 0], yh[:, 1])          # pooled over H -> (H//2, W, C)
    cols = []
    for j in range(W // 2):                       # W//2 <= 8 at these sizes
        pair = ph[:, 2 * j:2 * j + 2, :]          # contiguous static slice
        cols.append(jnp.maximum(pair[:, 0:1, :], pair[:, 1:2, :]))
    return jnp.concatenate(cols, axis=1)          # (H//2, W//2, C)


# ----------------------------------------------------------------------------
# Fused DoubleConv (+ optional maxpool) kernel
# ----------------------------------------------------------------------------
def _make_double_conv_kernel(H, W, Cin, Cout, pool):
    def kernel(x_ref, w1_ref, s1_ref, b1_ref, w2_ref, s2_ref, b2_ref, *rest):
        if pool:
            out_ref, pool_ref, pad1_ref, pad2_ref = rest
        else:
            out_ref, pad1_ref, pad2_ref = rest

        # ---- conv1 + BN + ReLU: halo built in a zeroed VMEM scratch ----
        pad1_ref[...] = jnp.zeros_like(pad1_ref)
        pad1_ref[1:H + 1, 1:W + 1, :] = x_ref[0]
        y1 = _conv3x3_bn_relu(pad1_ref[...], w1_ref, s1_ref, b1_ref, H, W)

        # ---- conv2 + BN + ReLU: intermediate never leaves VMEM ----
        pad2_ref[...] = jnp.zeros_like(pad2_ref)
        pad2_ref[1:H + 1, 1:W + 1, :] = y1.reshape(H, W, Cout)
        y2 = _conv3x3_bn_relu(pad2_ref[...], w2_ref, s2_ref, b2_ref, H, W)

        y2 = y2.reshape(H, W, Cout)
        out_ref[...] = y2.reshape(1, H, W, Cout).astype(out_ref.dtype)

        # ---- fused MaxPool2d(2, 2) ----
        if pool:
            p = _maxpool2x2(y2)
            pool_ref[...] = p.reshape(1, H // 2, W // 2, Cout).astype(pool_ref.dtype)

    return kernel


def double_conv_block(x, p, *, pool):
    """x: (N, H, W, Cin) NHWC.  Returns conv output (and pooled output if pool)."""
    N, H, W, Cin = x.shape
    Cout = p["wk2"].shape[-1]
    kernel = _make_double_conv_kernel(H, W, Cin, Cout, pool)

    full = lambda n: (n, 0, 0, 0)
    const2 = lambda n: (0, 0)
    in_specs = [
        pl.BlockSpec((1, H, W, Cin), full),
        pl.BlockSpec((9 * Cin, Cout), const2),
        pl.BlockSpec((1, Cout), const2),
        pl.BlockSpec((1, Cout), const2),
        pl.BlockSpec((9 * Cout, Cout), const2),
        pl.BlockSpec((1, Cout), const2),
        pl.BlockSpec((1, Cout), const2),
    ]
    if pool:
        out_shape = (jax.ShapeDtypeStruct((N, H, W, Cout), x.dtype),
                     jax.ShapeDtypeStruct((N, H // 2, W // 2, Cout), x.dtype))
        out_specs = (pl.BlockSpec((1, H, W, Cout), full),
                     pl.BlockSpec((1, H // 2, W // 2, Cout), full))
    else:
        out_shape = jax.ShapeDtypeStruct((N, H, W, Cout), x.dtype)
        out_specs = pl.BlockSpec((1, H, W, Cout), full)

    scratch_shapes = [
        pltpu.VMEM((H + 2, W + 2, Cin), jnp.float32),    # padded conv1 input
        pltpu.VMEM((H + 2, W + 2, Cout), jnp.float32),   # padded conv2 input
    ]
    return pl.pallas_call(
        kernel,
        out_shape=out_shape,
        grid=(N,),
        in_specs=in_specs,
        out_specs=out_specs,
        scratch_shapes=scratch_shapes,
        compiler_params=pltpu.CompilerParams(dimension_semantics=("parallel",)),
    )(x, p["wk1"], p["scale1"], p["shift1"], p["wk2"], p["scale2"], p["shift2"])


# ----------------------------------------------------------------------------
# Encoder forward (mirrors the PyTorch module)
# ----------------------------------------------------------------------------
def encoder_forward(params, x_nchw):
    """Returns (bottleneck_out, skip_connections), both NCHW like PyTorch."""
    x = jnp.transpose(x_nchw, (0, 2, 3, 1))               # NCHW -> NHWC
    skips = []
    for p in params["down"]:
        skip, x = double_conv_block(x, p, pool=True)      # DoubleConv + pool fused
        skips.append(jnp.transpose(skip, (0, 3, 1, 2)))   # skips returned in NCHW
    x = double_conv_block(x, params["bottleneck"], pool=False)
    return jnp.transpose(x, (0, 3, 1, 2)), skips


# ----------------------------------------------------------------------------
# Deterministic parameter init (BN folded to scale/shift, eval mode)
# ----------------------------------------------------------------------------
def _init_double_conv(key, cin, cout):
    eps = 1e-5
    k = jax.random.split(key, 4)
    p = {}
    for i, (ci, co, kw, kg) in enumerate(((cin, cout, k[0], k[1]),
                                          (cout, cout, k[2], k[3]))):
        w = jax.random.normal(kw, (3, 3, ci, co), jnp.float32) / jnp.sqrt(9.0 * ci)
        gamma = 1.0 + 0.1 * jax.random.normal(kg, (co,), jnp.float32)
        beta = 0.05 * jnp.arange(co, dtype=jnp.float32) / co
        mean = jnp.zeros((co,), jnp.float32)
        var = jnp.ones((co,), jnp.float32)
        scale = gamma / jnp.sqrt(var + eps)
        shift = beta - mean * scale
        p[f"w{i + 1}"] = w                                          # HWIO fp32 (ref)
        p[f"wk{i + 1}"] = w.reshape(9 * ci, co).astype(jnp.bfloat16)  # kernel layout
        p[f"scale{i + 1}"] = scale.reshape(1, co)
        p[f"shift{i + 1}"] = shift.reshape(1, co)
    return p


def init_encoder(key, in_channels, channels):
    keys = jax.random.split(key, len(channels) + 1)
    down = []
    cin = in_channels
    for i, c in enumerate(channels):
        down.append(_init_double_conv(keys[i], cin, c))
        cin = c
    bottleneck = _init_double_conv(keys[-1], channels[-1], channels[-1] * 2)
    return {"down": down, "bottleneck": bottleneck}


# ----------------------------------------------------------------------------
# Pure-JAX reference (same bf16-input / fp32-accumulate numerics as the kernel)
# ----------------------------------------------------------------------------
def _ref_conv_bn_relu(x, w, scale, shift):
    y = lax.conv_general_dilated(
        x.astype(jnp.bfloat16), w.astype(jnp.bfloat16), (1, 1), "SAME",
        dimension_numbers=("NHWC", "HWIO", "NHWC"),
        preferred_element_type=jnp.float32)
    return jnp.maximum(y * scale + shift, 0.0)


def _ref_encoder(params, x_nchw):
    x = jnp.transpose(x_nchw, (0, 2, 3, 1))
    skips = []
    for p in params["down"]:
        x = _ref_conv_bn_relu(x, p["w1"], p["scale1"], p["shift1"])
        x = _ref_conv_bn_relu(x, p["w2"], p["scale2"], p["shift2"])
        skips.append(jnp.transpose(x, (0, 3, 1, 2)))
        x = lax.reduce_window(x, -jnp.inf, lax.max,
                              (1, 2, 2, 1), (1, 2, 2, 1), "VALID")
    p = params["bottleneck"]
    x = _ref_conv_bn_relu(x, p["w1"], p["scale1"], p["shift1"])
    x = _ref_conv_bn_relu(x, p["w2"], p["scale2"], p["shift2"])
    return jnp.transpose(x, (0, 3, 1, 2)), skips


# ----------------------------------------------------------------------------
if __name__ == "__main__":
    key = jax.random.PRNGKey(0)
    k_params, k_input = jax.random.split(key)

    in_channels = 1
    channels = (8, 16, 32, 64)          # scaled-down version of (64,128,256,512)
    N, H, W = 2, 16, 16

    params = init_encoder(k_params, in_channels, channels)
    x = jax.random.normal(k_input, (N, in_channels, H, W), jnp.float32)

    fwd = jax.jit(encoder_forward)
    out, skips = fwd(params, x)
    out = jax.block_until_ready(out)
    skips = [jax.block_until_ready(s) for s in skips]

    # correctness check against a pure-JAX reference
    out_ref, skips_ref = _ref_encoder(params, x)
    assert out.shape == (N, channels[-1] * 2,
                         H // 2 ** len(channels), W // 2 ** len(channels))
    assert jnp.allclose(out, out_ref, atol=3e-2, rtol=3e-2), \
        float(jnp.max(jnp.abs(out - out_ref)))
    for s, sr in zip(skips, skips_ref):
        assert s.shape == sr.shape
        assert jnp.allclose(s, sr, atol=3e-2, rtol=3e-2), \
            float(jnp.max(jnp.abs(s - sr)))

    print("KERNEL_OK")
</pallas_src>

<mosaic_0001>
module attributes {stable_mosaic.version = 11 : i64} {
  func.func @kernel(%arg0: i32, %arg1: memref<1x16x16x1xf32, #tpu.memory_space<vmem>>, %arg2: memref<9x8xbf16, #tpu.memory_space<vmem>>, %arg3: memref<1x8xf32, #tpu.memory_space<vmem>>, %arg4: memref<1x8xf32, #tpu.memory_space<vmem>>, %arg5: memref<72x8xbf16, #tpu.memory_space<vmem>>, %arg6: memref<1x8xf32, #tpu.memory_space<vmem>>, %arg7: memref<1x8xf32, #tpu.memory_space<vmem>>, %arg8: memref<1x16x16x8xf32, #tpu.memory_space<vmem>>, %arg9: memref<1x8x8x8xf32, #tpu.memory_space<vmem>>, %arg10: memref<18x18x1xf32, #tpu.memory_space<vmem>>, %arg11: memref<18x18x8xf32, #tpu.memory_space<vmem>>) attributes {dimension_semantics = [#tpu.dimension_semantics<parallel>], iteration_bounds = array<i64: 2>, scalar_prefetch = 0 : i64, scratch_operands = 2 : i64, tpu.core_type = #tpu.core_type<tc>, window_params = [{transform_indices = @transform_0, window_bounds = array<i64: 1, 16, 16, 1>}, {pipeline_mode = #tpu.pipeline_mode<synchronous>, transform_indices = @transform_1, window_bounds = array<i64: 9, 8>}, {pipeline_mode = #tpu.pipeline_mode<synchronous>, transform_indices = @transform_2, window_bounds = array<i64: 1, 8>}, {pipeline_mode = #tpu.pipeline_mode<synchronous>, transform_indices = @transform_3, window_bounds = array<i64: 1, 8>}, {pipeline_mode = #tpu.pipeline_mode<synchronous>, transform_indices = @transform_4, window_bounds = array<i64: 72, 8>}, {pipeline_mode = #tpu.pipeline_mode<synchronous>, transform_indices = @transform_5, window_bounds = array<i64: 1, 8>}, {pipeline_mode = #tpu.pipeline_mode<synchronous>, transform_indices = @transform_6, window_bounds = array<i64: 1, 8>}, {transform_indices = @transform_7, window_bounds = array<i64: 1, 16, 16, 8>}, {transform_indices = @transform_8, window_bounds = array<i64: 1, 8, 8, 8>}]} {
    %cst = arith.constant 0.000000e+00 : f32
    %0 = vector.broadcast %cst : f32 to vector<18x18x1xf32>
    %c0 = arith.constant 0 : index
    %c0_0 = arith.constant 0 : index
    %c0_1 = arith.constant 0 : index
    %1 = vector.load %arg10[%c0, %c0_0, %c0_1] : memref<18x18x1xf32, #tpu.memory_space<vmem>>, vector<18x18x1xf32>
    tpu.vector_store %arg10[%c0, %c0_0, %c0_1], %0 {strides = array<i32>} : memref<18x18x1xf32, #tpu.memory_space<vmem>>, vector<18x18x1xf32>,
    %c0_2 = arith.constant 0 : index
    %c0_3 = arith.constant 0 : index
    %c0_4 = arith.constant 0 : index
    %c0_5 = arith.constant 0 : index
    %2 = vector.load %arg1[%c0_2, %c0_3, %c0_4, %c0_5] : memref<1x16x16x1xf32, #tpu.memory_space<vmem>>, vector<1x16x16x1xf32>
    %3 = vector.shape_cast %2 : vector<1x16x16x1xf32> to vector<16x16x1xf32>
    %c1 = arith.constant 1 : index
    %c1_6 = arith.constant 1 : index
    %c0_7 = arith.constant 0 : index
    %4 = vector.load %arg10[%c1, %c1_6, %c0_7] : memref<18x18x1xf32, #tpu.memory_space<vmem>>, vector<16x16x1xf32>
    tpu.vector_store %arg10[%c1, %c1_6, %c0_7], %3 {strides = array<i32>} : memref<18x18x1xf32, #tpu.memory_space<vmem>>, vector<16x16x1xf32>,
    %c0_8 = arith.constant 0 : index
    %c0_9 = arith.constant 0 : index
    %c0_10 = arith.constant 0 : index
    %5 = vector.load %arg10[%c0_8, %c0_9, %c0_10] : memref<18x18x1xf32, #tpu.memory_space<vmem>>, vector<18x18x1xf32>
    %6 = vector.extract_strided_slice %5 {offsets = [0, 0, 0], sizes = [16, 16, 1], strides = [1, 1, 1]} : vector<18x18x1xf32> to vector<16x16x1xf32>
    %7 = vector.extract_strided_slice %5 {offsets = [0, 1, 0], sizes = [16, 16, 1], strides = [1, 1, 1]} : vector<18x18x1xf32> to vector<16x16x1xf32>
    %8 = vector.extract_strided_slice %5 {offsets = [0, 2, 0], sizes = [16, 16, 1], strides = [1, 1, 1]} : vector<18x18x1xf32> to vector<16x16x1xf32>
    %9 = vector.extract_strided_slice %5 {offsets = [1, 0, 0], sizes = [16, 16, 1], strides = [1, 1, 1]} : vector<18x18x1xf32> to vector<16x16x1xf32>
    %10 = vector.extract_strided_slice %5 {offsets = [1, 1, 0], sizes = [16, 16, 1], strides = [1, 1, 1]} : vector<18x18x1xf32> to vector<16x16x1xf32>
    %11 = vector.extract_strided_slice %5 {offsets = [1, 2, 0], sizes = [16, 16, 1], strides = [1, 1, 1]} : vector<18x18x1xf32> to vector<16x16x1xf32>
    %12 = vector.extract_strided_slice %5 {offsets = [2, 0, 0], sizes = [16, 16, 1], strides = [1, 1, 1]} : vector<18x18x1xf32> to vector<16x16x1xf32>
    %13 = vector.extract_strided_slice %5 {offsets = [2, 1, 0], sizes = [16, 16, 1], strides = [1, 1, 1]} : vector<18x18x1xf32> to vector<16x16x1xf32>
    %14 = vector.extract_strided_slice %5 {offsets = [2, 2, 0], sizes = [16, 16, 1], strides = [1, 1, 1]} : vector<18x18x1xf32> to vector<16x16x1xf32>
    %15 = tpu.concatenate %6, %7, %8, %9, %10, %11, %12, %13, %14 in 2 : vector<16x16x1xf32>, vector<16x16x1xf32>, vector<16x16x1xf32>, vector<16x16x1xf32>, vector<16x16x1xf32>, vector<16x16x1xf32>, vector<16x16x1xf32>, vector<16x16x1xf32>, vector<16x16x1xf32> -> vector<16x16x9xf32>
    %16 = vector.shape_cast %15 : vector<16x16x9xf32> to vector<256x9xf32>
    %17 = arith.truncf %16 : vector<256x9xf32> to vector<256x9xbf16>
    %c0_11 = arith.constant 0 : index
    %c0_12 = arith.constant 0 : index
    %18 = vector.load %arg2[%c0_11, %c0_12] : memref<9x8xbf16, #tpu.memory_space<vmem>>, vector<9x8xbf16>
    %cst_13 = arith.constant dense<0.000000e+00> : vector<256x8xf32>
    %19 = tpu.matmul %17, %18, %cst_13 {dimension_numbers = #tpu.dot_dimension_numbers<[1], [0], [0], [1], [0, 0, 1, 1], [], []>} : vector<256x9xbf16>, vector<9x8xbf16>, vector<256x8xf32> -> vector<256x8xf32>
    %c0_14 = arith.constant 0 : index
    %c0_15 = arith.constant 0 : index
    %20 = vector.load %arg3[%c0_14, %c0_15] : memref<1x8xf32, #tpu.memory_space<vmem>>, vector<1x8xf32>
    %21 = vector.broadcast %20 : vector<1x8xf32> to vector<256x8xf32>
    %22 = arith.mulf %19, %21 : vector<256x8xf32>
    %c0_16 = arith.constant 0 : index
    %c0_17 = arith.constant 0 : index
    %23 = vector.load %arg4[%c0_16, %c0_17] : memref<1x8xf32, #tpu.memory_space<vmem>>, vector<1x8xf32>
    %24 = vector.broadcast %23 : vector<1x8xf32> to vector<256x8xf32>
    %25 = arith.addf %22, %24 : vector<256x8xf32>
    %cst_18 = arith.constant 0.000000e+00 : f32
    %26 = vector.broadcast %cst_18 : f32 to vector<256x8xf32>
    %27 = arith.maximumf %25, %26 : vector<256x8xf32>
    %cst_19 = arith.constant 0.000000e+00 : f32
    %28 = vector.broadcast %cst_19 : f32 to vector<18x18x8xf32>
    %c0_20 = arith.constant 0 : index
    %c0_21 = arith.constant 0 : index
    %c0_22 = arith.constant 0 : index
    %29 = vector.load %arg11[%c0_20, %c0_21, %c0_22] : memref<18x18x8xf32, #tpu.memory_space<vmem>>, vector<18x18x8xf32>
    tpu.vector_store %arg11[%c0_20, %c0_21, %c0_22], %28 {strides = array<i32>} : memref<18x18x8xf32, #tpu.memory_space<vmem>>, vector<18x18x8xf32>,
    %30 = vector.shape_cast %27 : vector<256x8xf32> to vector<16x16x8xf32>
    %c1_23 = arith.constant 1 : index
    %c1_24 = arith.constant 1 : index
    %c0_25 = arith.constant 0 : index
    %31 = vector.load %arg11[%c1_23, %c1_24, %c0_25] : memref<18x18x8xf32, #tpu.memory_space<vmem>>, vector<16x16x8xf32>
    tpu.vector_store %arg11[%c1_23, %c1_24, %c0_25], %30 {strides = array<i32>} : memref<18x18x8xf32, #tpu.memory_space<vmem>>, vector<16x16x8xf32>,
    %c0_26 = arith.constant 0 : index
    %c0_27 = arith.constant 0 : index
    %c0_28 = arith.constant 0 : index
    %32 = vector.load %arg11[%c0_26, %c0_27, %c0_28] : memref<18x18x8xf32, #tpu.memory_space<vmem>>, vector<18x18x8xf32>
    %33 = vector.extract_strided_slice %32 {offsets = [0, 0, 0], sizes = [16, 16, 8], strides = [1, 1, 1]} : vector<18x18x8xf32> to vector<16x16x8xf32>
    %34 = vector.extract_strided_slice %32 {offsets = [0, 1, 0], sizes = [16, 16, 8], strides = [1, 1, 1]} : vector<18x18x8xf32> to vector<16x16x8xf32>
    %35 = vector.extract_strided_slice %32 {offsets = [0, 2, 0], sizes = [16, 16, 8], strides = [1, 1, 1]} : vector<18x18x8xf32> to vector<16x16x8xf32>
    %36 = vector.extract_strided_slice %32 {offsets = [1, 0, 0], sizes = [16, 16, 8], strides = [1, 1, 1]} : vector<18x18x8xf32> to vector<16x16x8xf32>
    %37 = vector.extract_strided_slice %32 {offsets = [1, 1, 0], sizes = [16, 16, 8], strides = [1, 1, 1]} : vector<18x18x8xf32> to vector<16x16x8xf32>
    %38 = vector.extract_strided_slice %32 {offsets = [1, 2, 0], sizes = [16, 16, 8], strides = [1, 1, 1]} : vector<18x18x8xf32> to vector<16x16x8xf32>
    %39 = vector.extract_strided_slice %32 {offsets = [2, 0, 0], sizes = [16, 16, 8], strides = [1, 1, 1]} : vector<18x18x8xf32> to vector<16x16x8xf32>
    %40 = vector.extract_strided_slice %32 {offsets = [2, 1, 0], sizes = [16, 16, 8], strides = [1, 1, 1]} : vector<18x18x8xf32> to vector<16x16x8xf32>
    %41 = vector.extract_strided_slice %32 {offsets = [2, 2, 0], sizes = [16, 16, 8], strides = [1, 1, 1]} : vector<18x18x8xf32> to vector<16x16x8xf32>
    %42 = tpu.concatenate %33, %34, %35, %36, %37, %38, %39, %40, %41 in 2 : vector<16x16x8xf32>, vector<16x16x8xf32>, vector<16x16x8xf32>, vector<16x16x8xf32>, vector<16x16x8xf32>, vector<16x16x8xf32>, vector<16x16x8xf32>, vector<16x16x8xf32>, vector<16x16x8xf32> -> vector<16x16x72xf32>
    %43 = vector.shape_cast %42 : vector<16x16x72xf32> to vector<256x72xf32>
    %44 = arith.truncf %43 : vector<256x72xf32> to vector<256x72xbf16>
    %c0_29 = arith.constant 0 : index
    %c0_30 = arith.constant 0 : index
    %45 = vector.load %arg5[%c0_29, %c0_30] : memref<72x8xbf16, #tpu.memory_space<vmem>>, vector<72x8xbf16>
    %cst_31 = arith.constant dense<0.000000e+00> : vector<256x8xf32>
    %46 = tpu.matmul %44, %45, %cst_31 {dimension_numbers = #tpu.dot_dimension_numbers<[1], [0], [0], [1], [0, 0, 1, 1], [], []>} : vector<256x72xbf16>, vector<72x8xbf16>, vector<256x8xf32> -> vector<256x8xf32>
    %c0_32 = arith.constant 0 : index
    %c0_33 = arith.constant 0 : index
    %47 = vector.load %arg6[%c0_32, %c0_33] : memref<1x8xf32, #tpu.memory_space<vmem>>, vector<1x8xf32>
    %48 = vector.broadcast %47 : vector<1x8xf32> to vector<256x8xf32>
    %49 = arith.mulf %46, %48 : vector<256x8xf32>
    %c0_34 = arith.constant 0 : index
    %c0_35 = arith.constant 0 : index
    %50 = vector.load %arg7[%c0_34, %c0_35] : memref<1x8xf32, #tpu.memory_space<vmem>>, vector<1x8xf32>
    %51 = vector.broadcast %50 : vector<1x8xf32> to vector<256x8xf32>
    %52 = arith.addf %49, %51 : vector<256x8xf32>
    %cst_36 = arith.constant 0.000000e+00 : f32
    %53 = vector.broadcast %cst_36 : f32 to vector<256x8xf32>
    %54 = arith.maximumf %52, %53 : vector<256x8xf32>
    %55 = vector.shape_cast %54 : vector<256x8xf32> to vector<16x16x8xf32>
    %56 = vector.shape_cast %55 : vector<16x16x8xf32> to vector<1x16x16x8xf32>
    %c0_37 = arith.constant 0 : index
    %c0_38 = arith.constant 0 : index
    %c0_39 = arith.constant 0 : index
    %c0_40 = arith.constant 0 : index
    %57 = vector.load %arg8[%c0_37, %c0_38, %c0_39, %c0_40] : memref<1x16x16x8xf32, #tpu.memory_space<vmem>>, vector<1x16x16x8xf32>
    tpu.vector_store %arg8[%c0_37, %c0_38, %c0_39, %c0_40], %56 {strides = array<i32>} : memref<1x16x16x8xf32, #tpu.memory_space<vmem>>, vector<1x16x16x8xf32>,
    %58 = vector.shape_cast %55 : vector<16x16x8xf32> to vector<8x2x16x8xf32>
    %59 = vector.extract_strided_slice %58 {offsets = [0, 0, 0, 0], sizes = [8, 1, 16, 8], strides = [1, 1, 1, 1]} : vector<8x2x16x8xf32> to vector<8x1x16x8xf32>
    %60 = vector.shape_cast %59 : vector<8x1x16x8xf32> to vector<8x16x8xf32>
    %61 = vector.extract_strided_slice %58 {offsets = [0, 1, 0, 0], sizes = [8, 1, 16, 8], strides = [1, 1, 1, 1]} : vector<8x2x16x8xf32> to vector<8x1x16x8xf32>
    %62 = vector.shape_cast %61 : vector<8x1x16x8xf32> to vector<8x16x8xf32>
    %63 = arith.maximumf %60, %62 : vector<8x16x8xf32>
    %64 = vector.extract_strided_slice %63 {offsets = [0, 0, 0], sizes = [8, 2, 8], strides = [1, 1, 1]} : vector<8x16x8xf32> to vector<8x2x8xf32>
    %65 = vector.extract_strided_slice %64 {offsets = [0, 0, 0], sizes = [8, 1, 8], strides = [1, 1, 1]} : vector<8x2x8xf32> to vector<8x1x8xf32>
    %66 = vector.extract_strided_slice %64 {offsets = [0, 1, 0], sizes = [8, 1, 8], strides = [1, 1, 1]} : vector<8x2x8xf32> to vector<8x1x8xf32>
    %67 = arith.maximumf %65, %66 : vector<8x1x8xf32>
    %68 = vector.extract_strided_slice %63 {offsets = [0, 2, 0], sizes = [8, 2, 8], strides = [1, 1, 1]} : vector<8x16x8xf32> to vector<8x2x8xf32>
    %69 = vector.extract_strided_slice %68 {offsets = [0, 0, 0], sizes = [8, 1, 8], strides = [1, 1, 1]} : vector<8x2x8xf32> to vector<8x1x8xf32>
    %70 = vector.extract_strided_slice %68 {offsets = [0, 1, 0], sizes = [8, 1, 8], strides = [1, 1, 1]} : vector<8x2x8xf32> to vector<8x1x8xf32>
    %71 = arith.maximumf %69, %70 : vector<8x1x8xf32>
    %72 = vector.extract_strided_slice %63 {offsets = [0, 4, 0], sizes = [8, 2, 8], strides = [1, 1, 1]} : vector<8x16x8xf32> to vector<8x2x8xf32>
    %73 = vector.extract_strided_slice %72 {offsets = [0, 0, 0], sizes = [8, 1, 8], strides = [1, 1, 1]} : vector<8x2x8xf32> to vector<8x1x8xf32>
    %74 = vector.extract_strided_slice %72 {offsets = [0, 1, 0], sizes = [8, 1, 8], strides = [1, 1, 1]} : vector<8x2x8xf32> to vector<8x1x8xf32>
    %75 = arith.maximumf %73, %74 : vector<8x1x8xf32>
    %76 = vector.extract_strided_slice %63 {offsets = [0, 6, 0], sizes = [8, 2, 8], strides = [1, 1, 1]} : vector<8x16x8xf32> to vector<8x2x8xf32>
    %77 = vector.extract_strided_slice %76 {offsets = [0, 0, 0], sizes = [8, 1, 8], strides = [1, 1, 1]} : vector<8x2x8xf32> to vector<8x1x8xf32>
    %78 = vector.extract_strided_slice %76 {offsets = [0, 1, 0], sizes = [8, 1, 8], strides = [1, 1, 1]} : vector<8x2x8xf32> to vector<8x1x8xf32>
    %79 = arith.maximumf %77, %78 : vector<8x1x8xf32>
    %80 = vector.extract_strided_slice %63 {offsets = [0, 8, 0], sizes = [8, 2, 8], strides = [1, 1, 1]} : vector<8x16x8xf32> to vector<8x2x8xf32>
    %81 = vector.extract_strided_slice %80 {offsets = [0, 0, 0], sizes = [8, 1, 8], strides = [1, 1, 1]} : vector<8x2x8xf32> to vector<8x1x8xf32>
    %82 = vector.extract_strided_slice %80 {offsets = [0, 1, 0], sizes = [8, 1, 8], strides = [1, 1, 1]} : vector<8x2x8xf32> to vector<8x1x8xf32>
    %83 = arith.maximumf %81, %82 : vector<8x1x8xf32>
    %84 = vector.extract_strided_slice %63 {offsets = [0, 10, 0], sizes = [8, 2, 8], strides = [1, 1, 1]} : vector<8x16x8xf32> to vector<8x2x8xf32>
    %85 = vector.extract_strided_slice %84 {offsets = [0, 0, 0], sizes = [8, 1, 8], strides = [1, 1, 1]} : vector<8x2x8xf32> to vector<8x1x8xf32>
    %86 = vector.extract_strided_slice %84 {offsets = [0, 1, 0], sizes = [8, 1, 8], strides = [1, 1, 1]} : vector<8x2x8xf32> to vector<8x1x8xf32>
    %87 = arith.maximumf %85, %86 : vector<8x1x8xf32>
    %88 = vector.extract_strided_slice %63 {offsets = [0, 12, 0], sizes = [8, 2, 8], strides = [1, 1, 1]} : vector<8x16x8xf32> to vector<8x2x8xf32>
    %89 = vector.extract_strided_slice %88 {offsets = [0, 0, 0], sizes = [8, 1, 8], strides = [1, 1, 1]} : vector<8x2x8xf32> to vector<8x1x8xf32>
    %90 = vector.extract_strided_slice %88 {offsets = [0, 1, 0], sizes = [8, 1, 8], strides = [1, 1, 1]} : vector<8x2x8xf32> to vector<8x1x8xf32>
    %91 = arith.maximumf %89, %90 : vector<8x1x8xf32>
    %92 = vector.extract_strided_slice %63 {offsets = [0, 14, 0], sizes = [8, 2, 8], strides = [1, 1, 1]} : vector<8x16x8xf32> to vector<8x2x8xf32>
    %93 = vector.extract_strided_slice %92 {offsets = [0, 0, 0], sizes = [8, 1, 8], strides = [1, 1, 1]} : vector<8x2x8xf32> to vector<8x1x8xf32>
    %94 = vector.extract_strided_slice %92 {offsets = [0, 1, 0], sizes = [8, 1, 8], strides = [1, 1, 1]} : vector<8x2x8xf32> to vector<8x1x8xf32>
    %95 = arith.maximumf %93, %94 : vector<8x1x8xf32>
    %96 = tpu.concatenate %67, %71, %75, %79, %83, %87, %91, %95 in 1 : vector<8x1x8xf32>, vector<8x1x8xf32>, vector<8x1x8xf32>, vector<8x1x8xf32>, vector<8x1x8xf32>, vector<8x1x8xf32>, vector<8x1x8xf32>, vector<8x1x8xf32> -> vector<8x8x8xf32>
    %97 = vector.shape_cast %96 : vector<8x8x8xf32> to vector<1x8x8x8xf32>
    %c0_41 = arith.constant 0 : index
    %c0_42 = arith.constant 0 : index
    %c0_43 = arith.constant 0 : index
    %c0_44 = arith.constant 0 : index
    %98 = vector.load %arg9[%c0_41, %c0_42, %c0_43, %c0_44] : memref<1x8x8x8xf32, #tpu.memory_space<vmem>>, vector<1x8x8x8xf32>
    tpu.vector_store %arg9[%c0_41, %c0_42, %c0_43, %c0_44], %97 {strides = array<i32>} : memref<1x8x8x8xf32, #tpu.memory_space<vmem>>, vector<1x8x8x8xf32>,
    return
  }
  func.func @transform_0(%arg0: i32) -> (i32, i32, i32, i32) {
    %c0_i32 = arith.constant 0 : i32
    %c0_i32_0 = arith.constant 0 : i32
    %c0_i32_1 = arith.constant 0 : i32
    %c0_i32_2 = arith.constant 0 : i32
    return %arg0, %c0_i32, %c0_i32_0, %c0_i32_1 : i32, i32, i32, i32
  }
  func.func @transform_1(%arg0: i32) -> (i32, i32) {
    %c0_i32 = arith.constant 0 : i32
    %c0_i32_0 = arith.constant 0 : i32
    %c0_i32_1 = arith.constant 0 : i32
    return %c0_i32, %c0_i32_0 : i32, i32
  }
  func.func @transform_2(%arg0: i32) -> (i32, i32) {
    %c0_i32 = arith.constant 0 : i32
    %c0_i32_0 = arith.constant 0 : i32
    %c0_i32_1 = arith.constant 0 : i32
    return %c0_i32, %c0_i32_0 : i32, i32
  }
  func.func @transform_3(%arg0: i32) -> (i32, i32) {
    %c0_i32 = arith.constant 0 : i32
    %c0_i32_0 = arith.constant 0 : i32
    %c0_i32_1 = arith.constant 0 : i32
    return %c0_i32, %c0_i32_0 : i32, i32
  }
  func.func @transform_4(%arg0: i32) -> (i32, i32) {
    %c0_i32 = arith.constant 0 : i32
    %c0_i32_0 = arith.constant 0 : i32
    %c0_i32_1 = arith.constant 0 : i32
    return %c0_i32, %c0_i32_0 : i32, i32
  }
  func.func @transform_5(%arg0: i32) -> (i32, i32) {
    %c0_i32 = arith.constant 0 : i32
    %c0_i32_0 = arith.constant 0 : i32
    %c0_i32_1 = arith.constant 0 : i32
    return %c0_i32, %c0_i32_0 : i32, i32
  }
  func.func @transform_6(%arg0: i32) -> (i32, i32) {
    %c0_i32 = arith.constant 0 : i32
    %c0_i32_0 = arith.constant 0 : i32
    %c0_i32_1 = arith.constant 0 : i32
    return %c0_i32, %c0_i32_0 : i32, i32
  }
  func.func @transform_7(%arg0: i32) -> (i32, i32, i32, i32) {
    %c0_i32 = arith.constant 0 : i32
    %c0_i32_0 = arith.constant 0 : i32
    %c0_i32_1 = arith.constant 0 : i32
    %c0_i32_2 = arith.constant 0 : i32
    return %arg0, %c0_i32, %c0_i32_0, %c0_i32_1 : i32, i32, i32, i32
  }
  func.func @transform_8(%arg0: i32) -> (i32, i32, i32, i32) {
    %c0_i32 = arith.constant 0 : i32
    %c0_i32_0 = arith.constant 0 : i32
    %c0_i32_1 = arith.constant 0 : i32
    %c0_i32_2 = arith.constant 0 : i32
    return %arg0, %c0_i32, %c0_i32_0, %c0_i32_1 : i32, i32, i32, i32
  }
}

module attributes {stable_mosaic.version = 11 : i64} {
  func.func @kernel(%arg0: i32, %arg1: memref<1x8x8x8xf32, #tpu.memory_space<vmem>>, %arg2: memref<72x16xbf16, #tpu.memory_space<vmem>>, %arg3: memref<1x16xf32, #tpu.memory_space<vmem>>, %arg4: memref<1x16xf32, #tpu.memory_space<vmem>>, %arg5: memref<144x16xbf16, #tpu.memory_space<vmem>>, %arg6: memref<1x16xf32, #tpu.memory_space<vmem>>, %arg7: memref<1x16xf32, #tpu.memory_space<vmem>>, %arg8: memref<1x8x8x16xf32, #tpu.memory_space<vmem>>, %arg9: memref<1x4x4x16xf32, #tpu.memory_space<vmem>>, %arg10: memref<10x10x8xf32, #tpu.memory_space<vmem>>, %arg11: memref<10x10x16xf32, #tpu.memory_space<vmem>>) attributes {dimension_semantics = [#tpu.dimension_semantics<parallel>], iteration_bounds = array<i64: 2>, scalar_prefetch = 0 : i64, scratch_operands = 2 : i64, tpu.core_type = #tpu.core_type<tc>, window_params = [{transform_indices = @transform_0, window_bounds = array<i64: 1, 8, 8, 8>}, {pipeline_mode = #tpu.pipeline_mode<synchronous>, transform_indices = @transform_1, window_bounds = array<i64: 72, 16>}, {pipeline_mode = #tpu.pipeline_mode<synchronous>, transform_indices = @transform_2, window_bounds = array<i64: 1, 16>}, {pipeline_mode = #tpu.pipeline_mode<synchronous>, transform_indices = @transform_3, window_bounds = array<i64: 1, 16>}, {pipeline_mode = #tpu.pipeline_mode<synchronous>, transform_indices = @transform_4, window_bounds = array<i64: 144, 16>}, {pipeline_mode = #tpu.pipeline_mode<synchronous>, transform_indices = @transform_5, window_bounds = array<i64: 1, 16>}, {pipeline_mode = #tpu.pipeline_mode<synchronous>, transform_indices = @transform_6, window_bounds = array<i64: 1, 16>}, {transform_indices = @transform_7, window_bounds = array<i64: 1, 8, 8, 16>}, {transform_indices = @transform_8, window_bounds = array<i64: 1, 4, 4, 16>}]} {
    %cst = arith.constant 0.000000e+00 : f32
    %0 = vector.broadcast %cst : f32 to vector<10x10x8xf32>
    %c0 = arith.constant 0 : index
    %c0_0 = arith.constant 0 : index
    %c0_1 = arith.constant 0 : index
    %1 = vector.load %arg10[%c0, %c0_0, %c0_1] : memref<10x10x8xf32, #tpu.memory_space<vmem>>, vector<10x10x8xf32>
    tpu.vector_store %arg10[%c0, %c0_0, %c0_1], %0 {strides = array<i32>} : memref<10x10x8xf32, #tpu.memory_space<vmem>>, vector<10x10x8xf32>,
    %c0_2 = arith.constant 0 : index
    %c0_3 = arith.constant 0 : index
    %c0_4 = arith.constant 0 : index
    %c0_5 = arith.constant 0 : index
    %2 = vector.load %arg1[%c0_2, %c0_3, %c0_4, %c0_5] : memref<1x8x8x8xf32, #tpu.memory_space<vmem>>, vector<1x8x8x8xf32>
    %3 = vector.shape_cast %2 : vector<1x8x8x8xf32> to vector<8x8x8xf32>
    %c1 = arith.constant 1 : index
    %c1_6 = arith.constant 1 : index
    %c0_7 = arith.constant 0 : index
    %4 = vector.load %arg10[%c1, %c1_6, %c0_7] : memref<10x10x8xf32, #tpu.memory_space<vmem>>, vector<8x8x8xf32>
    tpu.vector_store %arg10[%c1, %c1_6, %c0_7], %3 {strides = array<i32>} : memref<10x10x8xf32, #tpu.memory_space<vmem>>, vector<8x8x8xf32>,
    %c0_8 = arith.constant 0 : index
    %c0_9 = arith.constant 0 : index
    %c0_10 = arith.constant 0 : index
    %5 = vector.load %arg10[%c0_8, %c0_9, %c0_10] : memref<10x10x8xf32, #tpu.memory_space<vmem>>, vector<10x10x8xf32>
    %6 = vector.extract_strided_slice %5 {offsets = [0, 0, 0], sizes = [8, 8, 8], strides = [1, 1, 1]} : vector<10x10x8xf32> to vector<8x8x8xf32>
    %7 = vector.extract_strided_slice %5 {offsets = [0, 1, 0], sizes = [8, 8, 8], strides = [1, 1, 1]} : vector<10x10x8xf32> to vector<8x8x8xf32>
    %8 = vector.extract_strided_slice %5 {offsets = [0, 2, 0], sizes = [8, 8, 8], strides = [1, 1, 1]} : vector<10x10x8xf32> to vector<8x8x8xf32>
    %9 = vector.extract_strided_slice %5 {offsets = [1, 0, 0], sizes = [8, 8, 8], strides = [1, 1, 1]} : vector<10x10x8xf32> to vector<8x8x8xf32>
    %10 = vector.extract_strided_slice %5 {offsets = [1, 1, 0], sizes = [8, 8, 8], strides = [1, 1, 1]} : vector<10x10x8xf32> to vector<8x8x8xf32>
    %11 = vector.extract_strided_slice %5 {offsets = [1, 2, 0], sizes = [8, 8, 8], strides = [1, 1, 1]} : vector<10x10x8xf32> to vector<8x8x8xf32>
    %12 = vector.extract_strided_slice %5 {offsets = [2, 0, 0], sizes = [8, 8, 8], strides = [1, 1, 1]} : vector<10x10x8xf32> to vector<8x8x8xf32>
    %13 = vector.extract_strided_slice %5 {offsets = [2, 1, 0], sizes = [8, 8, 8], strides = [1, 1, 1]} : vector<10x10x8xf32> to vector<8x8x8xf32>
    %14 = vector.extract_strided_slice %5 {offsets = [2, 2, 0], sizes = [8, 8, 8], strides = [1, 1, 1]} : vector<10x10x8xf32> to vector<8x8x8xf32>
    %15 = tpu.concatenate %6, %7, %8, %9, %10, %11, %12, %13, %14 in 2 : vector<8x8x8xf32>, vector<8x8x8xf32>, vector<8x8x8xf32>, vector<8x8x8xf32>, vector<8x8x8xf32>, vector<8x8x8xf32>, vector<8x8x8xf32>, vector<8x8x8xf32>, vector<8x8x8xf32> -> vector<8x8x72xf32>
    %16 = vector.shape_cast %15 : vector<8x8x72xf32> to vector<64x72xf32>
    %17 = arith.truncf %16 : vector<64x72xf32> to vector<64x72xbf16>
    %c0_11 = arith.constant 0 : index
    %c0_12 = arith.constant 0 : index
    %18 = vector.load %arg2[%c0_11, %c0_12] : memref<72x16xbf16, #tpu.memory_space<vmem>>, vector<72x16xbf16>
    %cst_13 = arith.constant dense<0.000000e+00> : vector<64x16xf32>
    %19 = tpu.matmul %17, %18, %cst_13 {dimension_numbers = #tpu.dot_dimension_numbers<[1], [0], [0], [1], [0, 0, 1, 1], [], []>} : vector<64x72xbf16>, vector<72x16xbf16>, vector<64x16xf32> -> vector<64x16xf32>
    %c0_14 = arith.constant 0 : index
    %c0_15 = arith.constant 0 : index
    %20 = vector.load %arg3[%c0_14, %c0_15] : memref<1x16xf32, #tpu.memory_space<vmem>>, vector<1x16xf32>
    %21 = vector.broadcast %20 : vector<1x16xf32> to vector<64x16xf32>
    %22 = arith.mulf %19, %21 : vector<64x16xf32>
    %c0_16 = arith.constant 0 : index
    %c0_17 = arith.constant 0 : index
    %23 = vector.load %arg4[%c0_16, %c0_17] : memref<1x16xf32, #tpu.memory_space<vmem>>, vector<1x16xf32>
    %24 = vector.broadcast %23 : vector<1x16xf32> to vector<64x16xf32>
    %25 = arith.addf %22, %24 : vector<64x16xf32>
    %cst_18 = arith.constant 0.000000e+00 : f32
    %26 = vector.broadcast %cst_18 : f32 to vector<64x16xf32>
    %27 = arith.maximumf %25, %26 : vector<64x16xf32>
    %cst_19 = arith.constant 0.000000e+00 : f32
    %28 = vector.broadcast %cst_19 : f32 to vector<10x10x16xf32>
    %c0_20 = arith.constant 0 : index
    %c0_21 = arith.constant 0 : index
    %c0_22 = arith.constant 0 : index
    %29 = vector.load %arg11[%c0_20, %c0_21, %c0_22] : memref<10x10x16xf32, #tpu.memory_space<vmem>>, vector<10x10x16xf32>
    tpu.vector_store %arg11[%c0_20, %c0_21, %c0_22], %28 {strides = array<i32>} : memref<10x10x16xf32, #tpu.memory_space<vmem>>, vector<10x10x16xf32>,
    %30 = vector.shape_cast %27 : vector<64x16xf32> to vector<8x8x16xf32>
    %c1_23 = arith.constant 1 : index
    %c1_24 = arith.constant 1 : index
    %c0_25 = arith.constant 0 : index
    %31 = vector.load %arg11[%c1_23, %c1_24, %c0_25] : memref<10x10x16xf32, #tpu.memory_space<vmem>>, vector<8x8x16xf32>
    tpu.vector_store %arg11[%c1_23, %c1_24, %c0_25], %30 {strides = array<i32>} : memref<10x10x16xf32, #tpu.memory_space<vmem>>, vector<8x8x16xf32>,
    %c0_26 = arith.constant 0 : index
    %c0_27 = arith.constant 0 : index
    %c0_28 = arith.constant 0 : index
    %32 = vector.load %arg11[%c0_26, %c0_27, %c0_28] : memref<10x10x16xf32, #tpu.memory_space<vmem>>, vector<10x10x16xf32>
    %33 = vector.extract_strided_slice %32 {offsets = [0, 0, 0], sizes = [8, 8, 16], strides = [1, 1, 1]} : vector<10x10x16xf32> to vector<8x8x16xf32>
    %34 = vector.extract_strided_slice %32 {offsets = [0, 1, 0], sizes = [8, 8, 16], strides = [1, 1, 1]} : vector<10x10x16xf32> to vector<8x8x16xf32>
    %35 = vector.extract_strided_slice %32 {offsets = [0, 2, 0], sizes = [8, 8, 16], strides = [1, 1, 1]} : vector<10x10x16xf32> to vector<8x8x16xf32>
    %36 = vector.extract_strided_slice %32 {offsets = [1, 0, 0], sizes = [8, 8, 16], strides = [1, 1, 1]} : vector<10x10x16xf32> to vector<8x8x16xf32>
    %37 = vector.extract_strided_slice %32 {offsets = [1, 1, 0], sizes = [8, 8, 16], strides = [1, 1, 1]} : vector<10x10x16xf32> to vector<8x8x16xf32>
    %38 = vector.extract_strided_slice %32 {offsets = [1, 2, 0], sizes = [8, 8, 16], strides = [1, 1, 1]} : vector<10x10x16xf32> to vector<8x8x16xf32>
    %39 = vector.extract_strided_slice %32 {offsets = [2, 0, 0], sizes = [8, 8, 16], strides = [1, 1, 1]} : vector<10x10x16xf32> to vector<8x8x16xf32>
    %40 = vector.extract_strided_slice %32 {offsets = [2, 1, 0], sizes = [8, 8, 16], strides = [1, 1, 1]} : vector<10x10x16xf32> to vector<8x8x16xf32>
    %41 = vector.extract_strided_slice %32 {offsets = [2, 2, 0], sizes = [8, 8, 16], strides = [1, 1, 1]} : vector<10x10x16xf32> to vector<8x8x16xf32>
    %42 = tpu.concatenate %33, %34, %35, %36, %37, %38, %39, %40, %41 in 2 : vector<8x8x16xf32>, vector<8x8x16xf32>, vector<8x8x16xf32>, vector<8x8x16xf32>, vector<8x8x16xf32>, vector<8x8x16xf32>, vector<8x8x16xf32>, vector<8x8x16xf32>, vector<8x8x16xf32> -> vector<8x8x144xf32>
    %43 = vector.shape_cast %42 : vector<8x8x144xf32> to vector<64x144xf32>
    %44 = arith.truncf %43 : vector<64x144xf32> to vector<64x144xbf16>
    %c0_29 = arith.constant 0 : index
    %c0_30 = arith.constant 0 : index
    %45 = vector.load %arg5[%c0_29, %c0_30] : memref<144x16xbf16, #tpu.memory_space<vmem>>, vector<144x16xbf16>
    %cst_31 = arith.constant dense<0.000000e+00> : vector<64x16xf32>
    %46 = tpu.matmul %44, %45, %cst_31 {dimension_numbers = #tpu.dot_dimension_numbers<[1], [0], [0], [1], [0, 0, 1, 1], [], []>} : vector<64x144xbf16>, vector<144x16xbf16>, vector<64x16xf32> -> vector<64x16xf32>
    %c0_32 = arith.constant 0 : index
    %c0_33 = arith.constant 0 : index
    %47 = vector.load %arg6[%c0_32, %c0_33] : memref<1x16xf32, #tpu.memory_space<vmem>>, vector<1x16xf32>
    %48 = vector.broadcast %47 : vector<1x16xf32> to vector<64x16xf32>
    %49 = arith.mulf %46, %48 : vector<64x16xf32>
    %c0_34 = arith.constant 0 : index
    %c0_35 = arith.constant 0 : index
    %50 = vector.load %arg7[%c0_34, %c0_35] : memref<1x16xf32, #tpu.memory_space<vmem>>, vector<1x16xf32>
    %51 = vector.broadcast %50 : vector<1x16xf32> to vector<64x16xf32>
    %52 = arith.addf %49, %51 : vector<64x16xf32>
    %cst_36 = arith.constant 0.000000e+00 : f32
    %53 = vector.broadcast %cst_36 : f32 to vector<64x16xf32>
    %54 = arith.maximumf %52, %53 : vector<64x16xf32>
    %55 = vector.shape_cast %54 : vector<64x16xf32> to vector<8x8x16xf32>
    %56 = vector.shape_cast %55 : vector<8x8x16xf32> to vector<1x8x8x16xf32>
    %c0_37 = arith.constant 0 : index
    %c0_38 = arith.constant 0 : index
    %c0_39 = arith.constant 0 : index
    %c0_40 = arith.constant 0 : index
    %57 = vector.load %arg8[%c0_37, %c0_38, %c0_39, %c0_40] : memref<1x8x8x16xf32, #tpu.memory_space<vmem>>, vector<1x8x8x16xf32>
    tpu.vector_store %arg8[%c0_37, %c0_38, %c0_39, %c0_40], %56 {strides = array<i32>} : memref<1x8x8x16xf32, #tpu.memory_space<vmem>>, vector<1x8x8x16xf32>,
    %58 = vector.shape_cast %55 : vector<8x8x16xf32> to vector<4x2x8x16xf32>
    %59 = vector.extract_strided_slice %58 {offsets = [0, 0, 0, 0], sizes = [4, 1, 8, 16], strides = [1, 1, 1, 1]} : vector<4x2x8x16xf32> to vector<4x1x8x16xf32>
    %60 = vector.shape_cast %59 : vector<4x1x8x16xf32> to vector<4x8x16xf32>
    %61 = vector.extract_strided_slice %58 {offsets = [0, 1, 0, 0], sizes = [4, 1, 8, 16], strides = [1, 1, 1, 1]} : vector<4x2x8x16xf32> to vector<4x1x8x16xf32>
    %62 = vector.shape_cast %61 : vector<4x1x8x16xf32> to vector<4x8x16xf32>
    %63 = arith.maximumf %60, %62 : vector<4x8x16xf32>
    %64 = vector.extract_strided_slice %63 {offsets = [0, 0, 0], sizes = [4, 2, 16], strides = [1, 1, 1]} : vector<4x8x16xf32> to vector<4x2x16xf32>
    %65 = vector.extract_strided_slice %64 {offsets = [0, 0, 0], sizes = [4, 1, 16], strides = [1, 1, 1]} : vector<4x2x16xf32> to vector<4x1x16xf32>
    %66 = vector.extract_strided_slice %64 {offsets = [0, 1, 0], sizes = [4, 1, 16], strides = [1, 1, 1]} : vector<4x2x16xf32> to vector<4x1x16xf32>
    %67 = arith.maximumf %65, %66 : vector<4x1x16xf32>
    %68 = vector.extract_strided_slice %63 {offsets = [0, 2, 0], sizes = [4, 2, 16], strides = [1, 1, 1]} : vector<4x8x16xf32> to vector<4x2x16xf32>
    %69 = vector.extract_strided_slice %68 {offsets = [0, 0, 0], sizes = [4, 1, 16], strides = [1, 1, 1]} : vector<4x2x16xf32> to vector<4x1x16xf32>
    %70 = vector.extract_strided_slice %68 {offsets = [0, 1, 0], sizes = [4, 1, 16], strides = [1, 1, 1]} : vector<4x2x16xf32> to vector<4x1x16xf32>
    %71 = arith.maximumf %69, %70 : vector<4x1x16xf32>
    %72 = vector.extract_strided_slice %63 {offsets = [0, 4, 0], sizes = [4, 2, 16], strides = [1, 1, 1]} : vector<4x8x16xf32> to vector<4x2x16xf32>
    %73 = vector.extract_strided_slice %72 {offsets = [0, 0, 0], sizes = [4, 1, 16], strides = [1, 1, 1]} : vector<4x2x16xf32> to vector<4x1x16xf32>
    %74 = vector.extract_strided_slice %72 {offsets = [0, 1, 0], sizes = [4, 1, 16], strides = [1, 1, 1]} : vector<4x2x16xf32> to vector<4x1x16xf32>
    %75 = arith.maximumf %73, %74 : vector<4x1x16xf32>
    %76 = vector.extract_strided_slice %63 {offsets = [0, 6, 0], sizes = [4, 2, 16], strides = [1, 1, 1]} : vector<4x8x16xf32> to vector<4x2x16xf32>
    %77 = vector.extract_strided_slice %76 {offsets = [0, 0, 0], sizes = [4, 1, 16], strides = [1, 1, 1]} : vector<4x2x16xf32> to vector<4x1x16xf32>
    %78 = vector.extract_strided_slice %76 {offsets = [0, 1, 0], sizes = [4, 1, 16], strides = [1, 1, 1]} : vector<4x2x16xf32> to vector<4x1x16xf32>
    %79 = arith.maximumf %77, %78 : vector<4x1x16xf32>
    %80 = tpu.concatenate %67, %71, %75, %79 in 1 : vector<4x1x16xf32>, vector<4x1x16xf32>, vector<4x1x16xf32>, vector<4x1x16xf32> -> vector<4x4x16xf32>
    %81 = vector.shape_cast %80 : vector<4x4x16xf32> to vector<1x4x4x16xf32>
    %c0_41 = arith.constant 0 : index
    %c0_42 = arith.constant 0 : index
    %c0_43 = arith.constant 0 : index
    %c0_44 = arith.constant 0 : index
    %82 = vector.load %arg9[%c0_41, %c0_42, %c0_43, %c0_44] : memref<1x4x4x16xf32, #tpu.memory_space<vmem>>, vector<1x4x4x16xf32>
    tpu.vector_store %arg9[%c0_41, %c0_42, %c0_43, %c0_44], %81 {strides = array<i32>} : memref<1x4x4x16xf32, #tpu.memory_space<vmem>>, vector<1x4x4x16xf32>,
    return
  }
  func.func @transform_0(%arg0: i32) -> (i32, i32, i32, i32) {
    %c0_i32 = arith.constant 0 : i32
    %c0_i32_0 = arith.constant 0 : i32
    %c0_i32_1 = arith.constant 0 : i32
    %c0_i32_2 = arith.constant 0 : i32
    return %arg0, %c0_i32, %c0_i32_0, %c0_i32_1 : i32, i32, i32, i32
  }
  func.func @transform_1(%arg0: i32) -> (i32, i32) {
    %c0_i32 = arith.constant 0 : i32
    %c0_i32_0 = arith.constant 0 : i32
    %c0_i32_1 = arith.constant 0 : i32
    return %c0_i32, %c0_i32_0 : i32, i32
  }
  func.func @transform_2(%arg0: i32) -> (i32, i32) {
    %c0_i32 = arith.constant 0 : i32
    %c0_i32_0 = arith.constant 0 : i32
    %c0_i32_1 = arith.constant 0 : i32
    return %c0_i32, %c0_i32_0 : i32, i32
  }
  func.func @transform_3(%arg0: i32) -> (i32, i32) {
    %c0_i32 = arith.constant 0 : i32
    %c0_i32_0 = arith.constant 0 : i32
    %c0_i32_1 = arith.constant 0 : i32
    return %c0_i32, %c0_i32_0 : i32, i32
  }
  func.func @transform_4(%arg0: i32) -> (i32, i32) {
    %c0_i32 = arith.constant 0 : i32
    %c0_i32_0 = arith.constant 0 : i32
    %c0_i32_1 = arith.constant 0 : i32
    return %c0_i32, %c0_i32_0 : i32, i32
  }
  func.func @transform_5(%arg0: i32) -> (i32, i32) {
    %c0_i32 = arith.constant 0 : i32
    %c0_i32_0 = arith.constant 0 : i32
    %c0_i32_1 = arith.constant 0 : i32
    return %c0_i32, %c0_i32_0 : i32, i32
  }
  func.func @transform_6(%arg0: i32) -> (i32, i32) {
    %c0_i32 = arith.constant 0 : i32
    %c0_i32_0 = arith.constant 0 : i32
    %c0_i32_1 = arith.constant 0 : i32
    return %c0_i32, %c0_i32_0 : i32, i32
  }
  func.func @transform_7(%arg0: i32) -> (i32, i32, i32, i32) {
    %c0_i32 = arith.constant 0 : i32
    %c0_i32_0 = arith.constant 0 : i32
    %c0_i32_1 = arith.constant 0 : i32
    %c0_i32_2 = arith.constant 0 : i32
    return %arg0, %c0_i32, %c0_i32_0, %c0_i32_1 : i32, i32, i32, i32
  }
  func.func @transform_8(%arg0: i32) -> (i32, i32, i32, i32) {
    %c0_i32 = arith.constant 0 : i32
    %c0_i32_0 = arith.constant 0 : i32
    %c0_i32_1 = arith.constant 0 : i32
    %c0_i32_2 = arith.constant 0 : i32
    return %arg0, %c0_i32, %c0_i32_0, %c0_i32_1 : i32, i32, i32, i32
  }
}

module attributes {stable_mosaic.version = 11 : i64} {
  func.func @kernel(%arg0: i32, %arg1: memref<1x4x4x16xf32, #tpu.memory_space<vmem>>, %arg2: memref<144x32xbf16, #tpu.memory_space<vmem>>, %arg3: memref<1x32xf32, #tpu.memory_space<vmem>>, %arg4: memref<1x32xf32, #tpu.memory_space<vmem>>, %arg5: memref<288x32xbf16, #tpu.memory_space<vmem>>, %arg6: memref<1x32xf32, #tpu.memory_space<vmem>>, %arg7: memref<1x32xf32, #tpu.memory_space<vmem>>, %arg8: memref<1x4x4x32xf32, #tpu.memory_space<vmem>>, %arg9: memref<1x2x2x32xf32, #tpu.memory_space<vmem>>, %arg10: memref<6x6x16xf32, #tpu.memory_space<vmem>>, %arg11: memref<6x6x32xf32, #tpu.memory_space<vmem>>) attributes {dimension_semantics = [#tpu.dimension_semantics<parallel>], iteration_bounds = array<i64: 2>, scalar_prefetch = 0 : i64, scratch_operands = 2 : i64, tpu.core_type = #tpu.core_type<tc>, window_params = [{transform_indices = @transform_0, window_bounds = array<i64: 1, 4, 4, 16>}, {pipeline_mode = #tpu.pipeline_mode<synchronous>, transform_indices = @transform_1, window_bounds = array<i64: 144, 32>}, {pipeline_mode = #tpu.pipeline_mode<synchronous>, transform_indices = @transform_2, window_bounds = array<i64: 1, 32>}, {pipeline_mode = #tpu.pipeline_mode<synchronous>, transform_indices = @transform_3, window_bounds = array<i64: 1, 32>}, {pipeline_mode = #tpu.pipeline_mode<synchronous>, transform_indices = @transform_4, window_bounds = array<i64: 288, 32>}, {pipeline_mode = #tpu.pipeline_mode<synchronous>, transform_indices = @transform_5, window_bounds = array<i64: 1, 32>}, {pipeline_mode = #tpu.pipeline_mode<synchronous>, transform_indices = @transform_6, window_bounds = array<i64: 1, 32>}, {transform_indices = @transform_7, window_bounds = array<i64: 1, 4, 4, 32>}, {transform_indices = @transform_8, window_bounds = array<i64: 1, 2, 2, 32>}]} {
    %cst = arith.constant 0.000000e+00 : f32
    %0 = vector.broadcast %cst : f32 to vector<6x6x16xf32>
    %c0 = arith.constant 0 : index
    %c0_0 = arith.constant 0 : index
    %c0_1 = arith.constant 0 : index
    %1 = vector.load %arg10[%c0, %c0_0, %c0_1] : memref<6x6x16xf32, #tpu.memory_space<vmem>>, vector<6x6x16xf32>
    tpu.vector_store %arg10[%c0, %c0_0, %c0_1], %0 {strides = array<i32>} : memref<6x6x16xf32, #tpu.memory_space<vmem>>, vector<6x6x16xf32>,
    %c0_2 = arith.constant 0 : index
    %c0_3 = arith.constant 0 : index
    %c0_4 = arith.constant 0 : index
    %c0_5 = arith.constant 0 : index
    %2 = vector.load %arg1[%c0_2, %c0_3, %c0_4, %c0_5] : memref<1x4x4x16xf32, #tpu.memory_space<vmem>>, vector<1x4x4x16xf32>
    %3 = vector.shape_cast %2 : vector<1x4x4x16xf32> to vector<4x4x16xf32>
    %c1 = arith.constant 1 : index
    %c1_6 = arith.constant 1 : index
    %c0_7 = arith.constant 0 : index
    %4 = vector.load %arg10[%c1, %c1_6, %c0_7] : memref<6x6x16xf32, #tpu.memory_space<vmem>>, vector<4x4x16xf32>
    tpu.vector_store %arg10[%c1, %c1_6, %c0_7], %3 {strides = array<i32>} : memref<6x6x16xf32, #tpu.memory_space<vmem>>, vector<4x4x16xf32>,
    %c0_8 = arith.constant 0 : index
    %c0_9 = arith.constant 0 : index
    %c0_10 = arith.constant 0 : index
    %5 = vector.load %arg10[%c0_8, %c0_9, %c0_10] : memref<6x6x16xf32, #tpu.memory_space<vmem>>, vector<6x6x16xf32>
    %6 = vector.extract_strided_slice %5 {offsets = [0, 0, 0], sizes = [4, 4, 16], strides = [1, 1, 1]} : vector<6x6x16xf32> to vector<4x4x16xf32>
    %7 = vector.extract_strided_slice %5 {offsets = [0, 1, 0], sizes = [4, 4, 16], strides = [1, 1, 1]} : vector<6x6x16xf32> to vector<4x4x16xf32>
    %8 = vector.extract_strided_slice %5 {offsets = [0, 2, 0], sizes = [4, 4, 16], strides = [1, 1, 1]} : vector<6x6x16xf32> to vector<4x4x16xf32>
    %9 = vector.extract_strided_slice %5 {offsets = [1, 0, 0], sizes = [4, 4, 16], strides = [1, 1, 1]} : vector<6x6x16xf32> to vector<4x4x16xf32>
    %10 = vector.extract_strided_slice %5 {offsets = [1, 1, 0], sizes = [4, 4, 16], strides = [1, 1, 1]} : vector<6x6x16xf32> to vector<4x4x16xf32>
    %11 = vector.extract_strided_slice %5 {offsets = [1, 2, 0], sizes = [4, 4, 16], strides = [1, 1, 1]} : vector<6x6x16xf32> to vector<4x4x16xf32>
    %12 = vector.extract_strided_slice %5 {offsets = [2, 0, 0], sizes = [4, 4, 16], strides = [1, 1, 1]} : vector<6x6x16xf32> to vector<4x4x16xf32>
    %13 = vector.extract_strided_slice %5 {offsets = [2, 1, 0], sizes = [4, 4, 16], strides = [1, 1, 1]} : vector<6x6x16xf32> to vector<4x4x16xf32>
    %14 = vector.extract_strided_slice %5 {offsets = [2, 2, 0], sizes = [4, 4, 16], strides = [1, 1, 1]} : vector<6x6x16xf32> to vector<4x4x16xf32>
    %15 = tpu.concatenate %6, %7, %8, %9, %10, %11, %12, %13, %14 in 2 : vector<4x4x16xf32>, vector<4x4x16xf32>, vector<4x4x16xf32>, vector<4x4x16xf32>, vector<4x4x16xf32>, vector<4x4x16xf32>, vector<4x4x16xf32>, vector<4x4x16xf32>, vector<4x4x16xf32> -> vector<4x4x144xf32>
    %16 = vector.shape_cast %15 : vector<4x4x144xf32> to vector<16x144xf32>
    %17 = arith.truncf %16 : vector<16x144xf32> to vector<16x144xbf16>
    %c0_11 = arith.constant 0 : index
    %c0_12 = arith.constant 0 : index
    %18 = vector.load %arg2[%c0_11, %c0_12] : memref<144x32xbf16, #tpu.memory_space<vmem>>, vector<144x32xbf16>
    %cst_13 = arith.constant dense<0.000000e+00> : vector<16x32xf32>
    %19 = tpu.matmul %17, %18, %cst_13 {dimension_numbers = #tpu.dot_dimension_numbers<[1], [0], [0], [1], [0, 0, 1, 1], [], []>} : vector<16x144xbf16>, vector<144x32xbf16>, vector<16x32xf32> -> vector<16x32xf32>
    %c0_14 = arith.constant 0 : index
    %c0_15 = arith.constant 0 : index
    %20 = vector.load %arg3[%c0_14, %c0_15] : memref<1x32xf32, #tpu.memory_space<vmem>>, vector<1x32xf32>
    %21 = vector.broadcast %20 : vector<1x32xf32> to vector<16x32xf32>
    %22 = arith.mulf %19, %21 : vector<16x32xf32>
    %c0_16 = arith.constant 0 : index
    %c0_17 = arith.constant 0 : index
    %23 = vector.load %arg4[%c0_16, %c0_17] : memref<1x32xf32, #tpu.memory_space<vmem>>, vector<1x32xf32>
    %24 = vector.broadcast %23 : vector<1x32xf32> to vector<16x32xf32>
    %25 = arith.addf %22, %24 : vector<16x32xf32>
    %cst_18 = arith.constant 0.000000e+00 : f32
    %26 = vector.broadcast %cst_18 : f32 to vector<16x32xf32>
    %27 = arith.maximumf %25, %26 : vector<16x32xf32>
    %cst_19 = arith.constant 0.000000e+00 : f32
    %28 = vector.broadcast %cst_19 : f32 to vector<6x6x32xf32>
    %c0_20 = arith.constant 0 : index
    %c0_21 = arith.constant 0 : index
    %c0_22 = arith.constant 0 : index
    %29 = vector.load %arg11[%c0_20, %c0_21, %c0_22] : memref<6x6x32xf32, #tpu.memory_space<vmem>>, vector<6x6x32xf32>
    tpu.vector_store %arg11[%c0_20, %c0_21, %c0_22], %28 {strides = array<i32>} : memref<6x6x32xf32, #tpu.memory_space<vmem>>, vector<6x6x32xf32>,
    %30 = vector.shape_cast %27 : vector<16x32xf32> to vector<4x4x32xf32>
    %c1_23 = arith.constant 1 : index
    %c1_24 = arith.constant 1 : index
    %c0_25 = arith.constant 0 : index
    %31 = vector.load %arg11[%c1_23, %c1_24, %c0_25] : memref<6x6x32xf32, #tpu.memory_space<vmem>>, vector<4x4x32xf32>
    tpu.vector_store %arg11[%c1_23, %c1_24, %c0_25], %30 {strides = array<i32>} : memref<6x6x32xf32, #tpu.memory_space<vmem>>, vector<4x4x32xf32>,
    %c0_26 = arith.constant 0 : index
    %c0_27 = arith.constant 0 : index
    %c0_28 = arith.constant 0 : index
    %32 = vector.load %arg11[%c0_26, %c0_27, %c0_28] : memref<6x6x32xf32, #tpu.memory_space<vmem>>, vector<6x6x32xf32>
    %33 = vector.extract_strided_slice %32 {offsets = [0, 0, 0], sizes = [4, 4, 32], strides = [1, 1, 1]} : vector<6x6x32xf32> to vector<4x4x32xf32>
    %34 = vector.extract_strided_slice %32 {offsets = [0, 1, 0], sizes = [4, 4, 32], strides = [1, 1, 1]} : vector<6x6x32xf32> to vector<4x4x32xf32>
    %35 = vector.extract_strided_slice %32 {offsets = [0, 2, 0], sizes = [4, 4, 32], strides = [1, 1, 1]} : vector<6x6x32xf32> to vector<4x4x32xf32>
    %36 = vector.extract_strided_slice %32 {offsets = [1, 0, 0], sizes = [4, 4, 32], strides = [1, 1, 1]} : vector<6x6x32xf32> to vector<4x4x32xf32>
    %37 = vector.extract_strided_slice %32 {offsets = [1, 1, 0], sizes = [4, 4, 32], strides = [1, 1, 1]} : vector<6x6x32xf32> to vector<4x4x32xf32>
    %38 = vector.extract_strided_slice %32 {offsets = [1, 2, 0], sizes = [4, 4, 32], strides = [1, 1, 1]} : vector<6x6x32xf32> to vector<4x4x32xf32>
    %39 = vector.extract_strided_slice %32 {offsets = [2, 0, 0], sizes = [4, 4, 32], strides = [1, 1, 1]} : vector<6x6x32xf32> to vector<4x4x32xf32>
    %40 = vector.extract_strided_slice %32 {offsets = [2, 1, 0], sizes = [4, 4, 32], strides = [1, 1, 1]} : vector<6x6x32xf32> to vector<4x4x32xf32>
    %41 = vector.extract_strided_slice %32 {offsets = [2, 2, 0], sizes = [4, 4, 32], strides = [1, 1, 1]} : vector<6x6x32xf32> to vector<4x4x32xf32>
    %42 = tpu.concatenate %33, %34, %35, %36, %37, %38, %39, %40, %41 in 2 : vector<4x4x32xf32>, vector<4x4x32xf32>, vector<4x4x32xf32>, vector<4x4x32xf32>, vector<4x4x32xf32>, vector<4x4x32xf32>, vector<4x4x32xf32>, vector<4x4x32xf32>, vector<4x4x32xf32> -> vector<4x4x288xf32>
    %43 = vector.shape_cast %42 : vector<4x4x288xf32> to vector<16x288xf32>
    %44 = arith.truncf %43 : vector<16x288xf32> to vector<16x288xbf16>
    %c0_29 = arith.constant 0 : index
    %c0_30 = arith.constant 0 : index
    %45 = vector.load %arg5[%c0_29, %c0_30] : memref<288x32xbf16, #tpu.memory_space<vmem>>, vector<288x32xbf16>
    %cst_31 = arith.constant dense<0.000000e+00> : vector<16x32xf32>
    %46 = tpu.matmul %44, %45, %cst_31 {dimension_numbers = #tpu.dot_dimension_numbers<[1], [0], [0], [1], [0, 0, 1, 1], [], []>} : vector<16x288xbf16>, vector<288x32xbf16>, vector<16x32xf32> -> vector<16x32xf32>
    %c0_32 = arith.constant 0 : index
    %c0_33 = arith.constant 0 : index
    %47 = vector.load %arg6[%c0_32, %c0_33] : memref<1x32xf32, #tpu.memory_space<vmem>>, vector<1x32xf32>
    %48 = vector.broadcast %47 : vector<1x32xf32> to vector<16x32xf32>
    %49 = arith.mulf %46, %48 : vector<16x32xf32>
    %c0_34 = arith.constant 0 : index
    %c0_35 = arith.constant 0 : index
    %50 = vector.load %arg7[%c0_34, %c0_35] : memref<1x32xf32, #tpu.memory_space<vmem>>, vector<1x32xf32>
    %51 = vector.broadcast %50 : vector<1x32xf32> to vector<16x32xf32>
    %52 = arith.addf %49, %51 : vector<16x32xf32>
    %cst_36 = arith.constant 0.000000e+00 : f32
    %53 = vector.broadcast %cst_36 : f32 to vector<16x32xf32>
    %54 = arith.maximumf %52, %53 : vector<16x32xf32>
    %55 = vector.shape_cast %54 : vector<16x32xf32> to vector<4x4x32xf32>
    %56 = vector.shape_cast %55 : vector<4x4x32xf32> to vector<1x4x4x32xf32>
    %c0_37 = arith.constant 0 : index
    %c0_38 = arith.constant 0 : index
    %c0_39 = arith.constant 0 : index
    %c0_40 = arith.constant 0 : index
    %57 = vector.load %arg8[%c0_37, %c0_38, %c0_39, %c0_40] : memref<1x4x4x32xf32, #tpu.memory_space<vmem>>, vector<1x4x4x32xf32>
    tpu.vector_store %arg8[%c0_37, %c0_38, %c0_39, %c0_40], %56 {strides = array<i32>} : memref<1x4x4x32xf32, #tpu.memory_space<vmem>>, vector<1x4x4x32xf32>,
    %58 = vector.shape_cast %55 : vector<4x4x32xf32> to vector<2x2x4x32xf32>
    %59 = vector.extract_strided_slice %58 {offsets = [0, 0, 0, 0], sizes = [2, 1, 4, 32], strides = [1, 1, 1, 1]} : vector<2x2x4x32xf32> to vector<2x1x4x32xf32>
    %60 = vector.shape_cast %59 : vector<2x1x4x32xf32> to vector<2x4x32xf32>
    %61 = vector.extract_strided_slice %58 {offsets = [0, 1, 0, 0], sizes = [2, 1, 4, 32], strides = [1, 1, 1, 1]} : vector<2x2x4x32xf32> to vector<2x1x4x32xf32>
    %62 = vector.shape_cast %61 : vector<2x1x4x32xf32> to vector<2x4x32xf32>
    %63 = arith.maximumf %60, %62 : vector<2x4x32xf32>
    %64 = vector.extract_strided_slice %63 {offsets = [0, 0, 0], sizes = [2, 2, 32], strides = [1, 1, 1]} : vector<2x4x32xf32> to vector<2x2x32xf32>
    %65 = vector.extract_strided_slice %64 {offsets = [0, 0, 0], sizes = [2, 1, 32], strides = [1, 1, 1]} : vector<2x2x32xf32> to vector<2x1x32xf32>
    %66 = vector.extract_strided_slice %64 {offsets = [0, 1, 0], sizes = [2, 1, 32], strides = [1, 1, 1]} : vector<2x2x32xf32> to vector<2x1x32xf32>
    %67 = arith.maximumf %65, %66 : vector<2x1x32xf32>
    %68 = vector.extract_strided_slice %63 {offsets = [0, 2, 0], sizes = [2, 2, 32], strides = [1, 1, 1]} : vector<2x4x32xf32> to vector<2x2x32xf32>
    %69 = vector.extract_strided_slice %68 {offsets = [0, 0, 0], sizes = [2, 1, 32], strides = [1, 1, 1]} : vector<2x2x32xf32> to vector<2x1x32xf32>
    %70 = vector.extract_strided_slice %68 {offsets = [0, 1, 0], sizes = [2, 1, 32], strides = [1, 1, 1]} : vector<2x2x32xf32> to vector<2x1x32xf32>
    %71 = arith.maximumf %69, %70 : vector<2x1x32xf32>
    %72 = tpu.concatenate %67, %71 in 1 : vector<2x1x32xf32>, vector<2x1x32xf32> -> vector<2x2x32xf32>
    %73 = vector.shape_cast %72 : vector<2x2x32xf32> to vector<1x2x2x32xf32>
    %c0_41 = arith.constant 0 : index
    %c0_42 = arith.constant 0 : index
    %c0_43 = arith.constant 0 : index
    %c0_44 = arith.constant 0 : index
    %74 = vector.load %arg9[%c0_41, %c0_42, %c0_43, %c0_44] : memref<1x2x2x32xf32, #tpu.memory_space<vmem>>, vector<1x2x2x32xf32>
    tpu.vector_store %arg9[%c0_41, %c0_42, %c0_43, %c0_44], %73 {strides = array<i32>} : memref<1x2x2x32xf32, #tpu.memory_space<vmem>>, vector<1x2x2x32xf32>,
    return
  }
  func.func @transform_0(%arg0: i32) -> (i32, i32, i32, i32) {
    %c0_i32 = arith.constant 0 : i32
    %c0_i32_0 = arith.constant 0 : i32
    %c0_i32_1 = arith.constant 0 : i32
    %c0_i32_2 = arith.constant 0 : i32
    return %arg0, %c0_i32, %c0_i32_0, %c0_i32_1 : i32, i32, i32, i32
  }
  func.func @transform_1(%arg0: i32) -> (i32, i32) {
    %c0_i32 = arith.constant 0 : i32
    %c0_i32_0 = arith.constant 0 : i32
    %c0_i32_1 = arith.constant 0 : i32
    return %c0_i32, %c0_i32_0 : i32, i32
  }
  func.func @transform_2(%arg0: i32) -> (i32, i32) {
    %c0_i32 = arith.constant 0 : i32
    %c0_i32_0 = arith.constant 0 : i32
    %c0_i32_1 = arith.constant 0 : i32
    return %c0_i32, %c0_i32_0 : i32, i32
  }
  func.func @transform_3(%arg0: i32) -> (i32, i32) {
    %c0_i32 = arith.constant 0 : i32
    %c0_i32_0 = arith.constant 0 : i32
    %c0_i32_1 = arith.constant 0 : i32
    return %c0_i32, %c0_i32_0 : i32, i32
  }
  func.func @transform_4(%arg0: i32) -> (i32, i32) {
    %c0_i32 = arith.constant 0 : i32
    %c0_i32_0 = arith.constant 0 : i32
    %c0_i32_1 = arith.constant 0 : i32
    return %c0_i32, %c0_i32_0 : i32, i32
  }
  func.func @transform_5(%arg0: i32) -> (i32, i32) {
    %c0_i32 = arith.constant 0 : i32
    %c0_i32_0 = arith.constant 0 : i32
    %c0_i32_1 = arith.constant 0 : i32
    return %c0_i32, %c0_i32_0 : i32, i32
  }
  func.func @transform_6(%arg0: i32) -> (i32, i32) {
    %c0_i32 = arith.constant 0 : i32
    %c0_i32_0 = arith.constant 0 : i32
    %c0_i32_1 = arith.constant 0 : i32
    return %c0_i32, %c0_i32_0 : i32, i32
  }
  func.func @transform_7(%arg0: i32) -> (i32, i32, i32, i32) {
    %c0_i32 = arith.constant 0 : i32
    %c0_i32_0 = arith.constant 0 : i32
    %c0_i32_1 = arith.constant 0 : i32
    %c0_i32_2 = arith.constant 0 : i32
    return %arg0, %c0_i32, %c0_i32_0, %c0_i32_1 : i32, i32, i32, i32
  }
  func.func @transform_8(%arg0: i32) -> (i32, i32, i32, i32) {
    %c0_i32 = arith.constant 0 : i32
    %c0_i32_0 = arith.constant 0 : i32
    %c0_i32_1 = arith.constant 0 : i32
    %c0_i32_2 = arith.constant 0 : i32
    return %arg0, %c0_i32, %c0_i32_0, %c0_i32_1 : i32, i32, i32, i32
  }
}

module attributes {stable_mosaic.version = 11 : i64} {
  func.func @kernel(%arg0: i32, %arg1: memref<1x2x2x32xf32, #tpu.memory_space<vmem>>, %arg2: memref<288x64xbf16, #tpu.memory_space<vmem>>, %arg3: memref<1x64xf32, #tpu.memory_space<vmem>>, %arg4: memref<1x64xf32, #tpu.memory_space<vmem>>, %arg5: memref<576x64xbf16, #tpu.memory_space<vmem>>, %arg6: memref<1x64xf32, #tpu.memory_space<vmem>>, %arg7: memref<1x64xf32, #tpu.memory_space<vmem>>, %arg8: memref<1x2x2x64xf32, #tpu.memory_space<vmem>>, %arg9: memref<1x1x1x64xf32, #tpu.memory_space<vmem>>, %arg10: memref<4x4x32xf32, #tpu.memory_space<vmem>>, %arg11: memref<4x4x64xf32, #tpu.memory_space<vmem>>) attributes {dimension_semantics = [#tpu.dimension_semantics<parallel>], iteration_bounds = array<i64: 2>, scalar_prefetch = 0 : i64, scratch_operands = 2 : i64, tpu.core_type = #tpu.core_type<tc>, window_params = [{transform_indices = @transform_0, window_bounds = array<i64: 1, 2, 2, 32>}, {pipeline_mode = #tpu.pipeline_mode<synchronous>, transform_indices = @transform_1, window_bounds = array<i64: 288, 64>}, {pipeline_mode = #tpu.pipeline_mode<synchronous>, transform_indices = @transform_2, window_bounds = array<i64: 1, 64>}, {pipeline_mode = #tpu.pipeline_mode<synchronous>, transform_indices = @transform_3, window_bounds = array<i64: 1, 64>}, {pipeline_mode = #tpu.pipeline_mode<synchronous>, transform_indices = @transform_4, window_bounds = array<i64: 576, 64>}, {pipeline_mode = #tpu.pipeline_mode<synchronous>, transform_indices = @transform_5, window_bounds = array<i64: 1, 64>}, {pipeline_mode = #tpu.pipeline_mode<synchronous>, transform_indices = @transform_6, window_bounds = array<i64: 1, 64>}, {transform_indices = @transform_7, window_bounds = array<i64: 1, 2, 2, 64>}, {transform_indices = @transform_8, window_bounds = array<i64: 1, 1, 1, 64>}]} {
    %cst = arith.constant 0.000000e+00 : f32
    %0 = vector.broadcast %cst : f32 to vector<4x4x32xf32>
    %c0 = arith.constant 0 : index
    %c0_0 = arith.constant 0 : index
    %c0_1 = arith.constant 0 : index
    %1 = vector.load %arg10[%c0, %c0_0, %c0_1] : memref<4x4x32xf32, #tpu.memory_space<vmem>>, vector<4x4x32xf32>
    tpu.vector_store %arg10[%c0, %c0_0, %c0_1], %0 {strides = array<i32>} : memref<4x4x32xf32, #tpu.memory_space<vmem>>, vector<4x4x32xf32>,
    %c0_2 = arith.constant 0 : index
    %c0_3 = arith.constant 0 : index
    %c0_4 = arith.constant 0 : index
    %c0_5 = arith.constant 0 : index
    %2 = vector.load %arg1[%c0_2, %c0_3, %c0_4, %c0_5] : memref<1x2x2x32xf32, #tpu.memory_space<vmem>>, vector<1x2x2x32xf32>
    %3 = vector.shape_cast %2 : vector<1x2x2x32xf32> to vector<2x2x32xf32>
    %c1 = arith.constant 1 : index
    %c1_6 = arith.constant 1 : index
    %c0_7 = arith.constant 0 : index
    %4 = vector.load %arg10[%c1, %c1_6, %c0_7] : memref<4x4x32xf32, #tpu.memory_space<vmem>>, vector<2x2x32xf32>
    tpu.vector_store %arg10[%c1, %c1_6, %c0_7], %3 {strides = array<i32>} : memref<4x4x32xf32, #tpu.memory_space<vmem>>, vector<2x2x32xf32>,
    %c0_8 = arith.constant 0 : index
    %c0_9 = arith.constant 0 : index
    %c0_10 = arith.constant 0 : index
    %5 = vector.load %arg10[%c0_8, %c0_9, %c0_10] : memref<4x4x32xf32, #tpu.memory_space<vmem>>, vector<4x4x32xf32>
    %6 = vector.extract_strided_slice %5 {offsets = [0, 0, 0], sizes = [2, 2, 32], strides = [1, 1, 1]} : vector<4x4x32xf32> to vector<2x2x32xf32>
    %7 = vector.extract_strided_slice %5 {offsets = [0, 1, 0], sizes = [2, 2, 32], strides = [1, 1, 1]} : vector<4x4x32xf32> to vector<2x2x32xf32>
    %8 = vector.extract_strided_slice %5 {offsets = [0, 2, 0], sizes = [2, 2, 32], strides = [1, 1, 1]} : vector<4x4x32xf32> to vector<2x2x32xf32>
    %9 = vector.extract_strided_slice %5 {offsets = [1, 0, 0], sizes = [2, 2, 32], strides = [1, 1, 1]} : vector<4x4x32xf32> to vector<2x2x32xf32>
    %10 = vector.extract_strided_slice %5 {offsets = [1, 1, 0], sizes = [2, 2, 32], strides = [1, 1, 1]} : vector<4x4x32xf32> to vector<2x2x32xf32>
    %11 = vector.extract_strided_slice %5 {offsets = [1, 2, 0], sizes = [2, 2, 32], strides = [1, 1, 1]} : vector<4x4x32xf32> to vector<2x2x32xf32>
    %12 = vector.extract_strided_slice %5 {offsets = [2, 0, 0], sizes = [2, 2, 32], strides = [1, 1, 1]} : vector<4x4x32xf32> to vector<2x2x32xf32>
    %13 = vector.extract_strided_slice %5 {offsets = [2, 1, 0], sizes = [2, 2, 32], strides = [1, 1, 1]} : vector<4x4x32xf32> to vector<2x2x32xf32>
    %14 = vector.extract_strided_slice %5 {offsets = [2, 2, 0], sizes = [2, 2, 32], strides = [1, 1, 1]} : vector<4x4x32xf32> to vector<2x2x32xf32>
    %15 = tpu.concatenate %6, %7, %8, %9, %10, %11, %12, %13, %14 in 2 : vector<2x2x32xf32>, vector<2x2x32xf32>, vector<2x2x32xf32>, vector<2x2x32xf32>, vector<2x2x32xf32>, vector<2x2x32xf32>, vector<2x2x32xf32>, vector<2x2x32xf32>, vector<2x2x32xf32> -> vector<2x2x288xf32>
    %16 = vector.shape_cast %15 : vector<2x2x288xf32> to vector<4x288xf32>
    %17 = arith.truncf %16 : vector<4x288xf32> to vector<4x288xbf16>
    %c0_11 = arith.constant 0 : index
    %c0_12 = arith.constant 0 : index
    %18 = vector.load %arg2[%c0_11, %c0_12] : memref<288x64xbf16, #tpu.memory_space<vmem>>, vector<288x64xbf16>
    %cst_13 = arith.constant dense<0.000000e+00> : vector<4x64xf32>
    %19 = tpu.matmul %17, %18, %cst_13 {dimension_numbers = #tpu.dot_dimension_numbers<[1], [0], [0], [1], [0, 0, 1, 1], [], []>} : vector<4x288xbf16>, vector<288x64xbf16>, vector<4x64xf32> -> vector<4x64xf32>
    %c0_14 = arith.constant 0 : index
    %c0_15 = arith.constant 0 : index
    %20 = vector.load %arg3[%c0_14, %c0_15] : memref<1x64xf32, #tpu.memory_space<vmem>>, vector<1x64xf32>
    %21 = vector.broadcast %20 : vector<1x64xf32> to vector<4x64xf32>
    %22 = arith.mulf %19, %21 : vector<4x64xf32>
    %c0_16 = arith.constant 0 : index
    %c0_17 = arith.constant 0 : index
    %23 = vector.load %arg4[%c0_16, %c0_17] : memref<1x64xf32, #tpu.memory_space<vmem>>, vector<1x64xf32>
    %24 = vector.broadcast %23 : vector<1x64xf32> to vector<4x64xf32>
    %25 = arith.addf %22, %24 : vector<4x64xf32>
    %cst_18 = arith.constant 0.000000e+00 : f32
    %26 = vector.broadcast %cst_18 : f32 to vector<4x64xf32>
    %27 = arith.maximumf %25, %26 : vector<4x64xf32>
    %cst_19 = arith.constant 0.000000e+00 : f32
    %28 = vector.broadcast %cst_19 : f32 to vector<4x4x64xf32>
    %c0_20 = arith.constant 0 : index
    %c0_21 = arith.constant 0 : index
    %c0_22 = arith.constant 0 : index
    %29 = vector.load %arg11[%c0_20, %c0_21, %c0_22] : memref<4x4x64xf32, #tpu.memory_space<vmem>>, vector<4x4x64xf32>
    tpu.vector_store %arg11[%c0_20, %c0_21, %c0_22], %28 {strides = array<i32>} : memref<4x4x64xf32, #tpu.memory_space<vmem>>, vector<4x4x64xf32>,
    %30 = vector.shape_cast %27 : vector<4x64xf32> to vector<2x2x64xf32>
    %c1_23 = arith.constant 1 : index
    %c1_24 = arith.constant 1 : index
    %c0_25 = arith.constant 0 : index
    %31 = vector.load %arg11[%c1_23, %c1_24, %c0_25] : memref<4x4x64xf32, #tpu.memory_space<vmem>>, vector<2x2x64xf32>
    tpu.vector_store %arg11[%c1_23, %c1_24, %c0_25], %30 {strides = array<i32>} : memref<4x4x64xf32, #tpu.memory_space<vmem>>, vector<2x2x64xf32>,
    %c0_26 = arith.constant 0 : index
    %c0_27 = arith.constant 0 : index
    %c0_28 = arith.constant 0 : index
    %32 = vector.load %arg11[%c0_26, %c0_27, %c0_28] : memref<4x4x64xf32, #tpu.memory_space<vmem>>, vector<4x4x64xf32>
    %33 = vector.extract_strided_slice %32 {offsets = [0, 0, 0], sizes = [2, 2, 64], strides = [1, 1, 1]} : vector<4x4x64xf32> to vector<2x2x64xf32>
    %34 = vector.extract_strided_slice %32 {offsets = [0, 1, 0], sizes = [2, 2, 64], strides = [1, 1, 1]} : vector<4x4x64xf32> to vector<2x2x64xf32>
    %35 = vector.extract_strided_slice %32 {offsets = [0, 2, 0], sizes = [2, 2, 64], strides = [1, 1, 1]} : vector<4x4x64xf32> to vector<2x2x64xf32>
    %36 = vector.extract_strided_slice %32 {offsets = [1, 0, 0], sizes = [2, 2, 64], strides = [1, 1, 1]} : vector<4x4x64xf32> to vector<2x2x64xf32>
    %37 = vector.extract_strided_slice %32 {offsets = [1, 1, 0], sizes = [2, 2, 64], strides = [1, 1, 1]} : vector<4x4x64xf32> to vector<2x2x64xf32>
    %38 = vector.extract_strided_slice %32 {offsets = [1, 2, 0], sizes = [2, 2, 64], strides = [1, 1, 1]} : vector<4x4x64xf32> to vector<2x2x64xf32>
    %39 = vector.extract_strided_slice %32 {offsets = [2, 0, 0], sizes = [2, 2, 64], strides = [1, 1, 1]} : vector<4x4x64xf32> to vector<2x2x64xf32>
    %40 = vector.extract_strided_slice %32 {offsets = [2, 1, 0], sizes = [2, 2, 64], strides = [1, 1, 1]} : vector<4x4x64xf32> to vector<2x2x64xf32>
    %41 = vector.extract_strided_slice %32 {offsets = [2, 2, 0], sizes = [2, 2, 64], strides = [1, 1, 1]} : vector<4x4x64xf32> to vector<2x2x64xf32>
    %42 = tpu.concatenate %33, %34, %35, %36, %37, %38, %39, %40, %41 in 2 : vector<2x2x64xf32>, vector<2x2x64xf32>, vector<2x2x64xf32>, vector<2x2x64xf32>, vector<2x2x64xf32>, vector<2x2x64xf32>, vector<2x2x64xf32>, vector<2x2x64xf32>, vector<2x2x64xf32> -> vector<2x2x576xf32>
    %43 = vector.shape_cast %42 : vector<2x2x576xf32> to vector<4x576xf32>
    %44 = arith.truncf %43 : vector<4x576xf32> to vector<4x576xbf16>
    %c0_29 = arith.constant 0 : index
    %c0_30 = arith.constant 0 : index
    %45 = vector.load %arg5[%c0_29, %c0_30] : memref<576x64xbf16, #tpu.memory_space<vmem>>, vector<576x64xbf16>
    %cst_31 = arith.constant dense<0.000000e+00> : vector<4x64xf32>
    %46 = tpu.matmul %44, %45, %cst_31 {dimension_numbers = #tpu.dot_dimension_numbers<[1], [0], [0], [1], [0, 0, 1, 1], [], []>} : vector<4x576xbf16>, vector<576x64xbf16>, vector<4x64xf32> -> vector<4x64xf32>
    %c0_32 = arith.constant 0 : index
    %c0_33 = arith.constant 0 : index
    %47 = vector.load %arg6[%c0_32, %c0_33] : memref<1x64xf32, #tpu.memory_space<vmem>>, vector<1x64xf32>
    %48 = vector.broadcast %47 : vector<1x64xf32> to vector<4x64xf32>
    %49 = arith.mulf %46, %48 : vector<4x64xf32>
    %c0_34 = arith.constant 0 : index
    %c0_35 = arith.constant 0 : index
    %50 = vector.load %arg7[%c0_34, %c0_35] : memref<1x64xf32, #tpu.memory_space<vmem>>, vector<1x64xf32>
    %51 = vector.broadcast %50 : vector<1x64xf32> to vector<4x64xf32>
    %52 = arith.addf %49, %51 : vector<4x64xf32>
    %cst_36 = arith.constant 0.000000e+00 : f32
    %53 = vector.broadcast %cst_36 : f32 to vector<4x64xf32>
    %54 = arith.maximumf %52, %53 : vector<4x64xf32>
    %55 = vector.shape_cast %54 : vector<4x64xf32> to vector<2x2x64xf32>
    %56 = vector.shape_cast %55 : vector<2x2x64xf32> to vector<1x2x2x64xf32>
    %c0_37 = arith.constant 0 : index
    %c0_38 = arith.constant 0 : index
    %c0_39 = arith.constant 0 : index
    %c0_40 = arith.constant 0 : index
    %57 = vector.load %arg8[%c0_37, %c0_38, %c0_39, %c0_40] : memref<1x2x2x64xf32, #tpu.memory_space<vmem>>, vector<1x2x2x64xf32>
    tpu.vector_store %arg8[%c0_37, %c0_38, %c0_39, %c0_40], %56 {strides = array<i32>} : memref<1x2x2x64xf32, #tpu.memory_space<vmem>>, vector<1x2x2x64xf32>,
    %58 = vector.shape_cast %55 : vector<2x2x64xf32> to vector<1x2x2x64xf32>
    %59 = vector.extract_strided_slice %58 {offsets = [0, 0, 0, 0], sizes = [1, 1, 2, 64], strides = [1, 1, 1, 1]} : vector<1x2x2x64xf32> to vector<1x1x2x64xf32>
    %60 = vector.shape_cast %59 : vector<1x1x2x64xf32> to vector<1x2x64xf32>
    %61 = vector.extract_strided_slice %58 {offsets = [0, 1, 0, 0], sizes = [1, 1, 2, 64], strides = [1, 1, 1, 1]} : vector<1x2x2x64xf32> to vector<1x1x2x64xf32>
    %62 = vector.shape_cast %61 : vector<1x1x2x64xf32> to vector<1x2x64xf32>
    %63 = arith.maximumf %60, %62 : vector<1x2x64xf32>
    %64 = vector.extract_strided_slice %63 {offsets = [0, 0, 0], sizes = [1, 1, 64], strides = [1, 1, 1]} : vector<1x2x64xf32> to vector<1x1x64xf32>
    %65 = vector.extract_strided_slice %63 {offsets = [0, 1, 0], sizes = [1, 1, 64], strides = [1, 1, 1]} : vector<1x2x64xf32> to vector<1x1x64xf32>
    %66 = arith.maximumf %64, %65 : vector<1x1x64xf32>
    %67 = vector.shape_cast %66 : vector<1x1x64xf32> to vector<1x1x1x64xf32>
    %c0_41 = arith.constant 0 : index
    %c0_42 = arith.constant 0 : index
    %c0_43 = arith.constant 0 : index
    %c0_44 = arith.constant 0 : index
    %68 = vector.load %arg9[%c0_41, %c0_42, %c0_43, %c0_44] : memref<1x1x1x64xf32, #tpu.memory_space<vmem>>, vector<1x1x1x64xf32>
    tpu.vector_store %arg9[%c0_41, %c0_42, %c0_43, %c0_44], %67 {strides = array<i32>} : memref<1x1x1x64xf32, #tpu.memory_space<vmem>>, vector<1x1x1x64xf32>,
    return
  }
  func.func @transform_0(%arg0: i32) -> (i32, i32, i32, i32) {
    %c0_i32 = arith.constant 0 : i32
    %c0_i32_0 = arith.constant 0 : i32
    %c0_i32_1 = arith.constant 0 : i32
    %c0_i32_2 = arith.constant 0 : i32
    return %arg0, %c0_i32, %c0_i32_0, %c0_i32_1 : i32, i32, i32, i32
  }
  func.func @transform_1(%arg0: i32) -> (i32, i32) {
    %c0_i32 = arith.constant 0 : i32
    %c0_i32_0 = arith.constant 0 : i32
    %c0_i32_1 = arith.constant 0 : i32
    return %c0_i32, %c0_i32_0 : i32, i32
  }
  func.func @transform_2(%arg0: i32) -> (i32, i32) {
    %c0_i32 = arith.constant 0 : i32
    %c0_i32_0 = arith.constant 0 : i32
    %c0_i32_1 = arith.constant 0 : i32
    return %c0_i32, %c0_i32_0 : i32, i32
  }
  func.func @transform_3(%arg0: i32) -> (i32, i32) {
    %c0_i32 = arith.constant 0 : i32
    %c0_i32_0 = arith.constant 0 : i32
    %c0_i32_1 = arith.constant 0 : i32
    return %c0_i32, %c0_i32_0 : i32, i32
  }
  func.func @transform_4(%arg0: i32) -> (i32, i32) {
    %c0_i32 = arith.constant 0 : i32
    %c0_i32_0 = arith.constant 0 : i32
    %c0_i32_1 = arith.constant 0 : i32
    return %c0_i32, %c0_i32_0 : i32, i32
  }
  func.func @transform_5(%arg0: i32) -> (i32, i32) {
    %c0_i32 = arith.constant 0 : i32
    %c0_i32_0 = arith.constant 0 : i32
    %c0_i32_1 = arith.constant 0 : i32
    return %c0_i32, %c0_i32_0 : i32, i32
  }
  func.func @transform_6(%arg0: i32) -> (i32, i32) {
    %c0_i32 = arith.constant 0 : i32
    %c0_i32_0 = arith.constant 0 : i32
    %c0_i32_1 = arith.constant 0 : i32
    return %c0_i32, %c0_i32_0 : i32, i32
  }
  func.func @transform_7(%arg0: i32) -> (i32, i32, i32, i32) {
    %c0_i32 = arith.constant 0 : i32
    %c0_i32_0 = arith.constant 0 : i32
    %c0_i32_1 = arith.constant 0 : i32
    %c0_i32_2 = arith.constant 0 : i32
    return %arg0, %c0_i32, %c0_i32_0, %c0_i32_1 : i32, i32, i32, i32
  }
  func.func @transform_8(%arg0: i32) -> (i32, i32, i32, i32) {
    %c0_i32 = arith.constant 0 : i32
    %c0_i32_0 = arith.constant 0 : i32
    %c0_i32_1 = arith.constant 0 : i32
    %c0_i32_2 = arith.constant 0 : i32
    return %arg0, %c0_i32, %c0_i32_0, %c0_i32_1 : i32, i32, i32, i32
  }
}

module attributes {stable_mosaic.version = 11 : i64} {
  func.func @kernel(%arg0: i32, %arg1: memref<1x1x1x64xf32, #tpu.memory_space<vmem>>, %arg2: memref<576x128xbf16, #tpu.memory_space<vmem>>, %arg3: memref<1x128xf32, #tpu.memory_space<vmem>>, %arg4: memref<1x128xf32, #tpu.memory_space<vmem>>, %arg5: memref<1152x128xbf16, #tpu.memory_space<vmem>>, %arg6: memref<1x128xf32, #tpu.memory_space<vmem>>, %arg7: memref<1x128xf32, #tpu.memory_space<vmem>>, %arg8: memref<1x1x1x128xf32, #tpu.memory_space<vmem>>, %arg9: memref<3x3x64xf32, #tpu.memory_space<vmem>>, %arg10: memref<3x3x128xf32, #tpu.memory_space<vmem>>) attributes {dimension_semantics = [#tpu.dimension_semantics<parallel>], iteration_bounds = array<i64: 2>, scalar_prefetch = 0 : i64, scratch_operands = 2 : i64, tpu.core_type = #tpu.core_type<tc>, window_params = [{transform_indices = @transform_0, window_bounds = array<i64: 1, 1, 1, 64>}, {pipeline_mode = #tpu.pipeline_mode<synchronous>, transform_indices = @transform_1, window_bounds = array<i64: 576, 128>}, {pipeline_mode = #tpu.pipeline_mode<synchronous>, transform_indices = @transform_2, window_bounds = array<i64: 1, 128>}, {pipeline_mode = #tpu.pipeline_mode<synchronous>, transform_indices = @transform_3, window_bounds = array<i64: 1, 128>}, {pipeline_mode = #tpu.pipeline_mode<synchronous>, transform_indices = @transform_4, window_bounds = array<i64: 1152, 128>}, {pipeline_mode = #tpu.pipeline_mode<synchronous>, transform_indices = @transform_5, window_bounds = array<i64: 1, 128>}, {pipeline_mode = #tpu.pipeline_mode<synchronous>, transform_indices = @transform_6, window_bounds = array<i64: 1, 128>}, {transform_indices = @transform_7, window_bounds = array<i64: 1, 1, 1, 128>}]} {
    %cst = arith.constant 0.000000e+00 : f32
    %0 = vector.broadcast %cst : f32 to vector<3x3x64xf32>
    %c0 = arith.constant 0 : index
    %c0_0 = arith.constant 0 : index
    %c0_1 = arith.constant 0 : index
    %1 = vector.load %arg9[%c0, %c0_0, %c0_1] : memref<3x3x64xf32, #tpu.memory_space<vmem>>, vector<3x3x64xf32>
    tpu.vector_store %arg9[%c0, %c0_0, %c0_1], %0 {strides = array<i32>} : memref<3x3x64xf32, #tpu.memory_space<vmem>>, vector<3x3x64xf32>,
    %c0_2 = arith.constant 0 : index
    %c0_3 = arith.constant 0 : index
    %c0_4 = arith.constant 0 : index
    %c0_5 = arith.constant 0 : index
    %2 = vector.load %arg1[%c0_2, %c0_3, %c0_4, %c0_5] : memref<1x1x1x64xf32, #tpu.memory_space<vmem>>, vector<1x1x1x64xf32>
    %3 = vector.shape_cast %2 : vector<1x1x1x64xf32> to vector<1x1x64xf32>
    %c1 = arith.constant 1 : index
    %c1_6 = arith.constant 1 : index
    %c0_7 = arith.constant 0 : index
    %4 = vector.load %arg9[%c1, %c1_6, %c0_7] : memref<3x3x64xf32, #tpu.memory_space<vmem>>, vector<1x1x64xf32>
    tpu.vector_store %arg9[%c1, %c1_6, %c0_7], %3 {strides = array<i32>} : memref<3x3x64xf32, #tpu.memory_space<vmem>>, vector<1x1x64xf32>,
    %c0_8 = arith.constant 0 : index
    %c0_9 = arith.constant 0 : index
    %c0_10 = arith.constant 0 : index
    %5 = vector.load %arg9[%c0_8, %c0_9, %c0_10] : memref<3x3x64xf32, #tpu.memory_space<vmem>>, vector<3x3x64xf32>
    %6 = vector.extract_strided_slice %5 {offsets = [0, 0, 0], sizes = [1, 1, 64], strides = [1, 1, 1]} : vector<3x3x64xf32> to vector<1x1x64xf32>
    %7 = vector.extract_strided_slice %5 {offsets = [0, 1, 0], sizes = [1, 1, 64], strides = [1, 1, 1]} : vector<3x3x64xf32> to vector<1x1x64xf32>
    %8 = vector.extract_strided_slice %5 {offsets = [0, 2, 0], sizes = [1, 1, 64], strides = [1, 1, 1]} : vector<3x3x64xf32> to vector<1x1x64xf32>
    %9 = vector.extract_strided_slice %5 {offsets = [1, 0, 0], sizes = [1, 1, 64], strides = [1, 1, 1]} : vector<3x3x64xf32> to vector<1x1x64xf32>
    %10 = vector.extract_strided_slice %5 {offsets = [1, 1, 0], sizes = [1, 1, 64], strides = [1, 1, 1]} : vector<3x3x64xf32> to vector<1x1x64xf32>
    %11 = vector.extract_strided_slice %5 {offsets = [1, 2, 0], sizes = [1, 1, 64], strides = [1, 1, 1]} : vector<3x3x64xf32> to vector<1x1x64xf32>
    %12 = vector.extract_strided_slice %5 {offsets = [2, 0, 0], sizes = [1, 1, 64], strides = [1, 1, 1]} : vector<3x3x64xf32> to vector<1x1x64xf32>
    %13 = vector.extract_strided_slice %5 {offsets = [2, 1, 0], sizes = [1, 1, 64], strides = [1, 1, 1]} : vector<3x3x64xf32> to vector<1x1x64xf32>
    %14 = vector.extract_strided_slice %5 {offsets = [2, 2, 0], sizes = [1, 1, 64], strides = [1, 1, 1]} : vector<3x3x64xf32> to vector<1x1x64xf32>
    %15 = tpu.concatenate %6, %7, %8, %9, %10, %11, %12, %13, %14 in 2 : vector<1x1x64xf32>, vector<1x1x64xf32>, vector<1x1x64xf32>, vector<1x1x64xf32>, vector<1x1x64xf32>, vector<1x1x64xf32>, vector<1x1x64xf32>, vector<1x1x64xf32>, vector<1x1x64xf32> -> vector<1x1x576xf32>
    %16 = vector.shape_cast %15 : vector<1x1x576xf32> to vector<1x576xf32>
    %17 = arith.truncf %16 : vector<1x576xf32> to vector<1x576xbf16>
    %c0_11 = arith.constant 0 : index
    %c0_12 = arith.constant 0 : index
    %18 = vector.load %arg2[%c0_11, %c0_12] : memref<576x128xbf16, #tpu.memory_space<vmem>>, vector<576x128xbf16>
    %cst_13 = arith.constant dense<0.000000e+00> : vector<1x128xf32>
    %19 = tpu.matmul %17, %18, %cst_13 {dimension_numbers = #tpu.dot_dimension_numbers<[1], [0], [0], [1], [0, 0, 1, 1], [], []>} : vector<1x576xbf16>, vector<576x128xbf16>, vector<1x128xf32> -> vector<1x128xf32>
    %c0_14 = arith.constant 0 : index
    %c0_15 = arith.constant 0 : index
    %20 = vector.load %arg3[%c0_14, %c0_15] : memref<1x128xf32, #tpu.memory_space<vmem>>, vector<1x128xf32>
    %21 = arith.mulf %19, %20 : vector<1x128xf32>
    %c0_16 = arith.constant 0 : index
    %c0_17 = arith.constant 0 : index
    %22 = vector.load %arg4[%c0_16, %c0_17] : memref<1x128xf32, #tpu.memory_space<vmem>>, vector<1x128xf32>
    %23 = arith.addf %21, %22 : vector<1x128xf32>
    %cst_18 = arith.constant 0.000000e+00 : f32
    %24 = vector.broadcast %cst_18 : f32 to vector<1x128xf32>
    %25 = arith.maximumf %23, %24 : vector<1x128xf32>
    %cst_19 = arith.constant 0.000000e+00 : f32
    %26 = vector.broadcast %cst_19 : f32 to vector<3x3x128xf32>
    %c0_20 = arith.constant 0 : index
    %c0_21 = arith.constant 0 : index
    %c0_22 = arith.constant 0 : index
    %27 = vector.load %arg10[%c0_20, %c0_21, %c0_22] : memref<3x3x128xf32, #tpu.memory_space<vmem>>, vector<3x3x128xf32>
    tpu.vector_store %arg10[%c0_20, %c0_21, %c0_22], %26 {strides = array<i32>} : memref<3x3x128xf32, #tpu.memory_space<vmem>>, vector<3x3x128xf32>,
    %28 = vector.shape_cast %25 : vector<1x128xf32> to vector<1x1x128xf32>
    %c1_23 = arith.constant 1 : index
    %c1_24 = arith.constant 1 : index
    %c0_25 = arith.constant 0 : index
    %29 = vector.load %arg10[%c1_23, %c1_24, %c0_25] : memref<3x3x128xf32, #tpu.memory_space<vmem>>, vector<1x1x128xf32>
    tpu.vector_store %arg10[%c1_23, %c1_24, %c0_25], %28 {strides = array<i32>} : memref<3x3x128xf32, #tpu.memory_space<vmem>>, vector<1x1x128xf32>,
    %c0_26 = arith.constant 0 : index
    %c0_27 = arith.constant 0 : index
    %c0_28 = arith.constant 0 : index
    %30 = vector.load %arg10[%c0_26, %c0_27, %c0_28] : memref<3x3x128xf32, #tpu.memory_space<vmem>>, vector<3x3x128xf32>
    %31 = vector.extract_strided_slice %30 {offsets = [0, 0, 0], sizes = [1, 1, 128], strides = [1, 1, 1]} : vector<3x3x128xf32> to vector<1x1x128xf32>
    %32 = vector.extract_strided_slice %30 {offsets = [0, 1, 0], sizes = [1, 1, 128], strides = [1, 1, 1]} : vector<3x3x128xf32> to vector<1x1x128xf32>
    %33 = vector.extract_strided_slice %30 {offsets = [0, 2, 0], sizes = [1, 1, 128], strides = [1, 1, 1]} : vector<3x3x128xf32> to vector<1x1x128xf32>
    %34 = vector.extract_strided_slice %30 {offsets = [1, 0, 0], sizes = [1, 1, 128], strides = [1, 1, 1]} : vector<3x3x128xf32> to vector<1x1x128xf32>
    %35 = vector.extract_strided_slice %30 {offsets = [1, 1, 0], sizes = [1, 1, 128], strides = [1, 1, 1]} : vector<3x3x128xf32> to vector<1x1x128xf32>
    %36 = vector.extract_strided_slice %30 {offsets = [1, 2, 0], sizes = [1, 1, 128], strides = [1, 1, 1]} : vector<3x3x128xf32> to vector<1x1x128xf32>
    %37 = vector.extract_strided_slice %30 {offsets = [2, 0, 0], sizes = [1, 1, 128], strides = [1, 1, 1]} : vector<3x3x128xf32> to vector<1x1x128xf32>
    %38 = vector.extract_strided_slice %30 {offsets = [2, 1, 0], sizes = [1, 1, 128], strides = [1, 1, 1]} : vector<3x3x128xf32> to vector<1x1x128xf32>
    %39 = vector.extract_strided_slice %30 {offsets = [2, 2, 0], sizes = [1, 1, 128], strides = [1, 1, 1]} : vector<3x3x128xf32> to vector<1x1x128xf32>
    %40 = tpu.concatenate %31, %32, %33, %34, %35, %36, %37, %38, %39 in 2 : vector<1x1x128xf32>, vector<1x1x128xf32>, vector<1x1x128xf32>, vector<1x1x128xf32>, vector<1x1x128xf32>, vector<1x1x128xf32>, vector<1x1x128xf32>, vector<1x1x128xf32>, vector<1x1x128xf32> -> vector<1x1x1152xf32>
    %41 = vector.shape_cast %40 : vector<1x1x1152xf32> to vector<1x1152xf32>
    %42 = arith.truncf %41 : vector<1x1152xf32> to vector<1x1152xbf16>
    %c0_29 = arith.constant 0 : index
    %c0_30 = arith.constant 0 : index
    %43 = vector.load %arg5[%c0_29, %c0_30] : memref<1152x128xbf16, #tpu.memory_space<vmem>>, vector<1152x128xbf16>
    %cst_31 = arith.constant dense<0.000000e+00> : vector<1x128xf32>
    %44 = tpu.matmul %42, %43, %cst_31 {dimension_numbers = #tpu.dot_dimension_numbers<[1], [0], [0], [1], [0, 0, 1, 1], [], []>} : vector<1x1152xbf16>, vector<1152x128xbf16>, vector<1x128xf32> -> vector<1x128xf32>
    %c0_32 = arith.constant 0 : index
    %c0_33 = arith.constant 0 : index
    %45 = vector.load %arg6[%c0_32, %c0_33] : memref<1x128xf32, #tpu.memory_space<vmem>>, vector<1x128xf32>
    %46 = arith.mulf %44, %45 : vector<1x128xf32>
    %c0_34 = arith.constant 0 : index
    %c0_35 = arith.constant 0 : index
    %47 = vector.load %arg7[%c0_34, %c0_35] : memref<1x128xf32, #tpu.memory_space<vmem>>, vector<1x128xf32>
    %48 = arith.addf %46, %47 : vector<1x128xf32>
    %cst_36 = arith.constant 0.000000e+00 : f32
    %49 = vector.broadcast %cst_36 : f32 to vector<1x128xf32>
    %50 = arith.maximumf %48, %49 : vector<1x128xf32>
    %51 = vector.shape_cast %50 : vector<1x128xf32> to vector<1x1x128xf32>
    %52 = vector.shape_cast %51 : vector<1x1x128xf32> to vector<1x1x1x128xf32>
    %c0_37 = arith.constant 0 : index
    %c0_38 = arith.constant 0 : index
    %c0_39 = arith.constant 0 : index
    %c0_40 = arith.constant 0 : index
    %53 = vector.load %arg8[%c0_37, %c0_38, %c0_39, %c0_40] : memref<1x1x1x128xf32, #tpu.memory_space<vmem>>, vector<1x1x1x128xf32>
    tpu.vector_store %arg8[%c0_37, %c0_38, %c0_39, %c0_40], %52 {strides = array<i32>} : memref<1x1x1x128xf32, #tpu.memory_space<vmem>>, vector<1x1x1x128xf32>,
    return
  }
  func.func @transform_0(%arg0: i32) -> (i32, i32, i32, i32) {
    %c0_i32 = arith.constant 0 : i32
    %c0_i32_0 = arith.constant 0 : i32
    %c0_i32_1 = arith.constant 0 : i32
    %c0_i32_2 = arith.constant 0 : i32
    return %arg0, %c0_i32, %c0_i32_0, %c0_i32_1 : i32, i32, i32, i32
  }
  func.func @transform_1(%arg0: i32) -> (i32, i32) {
    %c0_i32 = arith.constant 0 : i32
    %c0_i32_0 = arith.constant 0 : i32
    %c0_i32_1 = arith.constant 0 : i32
    return %c0_i32, %c0_i32_0 : i32, i32
  }
  func.func @transform_2(%arg0: i32) -> (i32, i32) {
    %c0_i32 = arith.constant 0 : i32
    %c0_i32_0 = arith.constant 0 : i32
    %c0_i32_1 = arith.constant 0 : i32
    return %c0_i32, %c0_i32_0 : i32, i32
  }
  func.func @transform_3(%arg0: i32) -> (i32, i32) {
    %c0_i32 = arith.constant 0 : i32
    %c0_i32_0 = arith.constant 0 : i32
    %c0_i32_1 = arith.constant 0 : i32
    return %c0_i32, %c0_i32_0 : i32, i32
  }
  func.func @transform_4(%arg0: i32) -> (i32, i32) {
    %c0_i32 = arith.constant 0 : i32
    %c0_i32_0 = arith.constant 0 : i32
    %c0_i32_1 = arith.constant 0 : i32
    return %c0_i32, %c0_i32_0 : i32, i32
  }
  func.func @transform_5(%arg0: i32) -> (i32, i32) {
    %c0_i32 = arith.constant 0 : i32
    %c0_i32_0 = arith.constant 0 : i32
    %c0_i32_1 = arith.constant 0 : i32
    return %c0_i32, %c0_i32_0 : i32, i32
  }
  func.func @transform_6(%arg0: i32) -> (i32, i32) {
    %c0_i32 = arith.constant 0 : i32
    %c0_i32_0 = arith.constant 0 : i32
    %c0_i32_1 = arith.constant 0 : i32
    return %c0_i32, %c0_i32_0 : i32, i32
  }
  func.func @transform_7(%arg0: i32) -> (i32, i32, i32, i32) {
    %c0_i32 = arith.constant 0 : i32
    %c0_i32_0 = arith.constant 0 : i32
    %c0_i32_1 = arith.constant 0 : i32
    %c0_i32_2 = arith.constant 0 : i32
    return %arg0, %c0_i32, %c0_i32_0, %c0_i32_1 : i32, i32, i32, i32
  }
}

</mosaic_0001>

<bundles_post_ra>
// kernel: encoder_forward.7
= control target key start
LH: loop header
LB: loop body
LE: loop exit
PB: predicated region body
PF: predicated region fallthrough
CT: control target
= control target key end

     0   :  { %14 = vsyncpa [#allocation5], 0  ;;  %s1887_s0 = inlined_call_operand.vmem [shape: f32[2,4,4,16], index: 0, kind: input, shape index: {}]   ;;  %s1888_s1 = inlined_call_operand.vmem [shape: bf16[144,32], index: 1, kind: input, shape index: {}]   ;;  %s1889_s2 = inlined_call_operand.vmem [shape: f32[1,32], index: 2, kind: input, shape index: {}]   ;;  %s1890_s3 = inlined_call_operand.vmem [shape: f32[1,32], index: 3, kind: input, shape index: {}]   ;;  %s1891_s4 = inlined_call_operand.vmem [shape: bf16[288,32], index: 4, kind: input, shape index: {}]   ;;  %s1892_s5 = inlined_call_operand.vmem [shape: f32[1,32], index: 5, kind: input, shape index: {}]   ;;  %s1893_s6 = inlined_call_operand.vmem [shape: f32[1,32], index: 6, kind: input, shape index: {}]   ;;  %s1894_s7 = inlined_call_operand.hbm [shape: f32[2,4,4,32], index: 7, kind: output, shape index: {0}]   ;;  %s1895_s8 = inlined_call_operand.vmem [shape: f32[2,2,2,32], index: 8, kind: output, shape index: {1}]  }
   0x1   :  { %16 = vsyncpa [#allocation5 + $0x1], 0  ;;  %s1489_s27 = smov 0   ;;  %s1491_s28 = smov 0  }
   0x2   :  { %s1493_s29 = smov 0   ;;  %s1495_s30 = smov 0  }
   0x3 LB: > { %s1510_s9 = sadd.s32 4294967295, %s1430_s30   ;;  %s1200_s10 = sadd.s32 4294967294, %s1430_s30   ;;  %s1430_s30 = sphi %s1495_s30, %s1902_s30   ;;  %s1426_s29 = sphi %s1493_s29, %s1901_s29   ;;  %s1422_s28 = sphi %s1491_s28, %s1900_s28   ;;  %s1418_s27 = sphi %s1489_s27, %s1899_s27  }
   0x4   : > { %s1514_s11 = sadd.s32 1, %s1430_s30   ;;  %s181_s12 = sadd.s32 1, %s1426_s29 }
   0x5   : > { %s178_s13 = ssub.s32 %s1430_s30, %s1514_s11  ;;  %p191_p0 = scmp.ne.s32.totalorder %s1426_s29, %s1422_s28 }
   0x6   : > { %p179_p1 = scmp.eq.s32.totalorder %s178_s13, 0  ;;  %p192_p2 = scmp.eq.s32.totalorder %s1510_s9, 1 }
   0x7   : > { %p197_p3 = scmp.ne.s32.totalorder %s1422_s28, %s1418_s27  ;;  %p198_p4 = scmp.eq.s32.totalorder %s1200_s10, 1 }
   0x8   : > { %s1525_s14 = scalar_select %p179_p1, %s1426_s29, %s181_s12  }
   0x9   : > { %p1527_p5 = por %p192_p2, %p191_p0  ;;  %p1531_p6 = por %p198_p4, %p197_p3 }
   0xa   : > { %p1203_p7 = scmp.ge.s32.totalorder %s1430_s30, 1  ;;  %p268_p8 = scmp.lt.s32.totalorder %s1430_s30, 3 }
   0xc   : > { %p269_p9 = pnand %p1203_p7, %p268_p8 }
   0xd   : > { %p307_p10 = scmp.lt.s32.totalorder (!%p269_p9), %s1510_s9, 1  ;;  %s1433_s22 = smov (!%p269_p9), 16  }
   0xe   : > { %272 = sbr.rel (%p269_p9) target bundleno = 804 (0x324), region = 48  ;;  %s1434_s23 = smov (!%p269_p9), 32  }
   0xf   : > { %s1435_s24 = smov (!%p269_p9), 48   ;;  %s1437_s19 = smov (!%p269_p9), 64  }
  0x10   : > { %s1438_s26 = smov (!%p269_p9), 80   ;;  %s1440_s10 = smov (!%p269_p9), 112  }
  0x13   : > { %vm318_vm0 = vcmask 128000   ;;  %v1432_v0 = vmov 0.0   ;;  %s1545_s17 = scalar_select %p307_p10, %s1510_s9, 1  ;;  %vm330_vm1 = vcmask 125952   ;;  %v1343_v16 = vld [vmem:[%s1888_s1 + $0x38] sm:$0xff]   ;;  %v1436_v17 = vmov 0  }
  0x14   : > { %319 = vst.msk [vmem:[#allocation2] sm:$0x3f] %vm318_vm0, %v1432_v0  ;;  %320 = vst.msk [vmem:[#allocation2 + $0x8] sm:$0x3f] %vm318_vm0, %v1432_v0  ;;  %571 = vmatprep.subr.bf16.mxu0 %v1436_v17  ;;  %v1344_v18 = vld [vmem:[%s1888_s1 + $0x30] sm:$0xff]   ;;  %v1345_v20 = vld [vmem:[%s1888_s1 + $0x28] sm:$0xff]  }
  0x15   : > { %321 = vst.msk [vmem:[#allocation2 + $0x10] sm:$0x3f] %vm318_vm0, %v1432_v0  ;;  %322 = vst.msk [vmem:[#allocation2 + $0x18] sm:$0x3f] %vm318_vm0, %v1432_v0  ;;  %s1257_s18 = sshll.u32 %s1545_s17, 4  ;;  %572 = vmatpush1.bf16.msra.mxu0 %v1343_v16  ;;  %v1346_v22 = vld [vmem:[%s1888_s1 + $0x20] sm:$0xff]  }
  0x16   : > { %323 = vst.msk [vmem:[#allocation2 + $0x20] sm:$0x3f] %vm318_vm0, %v1432_v0  ;;  %324 = vst.msk [vmem:[#allocation2 + $0x28] sm:$0x3f] %vm318_vm0, %v1432_v0  ;;  %s311_s21 = scalar_lea.vmem %s1887_s0, %s1257_s18  ;;  %573 = vmatprep.subr.bf16.mxu0 %v1436_v17  ;;  %v1347_v23 = vld [vmem:[%s1888_s1 + $0x18] sm:$0xff]   ;;  %v1348_v25 = vld [vmem:[%s1888_s1 + $0x10] sm:$0xff]  }
  0x17   : > { %v326_v1 = vld [vmem:[%s311_s21 + $0x4] sm:$0xf]  ;;  %v325_v2 = vld [vmem:[%s311_s21] sm:$0xf]  ;;  %v327_v3 = vld [vmem:[%s311_s21 + $0x8] sm:$0xf] }
  0x18   : > { %332 = vst.msk [vmem:[#allocation2 + $0x11] sm:$0xf] %vm330_vm1, %v326_v1  ;;  %331 = vst.msk [vmem:[#allocation2 + $0x9] sm:$0xf] %vm330_vm1, %v325_v2  ;;  %v328_v5 = vld [vmem:[%s311_s21 + $0xc] sm:$0xf] }
  0x19   : > { %333 = vst.msk [vmem:[#allocation2 + $0x19] sm:$0xf] %vm330_vm1, %v327_v3  ;;  %334 = vst.msk [vmem:[#allocation2 + $0x21] sm:$0xf] %vm330_vm1, %v328_v5  ;;  %574 = vmatpush1.bf16.msra.mxu0 %v1344_v18  ;;  %v1349_v26 = vld [vmem:[%s1888_s1 + $0x8] sm:$0xff]   ;;  %s1439_s18 = smov 96  }
  0x1a   : > { %575 = vmatprep.subr.bf16.mxu0 %v1436_v17  ;;  %v1350_v30 = vld [vmem:[%s1888_s1] sm:$0xff]   ;;  %vm443_vm2 = vcmask 130048   ;;  %vm448_vm3 = vcmask 261120   ;;  %vm453_vm4 = vcmask 392192   ;;  %vm458_vm5 = vcmask 523264  }
  0x1b   : > { %v1551_v4 = vld [vmem:[#allocation2] sm:$0x3f]  ;;  %vm463_vm6 = vcmask 654336   ;;  %vm468_vm7 = vcmask 785408   ;;  %vm473_vm8 = vcmask 916480   ;;  %vm632_vm9 = vcmask 259072  }
  0x1c   : > { %v345_v6 = vrot.slane %v1551_v4, 1  ;;  %v361_v7 = vrot.slane %v1551_v4, 2  ;;  %v1351_v31 = vld [vmem:[%s1888_s1 + $0x40] sm:$0xff]   ;;  %633 = vst.msk [vmem:[#allocation3] sm:$0x3f] %vm632_vm9, %v1432_v0  ;;  %vm646_vm10 = vcmask 257024  }
  0x1d   : > { %576 = vmatpush1.bf16.msra.mxu0 %v1345_v20  ;;  %v340_v28 = vld [vmem:[#allocation2 + $0x28] sm:$0x3f]  ;;  %634 = vst.msk [vmem:[#allocation3 + $0x8] sm:$0x3f] %vm632_vm9, %v1432_v0  ;;  %635 = vst.msk [vmem:[#allocation3 + $0x10] sm:$0x3f] %vm632_vm9, %v1432_v0 }
  0x1e   : > { %349 = vrot.lane.b32.xlu0 %v345_v6, %s1433_s22  ;;  %577 = vmatprep.subr.bf16.mxu0 %v1436_v17  ;;  %v442_v29 = vrot.slane %v340_v28, 2  ;;  %v429_v35 = vrot.slane %v340_v28, 1  ;;  %638 = vst.msk [vmem:[#allocation3 + $0x28] sm:$0x3f] %vm632_vm9, %v1432_v0  ;;  %636 = vst.msk [vmem:[#allocation3 + $0x18] sm:$0x3f] %vm632_vm9, %v1432_v0 }
  0x1f   : > { %v1556_v8 = vld [vmem:[#allocation2 + $0x10] sm:$0x3f]  ;;  %v1565_v11 = vld [vmem:[#allocation2 + $0x8] sm:$0x3f]  ;;  %637 = vst.msk [vmem:[#allocation3 + $0x20] sm:$0x3f] %vm632_vm9, %v1432_v0 }
  0x20   : > { %v1558_v9 = vld [vmem:[#allocation2 + $0x18] sm:$0x3f]  ;;  %380 = vrot.lane.b32.xlu1 %v1556_v8, %s1435_s24  ;;  %v1563_v10 = vrot.slane %v1556_v8, 1  ;;  %v346_v13 = vrot.slane %v1565_v11, 1  ;;  %v362_v14 = vrot.slane %v1565_v11, 2  ;;  %v363_v15 = vrot.slane %v1556_v8, 2 }
  0x21   : > { %v1568_v12 = vrot.slane %v1558_v9, 1  ;;  %v364_v19 = vrot.slane %v1558_v9, 2  ;;  %v339_v21 = vld [vmem:[#allocation2 + $0x20] sm:$0x3f]  ;;  %578 = vmatpush1.bf16.msra.mxu0 %v1346_v22  ;;  %vm1441_vm11 = vmmov 0   ;;  %vm1085_vm12 = vcmask 1040384  }
  0x22   : > { %365 = vrot.lane.b32.xlu0 %v361_v7, %s1434_s23  ;;  %579 = vmatprep.subr.bf16.mxu0 %v1436_v17  ;;  %v390_v24 = vrot.slane %v339_v21, 1  ;;  %v403_v27 = vrot.slane %v339_v21, 2 }
  0x23   : > { %v1210_v32 = vcombine.low %v363_v15, %v364_v19 }
  0x24   : > { %353 = vrot.lane.b32.xlu1 %v1563_v10, %s1433_s22  ;;  %v1212_v33 = vcombine.low %v403_v27, %v442_v29 }
  0x25   : > { %580 = vmatpush1.bf16.msra.mxu0 %v1347_v23 }
  0x26   : > { %378 = vrot.lane.b32.xlu0 %v1565_v11, %s1435_s24  ;;  %581 = vmatprep.subr.bf16.mxu0 %v1436_v17  ;;  %v495_v34 = vpack.c.bf16 %v1212_v33, %v1210_v32  ;;  %v1660_v32 = vld [vmem:[#allocation3] sm:$0x3f] }
  0x27   : > { %v661_v33 = vrot.slane %v1660_v32, 1 }
  0x28   : > { %355 = vrot.lane.b32.xlu1 %v1568_v12, %s1433_s22  ;;  %1222 = vmatprep.mubr.msk.bf16.mxu0 %vm443_vm2, %v495_v34  ;;  %v656_v34 = vld [vmem:[#allocation3 + $0x28] sm:$0x3f] }
  0x29   : > { %582 = vmatpush1.bf16.msra.mxu0 %v1348_v25 }
  0x2a   : > { %351 = vrot.lane.b32.xlu0 %v346_v13, %s1433_s22  ;;  %583 = vmatprep.subr.bf16.mxu0 %v1436_v17  ;;  %s1442_s22 = smov [#allocation4]  }
  0x2c   : > { %367 = vrot.lane.b32.xlu1 %v362_v14, %s1434_s23 }
  0x2d   : > { %584 = vmatpush1.bf16.msra.mxu0 %v1349_v26 }
  0x2e   : > { %369 = vrot.lane.b32.xlu0 %v363_v15, %s1434_s23  ;;  %585 = vmatprep.subr.bf16.mxu0 %v1436_v17 }
  0x30   : > { %371 = vrot.lane.b32.xlu1 %v364_v19, %s1434_s23 }
  0x31   : > { %586 = vmatpush1.bf16.msra.mxu0 %v1350_v30 }
  0x32   : > { %382 = vrot.lane.b32.xlu0 %v1558_v9, %s1435_s24  ;;  %601 = vmatprep.subr.bf16.mxu0 %v1436_v17 }
  0x34   : > { %384 = vrot.lane.b32.xlu1 %v339_v21, %s1435_s24  ;;  %s297_s24 = sand.u32 1, %s1422_s28  }
  0x35   : > { %602 = vmatpush2.bf16.msra.mxu0 %v1351_v31  ;;  %s1204_s25 = sshll.u32 %s297_s24, 4  ;;  %s1838_s20 = scalar_lea.sflag [#allocation5], %s297_s24 }
  0x36   : > { %391 = vrot.lane.b32.xlu0 %v346_v13, %s1437_s19 }
  0x38   : > { %393 = vrot.lane.b32.xlu1 %v1563_v10, %s1437_s19 }
  0x3a   : > { %395 = vrot.lane.b32.xlu0 %v1568_v12, %s1437_s19 }
  0x3c   : > { %397 = vrot.lane.b32.xlu1 %v390_v24, %s1437_s19 }
  0x3e   : > { %404 = vrot.lane.b32.xlu0 %v362_v14, %s1438_s26 }
  0x40   : > { %406 = vrot.lane.b32.xlu1 %v363_v15, %s1438_s26 }
  0x42   : > { %408 = vrot.lane.b32.xlu0 %v364_v19, %s1438_s26 }
  0x44   : > { %410 = vrot.lane.b32.xlu1 %v403_v27, %s1438_s26 }
  0x46   : > { %417 = vrot.lane.b32.xlu0 %v1556_v8, %s1439_s18 }
  0x48   : > { %419 = vrot.lane.b32.xlu1 %v1558_v9, %s1439_s18 }
  0x4a   : > { %421 = vrot.lane.b32.xlu0 %v339_v21, %s1439_s18 }
  0x4c   : > { %423 = vrot.lane.b32.xlu1 %v340_v28, %s1439_s18 }
  0x4e   : > { %430 = vrot.lane.b32.xlu0 %v1563_v10, %s1440_s10 }
  0x50   : > { %432 = vrot.lane.b32.xlu1 %v1568_v12, %s1440_s10 }
  0x52   : > { %434 = vrot.lane.b32.xlu0 %v390_v24, %s1440_s10 }
  0x54   : > { %436 = vrot.lane.b32.xlu1 %v429_v35, %s1440_s10  ;;  %v677_v35 = vrot.slane %v1660_v32, 2  ;;  %s299_s10 = scalar_lea.vmem [#allocation4], %s1204_s25  ;;  %s1374_s25 = sshll.u32 %s1442_s22, 4  ;;  %s1375_s25 = int_to_ptr.vmem [resolvable:$false] %s1374_s25 }
  0x56   : > { %665 = vrot.lane.b32.xlu0 %v661_v33, %s1434_s23 }
  0x58   : > { %731 = vrot.lane.b32.xlu1 %v656_v34, %s1437_s19 }
  0x5a   : > { %681 = vrot.lane.b32.xlu0 %v677_v35, %s1437_s19 }
  0x90   : > { %v350_v36 = vpop.permute.xlu0 %349 }
  0x91   : > { %v444_v63 = vsel %vm443_vm2, %v1551_v4, %v350_v36  ;;  %v737_v36 = vrot.slane %v656_v34, 1 }
  0x92   : > { %v381_v38 = vpop.permute.xlu1 %380 }
  0x93   : > { %744 = vrot.lane.b32.xlu1 %v737_v36, %s1439_s18 }
  0x94   : > { %v366_v37 = vpop.permute.xlu0 %365 }
  0x95   : > { %v449_v5 = vsel %vm448_vm3, %v444_v63, %v366_v37  ;;  %v1223_v37 = vld [vmem:[%s1889_s2] ss:$0 sm:$0xff]  ;;  %v1356_v63 = vld [vmem:[%s1891_s4 + $0x68] sm:$0xff]  }
  0x96   : > { %v354_v40 = vpop.permute.xlu1 %353 }
  0x97   : > { %v446_v1 = vsel %vm443_vm2, %v1556_v8, %v354_v40 }
  0x98   : > { %v379_v39 = vpop.permute.xlu0 %378 }
  0x9a   : > { %v356_v42 = vpop.permute.xlu1 %355 }
  0x9b   : > { %v447_v2 = vsel %vm443_vm2, %v1558_v9, %v356_v42 }
  0x9c   : > { %v352_v41 = vpop.permute.xlu0 %351 }
  0x9d   : > { %v445_v59 = vsel %vm443_vm2, %v1565_v11, %v352_v41  ;;  %v454_v11 = vsel %vm453_vm4, %v449_v5, %v379_v39  ;;  %v1224_v39 = vld [vmem:[%s1890_s3] ss:$0 sm:$0xff] }
  0x9e   : > { %v368_v44 = vpop.permute.xlu1 %367 }
  0x9f   : > { %v450_v60 = vsel %vm448_vm3, %v445_v59, %v368_v44 }
  0xa0   : > { %v370_v43 = vpop.permute.xlu0 %369  ;;  %v455_v3 = vsel %vm453_vm4, %v450_v60, %v381_v38  ;;  %v750_v60 = vrot.slane %v656_v34, 2 }
  0xa1   : > { %v451_v6 = vsel %vm448_vm3, %v446_v1, %v370_v43 }
  0xa2   : > { %v372_v46 = vpop.permute.xlu1 %371 }
  0xa3   : > { %v452_v7 = vsel %vm448_vm3, %v447_v2, %v372_v46  ;;  %v1357_v2 = vld [vmem:[%s1891_s4 + $0x28] sm:$0xff]  }
  0xa4   : > { %v383_v45 = vpop.permute.xlu0 %382 }
  0xa5   : > { %v456_v12 = vsel %vm453_vm4, %v451_v6, %v383_v45 }
  0xa6   : > { %v385_v48 = vpop.permute.xlu1 %384 }
  0xa7   : > { %v457_v13 = vsel %vm453_vm4, %v452_v7, %v385_v48  ;;  %v1358_v7 = vld [vmem:[%s1891_s4 + $0x60] sm:$0xff]  }
  0xa8   : > { %v392_v47 = vpop.permute.xlu0 %391 }
  0xa9   : > { %v459_v8 = vsel %vm458_vm5, %v454_v11, %v392_v47 }
  0xaa   : > { %v394_v50 = vpop.permute.xlu1 %393 }
  0xab   : > { %v460_v4 = vsel %vm458_vm5, %v455_v3, %v394_v50 }
  0xac   : > { %v396_v49 = vpop.permute.xlu0 %395 }
  0xad   : > { %v461_v9 = vsel %vm458_vm5, %v456_v12, %v396_v49  ;;  %v1360_v12 = vld [vmem:[%s1891_s4 + $0x58] sm:$0xff]  }
  0xae   : > { %v398_v52 = vpop.permute.xlu1 %397 }
  0xaf   : > { %v462_v15 = vsel %vm458_vm5, %v457_v13, %v398_v52  ;;  %v1353_v52 = vld [vmem:[%s1891_s4 + $0x38] sm:$0xff]  }
  0xb0   : > { %v405_v51 = vpop.permute.xlu0 %404  ;;  %v1361_v13 = vld [vmem:[%s1891_s4 + $0x18] sm:$0xff]  }
  0xb1   : > { %v464_v18 = vsel %vm463_vm6, %v459_v8, %v405_v51  ;;  %v1352_v51 = vld [vmem:[%s1891_s4 + $0x78] sm:$0xff]   ;;  %v1363_v8 = vld [vmem:[%s1891_s4 + $0x10] sm:$0xff]  }
  0xb2   : > { %v407_v54 = vpop.permute.xlu1 %406  ;;  %1260 = vmatprep.subr.bf16.mxu1 %v1352_v51 }
  0xb3   : > { %v465_v14 = vsel %vm463_vm6, %v460_v4, %v407_v54  ;;  %1261 = vmatpush3.bf16.msra.mxu1 %v1353_v52  ;;  %v1359_v4 = vld [vmem:[%s1891_s4 + $0x20] sm:$0xff]  }
  0xb4   : > { %v409_v53 = vpop.permute.xlu0 %408 }
  0xb5   : > { %v466_v19 = vsel %vm463_vm6, %v461_v9, %v409_v53 }
  0xb6   : > { %v411_v56 = vpop.permute.xlu1 %410 }
  0xb7   : > { %v467_v20 = vsel %vm463_vm6, %v462_v15, %v411_v56  ;;  %v1364_v15 = vld [vmem:[%s1891_s4 + $0x48] sm:$0xff]  }
  0xb8   : > { %v418_v55 = vpop.permute.xlu0 %417 }
  0xb9   : > { %v469_v22 = vsel %vm468_vm7, %v464_v18, %v418_v55  ;;  %v1354_v55 = vld [vmem:[%s1891_s4 + $0x70] sm:$0xff]   ;;  %v1367_v18 = vld [vmem:[%s1891_s4] sm:$0xff]  }
  0xba   : > { %v420_v58 = vpop.permute.xlu1 %419  ;;  %1262 = vmatprep.subr.bf16.mxu1 %v1354_v55 }
  0xbb   : > { %v470_v16 = vsel %vm468_vm7, %v465_v14, %v420_v58  ;;  %v1362_v14 = vld [vmem:[%s1891_s4 + $0x50] sm:$0xff]  }
  0xbc   : > { %v422_v57 = vpop.permute.xlu0 %421 }
  0xbd   : > { %v471_v23 = vsel %vm468_vm7, %v466_v19, %v422_v57  ;;  %v1355_v57 = vld [vmem:[%s1891_s4 + $0x30] sm:$0xff]  }
  0xbe   : > { %v424_v61 = vpop.permute.xlu1 %423  ;;  %1263 = vmatpush3.bf16.msra.mxu1 %v1355_v57 }
  0xbf   : > { %v472_v24 = vsel %vm468_vm7, %v467_v20, %v424_v61  ;;  %1264 = vmatprep.subr.bf16.mxu1 %v1356_v63 }
  0xc0   : > { %v431_v62 = vpop.permute.xlu0 %430 }
  0xc1   : > { %v474_v26 = vsel %vm473_vm8, %v469_v22, %v431_v62 }
  0xc2   : > { %v433_v10 = vpop.permute.xlu1 %432  ;;  %1265 = vmatpush3.bf16.msra.mxu1 %v1357_v2 }
  0xc3   : > { %v475_v21 = vsel %vm473_vm8, %v470_v16, %v433_v10  ;;  %1266 = vmatprep.subr.bf16.mxu1 %v1358_v7  ;;  %v1365_v16 = vld [vmem:[%s1891_s4 + $0x8] sm:$0xff]  }
  0xc4   : > { %v435_v17 = vpop.permute.xlu0 %434  ;;  %v1209_v29 = vcombine.low %v474_v26, %v475_v21 }
  0xc5   : > { %v476_v27 = vsel %vm473_vm8, %v471_v23, %v435_v17  ;;  %v1366_v17 = vld [vmem:[%s1891_s4 + $0x40] sm:$0xff]  }
  0xc6   : > { %v437_v25 = vpop.permute.xlu1 %436  ;;  %1267 = vmatpush3.bf16.msra.mxu1 %v1359_v4 }
  0xc7   : > { %v477_v28 = vsel %vm473_vm8, %v472_v24, %v437_v25  ;;  %1268 = vmatprep.subr.bf16.mxu1 %v1360_v12 }
  0xc8   : > { %v1211_v30 = vcombine.low %v476_v27, %v477_v28  ;;  %v666_v20 = vpop.permute.xlu0 %665 }
  0xca   : > { %v494_v31 = vpack.c.bf16 %v1211_v30, %v1209_v29  ;;  %1269 = vmatpush3.bf16.msra.mxu1 %v1361_v13  ;;  %v732_v21 = vpop.permute.xlu1 %731  ;;  %v1368_v13 = vld [vmem:[%s1891_s4 + $0x88] sm:$0xff]  }
  0xcb   : > { %1270 = vmatprep.subr.bf16.mxu1 %v1362_v14 }
  0xcc   : > { %604 = vmatmul.mubr.bf16.vlgmr.msra.gmra.mxu0 %v494_v31  ;;  %v682_v22 = vpop.permute.xlu0 %681 }
  0xce   : > { %1271 = vmatpush3.bf16.msra.mxu1 %v1363_v8  ;;  %v1369_v8 = vld [vmem:[%s1891_s4 + $0x80] sm:$0xff]  }
  0xcf   : > { %1272 = vmatprep.subr.bf16.mxu1 %v1364_v15 }
  0xd2   : > { %1273 = vmatpush3.bf16.msra.mxu1 %v1365_v16 }
  0xd3   : > { %1274 = vmatprep.subr.bf16.mxu1 %v1366_v17 }
  0xd6   : > { %1275 = vmatpush3.bf16.msra.mxu1 %v1367_v18 }
  0xd7   : > { %1285 = vmatprep.subr.bf16.mxu1 %v1432_v0 }
 0x105   : > { %v745_v23 = vpop.permute.xlu1 %744 }
 0x18c   : > { %v605_v38 = vpop.f32.mrf.mxu0 }
 0x18d   : > { %v619_v40 = vmul.f32 %v1223_v37, %v605_v38 }
 0x18e   : > { %v607_v41 = vpop.f32.mrf.mxu0 }
 0x18f   : > { %v628_v42 = vadd.f32 %v1224_v39, %v619_v40  ;;  %v751_v41 = vsel %vm448_vm3, %v1660_v32, %v666_v20  ;;  %v1248_v20 = vld [vmem:[%s1892_s5] ss:$0 sm:$0xff] }
 0x190   : > { %v608_v43 = vpop.f32.mrf.mxu0 }
 0x191   : > { %v630_v44 = vmax.f32 %v628_v42, 0.0  ;;  %v620_v45 = vmul.f32 %v1223_v37, %v608_v43 }
 0x192   : > { %v610_v46 = vpop.f32.mrf.mxu0 }
 0x193   : > { %v641_v47 = vcombine.high %v630_v44, %v630_v44  ;;  %647 = vst.msk [vmem:[#allocation3 + $0x9] sm:$0xf] %vm646_vm10, %v630_v44  ;;  %v629_v48 = vadd.f32 %v1224_v39, %v620_v45  ;;  %v755_v45 = vsel %vm458_vm5, %v751_v41, %v682_v22 }
 0x195   : > { %648 = vst.msk [vmem:[#allocation3 + $0x11] sm:$0xf] %vm646_vm10, %v641_v47  ;;  %v631_v49 = vmax.f32 %v629_v48, 0.0 }
 0x197   : > { %v642_v50 = vcombine.high %v631_v49, %v631_v49  ;;  %649 = vst.msk [vmem:[#allocation3 + $0x19] sm:$0xf] %vm646_vm10, %v631_v49 }
 0x199   : > { %650 = vst.msk [vmem:[#allocation3 + $0x21] sm:$0xf] %vm646_vm10, %v642_v50 }
 0x19a   : > { %v1684_v53 = vld [vmem:[#allocation3 + $0x8] sm:$0x3f] }
 0x19b   : > { %694 = vrot.lane.b32.xlu0 %v1684_v53, %s1439_s18  ;;  %v662_v54 = vrot.slane %v1684_v53, 1  ;;  %v678_v58 = vrot.slane %v1684_v53, 2 }
 0x19c   : > { %v1692_v56 = vld [vmem:[#allocation3 + $0x10] sm:$0x3f] }
 0x19d   : > { %667 = vrot.lane.b32.xlu1 %v662_v54, %s1434_s23  ;;  %v679_v61 = vrot.slane %v1692_v56, 2  ;;  %v663_v10 = vrot.slane %v1692_v56, 1 }
 0x19e   : > { %v1701_v59 = vld [vmem:[#allocation3 + $0x18] sm:$0x3f] }
 0x19f   : > { %712 = vrot.lane.b32.xlu0 %v678_v58, %s1434_s23  ;;  %v680_v62 = vrot.slane %v1701_v59, 2  ;;  %v664_v9 = vrot.slane %v1701_v59, 1 }
 0x1a0   : > { %v1709_v1 = vld [vmem:[#allocation3 + $0x20] sm:$0x3f] }
 0x1a1   : > { %683 = vrot.lane.b32.xlu1 %v678_v58, %s1437_s19  ;;  %v789_v3 = vcombine.low %v679_v61, %v680_v62  ;;  %v711_v5 = vrot.slane %v1709_v1, 2  ;;  %v706_v19 = vrot.slane %v1709_v1, 1 }
 0x1a3   : > { %725 = vrot.lane.b32.xlu0 %v1692_v56, %s1437_s19  ;;  %v792_v6 = vcombine.low %v711_v5, %v750_v60 }
 0x1a5   : > { %696 = vrot.lane.b32.xlu1 %v1692_v56, %s1439_s18  ;;  %v1727_v11 = vpack.c.bf16 %v792_v6, %v789_v3 }
 0x1a7   : > { %669 = vrot.lane.b32.xlu0 %v663_v10, %s1434_s23 }
 0x1a9   : > { %714 = vrot.lane.b32.xlu1 %v679_v61, %s1434_s23 }
 0x1ab   : > { %685 = vrot.lane.b32.xlu0 %v679_v61, %s1437_s19 }
 0x1ad   : > { %727 = vrot.lane.b32.xlu1 %v1701_v59, %s1437_s19 }
 0x1af   : > { %738 = vrot.lane.b32.xlu0 %v663_v10, %s1439_s18 }
 0x1b1   : > { %671 = vrot.lane.b32.xlu1 %v664_v9, %s1434_s23 }
 0x1b3   : > { %716 = vrot.lane.b32.xlu0 %v680_v62, %s1434_s23 }
 0x1b5   : > { %687 = vrot.lane.b32.xlu1 %v680_v62, %s1437_s19 }
 0x1b7   : > { %729 = vrot.lane.b32.xlu0 %v1709_v1, %s1437_s19 }
 0x1b9   : > { %740 = vrot.lane.b32.xlu1 %v664_v9, %s1439_s18 }
 0x1bb   : > { %742 = vrot.lane.b32.xlu0 %v706_v19, %s1439_s18 }
 0x1bd   : > { %718 = vrot.lane.b32.xlu1 %v711_v5, %s1434_s23  ;;  %s1259_s23 = sshll.u32 %s1510_s9, 8 }
 0x1be   : > { %s1829_s13 = scalar_lea.hbm %s1894_s7, %s1259_s23  ;;  %s1376_s23 = scalar_lea.vmem %s1375_s25, 512 }
 0x1bf   : > { %698 = vrot.lane.b32.xlu0 %v1701_v59, %s1439_s18 }
 0x1c1   : > { %700 = vrot.lane.b32.xlu1 %v1709_v1, %s1439_s18  ;;  %s1110_s18 = sshll.u32 %s299_s10, 4  ;;  %s1832_s18 = int_to_ptr.vmem [resolvable:$true] %s1110_s18 }
 0x1c2   : > { %s1370_s21 = scalar_lea.vmem %s1832_s18, 256  ;;  %p1377_p0 = scmp.lt.s32.totalorder %s1832_s18, %s1375_s25 }
 0x1c3   : > { %p1371_p11 = scmp.ne.s32.totalorder %s1832_s18, %s1370_s21  ;;  %p1378_p1 = scmp.lt.s32.totalorder %s1376_s23, %s1370_s21 }
 0x1c5   : > { %p1372_p12 = pnand %p1371_p11, %p1527_p5  ;;  %p1379_p2 = por %p1378_p1, %p1377_p0 }
 0x1c7   : > { %p1373_p13 = pneg %p1372_p12 }
 0x1c9   : > { %p1380_p3 = pnand %p1379_p2, %p1373_p13 }
 0x20d   : > { %v695_v24 = vpop.permute.xlu0 %694 }
 0x20e   : > { %v759_v6 = vsel %vm468_vm7, %v755_v45, %v695_v24 }
 0x20f   : > { %v668_v25 = vpop.permute.xlu1 %667 }
 0x210   : > { %v752_v43 = vsel %vm448_vm3, %v1684_v53, %v668_v25 }
 0x211   : > { %v713_v26 = vpop.permute.xlu0 %712 }
 0x212   : > { %v763_v46 = vsel %vm448_vm3, %v662_v54, %v713_v26  ;;  %v1075_v26 = vlaneseq }
 0x213   : > { %v684_v27 = vpop.permute.xlu1 %683 }
 0x214   : > { %v756_v47 = vsel %vm458_vm5, %v752_v43, %v684_v27 }
 0x215   : > { %v726_v28 = vpop.permute.xlu0 %725 }
 0x216   : > { %v767_v50 = vsel %vm458_vm5, %v763_v46, %v726_v28 }
 0x217   : > { %v697_v29 = vpop.permute.xlu1 %696 }
 0x218   : > { %v760_v55 = vsel %vm468_vm7, %v756_v47, %v697_v29 }
 0x219   : > { %v670_v30 = vpop.permute.xlu0 %669 }
 0x21a   : > { %v753_v53 = vsel %vm448_vm3, %v1692_v56, %v670_v30 }
 0x21b   : > { %v715_v31 = vpop.permute.xlu1 %714 }
 0x21c   : > { %v764_v44 = vsel %vm448_vm3, %v663_v10, %v715_v31  ;;  %v1225_v10 = vcombine.low %v759_v6, %v760_v55 }
 0x21d   : > { %v686_v33 = vpop.permute.xlu0 %685 }
 0x21e   : > { %v757_v1 = vsel %vm458_vm5, %v753_v53, %v686_v33  ;;  %v1076_v33 = vshrl.u32 %v1075_v26, 7 }
 0x21f   : > { %v728_v34 = vpop.permute.xlu1 %727 }
 0x220   : > { %v768_v48 = vsel %vm458_vm5, %v764_v44, %v728_v34 }
 0x221   : > { %v739_v35 = vpop.permute.xlu0 %738 }
 0x222   : > { %v771_v60 = vsel %vm468_vm7, %v767_v50, %v739_v35 }
 0x223   : > { %v672_v36 = vpop.permute.xlu1 %671 }
 0x224   : > { %v754_v61 = vsel %vm448_vm3, %v1701_v59, %v672_v36 }
 0x225   : > { %v717_v37 = vpop.permute.xlu0 %716 }
 0x226   : > { %v765_v32 = vsel %vm448_vm3, %v664_v9, %v717_v37 }
 0x227   : > { %v688_v38 = vpop.permute.xlu1 %687 }
 0x228   : > { %v758_v2 = vsel %vm458_vm5, %v754_v61, %v688_v38  ;;  %v1077_v38 = vsub.s32 2, %v1076_v33 }
 0x229   : > { %v730_v39 = vpop.permute.xlu0 %729 }
 0x22a   : > { %v769_v54 = vsel %vm458_vm5, %v765_v32, %v730_v39 }
 0x22b   : > { %v741_v40 = vpop.permute.xlu1 %740 }
 0x22c   : > { %v772_v51 = vsel %vm468_vm7, %v768_v48, %v741_v40 }
 0x22d   : > { %v743_v42 = vpop.permute.xlu0 %742  ;;  %v1226_v56 = vcombine.low %v771_v60, %v772_v51 }
 0x22e   : > { %v773_v62 = vsel %vm468_vm7, %v769_v54, %v743_v42 }
 0x22f   : > { %v719_v49 = vpop.permute.xlu1 %718 }
 0x230   : > { %v766_v52 = vsel %vm448_vm3, %v706_v19, %v719_v49 }
 0x231   : > { %v770_v57 = vsel %vm458_vm5, %v766_v52, %v732_v21  ;;  %v699_v58 = vpop.permute.xlu0 %698 }
 0x232   : > { %v774_v63 = vsel %vm468_vm7, %v770_v57, %v745_v23  ;;  %v761_v7 = vsel %vm468_vm7, %v757_v1, %v699_v58 }
 0x233   : > { %v701_v3 = vpop.permute.xlu1 %700  ;;  %v1228_v5 = vcombine.low %v773_v62, %v774_v63 }
 0x234   : > { %v762_v4 = vsel %vm468_vm7, %v758_v2, %v701_v3 }
 0x235   : > { %v1227_v12 = vcombine.low %v761_v7, %v762_v4  ;;  %v800_v59 = vpack.c.bf16 %v1228_v5, %v1226_v56 }
 0x237   : > { %981 = vmatprep.mubr.bf16.mxu1 %v800_v59  ;;  %v799_v14 = vpack.c.bf16 %v1227_v12, %v1225_v10 }
 0x239   : > { %982 = vmatmul.mubr.bf16.vlgmr.msra.gmra.mxu1 %v799_v14 }
 0x23a   : > { %1286 = vmatpush3.bf16.msra.mxu1 %v1368_v13  ;;  %1289 = vmatprep.mubr.msk.bf16.mxu1 %vm1441_vm11, %v1432_v0 }
 0x23b   : > { %1287 = vmatprep.subr.bf16.mxu1 %v1432_v0  ;;  %v1249_v0 = vld [vmem:[%s1893_s6] ss:$0 sm:$0xff] }
 0x23e   : > { %1288 = vmatpush3.bf16.msra.mxu1 %v1369_v8 }
 0x241   : > { %1290 = vmatmul.mubr.msk.bf16.vlgmr.msra.gmra.mxu1 %vm448_vm3, %v1727_v11 }
 0x2f9   : > { %v1276_v9 = vpop.f32.mrf.mxu1 }
 0x2fb   : > { %v1277_v15 = vpop.f32.mrf.mxu1 }
 0x2fc   : > { %v1278_v18 = vadd.f32 %v1277_v15, %v1276_v9 }
 0x2fd   : > { %v1279_v16 = vpop.f32.mrf.mxu1 }
 0x2ff   : > { %v1280_v17 = vpop.f32.mrf.mxu1 }
 0x300   : > { %v1281_v23 = vadd.f32 %v1280_v17, %v1279_v16 }
 0x301   : > { %v1024_v19 = vpop.f32.mrf.mxu1 }
 0x302   : > { %v1025_v21 = vadd.f32 %v1278_v18, %v1024_v19 }
 0x303   : > { %v1291_v22 = vpop.f32.mrf.mxu1 }
 0x304   : > { %v1038_v11 = vmul.f32 %v1248_v20, %v1025_v21 }
 0x305   : > { %v1027_v24 = vpop.f32.mrf.mxu1 }
 0x306   : > { %v1047_v25 = vadd.f32 %v1249_v0, %v1038_v11  ;;  %v1028_v27 = vadd.f32 %v1281_v23, %v1027_v24 }
 0x307   : > { %v1292_v28 = vpop.f32.mrf.mxu1 }
 0x308   : > { %v1049_v29 = vmax.f32 %v1047_v25, 0.0  ;;  %v1039_v30 = vmul.f32 %v1248_v20, %v1028_v27 }
 0x30a   : > { %v1053_v31 = vcombine.high %v1049_v29, %v1049_v29  ;;  %1057 = vst.msk [vmem:[%s299_s10] sm:$0xf] %vm646_vm10, %v1049_v29  ;;  %v1048_v34 = vadd.f32 %v1249_v0, %v1039_v30 }
 0x30c   : > { %1058 = vst.msk [vmem:[%s299_s10 + $0x4] sm:$0xf] %vm646_vm10, %v1053_v31  ;;  %v1061_v35 = vmax.f32 %v1049_v29, %v1053_v31  ;;  %v1050_v36 = vmax.f32 %v1048_v34, 0.0 }
 0x30e   : > { %v1250_v37 = vrot.slane %v1061_v35, 9  ;;  %v1054_v39 = vcombine.high %v1050_v36, %v1050_v36  ;;  %1059 = vst.msk [vmem:[%s299_s10 + $0x8] sm:$0xf] %vm646_vm10, %v1050_v36 }
 0x310   : > { %v1071_v40 = vmax.f32 %v1061_v35, %v1250_v37  ;;  %1060 = vst.msk [vmem:[%s299_s10 + $0xc] sm:$0xf] %vm646_vm10, %v1054_v39  ;;  %v1062_v41 = vmax.f32 %v1050_v36, %v1054_v39 }
 0x311   : > { %1383 = shalt.err (!%p1380_p3)
}
 0x312   : > { %s1384_s24 = scalar_lea.hbm %s1829_s13, 256  ;;  %s1388_s12 = scalar_lea.hbm %s1894_s7, 512 }
 0x313   : > { %p1385_p4 = scmp.ne.s32.totalorder %s1829_s13, %s1384_s24  ;;  %p1389_p9 = scmp.lt.s32.totalorder %s1829_s13, %s1894_s7 }
 0x314   : > { %p1390_p10 = scmp.lt.s32.totalorder %s1388_s12, %s1384_s24 }
 0x315   : > { %p1386_p7 = pnand %p1385_p4, %p1527_p5 }
 0x316   : > { %p1391_p11 = por %p1390_p10, %p1389_p9 }
 0x317   : > { %p1387_p8 = pneg %p1386_p7 }
 0x319   : > { %p1392_p12 = pnand %p1391_p11, %p1387_p8 }
 0x31b   : > { %1395 = shalt.err (!%p1392_p12)
}
 0x31c   : > { %s1443_s21 = smov 4   ;;  %s1898_s25 = sshll.u32 %s1545_s17, 2  ;;  %v1078_v42 = vrot.slane %v1071_v40, %v1077_v38  ;;  %vm1088_vm13 = vcmask 254976   ;;  %v1251_v43 = vrot.slane %v1062_v41, 9 }
 0x31d   : > { %1293 = dma.vmem_to_hbm [thread:$0]  (%p1527_p5), %s1832_s18, 256, %s1829_s13, %s1838_s20, %s1437_s19, %s1437_s19, %s1443_s21  }
 0x31e   : > { %s316_s9 = scalar_lea.vmem %s1895_s8, %s1898_s25  ;;  %v1086_v44 = vsel %vm1085_vm12, %v1071_v40, %v1078_v42  ;;  %v1072_v45 = vmax.f32 %v1062_v41, %v1251_v43 }
 0x31f   : > { %1089 = vst.msk [vmem:[%s316_s9] sm:$0x3] %vm1088_vm13, %v1086_v44 }
 0x320   : > { %v1082_v46 = vrot.slane %v1072_v45, %v1077_v38 }
 0x322   : > { %v1087_v47 = vsel %vm1085_vm12, %v1072_v45, %v1082_v46 }
 0x323   : > { %1090 = vst.msk [vmem:[%s316_s9 + $0x2] sm:$0x3] %vm1088_vm13, %v1087_v47 }
 0x324 PF: > { %p1299_p5 = scmp.ge.s32.totalorder %s1430_s30, 2  ;;  %s1128_s15 = sand.u32 1, %s1418_s27  }
 0x325   : > { %s1129_s17 = scalar_lea.sflag [#allocation5], %s1128_s15 }
 0x326   : > { %p1296_p13 = pnand %p1299_p5, %p1531_p6 }
 0x328   : > { %p1297_p0 = pneg %p1296_p13 }
 0x32a   : > { %1413 = dma.done.wait (%p1297_p0), %s1129_s17, 256  }
 0x32b   : > { %1415 = vsyncadd (%p1297_p0), %s1129_s17, 4294967040  ;;  %p19_p1 = scmp.ge.s32.totalorder %s1514_s11, 4   ;;  %s1899_s27 = smov %s1422_s28 }
 0x32c   : > { %s1900_s28 = smov %s1426_s29  ;;  %s1901_s29 = smov %s1525_s14 }
 0x32d   : > { %s1902_s30 = smov %s1514_s11  ;;  %21 = sbr.rel (!%p19_p1) target bundleno = 3 (0x3), region = 97 }
 0x332   :  { %1142 = vsyncpa [#allocation5], 1 }
 0x333   :  { %1144 = vsyncpa [#allocation5 + $0x1], 1 }

// kernel: encoder_forward.6
= control target key start
LH: loop header
LB: loop body
LE: loop exit
PB: predicated region body
PF: predicated region fallthrough
CT: control target
= control target key end

     0   :  { %14 = vsyncpa [#allocation5], 0  ;;  %s2936_s0 = inlined_call_operand.vmem [shape: f32[2,8,8,8], index: 0, kind: input, shape index: {}]   ;;  %s2937_s1 = inlined_call_operand.vmem [shape: bf16[72,16], index: 1, kind: input, shape index: {}]   ;;  %s2938_s2 = inlined_call_operand.vmem [shape: f32[1,16], index: 2, kind: input, shape index: {}]   ;;  %s2939_s3 = inlined_call_operand.vmem [shape: f32[1,16], index: 3, kind: input, shape index: {}]   ;;  %s2940_s4 = inlined_call_operand.vmem [shape: bf16[144,16], index: 4, kind: input, shape index: {}]   ;;  %s2941_s5 = inlined_call_operand.vmem [shape: f32[1,16], index: 5, kind: input, shape index: {}]   ;;  %s2942_s6 = inlined_call_operand.vmem [shape: f32[1,16], index: 6, kind: input, shape index: {}]   ;;  %s2943_s7 = inlined_call_operand.hbm [shape: f32[2,8,8,16], index: 7, kind: output, shape index: {0}]   ;;  %s2944_s8 = inlined_call_operand.vmem [shape: f32[2,4,4,16], index: 8, kind: output, shape index: {1}]  }
   0x1   :  { %16 = vsyncpa [#allocation5 + $0x1], 0  ;;  %s2187_s27 = smov 0   ;;  %s2189_s28 = smov 0  }
   0x2   :  { %s2191_s29 = smov 0   ;;  %s2193_s30 = smov 0  }
   0x3 LB: > { %s2208_s9 = sadd.s32 4294967295, %s2125_s30   ;;  %s1627_s10 = sadd.s32 4294967294, %s2125_s30   ;;  %s2125_s30 = sphi %s2193_s30, %s2950_s30   ;;  %s2121_s29 = sphi %s2191_s29, %s2949_s29   ;;  %s2117_s28 = sphi %s2189_s28, %s2948_s28   ;;  %s2113_s27 = sphi %s2187_s27, %s2947_s27  }
   0x4   : > { %s2212_s11 = sadd.s32 1, %s2125_s30   ;;  %s181_s12 = sadd.s32 1, %s2121_s29 }
   0x5   : > { %s178_s13 = ssub.s32 %s2125_s30, %s2212_s11  ;;  %p191_p0 = scmp.ne.s32.totalorder %s2121_s29, %s2117_s28 }
   0x6   : > { %p179_p1 = scmp.eq.s32.totalorder %s178_s13, 0  ;;  %p192_p2 = scmp.eq.s32.totalorder %s2208_s9, 1 }
   0x7   : > { %p197_p3 = scmp.ne.s32.totalorder %s2117_s28, %s2113_s27  ;;  %p198_p4 = scmp.eq.s32.totalorder %s1627_s10, 1 }
   0x8   : > { %s2223_s14 = scalar_select %p179_p1, %s2121_s29, %s181_s12  }
   0x9   : > { %p2225_p5 = por %p192_p2, %p191_p0  ;;  %p2229_p6 = por %p198_p4, %p197_p3 }
   0xa   : > { %p1630_p7 = scmp.ge.s32.totalorder %s2125_s30, 1  ;;  %p268_p8 = scmp.lt.s32.totalorder %s2125_s30, 3 }
   0xc   : > { %p269_p9 = pnand %p1630_p7, %p268_p8 }
   0xd   : > { %p307_p10 = scmp.lt.s32.totalorder (!%p269_p9), %s2208_s9, 1  ;;  %s2128_s22 = smov (!%p269_p9), 24  }
   0xe   : > { %272 = sbr.rel (%p269_p9) target bundleno = 809 (0x329), region = 48  ;;  %s2129_s23 = smov (!%p269_p9), 16  }
   0xf   : > { %s2130_s24 = smov (!%p269_p9), 8   ;;  %s2131_s25 = smov (!%p269_p9), 32  }
  0x10   : > { %s2132_s12 = smov (!%p269_p9), 40   ;;  %s2133_s19 = smov (!%p269_p9), 48  }
  0x11   : > { %s2134_s26 = smov (!%p269_p9), 56   ;;  %s2139_s10 = smov (!%p269_p9), 112  }
  0x13   : > { %vm318_vm0 = vcmask 64512   ;;  %vm320_vm1 = vcmask 58368   ;;  %v2127_v0 = vmov 0.0   ;;  %s2279_s17 = scalar_select %p307_p10, %s2208_s9, 1  ;;  %vm659_vm2 = vcmask 130048  }
  0x14   : > { %326 = vst.msk [vmem:[#allocation2 + $0x30] sm:$0xff] %vm318_vm0, %v2127_v0  ;;  %328 = vst.msk [vmem:[#allocation2 + $0x40] sm:$0xff] %vm318_vm0, %v2127_v0  ;;  %vm442_vm3 = vcmask 1045504   ;;  %vm393_vm4 = vcmask 1046528   ;;  %v2051_v63 = vld [vmem:[%s2937_s1 + $0x20] ss:$0 sps:$4 sm:$0xff]  }
  0x15   : > { %327 = vst.msk [vmem:[#allocation2 + $0x38] sm:$0x3] %vm320_vm1, %v2127_v0  ;;  %329 = vst.msk [vmem:[#allocation2 + $0x48] sm:$0x3] %vm320_vm1, %v2127_v0  ;;  %s1667_s18 = sshll.u32 %s2279_s17, 6  ;;  %vm775_vm5 = vcmask 1043456  }
  0x16   : > { %319 = vst.msk [vmem:[#allocation2] sm:$0xff] %vm318_vm0, %v2127_v0  ;;  %322 = vst.msk [vmem:[#allocation2 + $0x10] sm:$0xff] %vm318_vm0, %v2127_v0  ;;  %s311_s21 = scalar_lea.vmem %s2936_s0, %s1667_s18  ;;  %1697 = vmatprep.subr.msk.bf16.mxu0 %vm775_vm5, %v2051_v63  ;;  %s2135_s18 = smov 64   ;;  %vm668_vm6 = vcmask 195584   ;;  %vm677_vm7 = vcmask 261120   ;;  %vm686_vm8 = vcmask 326656  }
  0x17   : > { %321 = vst.msk [vmem:[#allocation2 + $0x8] sm:$0x3] %vm320_vm1, %v2127_v0  ;;  %323 = vst.msk [vmem:[#allocation2 + $0x18] sm:$0x3] %vm320_vm1, %v2127_v0  ;;  %v342_v1 = vld [vmem:[%s311_s21 + $0x10] sm:$0xff]  ;;  %v343_v2 = vld [vmem:[%s311_s21 + $0x18] sm:$0xff] }
  0x18   : > { %324 = vst.msk [vmem:[#allocation2 + $0x20] sm:$0xff] %vm318_vm0, %v2127_v0  ;;  %330 = vst.msk [vmem:[#allocation2 + $0x50] sm:$0xff] %vm318_vm0, %v2127_v0  ;;  %v340_v3 = vld [vmem:[%s311_s21] sm:$0xff]  ;;  %v341_v4 = vld [vmem:[%s311_s21 + $0x8] sm:$0xff]  ;;  %vm695_vm9 = vcmask 392192   ;;  %vm704_vm10 = vcmask 457728  }
  0x19   : > { %325 = vst.msk [vmem:[#allocation2 + $0x28] sm:$0x3] %vm320_vm1, %v2127_v0  ;;  %331 = vst.msk [vmem:[#allocation2 + $0x58] sm:$0x3] %vm320_vm1, %v2127_v0  ;;  %v344_v5 = vld [vmem:[%s311_s21 + $0x20] sm:$0xff]  ;;  %v345_v6 = vld [vmem:[%s311_s21 + $0x28] sm:$0xff] }
  0x1a   : > { %332 = vst.msk [vmem:[#allocation2 + $0x60] sm:$0xff] %vm318_vm0, %v2127_v0  ;;  %334 = vst.msk [vmem:[#allocation2 + $0x70] sm:$0xff] %vm318_vm0, %v2127_v0  ;;  %v346_v9 = vld [vmem:[%s311_s21 + $0x30] sm:$0xff]  ;;  %v347_v10 = vld [vmem:[%s311_s21 + $0x38] sm:$0xff]  ;;  %vm713_vm11 = vcmask 523264   ;;  %vm762_vm12 = vcmask 588800  }
  0x1b   : > { %333 = vst.msk [vmem:[#allocation2 + $0x68] sm:$0x3] %vm320_vm1, %v2127_v0  ;;  %335 = vst.msk [vmem:[#allocation2 + $0x78] sm:$0x3] %vm320_vm1, %v2127_v0  ;;  %vm883_vm13 = vcmask 123904   ;;  %s2137_s21 = smov 96  }
  0x1c   : > { %336 = vst.msk [vmem:[#allocation2 + $0x80] sm:$0xff] %vm318_vm0, %v2127_v0  ;;  %338 = vst.msk [vmem:[#allocation2 + $0x90] sm:$0xff] %vm318_vm0, %v2127_v0  ;;  %vm1220_vm14 = vcmask 654336   ;;  %vm1229_vm15 = vcmask 785408  }
  0x1d   : > { %337 = vst.msk [vmem:[#allocation2 + $0x88] sm:$0x3] %vm320_vm1, %v2127_v0  ;;  %339 = vst.msk [vmem:[#allocation2 + $0x98] sm:$0x3] %vm320_vm1, %v2127_v0  ;;  %v2289_v7 = vld [vmem:[#allocation2] sm:$0xff]  ;;  %vm1498_vm1 = vcmask 1040384  }
  0x1e   : > { %351 = vst.msk [vmem:[#allocation2 + $0x31] sm:$0xff] %vm318_vm0, %v342_v1  ;;  %352 = vst.msk [vmem:[#allocation2 + $0x41] sm:$0xff] %vm318_vm0, %v343_v2  ;;  %v358_v8 = vld [vmem:[#allocation2 + $0x8] sm:$0x3]  ;;  %v443_v11 = vrot.slane %v2289_v7, 2  ;;  %v394_v13 = vrot.slane %v2289_v7, 1 }
  0x1f   : > { %349 = vst.msk [vmem:[#allocation2 + $0x11] sm:$0xff] %vm318_vm0, %v340_v3  ;;  %350 = vst.msk [vmem:[#allocation2 + $0x21] sm:$0xff] %vm318_vm0, %v341_v4  ;;  %v444_v12 = vrot.slane %v358_v8, 2  ;;  %v395_v14 = vrot.slane %v358_v8, 1  ;;  %v2052_v8 = vld [vmem:[%s2937_s1 + $0x18] sm:$0xff]  }
  0x20   : > { %353 = vst.msk [vmem:[#allocation2 + $0x51] sm:$0xff] %vm318_vm0, %v344_v5  ;;  %354 = vst.msk [vmem:[#allocation2 + $0x61] sm:$0xff] %vm318_vm0, %v345_v6 }
  0x21   : > { %355 = vst.msk [vmem:[#allocation2 + $0x71] sm:$0xff] %vm318_vm0, %v346_v9  ;;  %356 = vst.msk [vmem:[#allocation2 + $0x81] sm:$0xff] %vm318_vm0, %v347_v10  ;;  %v445_v18 = vsel %vm442_vm3, %v443_v11, %v444_v12  ;;  %v396_v27 = vsel %vm393_vm4, %v394_v13, %v395_v14  ;;  %v777_v12 = vsel %vm775_vm5, %v2051_v63, 0  ;;  %vm1513_vm5 = vcmask 125952  }
  0x22   : > { %882 = vst.msk [vmem:[#allocation3] sm:$0xff] %vm659_vm2, %v2127_v0  ;;  %885 = vst.msk [vmem:[#allocation3 + $0x10] sm:$0xff] %vm659_vm2, %v2127_v0  ;;  %1680 = vmatpush3.bf16.msra.mxu0 %v777_v12 }
  0x23   : > { %887 = vst.msk [vmem:[#allocation3 + $0x20] sm:$0xff] %vm659_vm2, %v2127_v0  ;;  %889 = vst.msk [vmem:[#allocation3 + $0x30] sm:$0xff] %vm659_vm2, %v2127_v0  ;;  %1681 = vmatprep.subr.bf16.mxu0 %v2052_v8 }
  0x24   : > { %891 = vst.msk [vmem:[#allocation3 + $0x40] sm:$0xff] %vm659_vm2, %v2127_v0  ;;  %893 = vst.msk [vmem:[#allocation3 + $0x50] sm:$0xff] %vm659_vm2, %v2127_v0 }
  0x25   : > { %895 = vst.msk [vmem:[#allocation3 + $0x60] sm:$0xff] %vm659_vm2, %v2127_v0  ;;  %897 = vst.msk [vmem:[#allocation3 + $0x70] sm:$0xff] %vm659_vm2, %v2127_v0  ;;  %v2317_v15 = vld [vmem:[#allocation2 + $0x30] sm:$0xff]  ;;  %v2319_v16 = vld [vmem:[#allocation2 + $0x40] sm:$0xff] }
  0x26   : > { %899 = vst.msk [vmem:[#allocation3 + $0x80] sm:$0xff] %vm659_vm2, %v2127_v0  ;;  %901 = vst.msk [vmem:[#allocation3 + $0x90] sm:$0xff] %vm659_vm2, %v2127_v0  ;;  %v2321_v17 = vld [vmem:[#allocation2 + $0x10] sm:$0xff]  ;;  %v1756_v19 = vpack.i.bf16 %v2319_v16, %v2317_v15  ;;  %v2326_v20 = vld [vmem:[#allocation2 + $0x20] sm:$0xff]  ;;  %v452_v24 = vrot.slane %v2317_v15, 2  ;;  %v403_v38 = vrot.slane %v2317_v15, 1  ;;  %1682 = vmatpush3.bf16.msra.mxu0 %v2052_v8 }
  0x27   : > { %v360_v21 = vld [vmem:[#allocation2 + $0x18] sm:$0x3]  ;;  %v446_v22 = vrot.slane %v2321_v17, 2  ;;  %v397_v23 = vrot.slane %v2321_v17, 1  ;;  %v1751_v25 = vpack.i.bf16 %v2326_v20, %v2321_v17  ;;  %v362_v29 = vld [vmem:[#allocation2 + $0x28] sm:$0x3]  ;;  %v1796_v2 = vpack.i.bf16 %v2317_v15, %v2326_v20 }
  0x28   : > { %v447_v26 = vrot.slane %v360_v21, 2  ;;  %v398_v28 = vrot.slane %v360_v21, 1  ;;  %v364_v30 = vld [vmem:[#allocation2 + $0x38] sm:$0x3]  ;;  %1757 = vrot.lane.b32.xlu1 %v1756_v19, %s2128_s22  ;;  %v449_v31 = vrot.slane %v2326_v20, 2  ;;  %v450_v32 = vrot.slane %v362_v29, 2 }
  0x29   : > { %v453_v33 = vrot.slane %v364_v30, 2  ;;  %v400_v34 = vrot.slane %v2326_v20, 1  ;;  %1752 = vrot.lane.b32.xlu0 %v1751_v25, %s2128_s22  ;;  %v401_v37 = vrot.slane %v362_v29, 1  ;;  %v366_v39 = vld [vmem:[#allocation2 + $0x48] sm:$0x3]  ;;  %v404_v45 = vrot.slane %v364_v30, 1 }
  0x2a   : > { %v448_v35 = vsel %vm442_vm3, %v446_v22, %v447_v26  ;;  %v399_v36 = vsel %vm393_vm4, %v397_v23, %v398_v28  ;;  %v451_v42 = vsel %vm442_vm3, %v449_v31, %v450_v32  ;;  %v406_v46 = vrot.slane %v2319_v16, 1  ;;  %v2356_v57 = vld [vmem:[#allocation2 + $0x50] sm:$0xff]  ;;  %v368_v58 = vld [vmem:[#allocation2 + $0x58] sm:$0x3]  ;;  %v2374_v6 = vld [vmem:[#allocation2 + $0x60] sm:$0xff] }
  0x2b   : > { %v1771_v40 = vpack.i.bf16 %v448_v35, %v445_v18  ;;  %v1761_v41 = vpack.i.bf16 %v399_v36, %v396_v27  ;;  %v454_v43 = vsel %vm442_vm3, %v452_v24, %v453_v33  ;;  %v402_v44 = vsel %vm393_vm4, %v400_v34, %v401_v37  ;;  %v370_v9 = vld [vmem:[#allocation2 + $0x68] sm:$0x3]  ;;  %v2379_v10 = vld [vmem:[#allocation2 + $0x70] sm:$0xff]  ;;  %v372_v11 = vld [vmem:[#allocation2 + $0x78] sm:$0x3] }
  0x2c   : > { %v2346_v47 = vpack.i.bf16 %v454_v43, %v451_v42  ;;  %v407_v48 = vrot.slane %v366_v39, 1  ;;  %v405_v49 = vsel %vm393_vm4, %v403_v38, %v404_v45  ;;  %v455_v50 = vrot.slane %v2319_v16, 2  ;;  %v2053_v23 = vld [vmem:[%s2937_s1 + $0x10] sm:$0xff]   ;;  %v2054_v31 = vld [vmem:[%s2937_s1 + $0x8] sm:$0xff]   ;;  %890 = vst.msk [vmem:[#allocation3 + $0x38] sm:$0x3] %vm883_vm13, %v2127_v0 }
  0x2d   : > { %1772 = vrot.lane.b32.xlu1 %v1771_v40, %s2129_s23  ;;  %1762 = vrot.lane.b32.xlu0 %v1761_v41, %s2130_s24  ;;  %v456_v51 = vrot.slane %v366_v39, 2  ;;  %v1766_v52 = vpack.i.bf16 %v405_v49, %v402_v44  ;;  %v1781_v55 = vpack.i.bf16 %v402_v44, %v399_v36  ;;  %v1791_v60 = vpack.i.bf16 %v451_v42, %v448_v35  ;;  %v2055_v35 = vld [vmem:[%s2937_s1] sm:$0xff]   ;;  %v374_v37 = vld [vmem:[#allocation2 + $0x88] sm:$0x3] }
  0x2e   : > { %v408_v53 = vsel %vm393_vm4, %v406_v46, %v407_v48  ;;  %v409_v61 = vrot.slane %v2356_v57, 1  ;;  %v410_v62 = vrot.slane %v368_v58, 1  ;;  %v1806_v1 = vpack.i.bf16 %v2356_v57, %v2319_v16  ;;  %1683 = vmatprep.subr.bf16.mxu0 %v2053_v23  ;;  %v373_v36 = vld [vmem:[#allocation2 + $0x80] sm:$0xff]  ;;  %884 = vst.msk [vmem:[#allocation3 + $0x8] sm:$0x3] %vm883_vm13, %v2127_v0 }
  0x2f   : > { %v1786_v54 = vpack.i.bf16 %v408_v53, %v405_v49  ;;  %v457_v56 = vsel %vm442_vm3, %v455_v50, %v456_v51  ;;  %v458_v4 = vrot.slane %v2356_v57, 2  ;;  %v459_v5 = vrot.slane %v368_v58, 2  ;;  %1684 = vmatpush3.bf16.msra.mxu0 %v2053_v23  ;;  %v375_v49 = vld [vmem:[#allocation2 + $0x90] sm:$0xff]  ;;  %v376_v50 = vld [vmem:[#allocation2 + $0x98] sm:$0x3] }
  0x30   : > { %v1801_v59 = vpack.i.bf16 %v457_v56, %v454_v43  ;;  %v2371_v3 = vsel %vm393_vm4, %v409_v61, %v410_v62  ;;  %v412_v14 = vrot.slane %v2374_v6, 1  ;;  %v413_v19 = vrot.slane %v370_v9, 1  ;;  %1685 = vmatprep.subr.bf16.mxu0 %v2054_v31  ;;  %886 = vst.msk [vmem:[#allocation3 + $0x18] sm:$0x3] %vm883_vm13, %v2127_v0  ;;  %888 = vst.msk [vmem:[#allocation3 + $0x28] sm:$0x3] %vm883_vm13, %v2127_v0 }
  0x31   : > { %1777 = vrot.lane.b32.xlu1 %v2346_v47, %s2129_s23  ;;  %1767 = vrot.lane.b32.xlu0 %v1766_v52, %s2130_s24  ;;  %v1816_v13 = vpack.i.bf16 %v2371_v3, %v408_v53  ;;  %v460_v18 = vsel %vm442_vm3, %v458_v4, %v459_v5  ;;  %v415_v21 = vrot.slane %v2379_v10, 1  ;;  %v416_v22 = vrot.slane %v372_v11, 1  ;;  %892 = vst.msk [vmem:[#allocation3 + $0x48] sm:$0x3] %vm883_vm13, %v2127_v0 }
  0x32   : > { %v1826_v24 = vpack.i.bf16 %v460_v18, %v457_v56  ;;  %v461_v25 = vrot.slane %v2374_v6, 2  ;;  %v462_v26 = vrot.slane %v370_v9, 2  ;;  %v414_v27 = vsel %vm393_vm4, %v412_v14, %v413_v19  ;;  %894 = vst.msk [vmem:[#allocation3 + $0x58] sm:$0x3] %vm883_vm13, %v2127_v0  ;;  %896 = vst.msk [vmem:[#allocation3 + $0x68] sm:$0x3] %vm883_vm13, %v2127_v0 }
  0x33   : > { %v417_v28 = vsel %vm393_vm4, %v415_v21, %v416_v22  ;;  %v464_v29 = vrot.slane %v2379_v10, 2  ;;  %v465_v30 = vrot.slane %v372_v11, 2  ;;  %1686 = vmatpush3.bf16.msra.mxu0 %v2054_v31  ;;  %v517_v39 = vrot.slane %v373_v36, 1  ;;  %898 = vst.msk [vmem:[#allocation3 + $0x78] sm:$0x3] %vm883_vm13, %v2127_v0 }
  0x34   : > { %v1836_v32 = vpack.i.bf16 %v417_v28, %v414_v27  ;;  %v463_v33 = vsel %vm442_vm3, %v461_v25, %v462_v26  ;;  %v518_v40 = vrot.slane %v374_v37, 1  ;;  %1687 = vmatprep.subr.bf16.mxu0 %v2055_v35  ;;  %v1856_v41 = vpack.i.bf16 %v373_v36, %v2379_v10  ;;  %900 = vst.msk [vmem:[#allocation3 + $0x88] sm:$0x3] %vm883_vm13, %v2127_v0 }
  0x35   : > { %1787 = vrot.lane.b32.xlu1 %v1786_v54, %s2131_s25  ;;  %1782 = vrot.lane.b32.xlu0 %v1781_v55, %s2131_s25  ;;  %v466_v34 = vsel %vm442_vm3, %v464_v29, %v465_v30  ;;  %v1851_v42 = vpack.i.bf16 %v2374_v6, %v2356_v57  ;;  %v544_v44 = vrot.slane %v373_v36, 2  ;;  %v545_v45 = vrot.slane %v374_v37, 2  ;;  %902 = vst.msk [vmem:[#allocation3 + $0x98] sm:$0x3] %vm883_vm13, %v2127_v0  ;;  %v2535_v0 = vld [vmem:[%s2938_s2] ss:$0 sm:$0xff] }
  0x36   : > { %v1846_v38 = vpack.i.bf16 %v466_v34, %v463_v33  ;;  %v519_v43 = vsel %vm393_vm4, %v517_v39, %v518_v40  ;;  %v597_v53 = vrot.slane %v375_v49, 1  ;;  %v598_v54 = vrot.slane %v376_v50, 1 }
  0x37   : > { %1688 = vmatpush3.bf16.msra.mxu0 %v2055_v35  ;;  %v1866_v46 = vpack.i.bf16 %v519_v43, %v417_v28  ;;  %v546_v48 = vsel %vm442_vm3, %v544_v44, %v545_v45  ;;  %v1886_v55 = vpack.i.bf16 %v375_v49, %v373_v36  ;;  %v624_v56 = vrot.slane %v375_v49, 2 }
  0x38   : > { %v1876_v51 = vpack.i.bf16 %v546_v48, %v466_v34  ;;  %v1881_v58 = vpack.i.bf16 %v2379_v10, %v2374_v6 }
  0x39   : > { %1802 = vrot.lane.b32.xlu1 %v1801_v59, %s2132_s12  ;;  %1792 = vrot.lane.b32.xlu0 %v1791_v60, %s2132_s12  ;;  %v599_v59 = vsel %vm393_vm4, %v597_v53, %v598_v54  ;;  %v625_v60 = vrot.slane %v376_v50, 2 }
  0x3a   : > { %v1896_v61 = vpack.i.bf16 %v599_v59, %v519_v43 }
  0x3b   : > { %v626_v62 = vsel %vm442_vm3, %v624_v56, %v625_v60 }
  0x3c   : > { %v1906_v63 = vpack.i.bf16 %v626_v62, %v546_v48 }
  0x3d   : > { %1807 = vrot.lane.b32.xlu1 %v1806_v1, %s2133_s19  ;;  %1797 = vrot.lane.b32.xlu0 %v1796_v2, %s2133_s19 }
  0x41   : > { %1817 = vrot.lane.b32.xlu1 %v1816_v13, %s2134_s26  ;;  %1812 = vrot.lane.b32.xlu0 %v1766_v52, %s2134_s26  ;;  %v1871_v52 = vpack.i.bf16 %v463_v33, %v460_v18 }
  0x45   : > { %1827 = vrot.lane.b32.xlu1 %v1826_v24, %s2135_s18  ;;  %1822 = vrot.lane.b32.xlu0 %v2346_v47, %s2135_s18  ;;  %v1861_v47 = vpack.i.bf16 %v414_v27, %v2371_v3 }
  0x49   : > { %1837 = vrot.lane.b32.xlu1 %v1836_v32, %s2130_s24  ;;  %1832 = vrot.lane.b32.xlu0 %v1816_v13, %s2130_s24 }
  0x4d   : > { %1847 = vrot.lane.b32.xlu1 %v1846_v38, %s2129_s23  ;;  %1842 = vrot.lane.b32.xlu0 %v1826_v24, %s2129_s23 }
  0x51   : > { %1857 = vrot.lane.b32.xlu1 %v1856_v41, %s2128_s22  ;;  %1852 = vrot.lane.b32.xlu0 %v1851_v42, %s2128_s22  ;;  %s1668_s22 = sshll.u32 %s2279_s17, 4  ;;  %s1669_s17 = sshll.u32 %s2208_s9, 10 }
  0x52   : > { %s2877_s13 = scalar_lea.hbm %s2943_s7, %s1669_s17 }
  0x55   : > { %1867 = vrot.lane.b32.xlu1 %v1866_v46, %s2131_s25  ;;  %1862 = vrot.lane.b32.xlu0 %v1861_v47, %s2131_s25 }
  0x59   : > { %1877 = vrot.lane.b32.xlu1 %v1876_v51, %s2132_s12  ;;  %1872 = vrot.lane.b32.xlu0 %v1871_v52, %s2132_s12 }
  0x5d   : > { %1887 = vrot.lane.b32.xlu1 %v1886_v55, %s2133_s19  ;;  %1882 = vrot.lane.b32.xlu0 %v1881_v58, %s2133_s19 }
  0x61   : > { %1897 = vrot.lane.b32.xlu1 %v1896_v61, %s2134_s26  ;;  %1892 = vrot.lane.b32.xlu0 %v1836_v32, %s2134_s26  ;;  %s2138_s26 = smov 80  }
  0x65   : > { %1907 = vrot.lane.b32.xlu1 %v1906_v63, %s2135_s18  ;;  %1902 = vrot.lane.b32.xlu0 %v1846_v38, %s2135_s18 }
  0x9a   : > { %v1758_v1 = vpop.permute.xlu1 %1757 }
  0x9b   : > { %v1753_v2 = vpop.permute.xlu0 %1752  ;;  %v1759_v32 = vunpack.i.l.bf16 %v1758_v1 }
  0x9c   : > { %v1755_v34 = vunpack.i.h.bf16 %v1753_v2 }
  0x9f   : > { %v1773_v3 = vpop.permute.xlu1 %1772  ;;  %v1763_v4 = vpop.permute.xlu0 %1762 }
  0xa0   : > { %v1765_v13 = vunpack.i.h.bf16 %v1763_v4  ;;  %v1764_v14 = vunpack.i.l.bf16 %v1763_v4  ;;  %v1775_v22 = vunpack.i.h.bf16 %v1773_v3  ;;  %v1774_v23 = vunpack.i.l.bf16 %v1773_v3 }
  0xa2   : > { %v652_v27 = vsel %vm318_vm0, %v2321_v17, %v1765_v13  ;;  %v651_v28 = vsel %vm318_vm0, %v2289_v7, %v1764_v14  ;;  %v1754_v7 = vunpack.i.l.bf16 %v1753_v2 }
  0xa3   : > { %v1778_v5 = vpop.permute.xlu1 %1777  ;;  %v1768_v8 = vpop.permute.xlu0 %1767  ;;  %v660_v33 = vsel %vm659_vm2, %v651_v28, %v1774_v23 }
  0xa4   : > { %v1770_v9 = vunpack.i.h.bf16 %v1768_v8  ;;  %v1769_v11 = vunpack.i.l.bf16 %v1768_v8  ;;  %v1780_v19 = vunpack.i.h.bf16 %v1778_v5  ;;  %v1779_v21 = vunpack.i.l.bf16 %v1778_v5 }
  0xa5   : > { %v669_v42 = vsel %vm668_vm6, %v660_v33, %v1754_v7 }
  0xa6   : > { %v654_v24 = vsel %vm318_vm0, %v2317_v15, %v1770_v9  ;;  %v653_v25 = vsel %vm318_vm0, %v2326_v20, %v1769_v11  ;;  %v1760_v15 = vunpack.i.h.bf16 %v1758_v1  ;;  %v661_v20 = vsel %vm659_vm2, %v652_v27, %v1775_v22 }
  0xa7   : > { %v1788_v12 = vpop.permute.xlu1 %1787  ;;  %v1783_v18 = vpop.permute.xlu0 %1782  ;;  %v663_v30 = vsel %vm659_vm2, %v654_v24, %v1780_v19  ;;  %v662_v31 = vsel %vm659_vm2, %v653_v25, %v1779_v21  ;;  %v670_v43 = vsel %vm668_vm6, %v661_v20, %v1755_v34 }
  0xa8   : > { %v1790_v35 = vunpack.i.h.bf16 %v1788_v12  ;;  %v1789_v36 = vunpack.i.l.bf16 %v1788_v12  ;;  %v671_v38 = vsel %vm668_vm6, %v662_v31, %v1759_v32  ;;  %v672_v39 = vsel %vm668_vm6, %v663_v30, %v1760_v15 }
  0xa9   : > { %v1785_v40 = vunpack.i.h.bf16 %v1783_v18  ;;  %v1784_v41 = vunpack.i.l.bf16 %v1783_v18 }
  0xaa   : > { %v680_v51 = vsel %vm677_vm7, %v671_v38, %v1789_v36  ;;  %v681_v52 = vsel %vm677_vm7, %v672_v39, %v1790_v35 }
  0xab   : > { %v1803_v26 = vpop.permute.xlu1 %1802  ;;  %v1793_v29 = vpop.permute.xlu0 %1792  ;;  %v678_v56 = vsel %vm677_vm7, %v669_v42, %v1784_v41  ;;  %v679_v58 = vsel %vm677_vm7, %v670_v43, %v1785_v40 }
  0xac   : > { %v1805_v44 = vunpack.i.h.bf16 %v1803_v26  ;;  %v1804_v45 = vunpack.i.l.bf16 %v1803_v26  ;;  %v1795_v46 = vunpack.i.h.bf16 %v1793_v29  ;;  %v1794_v47 = vunpack.i.l.bf16 %v1793_v29 }
  0xae   : > { %v689_v61 = vsel %vm686_vm8, %v680_v51, %v1804_v45  ;;  %v690_v62 = vsel %vm686_vm8, %v681_v52, %v1805_v44  ;;  %v687_v2 = vsel %vm686_vm8, %v678_v56, %v1794_v47  ;;  %v688_v3 = vsel %vm686_vm8, %v679_v58, %v1795_v46 }
  0xaf   : > { %v1808_v17 = vpop.permute.xlu1 %1807  ;;  %v1798_v37 = vpop.permute.xlu0 %1797 }
  0xb0   : > { %v1810_v48 = vunpack.i.h.bf16 %v1808_v17  ;;  %v1809_v49 = vunpack.i.l.bf16 %v1808_v17  ;;  %v1800_v53 = vunpack.i.h.bf16 %v1798_v37  ;;  %v1799_v54 = vunpack.i.l.bf16 %v1798_v37 }
  0xb2   : > { %v698_v4 = vsel %vm695_vm9, %v689_v61, %v1809_v49  ;;  %v699_v5 = vsel %vm695_vm9, %v690_v62, %v1810_v48  ;;  %v696_v9 = vsel %vm695_vm9, %v687_v2, %v1799_v54  ;;  %v697_v11 = vsel %vm695_vm9, %v688_v3, %v1800_v53 }
  0xb3   : > { %v1818_v50 = vpop.permute.xlu1 %1817  ;;  %v1813_v55 = vpop.permute.xlu0 %1812 }
  0xb4   : > { %v1820_v59 = vunpack.i.h.bf16 %v1818_v50  ;;  %v1819_v60 = vunpack.i.l.bf16 %v1818_v50  ;;  %v1815_v63 = vunpack.i.h.bf16 %v1813_v55  ;;  %v1814_v1 = vunpack.i.l.bf16 %v1813_v55 }
  0xb6   : > { %v707_v18 = vsel %vm704_vm10, %v698_v4, %v1819_v60  ;;  %v708_v19 = vsel %vm704_vm10, %v699_v5, %v1820_v59  ;;  %v705_v25 = vsel %vm704_vm10, %v696_v9, %v1814_v1  ;;  %v706_v26 = vsel %vm704_vm10, %v697_v11, %v1815_v63 }
  0xb7   : > { %v1828_v8 = vpop.permute.xlu1 %1827  ;;  %v1823_v14 = vpop.permute.xlu0 %1822 }
  0xb8   : > { %v1830_v12 = vunpack.i.h.bf16 %v1828_v8  ;;  %v1829_v13 = vunpack.i.l.bf16 %v1828_v8  ;;  %v1825_v21 = vunpack.i.h.bf16 %v1823_v14  ;;  %v1824_v22 = vunpack.i.l.bf16 %v1823_v14 }
  0xba   : > { %v716_v23 = vsel %vm713_vm11, %v707_v18, %v1829_v13  ;;  %v717_v24 = vsel %vm713_vm11, %v708_v19, %v1830_v12  ;;  %v714_v29 = vsel %vm713_vm11, %v705_v25, %v1824_v22  ;;  %v715_v30 = vsel %vm713_vm11, %v706_v26, %v1825_v21 }
  0xbb   : > { %v723_v27 = vpack.c.bf16 %v717_v24, %v716_v23  ;;  %v1838_v28 = vpop.permute.xlu1 %1837  ;;  %v1833_v31 = vpop.permute.xlu0 %1832  ;;  %v722_v15 = vpack.c.bf16 %v715_v30, %v714_v29 }
  0xbc   : > { %v1840_v35 = vunpack.i.h.bf16 %v1838_v28  ;;  %v1839_v36 = vunpack.i.l.bf16 %v1838_v28  ;;  %v1835_v37 = vunpack.i.h.bf16 %v1833_v31  ;;  %v1834_v38 = vunpack.i.l.bf16 %v1833_v31 }
  0xbd   : > { %1689 = vmatprep.mubr.msk.bf16.mxu0 %vm762_vm12, %v722_v15 }
  0xbe   : > { %1690 = vmatmul.mubr.msk.bf16.vlgmr.msra.gmra.mxu0 %vm762_vm12, %v723_v27  ;;  %v658_v47 = vsel %vm318_vm0, %v2379_v10, %v1840_v35  ;;  %v657_v48 = vsel %vm318_vm0, %v2374_v6, %v1839_v36  ;;  %v656_v51 = vsel %vm318_vm0, %v2356_v57, %v1835_v37  ;;  %v655_v52 = vsel %vm318_vm0, %v2319_v16, %v1834_v38 }
  0xbf   : > { %v1848_v32 = vpop.permute.xlu1 %1847  ;;  %v1843_v20 = vpop.permute.xlu0 %1842  ;;  %vm1238_vm0 = vcmask 916480  }
  0xc0   : > { %v1850_v39 = vunpack.i.h.bf16 %v1848_v32  ;;  %v1849_v40 = vunpack.i.l.bf16 %v1848_v32  ;;  %v1845_v42 = vunpack.i.h.bf16 %v1843_v20  ;;  %v1844_v43 = vunpack.i.l.bf16 %v1843_v20 }
  0xc2   : > { %v666_v53 = vsel %vm659_vm2, %v657_v48, %v1849_v40  ;;  %v667_v54 = vsel %vm659_vm2, %v658_v47, %v1850_v39  ;;  %v664_v56 = vsel %vm659_vm2, %v655_v52, %v1844_v43  ;;  %v665_v10 = vsel %vm659_vm2, %v656_v51, %v1845_v42  ;;  %v2057_v48 = vld [vmem:[%s2940_s4 + $0x30] sm:$0xff]   ;;  %v2540_v51 = vld [vmem:[%s2939_s3] ss:$0 sm:$0xff] }
  0xc3   : > { %v1858_v33 = vpop.permute.xlu1 %1857  ;;  %v1853_v17 = vpop.permute.xlu0 %1852  ;;  %v2136_v47 = vmov 0  }
  0xc4   : > { %v1860_v45 = vunpack.i.h.bf16 %v1858_v33  ;;  %v1859_v46 = vunpack.i.l.bf16 %v1858_v33  ;;  %v1855_v49 = vunpack.i.h.bf16 %v1853_v17  ;;  %v1854_v50 = vunpack.i.l.bf16 %v1853_v17  ;;  %1339 = vmatprep.subr.bf16.mxu1 %v2136_v47 }
  0xc6   : > { %v675_v60 = vsel %vm668_vm6, %v666_v53, %v1859_v46  ;;  %v676_v61 = vsel %vm668_vm6, %v667_v54, %v1860_v45  ;;  %v673_v16 = vsel %vm668_vm6, %v664_v56, %v1854_v50  ;;  %v674_v63 = vsel %vm668_vm6, %v665_v10, %v1855_v49  ;;  %v2056_v46 = vld [vmem:[%s2940_s4 + $0x38] sm:$0xff]   ;;  %v2058_v49 = vld [vmem:[%s2940_s4 + $0x28] sm:$0xff]  }
  0xc7   : > { %v1868_v34 = vpop.permute.xlu1 %1867  ;;  %v1863_v7 = vpop.permute.xlu0 %1862  ;;  %1340 = vmatpush1.bf16.msra.mxu1 %v2056_v46 }
  0xc8   : > { %v1870_v58 = vunpack.i.h.bf16 %v1868_v34  ;;  %v1869_v59 = vunpack.i.l.bf16 %v1868_v34  ;;  %v1865_v57 = vunpack.i.h.bf16 %v1863_v7  ;;  %v1864_v62 = vunpack.i.l.bf16 %v1863_v7  ;;  %1341 = vmatprep.subr.bf16.mxu1 %v2136_v47 }
  0xca   : > { %v684_v11 = vsel %vm677_vm7, %v675_v60, %v1869_v59  ;;  %v685_v12 = vsel %vm677_vm7, %v676_v61, %v1870_v58  ;;  %v682_v19 = vsel %vm677_vm7, %v673_v16, %v1864_v62  ;;  %v683_v21 = vsel %vm677_vm7, %v674_v63, %v1865_v57  ;;  %v2552_v63 = vld [vmem:[#allocation3] sm:$0xff] }
  0xcb   : > { %v1878_v41 = vpop.permute.xlu1 %1877  ;;  %v1873_v44 = vpop.permute.xlu0 %1872  ;;  %1342 = vmatpush1.bf16.msra.mxu1 %v2057_v48 }
  0xcc   : > { %v1880_v1 = vunpack.i.h.bf16 %v1878_v41  ;;  %v1879_v2 = vunpack.i.l.bf16 %v1878_v41  ;;  %v1875_v3 = vunpack.i.h.bf16 %v1873_v44  ;;  %v1874_v4 = vunpack.i.l.bf16 %v1873_v44  ;;  %1343 = vmatprep.subr.bf16.mxu1 %v2136_v47 }
  0xce   : > { %v693_v24 = vsel %vm686_vm8, %v684_v11, %v1879_v2  ;;  %v694_v25 = vsel %vm686_vm8, %v685_v12, %v1880_v1  ;;  %v691_v28 = vsel %vm686_vm8, %v682_v19, %v1874_v4  ;;  %v692_v29 = vsel %vm686_vm8, %v683_v21, %v1875_v3  ;;  %v913_v1 = vld [vmem:[#allocation3 + $0x8] sm:$0x3]  ;;  %v2059_v3 = vld [vmem:[%s2940_s4 + $0x20] sm:$0xff]   ;;  %v2060_v11 = vld [vmem:[%s2940_s4 + $0x18] sm:$0xff]  }
  0xcf   : > { %v1888_v55 = vpop.permute.xlu1 %1887  ;;  %v1883_v6 = vpop.permute.xlu0 %1882  ;;  %1344 = vmatpush1.bf16.msra.mxu1 %v2058_v49  ;;  %v948_v4 = vrot.slane %v2552_v63, 1 }
  0xd0   : > { %v1890_v5 = vunpack.i.h.bf16 %v1888_v55  ;;  %v1889_v8 = vunpack.i.l.bf16 %v1888_v55  ;;  %v1885_v13 = vunpack.i.h.bf16 %v1883_v6  ;;  %v1884_v14 = vunpack.i.l.bf16 %v1883_v6  ;;  %1345 = vmatprep.subr.bf16.mxu1 %v2136_v47 }
  0xd2   : > { %v702_v30 = vsel %vm695_vm9, %v693_v24, %v1889_v8  ;;  %v703_v31 = vsel %vm695_vm9, %v694_v25, %v1890_v5  ;;  %v700_v32 = vsel %vm695_vm9, %v691_v28, %v1884_v14  ;;  %v701_v20 = vsel %vm695_vm9, %v692_v29, %v1885_v13  ;;  %v2061_v25 = vld [vmem:[%s2940_s4 + $0x10] sm:$0xff]  }
  0xd3   : > { %v1898_v9 = vpop.permute.xlu1 %1897  ;;  %v1893_v18 = vpop.permute.xlu0 %1892  ;;  %v949_v5 = vrot.slane %v913_v1, 1  ;;  %1346 = vmatpush1.bf16.msra.mxu1 %v2059_v3 }
  0xd4   : > { %v1900_v22 = vunpack.i.h.bf16 %v1898_v9  ;;  %v1899_v23 = vunpack.i.l.bf16 %v1898_v9  ;;  %v1895_v26 = vunpack.i.h.bf16 %v1893_v18  ;;  %v1894_v27 = vunpack.i.l.bf16 %v1893_v18  ;;  %1347 = vmatprep.subr.bf16.mxu1 %v2136_v47 }
  0xd5   : > { %v996_v9 = vrot.slane %v2552_v63, 2  ;;  %v950_v14 = vsel %vm393_vm4, %v948_v4, %v949_v5  ;;  %v997_v18 = vrot.slane %v913_v1, 2 }
  0xd6   : > { %v711_v7 = vsel %vm704_vm10, %v702_v30, %v1899_v23  ;;  %v712_v35 = vsel %vm704_vm10, %v703_v31, %v1900_v22  ;;  %v709_v38 = vsel %vm704_vm10, %v700_v32, %v1894_v27  ;;  %v710_v39 = vsel %vm704_vm10, %v701_v20, %v1895_v26 }
  0xd7   : > { %v1908_v15 = vpop.permute.xlu1 %1907  ;;  %v1903_v34 = vpop.permute.xlu0 %1902  ;;  %1348 = vmatpush1.bf16.msra.mxu1 %v2060_v11  ;;  %v998_v32 = vsel %vm442_vm3, %v996_v9, %v997_v18 }
  0xd8   : > { %v1910_v33 = vunpack.i.h.bf16 %v1908_v15  ;;  %v1909_v17 = vunpack.i.l.bf16 %v1908_v15  ;;  %v1905_v36 = vunpack.i.h.bf16 %v1903_v34  ;;  %v1904_v37 = vunpack.i.l.bf16 %v1903_v34  ;;  %1349 = vmatprep.subr.bf16.mxu1 %v2136_v47 }
  0xda   : > { %v720_v40 = vsel %vm713_vm11, %v711_v7, %v1909_v17  ;;  %v721_v41 = vsel %vm713_vm11, %v712_v35, %v1910_v33  ;;  %v718_v43 = vsel %vm713_vm11, %v709_v38, %v1904_v37  ;;  %v719_v44 = vsel %vm713_vm11, %v710_v39, %v1905_v36 }
  0xdb   : > { %v725_v42 = vpack.c.bf16 %v721_v41, %v720_v40  ;;  %v724_v45 = vpack.c.bf16 %v719_v44, %v718_v43  ;;  %1350 = vmatpush1.bf16.msra.mxu1 %v2061_v25  ;;  %v2652_v25 = vld [vmem:[#allocation3 + $0x98] sm:$0x3] }
  0xdc   : > { %1351 = vmatprep.subr.bf16.mxu1 %v2136_v47 }
  0xdd   : > { %1693 = vmatprep.mubr.msk.bf16.mxu0 %vm762_vm12, %v724_v45 }
  0xde   : > { %1694 = vmatmul.mubr.msk.bf16.gmra.mxu0 %vm762_vm12, %v725_v42  ;;  %v2062_v42 = vld [vmem:[%s2940_s4 + $0x8] sm:$0xff]  }
  0xdf   : > { %1352 = vmatpush1.bf16.msra.mxu1 %v2062_v42 }
  0xe0   : > { %1353 = vmatprep.subr.bf16.mxu1 %v2136_v47 }
 0x17e   : > { %v1691_v50 = vpop.f32.mrf.mxu0 }
 0x17f   : > { %v853_v52 = vmul.f32 %v1691_v50, %v2535_v0 }
 0x180   : > { %v813_v53 = vpop.f32.mrf.mxu0 }
 0x181   : > { %v868_v54 = vadd.f32 %v2540_v51, %v853_v52  ;;  %v851_v55 = vmul.f32 %v2535_v0, %v813_v53  ;;  %v2063_v52 = vld [vmem:[%s2940_s4] sm:$0xff]  }
 0x182   : > { %v1692_v56 = vpop.f32.mrf.mxu0  ;;  %1354 = vmatpush1.bf16.msra.mxu1 %v2063_v52 }
 0x183   : > { %v876_v10 = vmax.f32 %v868_v54, 0.0  ;;  %v866_v58 = vadd.f32 %v2540_v51, %v851_v55  ;;  %v854_v59 = vmul.f32 %v1692_v56, %v2535_v0  ;;  %1369 = vmatprep.subr.bf16.mxu1 %v2136_v47 }
 0x184   : > { %v816_v6 = vpop.f32.mrf.mxu0 }
 0x185   : > { %906 = vst.msk [vmem:[#allocation3 + $0x31] sm:$0xff] %vm659_vm2, %v876_v10  ;;  %v874_v60 = vmax.f32 %v866_v58, 0.0  ;;  %v869_v61 = vadd.f32 %v2540_v51, %v854_v59  ;;  %v852_v57 = vmul.f32 %v2535_v0, %v816_v6 }
 0x187   : > { %904 = vst.msk [vmem:[#allocation3 + $0x11] sm:$0xff] %vm659_vm2, %v874_v60  ;;  %v877_v62 = vmax.f32 %v869_v61, 0.0  ;;  %v867_v16 = vadd.f32 %v2540_v51, %v852_v57  ;;  %v2064_v60 = vld [vmem:[%s2940_s4 + $0x40] sm:$0xff]  }
 0x188   : > { %1370 = vmatpush2.bf16.msra.mxu1 %v2064_v60 }
 0x189   : > { %907 = vst.msk [vmem:[#allocation3 + $0x41] sm:$0xff] %vm659_vm2, %v877_v62  ;;  %v875_v2 = vmax.f32 %v867_v16, 0.0 }
 0x18b   : > { %905 = vst.msk [vmem:[#allocation3 + $0x21] sm:$0xff] %vm659_vm2, %v875_v2 }
 0x18c   : > { %v2561_v8 = vld [vmem:[#allocation3 + $0x30] sm:$0xff]  ;;  %v919_v19 = vld [vmem:[#allocation3 + $0x38] sm:$0x3] }
 0x18d   : > { %v1005_v30 = vrot.slane %v2561_v8, 2  ;;  %v1006_v31 = vrot.slane %v919_v19, 2  ;;  %v958_v37 = vrot.slane %v919_v19, 1  ;;  %v957_v41 = vrot.slane %v2561_v8, 1 }
 0x18e   : > { %v2567_v12 = vld [vmem:[#allocation3 + $0x10] sm:$0xff]  ;;  %v915_v13 = vld [vmem:[#allocation3 + $0x18] sm:$0x3] }
 0x18f   : > { %v951_v21 = vrot.slane %v2567_v12, 1  ;;  %v952_v22 = vrot.slane %v915_v13, 1  ;;  %v999_v23 = vrot.slane %v2567_v12, 2  ;;  %v1000_v24 = vrot.slane %v915_v13, 2 }
 0x190   : > { %v2575_v26 = vld [vmem:[#allocation3 + $0x40] sm:$0xff]  ;;  %v921_v27 = vld [vmem:[#allocation3 + $0x48] sm:$0x3]  ;;  %v1007_v40 = vsel %vm442_vm3, %v1005_v30, %v1006_v31  ;;  %v959_v50 = vsel %vm393_vm4, %v957_v41, %v958_v37 }
 0x191   : > { %v1911_v28 = vpack.i.bf16 %v2575_v26, %v2561_v8  ;;  %v2581_v29 = vsel %vm393_vm4, %v951_v21, %v952_v22  ;;  %v1001_v20 = vsel %vm442_vm3, %v999_v23, %v1000_v24  ;;  %v960_v35 = vrot.slane %v2575_v26, 1  ;;  %v2648_v23 = vld [vmem:[#allocation3 + $0x90] sm:$0xff] }
 0x192   : > { %v1916_v15 = vpack.i.bf16 %v2581_v29, %v950_v14  ;;  %v2587_v33 = vld [vmem:[#allocation3 + $0x20] sm:$0xff]  ;;  %v917_v17 = vld [vmem:[#allocation3 + $0x28] sm:$0x3]  ;;  %v961_v36 = vrot.slane %v921_v27, 1  ;;  %v1921_v38 = vpack.i.bf16 %v1001_v20, %v998_v32  ;;  %v1008_v45 = vrot.slane %v2575_v26, 2 }
 0x193   : > { %1912 = vrot.lane.b32.xlu1 %v1911_v28, %s2133_s19  ;;  %v1002_v34 = vrot.slane %v2587_v33, 2  ;;  %v1003_v7 = vrot.slane %v917_v17, 2  ;;  %v1926_v43 = vpack.i.bf16 %v2587_v33, %v2567_v12  ;;  %v1009_v46 = vrot.slane %v921_v27, 2 }
 0x194   : > { %1917 = vrot.lane.b32.xlu0 %v1916_v15, %s2129_s23  ;;  %v2605_v48 = vsel %vm393_vm4, %v960_v35, %v961_v36  ;;  %v1931_v49 = vpack.i.bf16 %v2561_v8, %v2587_v33  ;;  %v955_v53 = vrot.slane %v917_v17, 1  ;;  %v954_v56 = vrot.slane %v2587_v33, 1 }
 0x195   : > { %v1004_v39 = vsel %vm442_vm3, %v1002_v34, %v1003_v7  ;;  %v1936_v54 = vpack.i.bf16 %v2605_v48, %v959_v50  ;;  %v2617_v55 = vsel %vm442_vm3, %v1008_v45, %v1009_v46  ;;  %v1177_v7 = vrot.slane %v2648_v23, 2 }
 0x196   : > { %v1248_v44 = vpack.c.bf16 %v1007_v40, %v1004_v39  ;;  %v1941_v10 = vpack.i.bf16 %v2617_v55, %v1007_v40  ;;  %v1951_v59 = vpack.i.bf16 %v1004_v39, %v1001_v20  ;;  %v956_v6 = vsel %vm393_vm4, %v954_v56, %v955_v53 }
 0x197   : > { %1922 = vrot.lane.b32.xlu1 %v1921_v38, %s2131_s25  ;;  %v1946_v1 = vpack.i.bf16 %v956_v6, %v2581_v29  ;;  %v1956_v2 = vpack.i.bf16 %v959_v50, %v956_v6  ;;  %v1966_v18 = vpack.i.bf16 %v1007_v40, %v1004_v39  ;;  %v1178_v35 = vrot.slane %v2652_v25, 2 }
 0x198   : > { %1927 = vrot.lane.b32.xlu0 %v1926_v43, %s2133_s19  ;;  %1656 = vmatprep.mubr.msk.bf16.mxu1 %vm659_vm2, %v1248_v44 }
 0x19b   : > { %1932 = vrot.lane.b32.xlu1 %v1931_v49, %s2137_s21  ;;  %v2676_v49 = vsel %vm442_vm3, %v1177_v7, %v1178_v35 }
 0x19c   : > { %1937 = vrot.lane.b32.xlu0 %v1936_v54, %s2135_s18 }
 0x19e   : > { %v1695_v58 = vpop.f32.mrf.mxu0 }
 0x19f   : > { %v857_v61 = vmul.f32 %v1695_v58, %v2535_v0  ;;  %1942 = vrot.lane.b32.xlu1 %v1941_v10, %s2138_s26 }
 0x1a0   : > { %1952 = vrot.lane.b32.xlu0 %v1951_v59, %s2138_s26  ;;  %v829_v57 = vpop.f32.mrf.mxu0 }
 0x1a1   : > { %v872_v62 = vadd.f32 %v2540_v51, %v857_v61  ;;  %v855_v16 = vmul.f32 %v2535_v0, %v829_v57 }
 0x1a2   : > { %v1696_v47 = vpop.f32.mrf.mxu0 }
 0x1a3   : > { %v880_v3 = vmax.f32 %v872_v62, 0.0  ;;  %v870_v4 = vadd.f32 %v2540_v51, %v855_v16  ;;  %v858_v5 = vmul.f32 %v1696_v47, %v2535_v0  ;;  %1947 = vrot.lane.b32.xlu1 %v1946_v1, %s2135_s18 }
 0x1a4   : > { %1957 = vrot.lane.b32.xlu0 %v1956_v2, %s2139_s10  ;;  %v832_v9 = vpop.f32.mrf.mxu0 }
 0x1a5   : > { %910 = vst.msk [vmem:[#allocation3 + $0x71] sm:$0xff] %vm659_vm2, %v880_v3  ;;  %v878_v11 = vmax.f32 %v870_v4, 0.0  ;;  %v873_v13 = vadd.f32 %v2540_v51, %v858_v5  ;;  %v856_v14 = vmul.f32 %v2535_v0, %v832_v9  ;;  %v1150_v9 = vrot.slane %v2648_v23, 1 }
 0x1a7   : > { %908 = vst.msk [vmem:[#allocation3 + $0x51] sm:$0xff] %vm659_vm2, %v878_v11  ;;  %v881_v19 = vmax.f32 %v873_v13, 0.0  ;;  %v871_v21 = vadd.f32 %v2540_v51, %v856_v14  ;;  %1962 = vrot.lane.b32.xlu1 %v1956_v2, %s2129_s23  ;;  %v1151_v11 = vrot.slane %v2652_v25, 1 }
 0x1a8   : > { %1967 = vrot.lane.b32.xlu0 %v1966_v18, %s2131_s25 }
 0x1a9   : > { %911 = vst.msk [vmem:[#allocation3 + $0x81] sm:$0xff] %vm659_vm2, %v881_v19  ;;  %v879_v22 = vmax.f32 %v871_v21, 0.0  ;;  %v1152_v18 = vsel %vm393_vm4, %v1150_v9, %v1151_v11 }
 0x1ab   : > { %909 = vst.msk [vmem:[#allocation3 + $0x61] sm:$0xff] %vm659_vm2, %v879_v22 }
 0x1ac   : > { %v2658_v30 = vld [vmem:[#allocation3 + $0x70] sm:$0xff]  ;;  %v927_v32 = vld [vmem:[#allocation3 + $0x78] sm:$0x3] }
 0x1ad   : > { %v1017_v40 = vrot.slane %v2658_v30, 2  ;;  %v1018_v41 = vrot.slane %v927_v32, 2  ;;  %v969_v50 = vrot.slane %v2658_v30, 1  ;;  %v970_v52 = vrot.slane %v927_v32, 1 }
 0x1ae   : > { %v2650_v24 = vld [vmem:[#allocation3 + $0x50] sm:$0xff]  ;;  %v923_v0 = vld [vmem:[#allocation3 + $0x58] sm:$0x3] }
 0x1af   : > { %v1971_v27 = vpack.i.bf16 %v2650_v24, %v2575_v26  ;;  %v963_v51 = vrot.slane %v2650_v24, 1  ;;  %v964_v28 = vrot.slane %v923_v0, 1  ;;  %v1011_v29 = vrot.slane %v2650_v24, 2 }
 0x1b0   : > { %v928_v31 = vld [vmem:[#allocation3 + $0x80] sm:$0xff]  ;;  %v1012_v15 = vrot.slane %v923_v0, 2  ;;  %v929_v34 = vld [vmem:[#allocation3 + $0x88] sm:$0x3]  ;;  %v2692_v59 = vsel %vm442_vm3, %v1017_v40, %v1018_v41  ;;  %v971_v57 = vsel %vm393_vm4, %v969_v50, %v970_v52 }
 0x1b1   : > { %1972 = vrot.lane.b32.xlu0 %v1971_v27, %s2137_s21  ;;  %v1976_v20 = vpack.i.bf16 %v928_v31, %v2658_v30  ;;  %v965_v17 = vsel %vm393_vm4, %v963_v51, %v964_v28  ;;  %v1097_v42 = vrot.slane %v928_v31, 2  ;;  %v1070_v43 = vrot.slane %v928_v31, 1 }
 0x1b2   : > { %v1986_v36 = vpack.i.bf16 %v965_v17, %v2605_v48  ;;  %v2666_v37 = vld [vmem:[#allocation3 + $0x60] sm:$0xff]  ;;  %v925_v38 = vld [vmem:[#allocation3 + $0x68] sm:$0x3]  ;;  %v2670_v39 = vsel %vm442_vm3, %v1011_v29, %v1012_v15  ;;  %v1071_v44 = vrot.slane %v929_v34, 1  ;;  %v1098_v48 = vrot.slane %v929_v34, 2 }
 0x1b3   : > { %1977 = vrot.lane.b32.xlu1 %v1976_v20, %s2133_s19  ;;  %v1014_v45 = vrot.slane %v2666_v37, 2  ;;  %v1015_v46 = vrot.slane %v925_v38, 2  ;;  %v1250_v54 = vpack.c.bf16 %v2670_v39, %v2617_v55  ;;  %v1996_v56 = vpack.i.bf16 %v2666_v37, %v2650_v24 }
 0x1b4   : > { %v2688_v10 = vsel %vm442_vm3, %v1097_v42, %v1098_v48  ;;  %v1072_v58 = vsel %vm393_vm4, %v1070_v43, %v1071_v44  ;;  %v1991_v6 = vpack.i.bf16 %v2670_v39, %v2617_v55  ;;  %v966_v62 = vrot.slane %v2666_v37, 1 }
 0x1b5   : > { %1987 = vrot.lane.b32.xlu0 %v1986_v36, %s2129_s23  ;;  %v2680_v53 = vsel %vm442_vm3, %v1014_v45, %v1015_v46  ;;  %v1254_v60 = vpack.c.bf16 %v2676_v49, %v2688_v10  ;;  %v967_v16 = vrot.slane %v925_v38, 1  ;;  %v2006_v1 = vpack.i.bf16 %v1072_v58, %v971_v57  ;;  %v2815_v49 = vld [vmem:[%s2941_s5] ss:$0 sm:$0xff] }
 0x1b6   : > { %v1252_v61 = vpack.c.bf16 %v2692_v59, %v2680_v53  ;;  %v2001_v47 = vpack.i.bf16 %v2658_v30, %v2666_v37  ;;  %v2016_v3 = vpack.i.bf16 %v2680_v53, %v2670_v39  ;;  %v2036_v13 = vpack.i.bf16 %v2692_v59, %v2680_v53 }
 0x1b7   : > { %1982 = vrot.lane.b32.xlu1 %v1986_v36, %s2139_s10  ;;  %v968_v2 = vsel %vm393_vm4, %v966_v62, %v967_v16  ;;  %v2031_v14 = vpack.i.bf16 %v2688_v10, %v2692_v59  ;;  %v2041_v19 = vpack.i.bf16 %v2648_v23, %v928_v31  ;;  %v2046_v21 = vpack.i.bf16 %v1152_v18, %v1072_v58 }
 0x1b8   : > { %v2011_v4 = vpack.i.bf16 %v968_v2, %v965_v17  ;;  %v2021_v5 = vpack.i.bf16 %v971_v57, %v968_v2  ;;  %vm1503_vm3 = vcmask 1041408   ;;  %vm1508_vm4 = vcmask 1042432  }
 0x1b9   : > { %1997 = vrot.lane.b32.xlu0 %v1996_v56, %s2133_s19 }
 0x1bb   : > { %1992 = vrot.lane.b32.xlu1 %v1991_v6, %s2131_s25 }
 0x1bd   : > { %2007 = vrot.lane.b32.xlu0 %v2006_v1, %s2135_s18 }
 0x1bf   : > { %2002 = vrot.lane.b32.xlu1 %v2001_v47, %s2137_s21 }
 0x1c1   : > { %2017 = vrot.lane.b32.xlu0 %v2016_v3, %s2138_s26 }
 0x1c3   : > { %2012 = vrot.lane.b32.xlu1 %v2011_v4, %s2135_s18 }
 0x1c5   : > { %2022 = vrot.lane.b32.xlu0 %v2021_v5, %s2139_s10 }
 0x1c7   : > { %2027 = vrot.lane.b32.xlu1 %v2021_v5, %s2129_s23  ;;  %s297_s23 = sand.u32 1, %s2117_s28  }
 0x1c8   : > { %s1631_s20 = sshll.u32 %s297_s23, 6  ;;  %s2887_s9 = scalar_lea.sflag [#allocation5], %s297_s23 }
 0x1c9   : > { %2037 = vrot.lane.b32.xlu0 %v2036_v13, %s2131_s25 }
 0x1cb   : > { %2032 = vrot.lane.b32.xlu1 %v2031_v14, %s2138_s26 }
 0x1cd   : > { %2042 = vrot.lane.b32.xlu0 %v2041_v19, %s2137_s21  ;;  %s2827_s21 = scalar_lea.vmem [#allocation4], %s1631_s20 }
 0x1ce   : > { %s1537_s25 = sshll.u32 %s2827_s21, 4  ;;  %s2879_s25 = int_to_ptr.vmem [resolvable:$true] %s1537_s25 }
 0x1cf   : > { %2047 = vrot.lane.b32.xlu1 %v2046_v21, %s2139_s10  ;;  %s2839_s10 = scalar_lea.vmem %s2944_s8, %s1668_s22  ;;  %s2065_s20 = scalar_lea.vmem %s2879_s25, 1024 }
 0x1d0   : > { %p2066_p11 = scmp.ne.s32.totalorder %s2879_s25, %s2065_s20  ;;  %s2140_s22 = smov [#allocation4]  }
 0x1d1   : > { %s2069_s12 = sshll.u32 %s2140_s22, 4  ;;  %s2070_s12 = int_to_ptr.vmem [resolvable:$false] %s2069_s12 }
 0x1d2   : > { %p2067_p12 = pnand %p2066_p11, %p2225_p5  ;;  %s2071_s26 = scalar_lea.vmem %s2070_s12, 2048 }
 0x1d3   : > { %p2072_p0 = scmp.lt.s32.totalorder %s2879_s25, %s2070_s12  ;;  %p2073_p1 = scmp.lt.s32.totalorder %s2071_s26, %s2065_s20 }
 0x1d4   : > { %p2068_p13 = pneg %p2067_p12 }
 0x1d5   : > { %p2074_p2 = por %p2073_p1, %p2072_p0 }
 0x1d7   : > { %p2075_p3 = pnand %p2074_p2, %p2068_p13 }
 0x205   : > { %v1913_v22 = vpop.permute.xlu1 %1912 }
 0x206   : > { %v1918_v0 = vpop.permute.xlu0 %1917 }
 0x207   : > { %v1920_v29 = vunpack.i.h.bf16 %v1918_v0  ;;  %v1919_v15 = vunpack.i.l.bf16 %v1918_v0  ;;  %v1915_v0 = vunpack.i.h.bf16 %v1913_v22 }
 0x209   : > { %v1923_v25 = vpop.permute.xlu1 %1922  ;;  %v1189_v23 = vsel %vm659_vm2, %v2567_v12, %v1920_v29  ;;  %v1188_v31 = vsel %vm659_vm2, %v2552_v63, %v1919_v15 }
 0x20a   : > { %v1928_v27 = vpop.permute.xlu0 %1927  ;;  %v1925_v32 = vunpack.i.h.bf16 %v1923_v25  ;;  %v1924_v20 = vunpack.i.l.bf16 %v1923_v25  ;;  %v1914_v25 = vunpack.i.l.bf16 %v1913_v22 }
 0x20b   : > { %v1930_v7 = vunpack.i.h.bf16 %v1928_v27  ;;  %v1929_v35 = vunpack.i.l.bf16 %v1928_v27 }
 0x20c   : > { %v1197_v36 = vsel %vm677_vm7, %v1189_v23, %v1925_v32  ;;  %v1196_v38 = vsel %vm677_vm7, %v1188_v31, %v1924_v20 }
 0x20d   : > { %v1933_v51 = vpop.permute.xlu1 %1932  ;;  %v1205_v44 = vsel %vm695_vm9, %v1197_v36, %v1930_v7  ;;  %v1204_v12 = vsel %vm695_vm9, %v1196_v38, %v1929_v35 }
 0x20e   : > { %v1938_v28 = vpop.permute.xlu0 %1937  ;;  %v1935_v63 = vunpack.i.h.bf16 %v1933_v51  ;;  %v1934_v48 = vunpack.i.l.bf16 %v1933_v51 }
 0x20f   : > { %v1940_v29 = vunpack.i.h.bf16 %v1938_v28  ;;  %v1939_v15 = vunpack.i.l.bf16 %v1938_v28 }
 0x211   : > { %v2727_v17 = vpop.permute.xlu1 %1942 }
 0x212   : > { %v1953_v34 = vpop.permute.xlu0 %1952  ;;  %v1944_v22 = vunpack.i.l.bf16 %v2727_v17 }
 0x213   : > { %v1955_v45 = vunpack.i.h.bf16 %v1953_v34  ;;  %v1954_v46 = vunpack.i.l.bf16 %v1953_v34  ;;  %v1945_v34 = vunpack.i.h.bf16 %v2727_v17 }
 0x215   : > { %v1948_v40 = vpop.permute.xlu1 %1947 }
 0x216   : > { %v1950_v41 = vunpack.i.h.bf16 %v1948_v40  ;;  %v1949_v42 = vunpack.i.l.bf16 %v1948_v40  ;;  %v1958_v43 = vpop.permute.xlu0 %1957 }
 0x217   : > { %v1960_v6 = vunpack.i.h.bf16 %v1958_v43  ;;  %v1959_v57 = vunpack.i.l.bf16 %v1958_v43 }
 0x218   : > { %v1213_v50 = vsel %vm713_vm11, %v1205_v44, %v1950_v41  ;;  %v1212_v52 = vsel %vm713_vm11, %v1204_v12, %v1949_v42 }
 0x219   : > { %v1222_v56 = vsel %vm1220_vm14, %v1213_v50, %v1955_v45  ;;  %v1221_v58 = vsel %vm1220_vm14, %v1212_v52, %v1954_v46  ;;  %v1963_v62 = vpop.permute.xlu1 %1962 }
 0x21a   : > { %v1965_v16 = vunpack.i.h.bf16 %v1963_v62  ;;  %v1964_v1 = vunpack.i.l.bf16 %v1963_v62  ;;  %v1968_v47 = vpop.permute.xlu0 %1967  ;;  %v1230_v2 = vsel %vm1229_vm15, %v1221_v58, %v1934_v48  ;;  %v1231_v3 = vsel %vm1229_vm15, %v1222_v56, %v1935_v63 }
 0x21b   : > { %v1239_v4 = vsel %vm1238_vm0, %v1230_v2, %v1959_v57  ;;  %v1240_v5 = vsel %vm1238_vm0, %v1231_v3, %v1960_v6  ;;  %v1970_v11 = vunpack.i.h.bf16 %v1968_v47  ;;  %v1969_v13 = vunpack.i.l.bf16 %v1968_v47 }
 0x21c   : > { %v1247_v9 = vpack.c.bf16 %v1240_v5, %v1239_v4  ;;  %v1191_v14 = vsel %vm659_vm2, %v2561_v8, %v1965_v16  ;;  %v1190_v18 = vsel %vm659_vm2, %v2587_v33, %v1964_v1 }
 0x21d   : > { %v1198_v19 = vsel %vm677_vm7, %v1190_v18, %v1969_v13  ;;  %v1199_v21 = vsel %vm677_vm7, %v1191_v14, %v1970_v11 }
 0x21e   : > { %1372 = vmatmul.mubr.bf16.vlgmr.msra.gmra.mxu1 %v1247_v9  ;;  %v1206_v51 = vsel %vm695_vm9, %v1198_v19, %v1914_v25  ;;  %v1207_v8 = vsel %vm695_vm9, %v1199_v21, %v1915_v0 }
 0x21f   : > { %1657 = vmatprep.mubr.msk.bf16.mxu1 %vm659_vm2, %v1250_v54  ;;  %v1214_v32 = vsel %vm713_vm11, %v1206_v51, %v1939_v15  ;;  %v1215_v55 = vsel %vm713_vm11, %v1207_v8, %v1940_v29 }
 0x220   : > { %v1223_v31 = vsel %vm1220_vm14, %v1214_v32, %v1944_v22  ;;  %v1224_v7 = vsel %vm1220_vm14, %v1215_v55, %v1945_v34 }
 0x223   : > { %v1973_v27 = vpop.permute.xlu0 %1972 }
 0x224   : > { %v1975_v39 = vunpack.i.h.bf16 %v1973_v27  ;;  %v1974_v54 = vunpack.i.l.bf16 %v1973_v27 }
 0x225   : > { %v2757_v33 = vpop.permute.xlu1 %1977 }
 0x226   : > { %v1233_v36 = vsel %vm1229_vm15, %v1224_v7, %v1975_v39  ;;  %v1232_v38 = vsel %vm1229_vm15, %v1223_v31, %v1974_v54  ;;  %v1980_v27 = vunpack.i.h.bf16 %v2757_v33  ;;  %v1979_v54 = vunpack.i.l.bf16 %v2757_v33 }
 0x227   : > { %v1988_v20 = vpop.permute.xlu0 %1987 }
 0x228   : > { %v1990_v12 = vunpack.i.h.bf16 %v1988_v20  ;;  %v1989_v17 = vunpack.i.l.bf16 %v1988_v20 }
 0x229   : > { %v1983_v23 = vpop.permute.xlu1 %1982 }
 0x22a   : > { %v1985_v35 = vunpack.i.h.bf16 %v1983_v23  ;;  %v1984_v28 = vunpack.i.l.bf16 %v1983_v23  ;;  %v1193_v50 = vsel %vm659_vm2, %v2650_v24, %v1990_v12  ;;  %v1192_v52 = vsel %vm659_vm2, %v2575_v26, %v1989_v17 }
 0x22b   : > { %v1998_v40 = vpop.permute.xlu0 %1997 }
 0x22c   : > { %v1241_v41 = vsel %vm1238_vm0, %v1232_v38, %v1984_v28  ;;  %v1242_v42 = vsel %vm1238_vm0, %v1233_v36, %v1985_v35  ;;  %v2000_v57 = vunpack.i.h.bf16 %v1998_v40  ;;  %v1999_v62 = vunpack.i.l.bf16 %v1998_v40 }
 0x22d   : > { %v1993_v43 = vpop.permute.xlu1 %1992  ;;  %v1249_v44 = vpack.c.bf16 %v1242_v42, %v1241_v41 }
 0x22e   : > { %v1995_v45 = vunpack.i.h.bf16 %v1993_v43  ;;  %v1994_v46 = vunpack.i.l.bf16 %v1993_v43 }
 0x22f   : > { %1380 = vmatmul.mubr.bf16.gmra.mxu1 %v1249_v44  ;;  %v2008_v63 = vpop.permute.xlu0 %2007 }
 0x230   : > { %1658 = vmatprep.mubr.msk.bf16.mxu1 %vm659_vm2, %v1252_v61  ;;  %v1201_v56 = vsel %vm677_vm7, %v1193_v50, %v1995_v45  ;;  %v1200_v58 = vsel %vm677_vm7, %v1192_v52, %v1994_v46  ;;  %v2010_v20 = vunpack.i.h.bf16 %v2008_v63  ;;  %v2009_v34 = vunpack.i.l.bf16 %v2008_v63 }
 0x231   : > { %v2003_v48 = vpop.permute.xlu1 %2002  ;;  %v1208_v1 = vsel %vm695_vm9, %v1200_v58, %v1999_v62  ;;  %v1209_v53 = vsel %vm695_vm9, %v1201_v56, %v2000_v57 }
 0x232   : > { %v2005_v47 = vunpack.i.h.bf16 %v2003_v48  ;;  %v2004_v2 = vunpack.i.l.bf16 %v2003_v48 }
 0x233   : > { %v2018_v6 = vpop.permute.xlu0 %2017 }
 0x234   : > { %v2020_v24 = vunpack.i.h.bf16 %v2018_v6  ;;  %v2019_v3 = vunpack.i.l.bf16 %v2018_v6 }
 0x235   : > { %v2013_v16 = vpop.permute.xlu1 %2012 }
 0x236   : > { %v2015_v59 = vunpack.i.h.bf16 %v2013_v16  ;;  %v2014_v61 = vunpack.i.l.bf16 %v2013_v16 }
 0x237   : > { %v2023_v4 = vpop.permute.xlu0 %2022 }
 0x238   : > { %v1217_v26 = vsel %vm713_vm11, %v1209_v53, %v2015_v59  ;;  %v1216_v5 = vsel %vm713_vm11, %v1208_v1, %v2014_v61  ;;  %v2025_v9 = vunpack.i.h.bf16 %v2023_v4  ;;  %v2024_v11 = vunpack.i.l.bf16 %v2023_v4 }
 0x239   : > { %v1226_v13 = vsel %vm1220_vm14, %v1217_v26, %v2020_v24  ;;  %v1225_v14 = vsel %vm1220_vm14, %v1216_v5, %v2019_v3  ;;  %v2028_v18 = vpop.permute.xlu1 %2027 }
 0x23a   : > { %v2030_v19 = vunpack.i.h.bf16 %v2028_v18  ;;  %v2029_v21 = vunpack.i.l.bf16 %v2028_v18  ;;  %v1234_v0 = vsel %vm1229_vm15, %v1225_v14, %v2004_v2  ;;  %v1235_v25 = vsel %vm1229_vm15, %v1226_v13, %v2005_v47 }
 0x23b   : > { %v2038_v51 = vpop.permute.xlu0 %2037  ;;  %v1243_v8 = vsel %vm1238_vm0, %v1234_v0, %v2024_v11  ;;  %v1244_v29 = vsel %vm1238_vm0, %v1235_v25, %v2025_v9 }
 0x23c   : > { %v1195_v15 = vsel %vm659_vm2, %v2658_v30, %v2030_v19  ;;  %v1194_v32 = vsel %vm659_vm2, %v2666_v37, %v2029_v21  ;;  %v2040_v55 = vunpack.i.h.bf16 %v2038_v51  ;;  %v2039_v39 = vunpack.i.l.bf16 %v2038_v51 }
 0x23d   : > { %v2033_v22 = vpop.permute.xlu1 %2032  ;;  %v1251_v23 = vpack.c.bf16 %v1244_v29, %v1243_v8 }
 0x23e   : > { %v1202_v31 = vsel %vm677_vm7, %v1194_v32, %v2039_v39  ;;  %v1203_v7 = vsel %vm677_vm7, %v1195_v15, %v2040_v55  ;;  %v2035_v35 = vunpack.i.h.bf16 %v2033_v22  ;;  %v2034_v28 = vunpack.i.l.bf16 %v2033_v22 }
 0x23f   : > { %v1210_v36 = vsel %vm695_vm9, %v1202_v31, %v1979_v54  ;;  %v1211_v30 = vsel %vm695_vm9, %v1203_v7, %v1980_v27  ;;  %1388 = vmatmul.mubr.bf16.gmra.mxu1 %v1251_v23  ;;  %v2043_v37 = vpop.permute.xlu0 %2042 }
 0x240   : > { %v1218_v38 = vsel %vm713_vm11, %v1210_v36, %v2009_v34  ;;  %v1219_v33 = vsel %vm713_vm11, %v1211_v30, %v2010_v20  ;;  %v2045_v40 = vunpack.i.h.bf16 %v2043_v37  ;;  %v2044_v41 = vunpack.i.l.bf16 %v2043_v37  ;;  %1659 = vmatprep.mubr.msk.bf16.mxu1 %vm659_vm2, %v1254_v60  ;;  %v2820_v60 = vld [vmem:[%s2942_s6] ss:$0 sm:$0xff] }
 0x241   : > { %v1227_v42 = vsel %vm1220_vm14, %v1218_v38, %v2034_v28  ;;  %v1228_v43 = vsel %vm1220_vm14, %v1219_v33, %v2035_v35  ;;  %v2048_v44 = vpop.permute.xlu1 %2047 }
 0x242   : > { %v1236_v12 = vsel %vm1229_vm15, %v1227_v42, %v2044_v41  ;;  %v1237_v17 = vsel %vm1229_vm15, %v1228_v43, %v2045_v40  ;;  %v2050_v45 = vunpack.i.h.bf16 %v2048_v44  ;;  %v2049_v46 = vunpack.i.l.bf16 %v2048_v44 }
 0x244   : > { %v1245_v63 = vsel %vm1238_vm0, %v1236_v12, %v2049_v46  ;;  %v1246_v48 = vsel %vm1238_vm0, %v1237_v17, %v2050_v45 }
 0x245   : > { %v1253_v50 = vpack.c.bf16 %v1246_v48, %v1245_v63 }
 0x247   : > { %1396 = vmatmul.mubr.bf16.gmra.mxu1 %v1253_v50 }
 0x2de   : > { %v1373_v10 = vpop.f32.mrf.mxu1 }
 0x2df   : > { %v1411_v52 = vmul.f32 %v2815_v49, %v1373_v10 }
 0x2e0   : > { %v1375_v56 = vpop.f32.mrf.mxu1 }
 0x2e1   : > { %v1426_v58 = vadd.f32 %v2820_v60, %v1411_v52 }
 0x2e2   : > { %v1376_v6 = vpop.f32.mrf.mxu1 }
 0x2e3   : > { %v1434_v57 = vmax.f32 %v1426_v58, 0.0  ;;  %v1412_v62 = vmul.f32 %v2815_v49, %v1376_v6 }
 0x2e4   : > { %v1378_v16 = vpop.f32.mrf.mxu1 }
 0x2e5   : > { %1442 = vst.msk [vmem:[%s2827_s21] sm:$0xff] %vm659_vm2, %v1434_v57  ;;  %v1427_v1 = vadd.f32 %v2820_v60, %v1412_v62 }
 0x2e7   : > { %v1435_v53 = vmax.f32 %v1427_v1, 0.0 }
 0x2e9   : > { %1443 = vst.msk [vmem:[%s2827_s21 + $0x8] sm:$0xff] %vm659_vm2, %v1435_v53  ;;  %v1450_v59 = vmax.f32 %v1434_v57, %v1435_v53 }
 0x2eb   : > { %v1458_v61 = vrot.slane %v1450_v59, 1 }
 0x2ed   : > { %v1466_v47 = vmax.f32 %v1450_v59, %v1458_v61 }
 0x2ef   : > { %v1474_v2 = vrot.slane %v1466_v47, 1  ;;  %v1482_v24 = vrot.slane %v1466_v47, 2  ;;  %v1381_v3 = vpop.f32.mrf.mxu1  ;;  %v1490_v26 = vrot.slane %v1466_v47, 3 }
 0x2f0   : > { %v1413_v4 = vmul.f32 %v2815_v49, %v1381_v3 }
 0x2f1   : > { %v1499_v5 = vsel %vm1498_vm1, %v1466_v47, %v1474_v2  ;;  %v1383_v9 = vpop.f32.mrf.mxu1 }
 0x2f2   : > { %v1504_v11 = vsel %vm1503_vm3, %v1499_v5, %v1482_v24  ;;  %v1428_v13 = vadd.f32 %v2820_v60, %v1413_v4 }
 0x2f3   : > { %v1509_v14 = vsel %vm1508_vm4, %v1504_v11, %v1490_v26  ;;  %v1384_v18 = vpop.f32.mrf.mxu1 }
 0x2f4   : > { %1514 = vst.msk [vmem:[%s2839_s10] sm:$0xf] %vm1513_vm5, %v1509_v14  ;;  %v1436_v19 = vmax.f32 %v1428_v13, 0.0  ;;  %v1414_v21 = vmul.f32 %v2815_v49, %v1384_v18 }
 0x2f5   : > { %v1386_v0 = vpop.f32.mrf.mxu1 }
 0x2f6   : > { %1444 = vst.msk [vmem:[%s2827_s21 + $0x10] sm:$0xff] %vm659_vm2, %v1436_v19  ;;  %v1429_v25 = vadd.f32 %v2820_v60, %v1414_v21 }
 0x2f8   : > { %v1437_v27 = vmax.f32 %v1429_v25, 0.0 }
 0x2fa   : > { %1445 = vst.msk [vmem:[%s2827_s21 + $0x18] sm:$0xff] %vm659_vm2, %v1437_v27  ;;  %v1451_v51 = vmax.f32 %v1436_v19, %v1437_v27 }
 0x2fc   : > { %v1459_v8 = vrot.slane %v1451_v51, 1 }
 0x2fe   : > { %v1467_v29 = vmax.f32 %v1451_v51, %v1459_v8 }
 0x2ff   : > { %v1389_v15 = vpop.f32.mrf.mxu1 }
 0x300   : > { %v1475_v32 = vrot.slane %v1467_v29, 1  ;;  %v1483_v55 = vrot.slane %v1467_v29, 2  ;;  %v1415_v39 = vmul.f32 %v2815_v49, %v1389_v15  ;;  %v1491_v20 = vrot.slane %v1467_v29, 3 }
 0x301   : > { %v1391_v54 = vpop.f32.mrf.mxu1 }
 0x302   : > { %v1500_v34 = vsel %vm1498_vm1, %v1467_v29, %v1475_v32  ;;  %v1430_v22 = vadd.f32 %v2820_v60, %v1415_v39 }
 0x303   : > { %v1505_v23 = vsel %vm1503_vm3, %v1500_v34, %v1483_v55  ;;  %v1392_v31 = vpop.f32.mrf.mxu1 }
 0x304   : > { %v1510_v7 = vsel %vm1508_vm4, %v1505_v23, %v1491_v20  ;;  %v1438_v35 = vmax.f32 %v1430_v22, 0.0  ;;  %v1416_v28 = vmul.f32 %v2815_v49, %v1392_v31 }
 0x305   : > { %1515 = vst.msk [vmem:[%s2839_s10 + $0x4] sm:$0xf] %vm1513_vm5, %v1510_v7  ;;  %v1394_v36 = vpop.f32.mrf.mxu1 }
 0x306   : > { %1446 = vst.msk [vmem:[%s2827_s21 + $0x20] sm:$0xff] %vm659_vm2, %v1438_v35  ;;  %v1431_v30 = vadd.f32 %v2820_v60, %v1416_v28 }
 0x307   : > { %v1397_v37 = vpop.f32.mrf.mxu1 }
 0x308   : > { %v1439_v38 = vmax.f32 %v1431_v30, 0.0  ;;  %v1417_v33 = vmul.f32 %v2815_v49, %v1397_v37 }
 0x309   : > { %v1399_v40 = vpop.f32.mrf.mxu1 }
 0x30a   : > { %1447 = vst.msk [vmem:[%s2827_s21 + $0x28] sm:$0xff] %vm659_vm2, %v1439_v38  ;;  %v1452_v41 = vmax.f32 %v1438_v35, %v1439_v38  ;;  %v1432_v42 = vadd.f32 %v2820_v60, %v1417_v33 }
 0x30b   : > { %v1400_v43 = vpop.f32.mrf.mxu1 }
 0x30c   : > { %v1460_v44 = vrot.slane %v1452_v41, 1  ;;  %v1440_v12 = vmax.f32 %v1432_v42, 0.0  ;;  %v1418_v17 = vmul.f32 %v2815_v49, %v1400_v43 }
 0x30d   : > { %v1402_v45 = vpop.f32.mrf.mxu1 }
 0x30e   : > { %v1468_v46 = vmax.f32 %v1452_v41, %v1460_v44  ;;  %1448 = vst.msk [vmem:[%s2827_s21 + $0x30] sm:$0xff] %vm659_vm2, %v1440_v12  ;;  %v1433_v63 = vadd.f32 %v2820_v60, %v1418_v17 }
 0x310   : > { %v1476_v48 = vrot.slane %v1468_v46, 1  ;;  %v1484_v50 = vrot.slane %v1468_v46, 2  ;;  %v1441_v10 = vmax.f32 %v1433_v63, 0.0  ;;  %v1492_v49 = vrot.slane %v1468_v46, 3 }
 0x312   : > { %v1501_v52 = vsel %vm1498_vm1, %v1468_v46, %v1476_v48  ;;  %1449 = vst.msk [vmem:[%s2827_s21 + $0x38] sm:$0xff] %vm659_vm2, %v1441_v10  ;;  %v1453_v56 = vmax.f32 %v1440_v12, %v1441_v10 }
 0x313   : > { %v1506_v60 = vsel %vm1503_vm3, %v1501_v52, %v1484_v50 }
 0x314   : > { %2078 = shalt.err (!%p2075_p3)
}
 0x315   : > { %s2079_s23 = scalar_lea.hbm %s2877_s13, 1024  ;;  %s2083_s19 = scalar_lea.hbm %s2943_s7, 2048 }
 0x316   : > { %p2080_p4 = scmp.ne.s32.totalorder %s2877_s13, %s2079_s23  ;;  %p2084_p9 = scmp.lt.s32.totalorder %s2877_s13, %s2943_s7 }
 0x317   : > { %p2085_p10 = scmp.lt.s32.totalorder %s2083_s19, %s2079_s23 }
 0x318   : > { %p2081_p7 = pnand %p2080_p4, %p2225_p5 }
 0x319   : > { %p2086_p11 = por %p2085_p10, %p2084_p9 }
 0x31a   : > { %p2082_p8 = pneg %p2081_p7 }
 0x31c   : > { %p2087_p12 = pnand %p2086_p11, %p2082_p8 }
 0x31e   : > { %2090 = shalt.err (!%p2087_p12)
}
 0x31f   : > { %s2141_s20 = smov 128   ;;  %v1511_v58 = vsel %vm1508_vm4, %v1506_v60, %v1492_v49  ;;  %v1461_v6 = vrot.slane %v1453_v56, 1 }
 0x320   : > { %1698 = dma.vmem_to_hbm [thread:$0]  (%p2225_p5), %s2879_s25, 1024, %s2877_s13, %s2887_s9, %s2141_s20, %s2141_s20, %s2130_s24  }
 0x321   : > { %1516 = vst.msk [vmem:[%s2839_s10 + $0x8] sm:$0xf] %vm1513_vm5, %v1511_v58  ;;  %v1469_v57 = vmax.f32 %v1453_v56, %v1461_v6 }
 0x323   : > { %v1477_v62 = vrot.slane %v1469_v57, 1  ;;  %v1485_v16 = vrot.slane %v1469_v57, 2  ;;  %v1493_v1 = vrot.slane %v1469_v57, 3 }
 0x325   : > { %v1502_v53 = vsel %vm1498_vm1, %v1469_v57, %v1477_v62 }
 0x326   : > { %v1507_v59 = vsel %vm1503_vm3, %v1502_v53, %v1485_v16 }
 0x327   : > { %v1512_v61 = vsel %vm1508_vm4, %v1507_v59, %v1493_v1 }
 0x328   : > { %1517 = vst.msk [vmem:[%s2839_s10 + $0xc] sm:$0xf] %vm1513_vm5, %v1512_v61 }
 0x329 PF: > { %p1704_p5 = scmp.ge.s32.totalorder %s2125_s30, 2  ;;  %s1555_s15 = sand.u32 1, %s2113_s27  }
 0x32a   : > { %s1556_s24 = scalar_lea.sflag [#allocation5], %s1555_s15 }
 0x32b   : > { %p1701_p13 = pnand %p1704_p5, %p2229_p6 }
 0x32d   : > { %p1702_p0 = pneg %p1701_p13 }
 0x32f   : > { %2108 = dma.done.wait (%p1702_p0), %s1556_s24, 1024  }
 0x330   : > { %2110 = vsyncadd (%p1702_p0), %s1556_s24, 4294966272  ;;  %p19_p1 = scmp.ge.s32.totalorder %s2212_s11, 4   ;;  %s2947_s27 = smov %s2117_s28 }
 0x331   : > { %s2948_s28 = smov %s2121_s29  ;;  %s2949_s29 = smov %s2223_s14 }
 0x332   : > { %s2950_s30 = smov %s2212_s11  ;;  %21 = sbr.rel (!%p19_p1) target bundleno = 3 (0x3), region = 97 }
 0x337   :  { %1569 = vsyncpa [#allocation5], 1 }
 0x338   :  { %1571 = vsyncpa [#allocation5 + $0x1], 1 }

// kernel: encoder_forward.8
= control target key start
LH: loop header
LB: loop body
LE: loop exit
PB: predicated region body
PF: predicated region fallthrough
CT: control target
= control target key end

     0   :  { %14 = vsyncpa [#allocation5], 0  ;;  %s2186_s0 = inlined_call_operand.vmem [shape: f32[2,2,2,32], index: 0, kind: input, shape index: {}]   ;;  %s2187_s1 = inlined_call_operand.vmem [shape: bf16[288,64], index: 1, kind: input, shape index: {}]   ;;  %s2188_s2 = inlined_call_operand.vmem [shape: f32[1,64], index: 2, kind: input, shape index: {}]   ;;  %s2189_s3 = inlined_call_operand.vmem [shape: f32[1,64], index: 3, kind: input, shape index: {}]   ;;  %s2190_s4 = inlined_call_operand.vmem [shape: bf16[576,64], index: 4, kind: input, shape index: {}]   ;;  %s2191_s5 = inlined_call_operand.vmem [shape: f32[1,64], index: 5, kind: input, shape index: {}]   ;;  %s2192_s6 = inlined_call_operand.vmem [shape: f32[1,64], index: 6, kind: input, shape index: {}]   ;;  %s2193_s7 = inlined_call_operand.hbm [shape: f32[2,2,2,64], index: 7, kind: output, shape index: {0}]   ;;  %s2194_s8 = inlined_call_operand.vmem [shape: f32[2,1,1,64], index: 8, kind: output, shape index: {1}]  }
   0x1   :  { %16 = vsyncpa [#allocation5 + $0x1], 0  ;;  %s1799_s27 = smov 0   ;;  %s1801_s28 = smov 0  }
   0x2   :  { %s1803_s29 = smov 0   ;;  %s1805_s30 = smov 0  }
   0x3 LB: > { %s1820_s9 = sadd.s32 4294967295, %s1744_s30   ;;  %s1411_s10 = sadd.s32 4294967294, %s1744_s30   ;;  %s1744_s30 = sphi %s1805_s30, %s2200_s30   ;;  %s1740_s29 = sphi %s1803_s29, %s2199_s29   ;;  %s1736_s28 = sphi %s1801_s28, %s2198_s28   ;;  %s1732_s27 = sphi %s1799_s27, %s2197_s27  }
   0x4   : > { %s1824_s11 = sadd.s32 1, %s1744_s30   ;;  %s181_s12 = sadd.s32 1, %s1740_s29 }
   0x5   : > { %s178_s13 = ssub.s32 %s1744_s30, %s1824_s11  ;;  %p191_p0 = scmp.ne.s32.totalorder %s1740_s29, %s1736_s28 }
   0x6   : > { %p179_p1 = scmp.eq.s32.totalorder %s178_s13, 0  ;;  %p192_p2 = scmp.eq.s32.totalorder %s1820_s9, 1 }
   0x7   : > { %p197_p3 = scmp.ne.s32.totalorder %s1736_s28, %s1732_s27  ;;  %p198_p4 = scmp.eq.s32.totalorder %s1411_s10, 1 }
   0x8   : > { %s1835_s14 = scalar_select %p179_p1, %s1740_s29, %s181_s12  }
   0x9   : > { %p1837_p5 = por %p192_p2, %p191_p0  ;;  %p1841_p6 = por %p198_p4, %p197_p3 }
   0xa   : > { %p1414_p7 = scmp.ge.s32.totalorder %s1744_s30, 1  ;;  %p268_p8 = scmp.lt.s32.totalorder %s1744_s30, 3 }
   0xc   : > { %p269_p9 = pnand %p1414_p7, %p268_p8 }
   0xd   : > { %p305_p10 = scmp.lt.s32.totalorder (!%p269_p9), %s1820_s9, 1  ;;  %s1748_s20 = smov (!%p269_p9), 64  }
   0xe   : > { %272 = sbr.rel (%p269_p9) target bundleno = 767 (0x2ff), region = 48  ;;  %s1749_s23 = smov (!%p269_p9), 32  }
   0xf   : > { %s1750_s17 = smov (!%p269_p9), 96   ;;  %s297_s10 = sand.u32 (!%p269_p9), 1, %s1736_s28  }
  0x13   : > { %vm314_vm0 = vcmask 257024   ;;  %v1746_v0 = vmov 0.0   ;;  %v1630_v1 = vld [vmem:[%s2187_s1 + $0x78] sm:$0xff]   ;;  %s1857_s19 = scalar_select %p305_p10, %s1820_s9, 1  ;;  %vm322_vm1 = vcmask 254976   ;;  %v1632_v3 = vld [vmem:[%s2187_s1 + $0x70] sm:$0xff]   ;;  %v402_v6 = vlaneseq }
  0x14   : > { %318 = vst.msk [vmem:[#allocation2 + $0xc] sm:$0xf] %vm314_vm0, %v1746_v0  ;;  %315 = vst.msk [vmem:[#allocation2] sm:$0xf] %vm314_vm0, %v1746_v0  ;;  %1564 = vmatprep.subr.bf16.mxu1 %v1746_v0  ;;  %v1631_v2 = vld [vmem:[%s2187_s1 + $0x38] sm:$0xff]   ;;  %1490 = vmatprep.subr.bf16.mxu0 %v1630_v1  ;;  %v1633_v7 = vld [vmem:[%s2187_s1 + $0x30] sm:$0xff]  }
  0x15   : > { %316 = vst.msk [vmem:[#allocation2 + $0x4] sm:$0xf] %vm314_vm0, %v1746_v0  ;;  %317 = vst.msk [vmem:[#allocation2 + $0x8] sm:$0xf] %vm314_vm0, %v1746_v0  ;;  %v1747_v4 = vmov 1983009808   ;;  %1491 = vmatpush3.bf16.msra.mxu0 %v1631_v2 }
  0x16   : > { %v400_v5 = vunpack.c.l.s4 %v1747_v4  ;;  %s1488_s24 = sshll.u32 %s1857_s19, 2  ;;  %1492 = vmatprep.subr.bf16.mxu0 %v1632_v3  ;;  %v1634_v10 = vld [vmem:[%s2187_s1 + $0x68] sm:$0xff]   ;;  %v403_v13 = vshrl.u32 %v402_v6, 7  ;;  %v1636_v19 = vld [vmem:[%s2187_s1 + $0x60] sm:$0xff]   ;;  %v1638_v24 = vld [vmem:[%s2187_s1 + $0x58] sm:$0xff]   ;;  %vm379_vm2 = vcmask 261120  }
  0x17   : > { %s309_s13 = scalar_lea.vmem %s2186_s0, %s1488_s24  ;;  %v1635_v16 = vld [vmem:[%s2187_s1 + $0x28] sm:$0xff]   ;;  %v1637_v20 = vld [vmem:[%s2187_s1 + $0x20] sm:$0xff]   ;;  %v1639_v28 = vld [vmem:[%s2187_s1 + $0x18] sm:$0xff]   ;;  %vm1751_vm3 = vmmov 0   ;;  %vm382_vm4 = vcmask 523264   ;;  %vm385_vm5 = vcmask 785408  }
  0x18   : > { %v320_v8 = vld [vmem:[%s309_s13 + $0x2] sm:$0x3]  ;;  %v319_v9 = vld [vmem:[%s309_s13] sm:$0x3]  ;;  %v401_v12 = vunpack.c.0.s8 %v400_v5  ;;  %v1640_v30 = vld [vmem:[%s2187_s1 + $0x50] sm:$0xff]   ;;  %1568 = vmatprep.mubr.msk.bf16.mxu1 %vm1751_vm3, %v1746_v0  ;;  %vm697_vm6 = vcmask 519168  }
  0x19   : > { %324 = vst.msk [vmem:[#allocation2 + $0x9] sm:$0x3] %vm322_vm1, %v320_v8  ;;  %323 = vst.msk [vmem:[#allocation2 + $0x5] sm:$0x3] %vm322_vm1, %v319_v9  ;;  %1493 = vmatpush3.bf16.msra.mxu0 %v1633_v7  ;;  %v1641_v32 = vld [vmem:[%s2187_s1 + $0x10] sm:$0xff]   ;;  %v1642_v33 = vld [vmem:[%s2187_s1 + $0x88] sm:$0xff]  }
  0x1a   : > { %1494 = vmatprep.subr.bf16.mxu0 %v1634_v10  ;;  %v1896_v21 = vsub.s32 %v401_v12, %v403_v13  ;;  %v1643_v34 = vld [vmem:[%s2187_s1 + $0x48] sm:$0xff]   ;;  %v1645_v39 = vld [vmem:[%s2187_s1 + $0x80] sm:$0xff]   ;;  %1565 = vmatpush3.bf16.msra.mxu1 %v1642_v33  ;;  %698 = vst.msk [vmem:[#allocation3] sm:$0xf] %vm697_vm6, %v1746_v0  ;;  %699 = vst.msk [vmem:[#allocation3 + $0x4] sm:$0xf] %vm697_vm6, %v1746_v0 }
  0x1b   : > { %v1875_v11 = vld [vmem:[#allocation2 + $0xc] sm:$0xf]  ;;  %v1877_v14 = vld [vmem:[#allocation2] sm:$0xf]  ;;  %1566 = vmatprep.subr.bf16.mxu1 %v1746_v0  ;;  %700 = vst.msk [vmem:[#allocation3 + $0x8] sm:$0xf] %vm697_vm6, %v1746_v0 }
  0x1c   : > { %367 = vrot.lane.b32.xlu1 %v1875_v11, %s1748_s20  ;;  %v331_v15 = vrot.slane %v1877_v14, 1  ;;  %v378_v17 = vrot.slane %v1875_v11, 2  ;;  %v339_v18 = vrot.slane %v1877_v14, 2  ;;  %v371_v36 = vrot.slane %v1875_v11, 1  ;;  %v1644_v38 = vld [vmem:[%s2187_s1 + $0x8] sm:$0xff]   ;;  %v1646_v41 = vld [vmem:[%s2187_s1 + $0x40] sm:$0xff]  }
  0x1d   : > { %1495 = vmatpush3.bf16.msra.mxu0 %v1635_v16  ;;  %v1647_v42 = vld [vmem:[%s2187_s1] sm:$0xff]   ;;  %701 = vst.msk [vmem:[#allocation3 + $0xc] sm:$0xf] %vm697_vm6, %v1746_v0  ;;  %vm714_vm7 = vcmask 517120   ;;  %s1415_s13 = sshll.u32 %s297_s10, 2 }
  0x1e   : > { %333 = vrot.lane.b32.xlu0 %v331_v15, %s1749_s23  ;;  %1496 = vmatprep.subr.bf16.mxu0 %v1636_v19  ;;  %v428_v25 = vrot.slane %v378_v17, %v1896_v21  ;;  %v1439_v33 = vld [vmem:[%s2188_s2] ss:$0 sm:$0xff]  ;;  %s299_s18 = scalar_lea.vmem [#allocation4], %s1415_s13 }
  0x1f   : > { %1567 = vmatpush3.bf16.msra.mxu1 %v1645_v39  ;;  %v1657_v39 = vld [vmem:[%s2190_s4 + $0x20] sm:$0xff]   ;;  %s1327_s21 = sshll.u32 %s299_s18, 4  ;;  %s2137_s21 = int_to_ptr.vmem [resolvable:$true] %s1327_s21 }
  0x20   : > { %v1899_v22 = vld [vmem:[#allocation2 + $0x8] sm:$0xf]  ;;  %v326_v23 = vld [vmem:[#allocation2 + $0x4] sm:$0xf]  ;;  %s1684_s26 = scalar_lea.vmem %s2137_s21, 64 }
  0x21   : > { %350 = vrot.lane.b32.xlu1 %v1899_v22, %s1750_s17  ;;  %v340_v26 = vrot.slane %v326_v23, 2  ;;  %v357_v27 = vrot.slane %v1899_v22, 2  ;;  %1497 = vmatpush3.bf16.msra.mxu0 %v1637_v20  ;;  %v332_v35 = vrot.slane %v326_v23, 1  ;;  %v354_v37 = vrot.slane %v1899_v22, 1  ;;  %v1648_v20 = vld [vmem:[%s2190_s4 + $0x78] sm:$0xff]   ;;  %p1685_p11 = scmp.ne.s32.totalorder %s2137_s21, %s1684_s26 }
  0x22   : > { %341 = vrot.lane.b32.xlu0 %v339_v18, %s1748_s20  ;;  %1498 = vmatprep.subr.bf16.mxu0 %v1638_v24  ;;  %v1968_v18 = vld [vmem:[#allocation3] sm:$0xf]  ;;  %v1654_v24 = vld [vmem:[%s2190_s4 + $0xf8] sm:$0xff]  }
  0x23   : > { %v412_v29 = vrot.slane %v357_v27, %v1896_v21  ;;  %v723_v19 = vrot.slane %v1968_v18, 1  ;;  %1515 = vmatprep.subr.bf16.mxu1 %v1648_v20  ;;  %p1686_p12 = pnand %p1685_p11, %p1837_p5 }
  0x25   : > { %358 = vrot.lane.b32.xlu1 %v340_v26, %s1749_s23  ;;  %v1419_v31 = vcombine.low %v412_v29, %v428_v25  ;;  %1499 = vmatpush3.bf16.msra.mxu0 %v1639_v28  ;;  %v1655_v25 = vld [vmem:[%s2190_s4 + $0xb8] sm:$0xff]   ;;  %v1653_v28 = vld [vmem:[%s2190_s4 + $0x28] sm:$0xff]   ;;  %v1656_v29 = vld [vmem:[%s2190_s4 + $0x60] sm:$0xff]   ;;  %p1687_p13 = pneg %p1686_p12 }
  0x26   : > { %365 = vrot.lane.b32.xlu0 %v1899_v22, %s1748_s20  ;;  %1500 = vmatprep.subr.bf16.mxu0 %v1640_v30  ;;  %v1649_v22 = vld [vmem:[%s2190_s4 + $0x38] sm:$0xff]  }
  0x27   : > { %v445_v40 = vrot.slane %v1419_v31, %v1896_v21 }
  0x29   : > { %360 = vrot.lane.b32.xlu1 %v357_v27, %s1749_s23  ;;  %1501 = vmatpush3.bf16.msra.mxu0 %v1641_v32  ;;  %v452_v43 = vpack.c.bf16 %v445_v40, %v445_v40  ;;  %v1652_v27 = vld [vmem:[%s2190_s4 + $0x68] sm:$0xff]   ;;  %v1658_v40 = vld [vmem:[%s2190_s4 + $0xf0] sm:$0xff]  }
  0x2a   : > { %348 = vrot.lane.b32.xlu0 %v326_v23, %s1750_s17  ;;  %1502 = vmatprep.subr.bf16.mxu0 %v1643_v34 }
  0x2b   : > { %1569 = vmatmul.mubr.msk.bf16.vlgmr.msra.gmra.mxu1 %vm379_vm2, %v452_v43 }
  0x2c   : > { %1516 = vmatpush3.bf16.msra.mxu1 %v1649_v22 }
  0x2d   : > { %343 = vrot.lane.b32.xlu1 %v340_v26, %s1748_s20  ;;  %1503 = vmatpush3.bf16.msra.mxu0 %v1644_v38  ;;  %v1651_v26 = vld [vmem:[%s2190_s4 + $0x30] sm:$0xff]  }
  0x2e   : > { %335 = vrot.lane.b32.xlu0 %v332_v35, %s1749_s23  ;;  %1504 = vmatprep.subr.bf16.mxu0 %v1646_v41 }
  0x31   : > { %374 = vrot.lane.b32.xlu1 %v371_v36, %s1750_s17  ;;  %1505 = vmatpush3.bf16.msra.mxu0 %v1647_v42  ;;  %v1440_v36 = vld [vmem:[%s2189_s3] ss:$0 sm:$0xff]  ;;  %v1659_v42 = vld [vmem:[%s2190_s4 + $0xb0] sm:$0xff]  }
  0x32   : > { %372 = vrot.lane.b32.xlu0 %v354_v37, %s1750_s17  ;;  %1537 = vmatprep.subr.bf16.mxu0 %v1654_v24  ;;  %s1489_s17 = sshll.u32 %s1820_s9, 6  ;;  %s2140_s9 = scalar_lea.sflag [#allocation5], %s297_s10 }
  0x33   : > { %s2134_s25 = scalar_lea.hbm %s2193_s7, %s1489_s17 }
  0x36   : > { %725 = vrot.lane.b32.xlu0 %v723_v19, %s1748_s20 }
  0x8e   : > { %v368_v44 = vpop.permute.xlu1 %367 }
  0x90   : > { %v334_v45 = vpop.permute.xlu0 %333 }
  0x91   : > { %v380_v57 = vsel %vm379_vm2, %v1877_v14, %v334_v45  ;;  %v1661_v45 = vld [vmem:[%s2190_s4 + $0x18] sm:$0xff]  }
  0x93   : > { %v351_v47 = vpop.permute.xlu1 %350 }
  0x94   : > { %v342_v46 = vpop.permute.xlu0 %341 }
  0x95   : > { %v383_v59 = vsel %vm382_vm4, %v380_v57, %v342_v46  ;;  %v1662_v46 = vld [vmem:[%s2190_s4 + $0xe8] sm:$0xff]   ;;  %v1671_v57 = vld [vmem:[%s2190_s4 + $0x98] sm:$0xff]  }
  0x97   : > { %v359_v49 = vpop.permute.xlu1 %358 }
  0x98   : > { %v366_v48 = vpop.permute.xlu0 %365  ;;  %v388_v53 = vsel %vm379_vm2, %v332_v35, %v359_v49 }
  0x99   : > { %v390_v61 = vsel %vm382_vm4, %v388_v53, %v366_v48  ;;  %v1663_v48 = vld [vmem:[%s2190_s4 + $0xa8] sm:$0xff]   ;;  %v1667_v53 = vld [vmem:[%s2190_s4 + $0xa0] sm:$0xff]  }
  0x9b   : > { %v361_v51 = vpop.permute.xlu1 %360 }
  0x9c   : > { %v349_v50 = vpop.permute.xlu0 %348  ;;  %v389_v56 = vsel %vm379_vm2, %v354_v37, %v361_v51  ;;  %v1665_v51 = vld [vmem:[%s2190_s4 + $0x10] sm:$0xff]  }
  0x9d   : > { %v386_v62 = vsel %vm385_vm5, %v383_v59, %v349_v50  ;;  %v391_v63 = vsel %vm382_vm4, %v389_v56, %v368_v44  ;;  %v1660_v44 = vld [vmem:[%s2190_s4 + $0x58] sm:$0xff]   ;;  %v1664_v50 = vld [vmem:[%s2190_s4 + $0x50] sm:$0xff]  }
  0x9e   : > { %v1670_v56 = vld [vmem:[%s2190_s4 + $0xd8] sm:$0xff]  }
  0x9f   : > { %v344_v54 = vpop.permute.xlu1 %343 }
  0xa0   : > { %v336_v52 = vpop.permute.xlu0 %335 }
  0xa1   : > { %v381_v55 = vsel %vm379_vm2, %v326_v23, %v336_v52  ;;  %v1650_v23 = vld [vmem:[%s2190_s4 + $0x70] sm:$0xff]   ;;  %v1666_v52 = vld [vmem:[%s2190_s4 + $0xe0] sm:$0xff]  }
  0xa2   : > { %v384_v58 = vsel %vm382_vm4, %v381_v55, %v344_v54  ;;  %1517 = vmatprep.subr.bf16.mxu1 %v1650_v23  ;;  %v1668_v54 = vld [vmem:[%s2190_s4 + $0x48] sm:$0xff]  }
  0xa3   : > { %v375_v1 = vpop.permute.xlu1 %374  ;;  %v387_v3 = vsel %vm385_vm5, %v384_v58, %v351_v47  ;;  %1518 = vmatpush3.bf16.msra.mxu1 %v1651_v26  ;;  %v1669_v55 = vld [vmem:[%s2190_s4 + $0x8] sm:$0xff]  }
  0xa4   : > { %v373_v60 = vpop.permute.xlu0 %372  ;;  %v393_v4 = vsel %vm385_vm5, %v391_v63, %v375_v1  ;;  %1519 = vmatprep.subr.bf16.mxu1 %v1652_v27  ;;  %v1675_v1 = vld [vmem:[%s2190_s4 + $0x90] sm:$0xff]  }
  0xa5   : > { %v392_v2 = vsel %vm385_vm5, %v390_v61, %v373_v60  ;;  %v414_v6 = vcombine.low %v387_v3, %v393_v4  ;;  %v1672_v60 = vld [vmem:[%s2190_s4 + $0x40] sm:$0xff]   ;;  %v1676_v3 = vld [vmem:[%s2190_s4 + $0xc8] sm:$0xff]  }
  0xa6   : > { %v398_v5 = vcombine.low %v386_v62, %v392_v2  ;;  %v1673_v61 = vld [vmem:[%s2190_s4] sm:$0xff]   ;;  %v1674_v62 = vld [vmem:[%s2190_s4 + $0xd0] sm:$0xff]  }
  0xa7   : > { %v421_v8 = vrot.slane %v414_v6, %v1896_v21  ;;  %1520 = vmatpush3.bf16.msra.mxu1 %v1653_v28 }
  0xa8   : > { %v405_v7 = vrot.slane %v398_v5, %v1896_v21  ;;  %1521 = vmatprep.subr.bf16.mxu1 %v1656_v29  ;;  %v1678_v5 = vld [vmem:[%s2190_s4 + $0x88] sm:$0xff]  }
  0xaa   : > { %v1418_v9 = vcombine.low %v405_v7, %v421_v8  ;;  %v720_v7 = vld [vmem:[#allocation3 + $0xc] sm:$0xf]  ;;  %v1679_v8 = vld [vmem:[%s2190_s4 + $0xc0] sm:$0xff]  }
  0xab   : > { %1522 = vmatpush3.bf16.msra.mxu1 %v1657_v39 }
  0xac   : > { %v438_v10 = vrot.slane %v1418_v9, %v1896_v21  ;;  %1523 = vmatprep.subr.bf16.mxu1 %v1660_v44  ;;  %v753_v9 = vrot.slane %v720_v7, 1 }
  0xae   : > { %v446_v11 = vcombine.high %v438_v10, %v438_v10  ;;  %v450_v13 = vpack.c.bf16 %v438_v10, %v438_v10  ;;  %v1681_v10 = vld [vmem:[%s2190_s4 + $0x80] sm:$0xff]  }
  0xaf   : > { %1524 = vmatpush3.bf16.msra.mxu1 %v1661_v45  ;;  %v1680_v45 = vld [vmem:[%s2190_s4 + $0x110] sm:$0xff]  }
  0xb0   : > { %v451_v12 = vpack.c.bf16 %v446_v11, %v446_v11  ;;  %1525 = vmatprep.subr.bf16.mxu1 %v1664_v50  ;;  %v726_v11 = vpop.permute.xlu0 %725 }
  0xb2   : > { %632 = vmatprep.mubr.bf16.mxu0 %v451_v12  ;;  %v731_v12 = vrot.slane %v1968_v18, 2 }
  0xb3   : > { %633 = vmatmul.mubr.bf16.vlgmr.msra.gmra.mxu0 %v450_v13  ;;  %1526 = vmatpush3.bf16.msra.mxu1 %v1665_v51  ;;  %v1682_v51 = vld [vmem:[%s2190_s4 + $0x108] sm:$0xff]  }
  0xb4   : > { %1538 = vmatpush3.bf16.msra.mxu0 %v1655_v25  ;;  %1527 = vmatprep.subr.bf16.mxu1 %v1668_v54  ;;  %v1683_v54 = vld [vmem:[%s2190_s4 + $0x100] sm:$0xff]  }
  0xb5   : > { %1539 = vmatprep.subr.bf16.mxu0 %v1658_v40 }
  0xb7   : > { %1528 = vmatpush3.bf16.msra.mxu1 %v1669_v55 }
  0xb8   : > { %1540 = vmatpush3.bf16.msra.mxu0 %v1659_v42  ;;  %1529 = vmatprep.subr.bf16.mxu1 %v1672_v60  ;;  %v760_v42 = vrot.slane %v720_v7, 2 }
  0xb9   : > { %1541 = vmatprep.subr.bf16.mxu0 %v1662_v46 }
  0xbb   : > { %1530 = vmatpush3.bf16.msra.mxu1 %v1673_v61 }
  0xbc   : > { %1542 = vmatpush3.bf16.msra.mxu0 %v1663_v48  ;;  %1572 = vmatprep.subr.bf16.mxu1 %v1746_v0  ;;  %v824_v48 = vrot.slane %v760_v42, %v1896_v21 }
  0xbd   : > { %1543 = vmatprep.subr.bf16.mxu0 %v1666_v52 }
  0xc0   : > { %1544 = vmatpush3.bf16.msra.mxu0 %v1667_v53 }
  0xc1   : > { %1545 = vmatprep.subr.bf16.mxu0 %v1670_v56 }
  0xc4   : > { %1546 = vmatpush3.bf16.msra.mxu0 %v1671_v57 }
  0xc5   : > { %1547 = vmatprep.subr.bf16.mxu0 %v1674_v62 }
  0xc8   : > { %1548 = vmatpush3.bf16.msra.mxu0 %v1675_v1 }
  0xc9   : > { %1549 = vmatprep.subr.bf16.mxu0 %v1676_v3 }
  0xcc   : > { %1550 = vmatpush3.bf16.msra.mxu0 %v1678_v5  ;;  %v1480_v5 = vld [vmem:[%s2191_s5] ss:$0 sm:$0xff] }
  0xcd   : > { %1551 = vmatprep.subr.bf16.mxu0 %v1679_v8 }
  0xd0   : > { %1552 = vmatpush3.bf16.msra.mxu0 %v1681_v10 }
  0xeb   : > { %v674_v14 = vpop.f32.mrf.mxu1 }
  0xed   : > { %v1570_v15 = vpop.f32.mrf.mxu1 }
  0xee   : > { %v761_v15 = vsel %vm382_vm4, %v1968_v18, %v726_v11 }
  0xef   : > { %v677_v16 = vpop.f32.mrf.mxu1 }
  0xf1   : > { %v1571_v17 = vpop.f32.mrf.mxu1 }
 0x173   : > { %v1506_v30 = vpop.f32.mrf.mxu0 }
 0x175   : > { %v1507_v31 = vpop.f32.mrf.mxu0 }
 0x176   : > { %v1508_v32 = vadd.f32 %v1507_v31, %v1506_v30 }
 0x177   : > { %v1509_v34 = vpop.f32.mrf.mxu0 }
 0x178   : > { %v675_v35 = vadd.f32 %v1508_v32, %v674_v14 }
 0x179   : > { %v1510_v37 = vpop.f32.mrf.mxu0 }
 0x17a   : > { %v687_v38 = vmul.f32 %v1439_v33, %v675_v35 }
 0x17c   : > { %v695_v41 = vadd.f32 %v1440_v36, %v687_v38 }
 0x17e   : > { %v696_v43 = vmax.f32 %v695_v41, 0.0  ;;  %v1677_v41 = vld [vmem:[%s2190_s4 + $0x118] sm:$0xff]  }
 0x180   : > { %v709_v47 = vrot.slane %v696_v43, %v1896_v21 }
 0x182   : > { %v710_v49 = vcombine.high %v709_v47, %v709_v47  ;;  %715 = vst.msk [vmem:[#allocation3 + $0x5] sm:$0x3] %vm714_vm7, %v709_v47 }
 0x184   : > { %716 = vst.msk [vmem:[#allocation3 + $0x9] sm:$0x3] %vm714_vm7, %v710_v49 }
 0x189   : > { %v718_v58 = vld [vmem:[#allocation3 + $0x4] sm:$0xf] }
 0x18a   : > { %736 = vrot.lane.b32.xlu0 %v718_v58, %s1748_s20  ;;  %v724_v59 = vrot.slane %v718_v58, 1  ;;  %v732_v63 = vrot.slane %v718_v58, 2 }
 0x18b   : > { %v719_v2 = vld [vmem:[#allocation3 + $0x8] sm:$0xf] }
 0x18c   : > { %727 = vrot.lane.b32.xlu1 %v724_v59, %s1748_s20  ;;  %v742_v4 = vrot.slane %v719_v2, 1  ;;  %v745_v6 = vrot.slane %v719_v2, 2 }
 0x18e   : > { %746 = vrot.lane.b32.xlu0 %v732_v63, %s1748_s20  ;;  %v800_v47 = vrot.slane %v745_v6, %v1896_v21 }
 0x190   : > { %738 = vrot.lane.b32.xlu1 %v719_v2, %s1748_s20  ;;  %v843_v52 = vcombine.low %v800_v47, %v824_v48 }
 0x192   : > { %754 = vrot.lane.b32.xlu0 %v742_v4, %s1748_s20  ;;  %v850_v55 = vrot.slane %v843_v52, %v1896_v21 }
 0x194   : > { %748 = vrot.lane.b32.xlu1 %v745_v6, %s1748_s20  ;;  %v860_v56 = vpack.c.bf16 %v850_v55, %v850_v55 }
 0x198   : > { %756 = vrot.lane.b32.xlu1 %v753_v9, %s1748_s20  ;;  %s1752_s20 = smov [#allocation4]  }
 0x199   : > { %s1688_s12 = sshll.u32 %s1752_s20, 4  ;;  %s1689_s12 = int_to_ptr.vmem [resolvable:$false] %s1688_s12 }
 0x19a   : > { %s1690_s13 = scalar_lea.vmem %s1689_s12, 128  ;;  %p1691_p0 = scmp.lt.s32.totalorder %s2137_s21, %s1689_s12 }
 0x19b   : > { %p1692_p1 = scmp.lt.s32.totalorder %s1690_s13, %s1684_s26 }
 0x19d   : > { %p1693_p2 = por %p1692_p1, %p1691_p0 }
 0x19f   : > { %p1694_p3 = pnand %p1693_p2, %p1687_p13 }
 0x1fc   : > { %v737_v13 = vpop.permute.xlu0 %736 }
 0x1fd   : > { %v763_v16 = vsel %vm382_vm4, %v731_v12, %v737_v13 }
 0x1fe   : > { %v728_v14 = vpop.permute.xlu1 %727  ;;  %v777_v19 = vcombine.low %v761_v15, %v763_v16 }
 0x1ff   : > { %v762_v22 = vsel %vm382_vm4, %v718_v58, %v728_v14 }
 0x200   : > { %v747_v17 = vpop.permute.xlu0 %746  ;;  %v785_v26 = vrot.slane %v777_v19, %v1896_v21 }
 0x201   : > { %v765_v18 = vsel %vm382_vm4, %v724_v59, %v747_v17 }
 0x202   : > { %v739_v20 = vpop.permute.xlu1 %738 }
 0x203   : > { %v764_v23 = vsel %vm382_vm4, %v732_v63, %v739_v20 }
 0x204   : > { %v801_v24 = vcombine.low %v762_v22, %v764_v23  ;;  %v755_v25 = vpop.permute.xlu0 %754 }
 0x205   : > { %v767_v29 = vsel %vm382_vm4, %v719_v2, %v755_v25 }
 0x206   : > { %v809_v27 = vrot.slane %v801_v24, %v1896_v21  ;;  %v749_v28 = vpop.permute.xlu1 %748  ;;  %v778_v31 = vcombine.low %v765_v18, %v767_v29 }
 0x207   : > { %v766_v34 = vsel %vm382_vm4, %v742_v4, %v749_v28 }
 0x208   : > { %v1441_v30 = vcombine.low %v785_v26, %v809_v27  ;;  %v792_v38 = vrot.slane %v778_v31, %v1896_v21 }
 0x20a   : > { %v757_v32 = vpop.permute.xlu1 %756  ;;  %v833_v33 = vrot.slane %v1441_v30, %v1896_v21 }
 0x20b   : > { %v768_v35 = vsel %vm382_vm4, %v720_v7, %v757_v32  ;;  %v1481_v7 = vld [vmem:[%s2192_s6] ss:$0 sm:$0xff] }
 0x20c   : > { %v802_v36 = vcombine.low %v766_v34, %v768_v35  ;;  %v841_v37 = vcombine.high %v833_v33, %v833_v33  ;;  %v856_v43 = vpack.c.bf16 %v833_v33, %v833_v33 }
 0x20e   : > { %v816_v39 = vrot.slane %v802_v36, %v1896_v21  ;;  %v857_v40 = vpack.c.bf16 %v841_v37, %v841_v37 }
 0x210   : > { %v1442_v44 = vcombine.low %v792_v38, %v816_v39  ;;  %1184 = vmatprep.mubr.bf16.mxu1 %v857_v40 }
 0x211   : > { %1185 = vmatmul.mubr.bf16.vlgmr.msra.gmra.mxu1 %v856_v43 }
 0x212   : > { %1573 = vmatpush3.bf16.msra.mxu1 %v1677_v41  ;;  %v840_v46 = vrot.slane %v1442_v44, %v1896_v21  ;;  %1580 = vmatprep.mubr.msk.bf16.mxu1 %vm1751_vm3, %v1746_v0 }
 0x213   : > { %1574 = vmatprep.subr.bf16.mxu1 %v1746_v0 }
 0x214   : > { %v842_v49 = vcombine.high %v840_v46, %v840_v46  ;;  %v858_v53 = vpack.c.bf16 %v840_v46, %v840_v46 }
 0x216   : > { %1575 = vmatpush3.bf16.msra.mxu1 %v1680_v45  ;;  %v859_v50 = vpack.c.bf16 %v842_v49, %v842_v49 }
 0x217   : > { %1576 = vmatprep.subr.bf16.mxu1 %v1746_v0 }
 0x218   : > { %1224 = vmatprep.mubr.bf16.mxu0 %v859_v50 }
 0x219   : > { %1225 = vmatmul.mubr.bf16.vlgmr.msra.gmra.mxu0 %v858_v53 }
 0x21a   : > { %1577 = vmatpush3.bf16.msra.mxu1 %v1682_v51 }
 0x21b   : > { %1578 = vmatprep.subr.bf16.mxu1 %v1746_v0 }
 0x21e   : > { %1579 = vmatpush3.bf16.msra.mxu1 %v1683_v54 }
 0x221   : > { %1581 = vmatmul.mubr.msk.bf16.vlgmr.msra.gmra.mxu1 %vm382_vm4, %v860_v56 }
 0x2d1   : > { %v1531_v57 = vpop.f32.mrf.mxu1 }
 0x2d3   : > { %v1532_v58 = vpop.f32.mrf.mxu1 }
 0x2d4   : > { %v1533_v63 = vadd.f32 %v1532_v58, %v1531_v57 }
 0x2d5   : > { %v1534_v59 = vpop.f32.mrf.mxu1 }
 0x2d7   : > { %v1535_v60 = vpop.f32.mrf.mxu1 }
 0x2d9   : > { %v1553_v61 = vpop.f32.mrf.mxu0 }
 0x2db   : > { %v1554_v62 = vpop.f32.mrf.mxu0 }
 0x2dc   : > { %v1555_v1 = vadd.f32 %v1554_v62, %v1553_v61 }
 0x2dd   : > { %v1556_v2 = vpop.f32.mrf.mxu0 }
 0x2de   : > { %v1227_v3 = vadd.f32 %v1555_v1, %v1533_v63 }
 0x2df   : > { %v1557_v4 = vpop.f32.mrf.mxu0 }
 0x2e1   : > { %v1266_v0 = vpop.f32.mrf.mxu1 }
 0x2e2   : > { %v1267_v6 = vadd.f32 %v1266_v0, %v1227_v3 }
 0x2e3   : > { %v1582_v8 = vpop.f32.mrf.mxu1 }
 0x2e4   : > { %v1279_v9 = vmul.f32 %v1480_v5, %v1267_v6 }
 0x2e5   : > { %v1269_v10 = vpop.f32.mrf.mxu1 }
 0x2e6   : > { %v1287_v11 = vadd.f32 %v1481_v7, %v1279_v9 }
 0x2e7   : > { %v1583_v12 = vpop.f32.mrf.mxu1 }
 0x2e8   : > { %v1288_v13 = vmax.f32 %v1287_v11, 0.0 }
 0x2ea   : > { %v1296_v14 = vrot.slane %v1288_v13, %v1896_v21 }
 0x2ec   : > { %v1297_v15 = vcombine.high %v1296_v14, %v1296_v14  ;;  %1300 = vst.msk [vmem:[%s299_s18] sm:$0x3] %vm714_vm7, %v1296_v14 }
 0x2ee   : > { %v1302_v16 = vmax.f32 %v1296_v14, %v1297_v15  ;;  %1301 = vst.msk [vmem:[%s299_s18 + $0x2] sm:$0x3] %vm714_vm7, %v1297_v15 }
 0x2ef   : > { %1697 = shalt.err (!%p1694_p3)
}
 0x2f0   : > { %s1698_s10 = scalar_lea.hbm %s2134_s25, 64  ;;  %s1702_s22 = scalar_lea.hbm %s2193_s7, 128 }
 0x2f1   : > { %p1699_p4 = scmp.ne.s32.totalorder %s2134_s25, %s1698_s10  ;;  %p1703_p9 = scmp.lt.s32.totalorder %s2134_s25, %s2193_s7 }
 0x2f2   : > { %p1704_p10 = scmp.lt.s32.totalorder %s1702_s22, %s1698_s10 }
 0x2f3   : > { %p1700_p7 = pnand %p1699_p4, %p1837_p5 }
 0x2f4   : > { %p1705_p11 = por %p1704_p10, %p1703_p9 }
 0x2f5   : > { %p1701_p8 = pneg %p1700_p7 }
 0x2f7   : > { %p1706_p12 = pnand %p1705_p11, %p1701_p8 }
 0x2f9   : > { %1709 = shalt.err (!%p1706_p12)
}
 0x2fa   : > { %s1753_s26 = smov 2   ;;  %v1482_v21 = vrot.slane %v1302_v16, 9  ;;  %s312_s17 = scalar_lea.vmem %s2194_s8, %s1857_s19  ;;  %vm1308_vm8 = vcmask 516096  }
 0x2fb   : > { %1584 = dma.vmem_to_hbm [thread:$0]  (%p1837_p5), %s2137_s21, 64, %s2134_s25, %s2140_s9, %s1749_s23, %s1749_s23, %s1753_s26  }
 0x2fc   : > { %v1307_v17 = vmax.f32 %v1302_v16, %v1482_v21 }
 0x2fe   : > { %1309 = vst.msk [vmem:[%s312_s17] sm:$0x1] %vm1308_vm8, %v1307_v17 }
 0x2ff PF: > { %p1590_p13 = scmp.ge.s32.totalorder %s1744_s30, 2  ;;  %s1345_s15 = sand.u32 1, %s1732_s27  }
 0x300   : > { %s1346_s10 = scalar_lea.sflag [#allocation5], %s1345_s15 }
 0x301   : > { %p1587_p0 = pnand %p1590_p13, %p1841_p6 }
 0x303   : > { %p1588_p1 = pneg %p1587_p0 }
 0x305   : > { %1727 = dma.done.wait (%p1588_p1), %s1346_s10, 64  }
 0x306   : > { %1729 = vsyncadd (%p1588_p1), %s1346_s10, 4294967232  ;;  %p19_p5 = scmp.ge.s32.totalorder %s1824_s11, 4   ;;  %s2197_s27 = smov %s1736_s28 }
 0x307   : > { %s2198_s28 = smov %s1740_s29  ;;  %s2199_s29 = smov %s1835_s14 }
 0x308   : > { %s2200_s30 = smov %s1824_s11  ;;  %21 = sbr.rel (!%p19_p5) target bundleno = 3 (0x3), region = 97 }
 0x30d   :  { %1357 = vsyncpa [#allocation5], 1 }
 0x30e   :  { %1359 = vsyncpa [#allocation5 + $0x1], 1 }

// kernel: encoder_forward.5
= control target key start
LH: loop header
LB: loop body
LE: loop exit
PB: predicated region body
PF: predicated region fallthrough
CT: control target
= control target key end

     0   :  { %s5911_s27 = smov 0   ;;  %s9276_s0 = inlined_call_operand.vmem [shape: f32[2,16,16,1], index: 0, kind: input, shape index: {}]   ;;  %s9277_s1 = inlined_call_operand.vmem [shape: bf16[9,8], index: 1, kind: input, shape index: {}]   ;;  %s9278_s2 = inlined_call_operand.vmem [shape: f32[1,8], index: 2, kind: input, shape index: {}]   ;;  %s9279_s3 = inlined_call_operand.vmem [shape: f32[1,8], index: 3, kind: input, shape index: {}]   ;;  %s9280_s4 = inlined_call_operand.vmem [shape: bf16[72,8], index: 4, kind: input, shape index: {}]   ;;  %s9281_s5 = inlined_call_operand.vmem [shape: f32[1,8], index: 5, kind: input, shape index: {}]   ;;  %s9282_s6 = inlined_call_operand.vmem [shape: f32[1,8], index: 6, kind: input, shape index: {}]   ;;  %s9283_s7 = inlined_call_operand.vmem [shape: f32[2,16,16,8], index: 7, kind: output, shape index: {0}]   ;;  %s9284_s8 = inlined_call_operand.vmem [shape: f32[2,8,8,8], index: 8, kind: output, shape index: {1}]  }
   0x1 LB: > { %s4289_s28 = sadd.s32 4294967295, %s5847_s27   ;;  %p4293_p0 = scmp.ge.s32.totalorder %s5847_s27, 1  ;;  %s5847_s27 = sphi %s5911_s27, %s19_s27  }
   0x2   : > { %p265_p1 = scmp.lt.s32.totalorder %s5847_s27, 3 }
   0x4   : > { %p266_p2 = pnand %p4293_p0, %p265_p1 }
   0x6   : > { %269 = sbr.rel (%p266_p2) target bundleno = 1187 (0x4a3), region = 48 }
   0xb   : > { %vm320_vm0 = vcmask 7168   ;;  %vm323_vm1 = vcmask 1024   ;;  %p5921_p3 = scmp.lt.s32.totalorder %s4289_s28, 1  ;;  %v9285_v0 = vmov 0.0   ;;  %vm543_vm2 = vcmask 1046528   ;;  %s5850_s12 = smov 1  }
   0xc   : > { %321 = vst.msk [vmem:[#allocation2] sm:$0xff] %vm320_vm0, %v9285_v0  ;;  %322 = vst.msk [vmem:[#allocation2 + $0x8] sm:$0xff] %vm320_vm0, %v9285_v0  ;;  %vm720_vm3 = vcmask 1045504   ;;  %s5851_s13 = smov 2   ;;  %s5852_s14 = smov 3   ;;  %vm1834_vm4 = vcmask 1043456  }
   0xd   : > { %324 = vst.msk [vmem:[#allocation2 + $0x10] sm:$0x3] %vm323_vm1, %v9285_v0  ;;  %327 = vst.msk [vmem:[#allocation2 + $0x28] sm:$0x3] %vm323_vm1, %v9285_v0  ;;  %s9568_s28 = smov (!%p5921_p3, %s4289_s28), 1  ;;  %s5853_s15 = smov 4  }
   0xe   : > { %325 = vst.msk [vmem:[#allocation2 + $0x18] sm:$0xff] %vm320_vm0, %v9285_v0  ;;  %326 = vst.msk [vmem:[#allocation2 + $0x20] sm:$0xff] %vm320_vm0, %v9285_v0  ;;  %s4344_s30 = sshll.u32 %s9568_s28, 8  ;;  %s5854_s16 = smov 5   ;;  %vm1729_vm5 = vcmask 64512   ;;  %vm1835_vm6 = vcmask 1044480  }
   0xf   : > { %328 = vst.msk [vmem:[#allocation2 + $0x30] sm:$0xff] %vm320_vm0, %v9285_v0  ;;  %329 = vst.msk [vmem:[#allocation2 + $0x38] sm:$0xff] %vm320_vm0, %v9285_v0  ;;  %s6045_s11 = scalar_lea.vmem %s9276_s0, %s4344_s30  ;;  %s5855_s17 = smov 6   ;;  %vm1531_vm7 = vcmask 15360   ;;  %vm1564_vm8 = vcmask 23552   ;;  %vm1597_vm9 = vcmask 31744  }
  0x10   : > { %330 = vst.msk [vmem:[#allocation2 + $0x40] sm:$0x3] %vm323_vm1, %v9285_v0  ;;  %333 = vst.msk [vmem:[#allocation2 + $0x58] sm:$0x3] %vm323_vm1, %v9285_v0  ;;  %v378_v1 = vld [vmem:[%s6045_s11 + $0x10] sm:$0xff]  ;;  %v379_v2 = vld [vmem:[%s6045_s11 + $0x18] sm:$0xff] }
  0x11   : > { %331 = vst.msk [vmem:[#allocation2 + $0x48] sm:$0xff] %vm320_vm0, %v9285_v0  ;;  %332 = vst.msk [vmem:[#allocation2 + $0x50] sm:$0xff] %vm320_vm0, %v9285_v0  ;;  %v376_v3 = vld [vmem:[%s6045_s11] sm:$0xff]  ;;  %v377_v4 = vld [vmem:[%s6045_s11 + $0x8] sm:$0xff]  ;;  %s5857_s20 = smov 7   ;;  %s5858_s21 = smov 8  }
  0x12   : > { %334 = vst.msk [vmem:[#allocation2 + $0x60] sm:$0xff] %vm320_vm0, %v9285_v0  ;;  %335 = vst.msk [vmem:[#allocation2 + $0x68] sm:$0xff] %vm320_vm0, %v9285_v0  ;;  %v380_v5 = vld [vmem:[%s6045_s11 + $0x20] sm:$0xff]  ;;  %v381_v6 = vld [vmem:[%s6045_s11 + $0x28] sm:$0xff]  ;;  %vm1630_vm10 = vcmask 39936   ;;  %vm1663_vm11 = vcmask 48128  }
  0x13   : > { %336 = vst.msk [vmem:[#allocation2 + $0x70] sm:$0x3] %vm323_vm1, %v9285_v0  ;;  %339 = vst.msk [vmem:[#allocation2 + $0x88] sm:$0x3] %vm323_vm1, %v9285_v0  ;;  %v6056_v7 = vld [vmem:[#allocation2] sm:$0xff]  ;;  %v6058_v8 = vld [vmem:[#allocation2 + $0x8] sm:$0xff] }
  0x14   : > { %337 = vst.msk [vmem:[#allocation2 + $0x78] sm:$0xff] %vm320_vm0, %v9285_v0  ;;  %338 = vst.msk [vmem:[#allocation2 + $0x80] sm:$0xff] %vm320_vm0, %v9285_v0  ;;  %v6060_v9 = vld [vmem:[#allocation2 + $0x10] sm:$0x3]  ;;  %v544_v10 = vrot.slane %v6056_v7, 1  ;;  %v545_v11 = vrot.slane %v6058_v8, 1 }
  0x15   : > { %340 = vst.msk [vmem:[#allocation2 + $0x90] sm:$0xff] %vm320_vm0, %v9285_v0  ;;  %341 = vst.msk [vmem:[#allocation2 + $0x98] sm:$0xff] %vm320_vm0, %v9285_v0  ;;  %v547_v12 = vrot.slane %v6060_v9, 1  ;;  %v382_v13 = vld [vmem:[%s6045_s11 + $0x30] sm:$0xff]  ;;  %v383_v14 = vld [vmem:[%s6045_s11 + $0x38] sm:$0xff]  ;;  %vm1696_vm12 = vcmask 56320  }
  0x16   : > { %342 = vst.msk [vmem:[#allocation2 + $0xa0] sm:$0x3] %vm323_vm1, %v9285_v0  ;;  %345 = vst.msk [vmem:[#allocation2 + $0xb8] sm:$0x3] %vm323_vm1, %v9285_v0  ;;  %v384_v15 = vld [vmem:[%s6045_s11 + $0x40] sm:$0xff]  ;;  %v385_v16 = vld [vmem:[%s6045_s11 + $0x48] sm:$0xff]  ;;  %v546_v18 = vsel %vm543_vm2, %v544_v10, %v545_v11 }
  0x17   : > { %343 = vst.msk [vmem:[#allocation2 + $0xa8] sm:$0xff] %vm320_vm0, %v9285_v0  ;;  %344 = vst.msk [vmem:[#allocation2 + $0xb0] sm:$0xff] %vm320_vm0, %v9285_v0  ;;  %v386_v17 = vld [vmem:[%s6045_s11 + $0x50] sm:$0xff]  ;;  %v548_v19 = vsel %vm543_vm2, %v545_v11, %v547_v12  ;;  %v387_v20 = vld [vmem:[%s6045_s11 + $0x58] sm:$0xff]  ;;  %vm1785_vm13 = vcmask 72704   ;;  %vm2114_vm14 = vcmask 58368  }
  0x18   : > { %346 = vst.msk [vmem:[#allocation2 + $0xc0] sm:$0xff] %vm320_vm0, %v9285_v0  ;;  %347 = vst.msk [vmem:[#allocation2 + $0xc8] sm:$0xff] %vm320_vm0, %v9285_v0  ;;  %v388_v21 = vld [vmem:[%s6045_s11 + $0x60] sm:$0xff]  ;;  %v389_v22 = vld [vmem:[%s6045_s11 + $0x68] sm:$0xff]  ;;  %v4498_v23 = vpack.i.bf16 %v548_v19, %v546_v18  ;;  %s5859_s22 = smov 16   ;;  %s5860_s29 = smov 24  }
  0x19   : > { %348 = vst.msk [vmem:[#allocation2 + $0xd0] sm:$0x3] %vm323_vm1, %v9285_v0  ;;  %351 = vst.msk [vmem:[#allocation2 + $0xe8] sm:$0x3] %vm323_vm1, %v9285_v0  ;;  %v390_v24 = vld [vmem:[%s6045_s11 + $0x70] sm:$0xff]  ;;  %v391_v25 = vld [vmem:[%s6045_s11 + $0x78] sm:$0xff] }
  0x1a   : > { %349 = vst.msk [vmem:[#allocation2 + $0xd8] sm:$0xff] %vm320_vm0, %v9285_v0  ;;  %350 = vst.msk [vmem:[#allocation2 + $0xe0] sm:$0xff] %vm320_vm0, %v9285_v0  ;;  %v392_v26 = vld [vmem:[%s6045_s11 + $0x80] sm:$0xff]  ;;  %v393_v27 = vld [vmem:[%s6045_s11 + $0x88] sm:$0xff]  ;;  %4499 = vrot.lane.b32.xlu0 %v4498_v23, %s5850_s12  ;;  %s5861_s9 = smov 48   ;;  %s5862_s10 = smov 32  }
  0x1b   : > { %352 = vst.msk [vmem:[#allocation2 + $0xf0] sm:$0xff] %vm320_vm0, %v9285_v0  ;;  %353 = vst.msk [vmem:[#allocation2 + $0xf8] sm:$0xff] %vm320_vm0, %v9285_v0  ;;  %v394_v28 = vld [vmem:[%s6045_s11 + $0x90] sm:$0xff]  ;;  %v395_v29 = vld [vmem:[%s6045_s11 + $0x98] sm:$0xff]  ;;  %vm3288_vm15 = vcmask 130048  }
  0x1c   : > { %354 = vst.msk [vmem:[#allocation2 + $0x100] sm:$0x3] %vm323_vm1, %v9285_v0  ;;  %357 = vst.msk [vmem:[#allocation2 + $0x118] sm:$0x3] %vm323_vm1, %v9285_v0 }
  0x1d   : > { %355 = vst.msk [vmem:[#allocation2 + $0x108] sm:$0xff] %vm320_vm0, %v9285_v0  ;;  %356 = vst.msk [vmem:[#allocation2 + $0x110] sm:$0xff] %vm320_vm0, %v9285_v0 }
  0x1e   : > { %358 = vst.msk [vmem:[#allocation2 + $0x120] sm:$0xff] %vm320_vm0, %v9285_v0  ;;  %359 = vst.msk [vmem:[#allocation2 + $0x128] sm:$0xff] %vm320_vm0, %v9285_v0 }
  0x1f   : > { %360 = vst.msk [vmem:[#allocation2 + $0x130] sm:$0x3] %vm323_vm1, %v9285_v0  ;;  %363 = vst.msk [vmem:[#allocation2 + $0x148] sm:$0x3] %vm323_vm1, %v9285_v0 }
  0x20   : > { %361 = vst.msk [vmem:[#allocation2 + $0x138] sm:$0xff] %vm320_vm0, %v9285_v0  ;;  %362 = vst.msk [vmem:[#allocation2 + $0x140] sm:$0xff] %vm320_vm0, %v9285_v0 }
  0x21   : > { %364 = vst.msk [vmem:[#allocation2 + $0x150] sm:$0xff] %vm320_vm0, %v9285_v0  ;;  %365 = vst.msk [vmem:[#allocation2 + $0x158] sm:$0xff] %vm320_vm0, %v9285_v0 }
  0x22   : > { %366 = vst.msk [vmem:[#allocation2 + $0x160] sm:$0x3] %vm323_vm1, %v9285_v0  ;;  %369 = vst.msk [vmem:[#allocation2 + $0x178] sm:$0x3] %vm323_vm1, %v9285_v0 }
  0x23   : > { %367 = vst.msk [vmem:[#allocation2 + $0x168] sm:$0xff] %vm320_vm0, %v9285_v0  ;;  %368 = vst.msk [vmem:[#allocation2 + $0x170] sm:$0xff] %vm320_vm0, %v9285_v0 }
  0x24   : > { %370 = vst.msk [vmem:[#allocation2 + $0x180] sm:$0xff] %vm320_vm0, %v9285_v0  ;;  %371 = vst.msk [vmem:[#allocation2 + $0x188] sm:$0xff] %vm320_vm0, %v9285_v0 }
  0x25   : > { %372 = vst.msk [vmem:[#allocation2 + $0x190] sm:$0x3] %vm323_vm1, %v9285_v0  ;;  %375 = vst.msk [vmem:[#allocation2 + $0x1a8] sm:$0x3] %vm323_vm1, %v9285_v0  ;;  %vm3354_vm1 = vcmask 261120  }
  0x26   : > { %373 = vst.msk [vmem:[#allocation2 + $0x198] sm:$0xff] %vm320_vm0, %v9285_v0  ;;  %374 = vst.msk [vmem:[#allocation2 + $0x1a0] sm:$0xff] %vm320_vm0, %v9285_v0 }
  0x27   : > { %411 = vst.msk [vmem:[#allocation2 + $0x31] sm:$0xff] %vm320_vm0, %v378_v1  ;;  %412 = vst.msk [vmem:[#allocation2 + $0x39] sm:$0xff] %vm320_vm0, %v379_v2 }
  0x28   : > { %409 = vst.msk [vmem:[#allocation2 + $0x19] sm:$0xff] %vm320_vm0, %v376_v3  ;;  %410 = vst.msk [vmem:[#allocation2 + $0x21] sm:$0xff] %vm320_vm0, %v377_v4 }
  0x29   : > { %413 = vst.msk [vmem:[#allocation2 + $0x49] sm:$0xff] %vm320_vm0, %v380_v5  ;;  %414 = vst.msk [vmem:[#allocation2 + $0x51] sm:$0xff] %vm320_vm0, %v381_v6 }
  0x2a   : > { %415 = vst.msk [vmem:[#allocation2 + $0x61] sm:$0xff] %vm320_vm0, %v382_v13  ;;  %416 = vst.msk [vmem:[#allocation2 + $0x69] sm:$0xff] %vm320_vm0, %v383_v14 }
  0x2b   : > { %417 = vst.msk [vmem:[#allocation2 + $0x79] sm:$0xff] %vm320_vm0, %v384_v15  ;;  %418 = vst.msk [vmem:[#allocation2 + $0x81] sm:$0xff] %vm320_vm0, %v385_v16 }
  0x2c   : > { %419 = vst.msk [vmem:[#allocation2 + $0x91] sm:$0xff] %vm320_vm0, %v386_v17  ;;  %420 = vst.msk [vmem:[#allocation2 + $0x99] sm:$0xff] %vm320_vm0, %v387_v20 }
  0x2d   : > { %421 = vst.msk [vmem:[#allocation2 + $0xa9] sm:$0xff] %vm320_vm0, %v388_v21  ;;  %422 = vst.msk [vmem:[#allocation2 + $0xb1] sm:$0xff] %vm320_vm0, %v389_v22 }
  0x2e   : > { %423 = vst.msk [vmem:[#allocation2 + $0xc1] sm:$0xff] %vm320_vm0, %v390_v24  ;;  %424 = vst.msk [vmem:[#allocation2 + $0xc9] sm:$0xff] %vm320_vm0, %v391_v25  ;;  %v6096_v30 = vld [vmem:[#allocation2 + $0x30] sm:$0xff]  ;;  %v6098_v31 = vld [vmem:[#allocation2 + $0x38] sm:$0xff] }
  0x2f   : > { %425 = vst.msk [vmem:[#allocation2 + $0xd9] sm:$0xff] %vm320_vm0, %v392_v26  ;;  %v6100_v32 = vld [vmem:[#allocation2 + $0x40] sm:$0x3]  ;;  %426 = vst.msk [vmem:[#allocation2 + $0xe1] sm:$0xff] %vm320_vm0, %v393_v27  ;;  %v554_v33 = vrot.slane %v6096_v30, 1  ;;  %v555_v34 = vrot.slane %v6098_v31, 1 }
  0x30   : > { %427 = vst.msk [vmem:[#allocation2 + $0xf1] sm:$0xff] %vm320_vm0, %v394_v28  ;;  %428 = vst.msk [vmem:[#allocation2 + $0xf9] sm:$0xff] %vm320_vm0, %v395_v29  ;;  %v557_v35 = vrot.slane %v6100_v32, 1  ;;  %v6108_v36 = vld [vmem:[#allocation2 + $0x18] sm:$0xff]  ;;  %v6110_v37 = vld [vmem:[#allocation2 + $0x20] sm:$0xff] }
  0x31   : > { %9388 = vst [vmem:[#allocation4_spill] sm:$0xff] %v6108_v36  ;;  %9389 = vst [vmem:[#allocation5_spill] sm:$0xff] %v6110_v37  ;;  %v6112_v38 = vld [vmem:[#allocation2 + $0x28] sm:$0x3]  ;;  %v549_v39 = vrot.slane %v6108_v36, 1  ;;  %v550_v40 = vrot.slane %v6110_v37, 1  ;;  %v556_v43 = vsel %vm543_vm2, %v554_v33, %v555_v34 }
  0x32   : > { %v6116_v41 = vld [vmem:[#allocation2 + $0x48] sm:$0xff]  ;;  %v6118_v42 = vld [vmem:[#allocation2 + $0x50] sm:$0xff]  ;;  %v558_v44 = vsel %vm543_vm2, %v555_v34, %v557_v35  ;;  %v552_v45 = vrot.slane %v6112_v38, 1  ;;  %v6123_v46 = vld [vmem:[#allocation2 + $0x58] sm:$0x3] }
  0x33   : > { %v559_v47 = vrot.slane %v6116_v41, 1  ;;  %v6126_v48 = vld [vmem:[#allocation2 + $0x60] sm:$0xff]  ;;  %v6128_v49 = vld [vmem:[#allocation2 + $0x68] sm:$0xff]  ;;  %v6130_v50 = vpack.i.bf16 %v558_v44, %v556_v43  ;;  %v551_v51 = vsel %vm543_vm2, %v549_v39, %v550_v40  ;;  %v560_v52 = vrot.slane %v6118_v42, 1  ;;  %v6135_v54 = vld [vmem:[#allocation2 + $0x70] sm:$0x3] }
  0x34   : > { %v562_v53 = vrot.slane %v6123_v46, 1  ;;  %v6137_v55 = vld [vmem:[#allocation2 + $0x78] sm:$0xff]  ;;  %v6139_v56 = vld [vmem:[#allocation2 + $0x80] sm:$0xff]  ;;  %v553_v57 = vsel %vm543_vm2, %v550_v40, %v552_v45  ;;  %v564_v58 = vrot.slane %v6126_v48, 1  ;;  %v565_v59 = vrot.slane %v6128_v49, 1  ;;  %v6147_v62 = vld [vmem:[#allocation2 + $0x90] sm:$0xff] }
  0x35   : > { %9390 = vst [vmem:[#allocation6_spill] sm:$0xff] %v6130_v50  ;;  %v567_v60 = vrot.slane %v6135_v54, 1  ;;  %v6145_v61 = vld [vmem:[#allocation2 + $0x88] sm:$0x3]  ;;  %4509 = vrot.lane.b32.xlu1 %v6130_v50, %s5850_s12  ;;  %v6151_v63 = vpack.i.bf16 %v553_v57, %v551_v51  ;;  %v561_v1 = vsel %vm543_vm2, %v559_v47, %v560_v52  ;;  %v569_v3 = vrot.slane %v6137_v55, 1  ;;  %v6156_v4 = vld [vmem:[#allocation2 + $0x98] sm:$0xff] }
  0x36   : > { %v563_v2 = vsel %vm543_vm2, %v560_v52, %v562_v53  ;;  %v6158_v5 = vld [vmem:[#allocation2 + $0xa0] sm:$0x3]  ;;  %v6160_v6 = vld [vmem:[#allocation2 + $0xa8] sm:$0xff]  ;;  %v566_v11 = vsel %vm543_vm2, %v564_v58, %v565_v59  ;;  %v570_v13 = vrot.slane %v6139_v56, 1  ;;  %v6167_v14 = vld [vmem:[#allocation2 + $0xb0] sm:$0xff]  ;;  %v572_v18 = vrot.slane %v6145_v61, 1 }
  0x37   : > { %9391 = vst [vmem:[#allocation7_spill] sm:$0xff] %v6151_v63  ;;  %v6162_v10 = vpack.i.bf16 %v563_v2, %v561_v1  ;;  %v568_v12 = vsel %vm543_vm2, %v565_v59, %v567_v60  ;;  %v6169_v15 = vld [vmem:[#allocation2 + $0xb8] sm:$0x3]  ;;  %v6171_v16 = vld [vmem:[#allocation2 + $0xc0] sm:$0xff]  ;;  %4504 = vrot.lane.b32.xlu0 %v6151_v63, %s5850_s12  ;;  %v574_v19 = vrot.slane %v6147_v62, 1  ;;  %v575_v20 = vrot.slane %v6156_v4, 1 }
  0x38   : > { %v6175_v17 = vpack.i.bf16 %v568_v12, %v566_v11  ;;  %v6180_v21 = vld [vmem:[#allocation2 + $0xc8] sm:$0xff]  ;;  %v6182_v22 = vld [vmem:[#allocation2 + $0xd0] sm:$0x3]  ;;  %v571_v23 = vsel %vm543_vm2, %v569_v3, %v570_v13  ;;  %v577_v24 = vrot.slane %v6158_v5, 1  ;;  %v579_v25 = vrot.slane %v6160_v6, 1  ;;  %v6188_v27 = vld [vmem:[#allocation2 + $0xd8] sm:$0xff] }
  0x39   : > { %9392 = vst [vmem:[#allocation8_spill] sm:$0xff] %v6162_v10  ;;  %v580_v26 = vrot.slane %v6167_v14, 1  ;;  %v6190_v28 = vld [vmem:[#allocation2 + $0xe0] sm:$0xff]  ;;  %v6192_v29 = vld [vmem:[#allocation2 + $0xf0] sm:$0xff]  ;;  %4514 = vrot.lane.b32.xlu1 %v6162_v10, %s5850_s12  ;;  %v573_v33 = vsel %vm543_vm2, %v570_v13, %v572_v18  ;;  %v576_v34 = vsel %vm543_vm2, %v574_v19, %v575_v20  ;;  %v582_v35 = vrot.slane %v6169_v15, 1  ;;  %v6202_v43 = vld [vmem:[#allocation2 + $0xf8] sm:$0xff] }
  0x3a   : > { %9393 = vst [vmem:[#allocation9_spill] sm:$0xff] %v6175_v17  ;;  %v584_v39 = vrot.slane %v6171_v16, 1  ;;  %v6200_v40 = vld [vmem:[#allocation2 + $0xe8] sm:$0x3]  ;;  %v396_v44 = vld [vmem:[%s6045_s11 + $0xa0] sm:$0xff]  ;;  %v6205_v45 = vpack.i.bf16 %v573_v33, %v571_v23  ;;  %v578_v47 = vsel %vm543_vm2, %v575_v20, %v577_v24  ;;  %v585_v52 = vrot.slane %v6180_v21, 1 }
  0x3b   : > { %v581_v51 = vsel %vm543_vm2, %v579_v25, %v580_v26  ;;  %v6210_v53 = vld [vmem:[#allocation2 + $0x100] sm:$0x3]  ;;  %v397_v57 = vld [vmem:[%s6045_s11 + $0xa8] sm:$0xff]  ;;  %429 = vst.msk [vmem:[#allocation2 + $0x109] sm:$0xff] %vm320_vm0, %v396_v44  ;;  %v398_v58 = vld [vmem:[%s6045_s11 + $0xb0] sm:$0xff]  ;;  %4519 = vrot.lane.b32.xlu0 %v6175_v17, %s5850_s12  ;;  %v6217_v59 = vpack.i.bf16 %v578_v47, %v576_v34  ;;  %v583_v60 = vsel %vm543_vm2, %v580_v26, %v582_v35  ;;  %v587_v1 = vrot.slane %v6182_v22, 1 }
  0x3c   : > { %9394 = vst [vmem:[#allocation10_spill] sm:$0xff] %v6205_v45  ;;  %v589_v2 = vrot.slane %v6188_v27, 1  ;;  %430 = vst.msk [vmem:[#allocation2 + $0x111] sm:$0xff] %vm320_vm0, %v397_v57  ;;  %v399_v3 = vld [vmem:[%s6045_s11 + $0xb8] sm:$0xff]  ;;  %v400_v11 = vld [vmem:[%s6045_s11 + $0xc0] sm:$0xff]  ;;  %v6227_v13 = vpack.i.bf16 %v583_v60, %v581_v51  ;;  %v586_v18 = vsel %vm543_vm2, %v584_v39, %v585_v52  ;;  %v590_v19 = vrot.slane %v6190_v28, 1 }
  0x3d   : > { %9395 = vst [vmem:[#allocation11_spill] sm:$0xff] %v6217_v59  ;;  %431 = vst.msk [vmem:[#allocation2 + $0x121] sm:$0xff] %vm320_vm0, %v398_v58  ;;  %v401_v12 = vld [vmem:[%s6045_s11 + $0xc8] sm:$0xff]  ;;  %v592_v20 = vrot.slane %v6200_v40, 1  ;;  %v402_v23 = vld [vmem:[%s6045_s11 + $0xd0] sm:$0xff]  ;;  %4524 = vrot.lane.b32.xlu1 %v6205_v45, %s5850_s12  ;;  %v588_v26 = vsel %vm543_vm2, %v585_v52, %v587_v1  ;;  %v594_v33 = vrot.slane %v6192_v29, 1 }
  0x3e   : > { %9396 = vst [vmem:[#allocation12_spill] sm:$0xff] %v6227_v13  ;;  %432 = vst.msk [vmem:[#allocation2 + $0x129] sm:$0xff] %vm320_vm0, %v399_v3  ;;  %v403_v24 = vld [vmem:[%s6045_s11 + $0xd8] sm:$0xff]  ;;  %v404_v25 = vld [vmem:[%s6045_s11 + $0xe0] sm:$0xff]  ;;  %v595_v34 = vrot.slane %v6202_v43, 1  ;;  %v597_v35 = vrot.slane %v6210_v53, 1  ;;  %v591_v51 = vsel %vm543_vm2, %v589_v2, %v590_v19  ;;  %v6257_v52 = vpack.i.bf16 %v588_v26, %v586_v18 }
  0x3f   : > { %433 = vst.msk [vmem:[#allocation2 + $0x139] sm:$0xff] %vm320_vm0, %v400_v11  ;;  %434 = vst.msk [vmem:[#allocation2 + $0x141] sm:$0xff] %vm320_vm0, %v401_v12  ;;  %v405_v39 = vld [vmem:[%s6045_s11 + $0xe8] sm:$0xff]  ;;  %v406_v44 = vld [vmem:[%s6045_s11 + $0xf0] sm:$0xff]  ;;  %v593_v57 = vsel %vm543_vm2, %v590_v19, %v592_v20  ;;  %4529 = vrot.lane.b32.xlu0 %v6217_v59, %s5850_s12  ;;  %v721_v1 = vrot.slane %v6056_v7, 2  ;;  %v722_v2 = vrot.slane %v6058_v8, 2 }
  0x40   : > { %435 = vst.msk [vmem:[#allocation2 + $0x151] sm:$0xff] %vm320_vm0, %v402_v23  ;;  %436 = vst.msk [vmem:[#allocation2 + $0x159] sm:$0xff] %vm320_vm0, %v403_v24  ;;  %v407_v47 = vld [vmem:[%s6045_s11 + $0xf8] sm:$0xff]  ;;  %v596_v58 = vsel %vm543_vm2, %v594_v33, %v595_v34  ;;  %v598_v60 = vsel %vm543_vm2, %v595_v34, %v597_v35  ;;  %v724_v3 = vrot.slane %v6060_v9, 2  ;;  %v6266_v11 = vpack.i.bf16 %v593_v57, %v591_v51  ;;  %s5863_s11 = smov 40  }
  0x41   : > { %437 = vst.msk [vmem:[#allocation2 + $0x169] sm:$0xff] %vm320_vm0, %v404_v25  ;;  %438 = vst.msk [vmem:[#allocation2 + $0x171] sm:$0xff] %vm320_vm0, %v405_v39  ;;  %4534 = vrot.lane.b32.xlu1 %v6227_v13, %s5850_s12  ;;  %v726_v18 = vrot.slane %v6108_v36, 2  ;;  %v727_v19 = vrot.slane %v6110_v37, 2  ;;  %v729_v9 = vrot.slane %v6112_v38, 2  ;;  %v6282_v24 = vpack.i.bf16 %v598_v60, %v596_v58 }
  0x42   : > { %439 = vst.msk [vmem:[#allocation2 + $0x181] sm:$0xff] %vm320_vm0, %v406_v44  ;;  %440 = vst.msk [vmem:[#allocation2 + $0x189] sm:$0xff] %vm320_vm0, %v407_v47  ;;  %v6268_v12 = vld [vmem:[#allocation2 + $0x108] sm:$0xff]  ;;  %v6300_v57 = vsel %vm720_vm3, %v721_v1, %v722_v2  ;;  %v734_v36 = vrot.slane %v6100_v32, 2  ;;  %v736_v32 = vrot.slane %v6116_v41, 2 }
  0x43   : > { %9397 = vst [vmem:[#allocation13_spill] sm:$0xff] %v6257_v52  ;;  %9398 = vst [vmem:[#allocation14_spill] sm:$0xff] %v6266_v11  ;;  %v6272_v20 = vld [vmem:[#allocation2 + $0x110] sm:$0xff]  ;;  %v6274_v23 = vld [vmem:[#allocation2 + $0x118] sm:$0x3]  ;;  %v599_v7 = vrot.slane %v6268_v12, 1  ;;  %4539 = vrot.lane.b32.xlu0 %v6257_v52, %s5850_s12 }
  0x44   : > { %v6277_v8 = vld [vmem:[#allocation2 + $0x120] sm:$0xff]  ;;  %9399 = vst [vmem:[#allocation15_spill] sm:$0xff] %v6282_v24  ;;  %v600_v25 = vrot.slane %v6272_v20, 1  ;;  %v602_v26 = vrot.slane %v6274_v23, 1 }
  0x45   : > { %v6286_v33 = vld [vmem:[#allocation2 + $0x128] sm:$0xff]  ;;  %v6288_v34 = vld [vmem:[#allocation2 + $0x130] sm:$0x3]  ;;  %v604_v35 = vrot.slane %v6277_v8, 1  ;;  %4544 = vrot.lane.b32.xlu1 %v6266_v11, %s5850_s12 }
  0x46   : > { %v605_v39 = vrot.slane %v6286_v33, 1  ;;  %v607_v44 = vrot.slane %v6288_v34, 1  ;;  %v6293_v38 = vld [vmem:[#allocation2 + $0x138] sm:$0xff]  ;;  %v6295_v47 = vld [vmem:[#allocation2 + $0x140] sm:$0xff]  ;;  %v6297_v51 = vld [vmem:[#allocation2 + $0x148] sm:$0x3]  ;;  %v601_v58 = vsel %vm543_vm2, %v599_v7, %v600_v25  ;;  %v603_v60 = vsel %vm543_vm2, %v600_v25, %v602_v26 }
  0x47   : > { %v609_v0 = vrot.slane %v6293_v38, 1  ;;  %v610_v52 = vrot.slane %v6295_v47, 1  ;;  %v6308_v13 = vld [vmem:[#allocation2 + $0x150] sm:$0xff]  ;;  %v6310_v59 = vld [vmem:[#allocation2 + $0x158] sm:$0xff]  ;;  %v6312_v45 = vld [vmem:[#allocation2 + $0x160] sm:$0x3]  ;;  %v6314_v17 = vpack.i.bf16 %v603_v60, %v601_v58  ;;  %4549 = vrot.lane.b32.xlu0 %v6282_v24, %s5850_s12 }
  0x48   : > { %v606_v1 = vsel %vm543_vm2, %v604_v35, %v605_v39  ;;  %v608_v11 = vsel %vm543_vm2, %v605_v39, %v607_v44  ;;  %v612_v7 = vrot.slane %v6297_v51, 1  ;;  %v6319_v10 = vld [vmem:[#allocation2 + $0x168] sm:$0xff]  ;;  %v6321_v25 = vld [vmem:[#allocation2 + $0x170] sm:$0xff]  ;;  %v6323_v26 = vld [vmem:[#allocation2 + $0x178] sm:$0x3]  ;;  %v614_v60 = vrot.slane %v6308_v13, 1 }
  0x49   : > { %9400 = vst [vmem:[#allocation16_spill] sm:$0xff] %v6314_v17  ;;  %9401 = vst [vmem:[#allocation17_spill] sm:$0xff] %v6319_v10  ;;  %v6327_v50 = vpack.i.bf16 %v608_v11, %v606_v1  ;;  %v611_v58 = vsel %vm543_vm2, %v609_v0, %v610_v52  ;;  %v615_v35 = vrot.slane %v6310_v59, 1  ;;  %v617_v44 = vrot.slane %v6312_v45, 1  ;;  %4554 = vrot.lane.b32.xlu1 %v6314_v17, %s5850_s12 }
  0x4a   : > { %v613_v39 = vsel %vm543_vm2, %v610_v52, %v612_v7  ;;  %v619_v63 = vrot.slane %v6319_v10, 1  ;;  %v620_v37 = vrot.slane %v6321_v25, 1  ;;  %v622_v0 = vrot.slane %v6323_v26, 1 }
  0x4b   : > { %v6338_v24 = vpack.i.bf16 %v613_v39, %v611_v58  ;;  %v616_v11 = vsel %vm543_vm2, %v614_v60, %v615_v35  ;;  %v725_v1 = vsel %vm720_vm3, %v722_v2, %v724_v3  ;;  %v618_v52 = vsel %vm543_vm2, %v615_v35, %v617_v44  ;;  %4559 = vrot.lane.b32.xlu0 %v6327_v50, %s5850_s12 }
  0x4c   : > { %v621_v7 = vsel %vm543_vm2, %v619_v63, %v620_v37  ;;  %v731_v10 = vrot.slane %v6096_v30, 2  ;;  %v6349_v17 = vpack.i.bf16 %v618_v52, %v616_v11  ;;  %v623_v58 = vsel %vm543_vm2, %v620_v37, %v622_v0 }
  0x4d   : > { %9402 = vst [vmem:[#allocation18_spill] sm:$0xff] %v6338_v24  ;;  %v728_v60 = vsel %vm720_vm3, %v726_v18, %v727_v19  ;;  %v732_v39 = vrot.slane %v6098_v31, 2  ;;  %v730_v2 = vsel %vm720_vm3, %v727_v19, %v729_v9  ;;  %v737_v3 = vrot.slane %v6118_v42, 2  ;;  %4564 = vrot.lane.b32.xlu1 %v6338_v24, %s5850_s12 }
  0x4e   : > { %9403 = vst [vmem:[#allocation19_spill] sm:$0xff] %v6349_v17  ;;  %v739_v63 = vrot.slane %v6123_v46, 2  ;;  %v6360_v35 = vpack.i.bf16 %v623_v58, %v621_v7  ;;  %v741_v44 = vrot.slane %v6126_v48, 2  ;;  %v742_v37 = vrot.slane %v6128_v49, 2 }
  0x4f   : > { %v744_v18 = vrot.slane %v6135_v54, 2  ;;  %v746_v11 = vrot.slane %v6137_v55, 2  ;;  %v747_v19 = vrot.slane %v6139_v56, 2  ;;  %v749_v9 = vrot.slane %v6145_v61, 2  ;;  %4569 = vrot.lane.b32.xlu0 %v6349_v17, %s5850_s12 }
  0x50   : > { %v4578_v46 = vpack.i.bf16 %v725_v1, %v6300_v57  ;;  %v6371_v0 = vpack.i.bf16 %v730_v2, %v728_v60  ;;  %v733_v52 = vsel %vm720_vm3, %v731_v10, %v732_v39  ;;  %v735_v7 = vsel %vm720_vm3, %v732_v39, %v734_v36 }
  0x51   : > { %v738_v58 = vsel %vm720_vm3, %v736_v32, %v737_v3  ;;  %4574 = vrot.lane.b32.xlu1 %v6360_v35, %s5850_s12  ;;  %v740_v54 = vsel %vm720_vm3, %v737_v3, %v739_v63  ;;  %v743_v61 = vsel %vm720_vm3, %v741_v44, %v742_v37  ;;  %v745_v24 = vsel %vm720_vm3, %v742_v37, %v744_v18  ;;  %s5864_s12 = smov 56  }
  0x52   : > { %v751_v17 = vrot.slane %v6147_v62, 2  ;;  %v748_v57 = vsel %vm720_vm3, %v746_v11, %v747_v19  ;;  %v750_v1 = vsel %vm720_vm3, %v747_v19, %v749_v9  ;;  %v752_v10 = vrot.slane %v6156_v4, 2 }
  0x53   : > { %v754_v36 = vrot.slane %v6158_v5, 2  ;;  %4579 = vrot.lane.b32.xlu0 %v4578_v46, %s5851_s13  ;;  %v6387_v60 = vpack.i.bf16 %v735_v7, %v733_v52  ;;  %v756_v39 = vrot.slane %v6160_v6, 2  ;;  %v757_v2 = vrot.slane %v6167_v14, 2 }
  0x54   : > { %v759_v32 = vrot.slane %v6169_v15, 2  ;;  %v6394_v3 = vpack.i.bf16 %v740_v54, %v738_v58  ;;  %v6396_v63 = vpack.i.bf16 %v745_v24, %v743_v61  ;;  %v6398_v44 = vpack.i.bf16 %v750_v1, %v748_v57 }
  0x55   : > { %4584 = vrot.lane.b32.xlu1 %v6371_v0, %s5851_s13  ;;  %v753_v5 = vsel %vm720_vm3, %v751_v17, %v752_v10  ;;  %v755_v37 = vsel %vm720_vm3, %v752_v10, %v754_v36  ;;  %v761_v18 = vrot.slane %v6171_v16, 2  ;;  %v762_v11 = vrot.slane %v6180_v21, 2 }
  0x56   : > { %v758_v15 = vsel %vm720_vm3, %v756_v39, %v757_v2  ;;  %v764_v19 = vrot.slane %v6182_v22, 2  ;;  %v766_v24 = vrot.slane %v6188_v27, 2  ;;  %v767_v9 = vrot.slane %v6190_v28, 2 }
  0x57   : > { %4589 = vrot.lane.b32.xlu0 %v6387_v60, %s5851_s13  ;;  %v760_v46 = vsel %vm720_vm3, %v757_v2, %v759_v32  ;;  %v769_v17 = vrot.slane %v6200_v40, 2  ;;  %v771_v52 = vrot.slane %v6192_v29, 2  ;;  %v772_v7 = vrot.slane %v6202_v43, 2 }
  0x58   : > { %v774_v58 = vrot.slane %v6210_v53, 2  ;;  %v776_v54 = vrot.slane %v6268_v12, 2  ;;  %v777_v22 = vrot.slane %v6272_v20, 2  ;;  %v779_v61 = vrot.slane %v6274_v23, 2 }
  0x59   : > { %4594 = vrot.lane.b32.xlu1 %v6394_v3, %s5851_s13  ;;  %v6420_v57 = vpack.i.bf16 %v755_v37, %v753_v5  ;;  %v6424_v40 = vpack.i.bf16 %v760_v46, %v758_v15  ;;  %v763_v1 = vsel %vm720_vm3, %v761_v18, %v762_v11  ;;  %v765_v10 = vsel %vm720_vm3, %v762_v11, %v764_v19 }
  0x5a   : > { %v768_v36 = vsel %vm720_vm3, %v766_v24, %v767_v9  ;;  %v770_v53 = vsel %vm720_vm3, %v767_v9, %v769_v17  ;;  %v781_v39 = vrot.slane %v6277_v8, 2  ;;  %v782_v2 = vrot.slane %v6286_v33, 2 }
  0x5b   : > { %4599 = vrot.lane.b32.xlu0 %v6396_v63, %s5851_s13  ;;  %v784_v23 = vrot.slane %v6288_v34, 2  ;;  %v773_v32 = vsel %vm720_vm3, %v771_v52, %v772_v7  ;;  %v775_v5 = vsel %vm720_vm3, %v772_v7, %v774_v58  ;;  %v778_v37 = vsel %vm720_vm3, %v776_v54, %v777_v22  ;;  %v491_v54 = vld [vmem:[#allocation2 + $0x190] sm:$0x3] }
  0x5c   : > { %v780_v18 = vsel %vm720_vm3, %v777_v22, %v779_v61  ;;  %v6439_v11 = vpack.i.bf16 %v765_v10, %v763_v1  ;;  %v6443_v15 = vpack.i.bf16 %v770_v53, %v768_v36  ;;  %v786_v34 = vrot.slane %v6293_v38, 2  ;;  %v489_v10 = vld [vmem:[#allocation2 + $0x180] sm:$0xff]  ;;  %v9406_v36 = vld [vmem:[#allocation17_spill] sm:$0xff] }
  0x5d   : > { %4604 = vrot.lane.b32.xlu1 %v6398_v44, %s5851_s13  ;;  %v787_v19 = vrot.slane %v6295_v47, 2  ;;  %v789_v24 = vrot.slane %v6297_v51, 2  ;;  %v6448_v9 = vpack.i.bf16 %v775_v5, %v773_v32  ;;  %v6450_v46 = vpack.i.bf16 %v780_v18, %v778_v37 }
  0x5e   : > { %9404 = vst [vmem:[#allocation20_spill] sm:$0xff] %v6443_v15  ;;  %v783_v17 = vsel %vm720_vm3, %v781_v39, %v782_v2  ;;  %v785_v52 = vsel %vm720_vm3, %v782_v2, %v784_v23  ;;  %v791_v7 = vrot.slane %v6308_v13, 2  ;;  %v792_v58 = vrot.slane %v6310_v59, 2  ;;  %v490_v23 = vld [vmem:[#allocation2 + $0x188] sm:$0xff] }
  0x5f   : > { %4609 = vrot.lane.b32.xlu0 %v6420_v57, %s5851_s13  ;;  %9405 = vst [vmem:[#allocation21_spill] sm:$0xff] %v6448_v9  ;;  %v6460_v51 = vpack.i.bf16 %v785_v52, %v783_v17  ;;  %v788_v22 = vsel %vm720_vm3, %v786_v34, %v787_v19  ;;  %v790_v61 = vsel %vm720_vm3, %v787_v19, %v789_v24  ;;  %v794_v1 = vrot.slane %v6312_v45, 2 }
  0x60   : > { %v796_v53 = vrot.slane %v9406_v36, 2  ;;  %v797_v39 = vrot.slane %v6321_v25, 2  ;;  %v799_v2 = vrot.slane %v6323_v26, 2  ;;  %v996_v32 = vrot.slane %v489_v10, 1 }
  0x61   : > { %4614 = vrot.lane.b32.xlu1 %v6424_v40, %s5851_s13  ;;  %v997_v5 = vrot.slane %v490_v23, 1  ;;  %v999_v37 = vrot.slane %v491_v54, 1  ;;  %v793_v34 = vsel %vm720_vm3, %v791_v7, %v792_v58  ;;  %v795_v19 = vsel %vm720_vm3, %v792_v58, %v794_v1 }
  0x62   : > { %v6480_v26 = vpack.i.bf16 %v790_v61, %v788_v22  ;;  %v798_v17 = vsel %vm720_vm3, %v796_v53, %v797_v39  ;;  %v800_v52 = vsel %vm720_vm3, %v797_v39, %v799_v2  ;;  %v1100_v7 = vrot.slane %v491_v54, 2  ;;  %v9407_v53 = vld [vmem:[#allocation4_spill] sm:$0xff]  ;;  %v9408_v39 = vld [vmem:[#allocation5_spill] sm:$0xff] }
  0x63   : > { %4619 = vrot.lane.b32.xlu0 %v6439_v11, %s5851_s13  ;;  %v998_v18 = vsel %vm543_vm2, %v996_v32, %v997_v5  ;;  %v1000_v45 = vsel %vm543_vm2, %v997_v5, %v999_v37  ;;  %v6486_v32 = vpack.i.bf16 %v795_v19, %v793_v34  ;;  %v6490_v58 = vpack.i.bf16 %v800_v52, %v798_v17 }
  0x64   : > { %v6476_v24 = vpack.i.bf16 %v1000_v45, %v998_v18  ;;  %v4658_v2 = vpack.i.bf16 %v9408_v39, %v9407_v53  ;;  %v6500_v5 = vpack.i.bf16 %v490_v23, %v489_v10  ;;  %v6506_v54 = vpack.i.bf16 %v6098_v31, %v6096_v30 }
  0x65   : > { %4624 = vrot.lane.b32.xlu1 %v6443_v15, %s5851_s13  ;;  %v1098_v15 = vrot.slane %v490_v23, 2  ;;  %v6525_v30 = vpack.i.bf16 %v6156_v4, %v6147_v62  ;;  %v6530_v31 = vpack.i.bf16 %v6167_v14, %v6160_v6  ;;  %v6565_v62 = vpack.i.bf16 %v6310_v59, %v6308_v13  ;;  %v9409_v6 = vld [vmem:[#allocation7_spill] sm:$0xff]  ;;  %v9410_v14 = vld [vmem:[#allocation6_spill] sm:$0xff] }
  0x66   : > { %v6570_v4 = vpack.i.bf16 %v6321_v25, %v9406_v36  ;;  %v9417_v59 = vld [vmem:[#allocation14_spill] sm:$0xff]  ;;  %v9421_v36 = vld [vmem:[#allocation19_spill] sm:$0xff]  ;;  %v9426_v39 = vld [vmem:[#allocation21_spill] sm:$0xff] }
  0x67   : > { %4629 = vrot.lane.b32.xlu0 %v6448_v9, %s5851_s13  ;;  %v1097_v9 = vrot.slane %v489_v10, 2  ;;  %v1101_v61 = vsel %vm720_vm3, %v1098_v15, %v1100_v7  ;;  %v6520_v10 = vpack.i.bf16 %v6139_v56, %v6137_v55  ;;  %v6555_v55 = vpack.i.bf16 %v6286_v33, %v6277_v8 }
  0x68   : > { %v6560_v56 = vpack.i.bf16 %v6295_v47, %v6293_v38  ;;  %v9420_v38 = vld [vmem:[#allocation18_spill] sm:$0xff] }
  0x69   : > { %4634 = vrot.lane.b32.xlu1 %v6450_v46, %s5851_s13  ;;  %v1099_v22 = vsel %vm720_vm3, %v1097_v9, %v1098_v15  ;;  %v6510_v15 = vpack.i.bf16 %v6118_v42, %v6116_v41  ;;  %v6515_v9 = vpack.i.bf16 %v6128_v49, %v6126_v48  ;;  %v6535_v41 = vpack.i.bf16 %v6180_v21, %v6171_v16  ;;  %v9411_v16 = vld [vmem:[#allocation8_spill] sm:$0xff]  ;;  %v9412_v21 = vld [vmem:[#allocation9_spill] sm:$0xff] }
  0x6a   : > { %v6494_v1 = vpack.i.bf16 %v1101_v61, %v1099_v22  ;;  %v6540_v42 = vpack.i.bf16 %v6190_v28, %v6188_v27  ;;  %v6545_v48 = vpack.i.bf16 %v6202_v43, %v6192_v29  ;;  %v6550_v49 = vpack.i.bf16 %v6272_v20, %v6268_v12  ;;  %v9413_v27 = vld [vmem:[#allocation10_spill] sm:$0xff]  ;;  %v9414_v28 = vld [vmem:[#allocation11_spill] sm:$0xff]  ;;  %v9415_v29 = vld [vmem:[#allocation12_spill] sm:$0xff] }
  0x6b   : > { %4639 = vrot.lane.b32.xlu0 %v6460_v51, %s5851_s13  ;;  %v9416_v43 = vld [vmem:[#allocation13_spill] sm:$0xff]  ;;  %v9418_v12 = vld [vmem:[#allocation15_spill] sm:$0xff]  ;;  %v9419_v20 = vld [vmem:[#allocation16_spill] sm:$0xff] }
  0x6c   : > { %v9423_v22 = vld [vmem:[#allocation20_spill] sm:$0xff] }
  0x6d   : > { %4644 = vrot.lane.b32.xlu1 %v6480_v26, %s5851_s13 }
  0x6f   : > { %4649 = vrot.lane.b32.xlu0 %v6486_v32, %s5851_s13 }
  0x71   : > { %4654 = vrot.lane.b32.xlu1 %v6490_v58, %s5851_s13 }
  0x73   : > { %4659 = vrot.lane.b32.xlu0 %v4658_v2, %s5852_s14 }
  0x75   : > { %4664 = vrot.lane.b32.xlu1 %v6506_v54, %s5852_s14 }
  0x77   : > { %4669 = vrot.lane.b32.xlu0 %v6510_v15, %s5852_s14 }
  0x79   : > { %4674 = vrot.lane.b32.xlu1 %v6515_v9, %s5852_s14 }
  0x7b   : > { %4679 = vrot.lane.b32.xlu0 %v6520_v10, %s5852_s14 }
  0x7d   : > { %4684 = vrot.lane.b32.xlu1 %v6525_v30, %s5852_s14 }
  0x7f   : > { %4689 = vrot.lane.b32.xlu0 %v6530_v31, %s5852_s14 }
  0x81   : > { %4694 = vrot.lane.b32.xlu1 %v6535_v41, %s5852_s14 }
  0x83   : > { %4699 = vrot.lane.b32.xlu0 %v6540_v42, %s5852_s14 }
  0x85   : > { %4704 = vrot.lane.b32.xlu1 %v6545_v48, %s5852_s14 }
  0x87   : > { %4709 = vrot.lane.b32.xlu0 %v6550_v49, %s5852_s14 }
  0x89   : > { %4714 = vrot.lane.b32.xlu1 %v6555_v55, %s5852_s14 }
  0x8b   : > { %4719 = vrot.lane.b32.xlu0 %v6560_v56, %s5852_s14 }
  0x8c   : > { %v6584_v13 = vpop.permute.xlu0 %4499 }
  0x8d   : > { %4724 = vrot.lane.b32.xlu1 %v6565_v62, %s5852_s14 }
  0x8f   : > { %4729 = vrot.lane.b32.xlu0 %v6570_v4, %s5852_s14 }
  0x91   : > { %4734 = vrot.lane.b32.xlu1 %v6500_v5, %s5852_s14 }
  0x93   : > { %4739 = vrot.lane.b32.xlu0 %v9409_v6, %s5853_s15 }
  0x95   : > { %4744 = vrot.lane.b32.xlu1 %v9410_v14, %s5853_s15 }
  0x97   : > { %4749 = vrot.lane.b32.xlu0 %v9411_v16, %s5853_s15 }
  0x99   : > { %4754 = vrot.lane.b32.xlu1 %v9412_v21, %s5853_s15 }
  0x9b   : > { %4759 = vrot.lane.b32.xlu0 %v9413_v27, %s5853_s15 }
  0x9d   : > { %4764 = vrot.lane.b32.xlu1 %v9414_v28, %s5853_s15 }
  0x9f   : > { %4769 = vrot.lane.b32.xlu0 %v9415_v29, %s5853_s15 }
  0xa1   : > { %4774 = vrot.lane.b32.xlu1 %v9416_v43, %s5853_s15 }
  0xa3   : > { %4779 = vrot.lane.b32.xlu0 %v9417_v59, %s5853_s15 }
  0xa5   : > { %4784 = vrot.lane.b32.xlu1 %v9418_v12, %s5853_s15 }
  0xa7   : > { %4789 = vrot.lane.b32.xlu0 %v9419_v20, %s5853_s15  ;;  %v6588_v8 = vpop.permute.xlu1 %4509 }
  0xa9   : > { %v6590_v33 = vpop.permute.xlu0 %4504  ;;  %4794 = vrot.lane.b32.xlu1 %v6327_v50, %s5853_s15 }
  0xab   : > { %4799 = vrot.lane.b32.xlu0 %v9420_v38, %s5853_s15  ;;  %v6594_v47 = vpop.permute.xlu1 %4514 }
  0xad   : > { %v6596_v25 = vpop.permute.xlu0 %4519  ;;  %4804 = vrot.lane.b32.xlu1 %v9421_v36, %s5853_s15 }
  0xaf   : > { %4809 = vrot.lane.b32.xlu0 %v6360_v35, %s5853_s15  ;;  %v6600_v23 = vpop.permute.xlu1 %4524 }
  0xb1   : > { %v6602_v37 = vpop.permute.xlu0 %4529  ;;  %4814 = vrot.lane.b32.xlu1 %v6476_v24, %s5853_s15  ;;  %s5865_s15 = smov 64  }
  0xb3   : > { %4819 = vrot.lane.b32.xlu0 %v6371_v0, %s5854_s16  ;;  %v6607_v18 = vpop.permute.xlu1 %4534 }
  0xb5   : > { %v6609_v45 = vpop.permute.xlu0 %4539  ;;  %4824 = vrot.lane.b32.xlu1 %v6387_v60, %s5854_s16 }
  0xb7   : > { %4829 = vrot.lane.b32.xlu0 %v6394_v3, %s5854_s16  ;;  %v6615_v34 = vpop.permute.xlu1 %4544 }
  0xb9   : > { %v6617_v19 = vpop.permute.xlu0 %4549  ;;  %4834 = vrot.lane.b32.xlu1 %v6396_v63, %s5854_s16 }
  0xbb   : > { %4839 = vrot.lane.b32.xlu0 %v6398_v44, %s5854_s16  ;;  %v6623_v0 = vpop.permute.xlu1 %4554 }
  0xbd   : > { %v6625_v17 = vpop.permute.xlu0 %4559  ;;  %4844 = vrot.lane.b32.xlu1 %v6420_v57, %s5854_s16 }
  0xbf   : > { %4849 = vrot.lane.b32.xlu0 %v6424_v40, %s5854_s16  ;;  %v6631_v52 = vpop.permute.xlu1 %4564 }
  0xc1   : > { %v6633_v7 = vpop.permute.xlu0 %4569  ;;  %4854 = vrot.lane.b32.xlu1 %v6439_v11, %s5854_s16 }
  0xc2   : > { %9422 = vst [vmem:[#allocation17_spill] sm:$0xff] %v6633_v7 }
  0xc3   : > { %4859 = vrot.lane.b32.xlu0 %v9423_v22, %s5854_s16  ;;  %v6639_v61 = vpop.permute.xlu1 %4574 }
  0xc4   : > { %9424 = vst [vmem:[#allocation4_spill] sm:$0xff] %v6639_v61 }
  0xc5   : > { %v6641_v53 = vpop.permute.xlu0 %4579  ;;  %4864 = vrot.lane.b32.xlu1 %v9426_v39, %s5854_s16 }
  0xc6   : > { %9425 = vst [vmem:[#allocation5_spill] sm:$0xff] %v6641_v53 }
  0xc7   : > { %4869 = vrot.lane.b32.xlu0 %v6450_v46, %s5854_s16  ;;  %v6647_v2 = vpop.permute.xlu1 %4584 }
  0xc8   : > { %9427 = vst [vmem:[#allocation7_spill] sm:$0xff] %v6647_v2 }
  0xc9   : > { %v6649_v6 = vpop.permute.xlu0 %4589  ;;  %4874 = vrot.lane.b32.xlu1 %v6460_v51, %s5854_s16 }
  0xcb   : > { %4879 = vrot.lane.b32.xlu0 %v6480_v26, %s5854_s16  ;;  %v6655_v7 = vpop.permute.xlu1 %4594 }
  0xcc   : > { %9428 = vst [vmem:[#allocation6_spill] sm:$0xff] %v6655_v7 }
  0xcd   : > { %v6657_v61 = vpop.permute.xlu0 %4599  ;;  %4884 = vrot.lane.b32.xlu1 %v6486_v32, %s5854_s16 }
  0xce   : > { %9429 = vst [vmem:[#allocation8_spill] sm:$0xff] %v6657_v61 }
  0xcf   : > { %4889 = vrot.lane.b32.xlu0 %v6490_v58, %s5854_s16  ;;  %v6663_v53 = vpop.permute.xlu1 %4604 }
  0xd0   : > { %9430 = vst [vmem:[#allocation9_spill] sm:$0xff] %v6663_v53 }
  0xd1   : > { %v6665_v2 = vpop.permute.xlu0 %4609  ;;  %4894 = vrot.lane.b32.xlu1 %v6494_v1, %s5854_s16 }
  0xd2   : > { %9431 = vst [vmem:[#allocation10_spill] sm:$0xff] %v6665_v2 }
  0xd3   : > { %4899 = vrot.lane.b32.xlu0 %v6506_v54, %s5855_s17  ;;  %v6671_v7 = vpop.permute.xlu1 %4614 }
  0xd4   : > { %9432 = vst [vmem:[#allocation11_spill] sm:$0xff] %v6671_v7 }
  0xd5   : > { %v6673_v61 = vpop.permute.xlu0 %4619  ;;  %4904 = vrot.lane.b32.xlu1 %v6510_v15, %s5855_s17 }
  0xd7   : > { %4909 = vrot.lane.b32.xlu0 %v6515_v9, %s5855_s17  ;;  %v6679_v53 = vpop.permute.xlu1 %4624 }
  0xd9   : > { %v6681_v2 = vpop.permute.xlu0 %4629  ;;  %4914 = vrot.lane.b32.xlu1 %v6520_v10, %s5855_s17 }
  0xdb   : > { %4919 = vrot.lane.b32.xlu0 %v6525_v30, %s5855_s17  ;;  %v6687_v54 = vpop.permute.xlu1 %4634 }
  0xdd   : > { %v6689_v7 = vpop.permute.xlu0 %4639  ;;  %4924 = vrot.lane.b32.xlu1 %v6530_v31, %s5855_s17 }
  0xdf   : > { %4929 = vrot.lane.b32.xlu0 %v6535_v41, %s5855_s17  ;;  %v6695_v15 = vpop.permute.xlu1 %4644 }
  0xe1   : > { %v6697_v9 = vpop.permute.xlu0 %4649  ;;  %4934 = vrot.lane.b32.xlu1 %v6540_v42, %s5855_s17  ;;  %v6717_v42 = vld [vmem:[#allocation2 + $0x198] sm:$0xff] }
  0xe3   : > { %4939 = vrot.lane.b32.xlu0 %v6545_v48, %s5855_s17  ;;  %v6703_v10 = vpop.permute.xlu1 %4654  ;;  %v6719_v48 = vld [vmem:[#allocation2 + $0x1a0] sm:$0xff] }
  0xe5   : > { %v6705_v30 = vpop.permute.xlu0 %4659  ;;  %4944 = vrot.lane.b32.xlu1 %v6550_v49, %s5855_s17 }
  0xe6   : > { %9433 = vst [vmem:[#allocation12_spill] sm:$0xff] %v6705_v30 }
  0xe7   : > { %4949 = vrot.lane.b32.xlu0 %v6555_v55, %s5855_s17  ;;  %v6711_v31 = vpop.permute.xlu1 %4664  ;;  %v4973_v55 = vpack.i.bf16 %v6719_v48, %v6717_v42 }
  0xe9   : > { %v6713_v41 = vpop.permute.xlu0 %4669  ;;  %4954 = vrot.lane.b32.xlu1 %v6560_v56, %s5855_s17 }
  0xea   : > { %9434 = vst [vmem:[#allocation13_spill] sm:$0xff] %v6713_v41 }
  0xeb   : > { %4959 = vrot.lane.b32.xlu0 %v6565_v62, %s5855_s17  ;;  %v6723_v30 = vpop.permute.xlu1 %4674  ;;  %v5778_v62 = vld [vmem:[%s9277_s1] sm:$0x1f]  }
  0xec   : > { %9435 = vst [vmem:[#allocation14_spill] sm:$0xff] %v6723_v30  ;;  %v9439_v30 = vmov 0.0  }
  0xed   : > { %v6725_v49 = vpop.permute.xlu0 %4679  ;;  %4964 = vrot.lane.b32.xlu1 %v6570_v4, %s5855_s17  ;;  %v5856_v4 = vmov 65535   ;;  %2112 = vst.msk [vmem:[#allocation3] sm:$0xff] %vm1729_vm5, %v9439_v30  ;;  %2113 = vst.msk [vmem:[#allocation3 + $0x8] sm:$0xff] %vm1729_vm5, %v9439_v30 }
  0xee   : > { %9436 = vst [vmem:[#allocation15_spill] sm:$0xff] %v6725_v49  ;;  %v1836_v49 = vsel %vm1834_vm4, 4294967295, %v5856_v4  ;;  %2116 = vst.msk [vmem:[#allocation3 + $0x18] sm:$0xff] %vm1729_vm5, %v9439_v30 }
  0xef   : > { %4969 = vrot.lane.b32.xlu0 %v6500_v5, %s5855_s17  ;;  %v6733_v56 = vpop.permute.xlu1 %4684  ;;  %2117 = vst.msk [vmem:[#allocation3 + $0x20] sm:$0xff] %vm1729_vm5, %v9439_v30  ;;  %2119 = vst.msk [vmem:[#allocation3 + $0x30] sm:$0xff] %vm1729_vm5, %v9439_v30 }
  0xf0   : > { %9437 = vst [vmem:[#allocation16_spill] sm:$0xff] %v6733_v56  ;;  %2120 = vst.msk [vmem:[#allocation3 + $0x38] sm:$0xff] %vm1729_vm5, %v9439_v30 }
  0xf1   : > { %v6735_v41 = vpop.permute.xlu0 %4689  ;;  %4974 = vrot.lane.b32.xlu1 %v4973_v55, %s5855_s17  ;;  %2122 = vst.msk [vmem:[#allocation3 + $0x48] sm:$0xff] %vm1729_vm5, %v9439_v30  ;;  %2123 = vst.msk [vmem:[#allocation3 + $0x50] sm:$0xff] %vm1729_vm5, %v9439_v30  ;;  %v1837_v55 = vsel %vm1835_vm6, %v1836_v49, 0 }
  0xf2   : > { %9438 = vst [vmem:[#allocation18_spill] sm:$0xff] %v6735_v41  ;;  %2125 = vst.msk [vmem:[#allocation3 + $0x60] sm:$0xff] %vm1729_vm5, %v9439_v30  ;;  %v1839_v41 = vand.u32 %v5778_v62, %v1837_v55  ;;  %v4512_v62 = vunpack.i.h.bf16 %v6588_v8 }
  0xf3   : > { %2126 = vst.msk [vmem:[#allocation3 + $0x68] sm:$0xff] %vm1729_vm5, %v9439_v30  ;;  %2128 = vst.msk [vmem:[#allocation3 + $0x78] sm:$0xff] %vm1729_vm5, %v9439_v30  ;;  %4979 = vrot.lane.b32.xlu0 %v9410_v14, %s5857_s20  ;;  %v6816_v5 = vpop.permute.xlu1 %4694 }
  0xf4   : > { %2129 = vst.msk [vmem:[#allocation3 + $0x80] sm:$0xff] %vm1729_vm5, %v9439_v30  ;;  %2131 = vst.msk [vmem:[#allocation3 + $0x90] sm:$0xff] %vm1729_vm5, %v9439_v30  ;;  %4385 = vmatprep.subr.bf16.mxu0 %v1839_v41 }
  0xf5   : > { %2132 = vst.msk [vmem:[#allocation3 + $0x98] sm:$0xff] %vm1729_vm5, %v9439_v30  ;;  %2134 = vst.msk [vmem:[#allocation3 + $0xa8] sm:$0xff] %vm1729_vm5, %v9439_v30  ;;  %v6819_v4 = vpop.permute.xlu0 %4699  ;;  %4984 = vrot.lane.b32.xlu1 %v9411_v16, %s5857_s20  ;;  %4386 = vmatpush3.bf16.msra.mxu0 %v1839_v41  ;;  %v4502_v41 = vunpack.i.h.bf16 %v6584_v13 }
  0xf6   : > { %2135 = vst.msk [vmem:[#allocation3 + $0xb0] sm:$0xff] %vm1729_vm5, %v9439_v30  ;;  %2137 = vst.msk [vmem:[#allocation3 + $0xc0] sm:$0xff] %vm1729_vm5, %v9439_v30 }
  0xf7   : > { %2138 = vst.msk [vmem:[#allocation3 + $0xc8] sm:$0xff] %vm1729_vm5, %v9439_v30  ;;  %2140 = vst.msk [vmem:[#allocation3 + $0xd8] sm:$0xff] %vm1729_vm5, %v9439_v30  ;;  %4989 = vrot.lane.b32.xlu0 %v9412_v21, %s5857_s20  ;;  %v6825_v56 = vpop.permute.xlu1 %4704 }
  0xf8   : > { %2141 = vst.msk [vmem:[#allocation3 + $0xe0] sm:$0xff] %vm1729_vm5, %v9439_v30  ;;  %2143 = vst.msk [vmem:[#allocation3 + $0xf0] sm:$0xff] %vm1729_vm5, %v9439_v30 }
  0xf9   : > { %2144 = vst.msk [vmem:[#allocation3 + $0xf8] sm:$0xff] %vm1729_vm5, %v9439_v30  ;;  %2146 = vst.msk [vmem:[#allocation3 + $0x108] sm:$0xff] %vm1729_vm5, %v9439_v30  ;;  %4994 = vrot.lane.b32.xlu1 %v9413_v27, %s5857_s20 }
  0xfa   : > { %2147 = vst.msk [vmem:[#allocation3 + $0x110] sm:$0xff] %vm1729_vm5, %v9439_v30  ;;  %2149 = vst.msk [vmem:[#allocation3 + $0x120] sm:$0xff] %vm1729_vm5, %v9439_v30 }
  0xfb   : > { %2150 = vst.msk [vmem:[#allocation3 + $0x128] sm:$0xff] %vm1729_vm5, %v9439_v30  ;;  %2152 = vst.msk [vmem:[#allocation3 + $0x138] sm:$0xff] %vm1729_vm5, %v9439_v30  ;;  %4999 = vrot.lane.b32.xlu0 %v9414_v28, %s5857_s20  ;;  %v6833_v14 = vpop.permute.xlu1 %4714 }
  0xfc   : > { %2153 = vst.msk [vmem:[#allocation3 + $0x140] sm:$0xff] %vm1729_vm5, %v9439_v30  ;;  %2155 = vst.msk [vmem:[#allocation3 + $0x150] sm:$0xff] %vm1729_vm5, %v9439_v30 }
  0xfd   : > { %2156 = vst.msk [vmem:[#allocation3 + $0x158] sm:$0xff] %vm1729_vm5, %v9439_v30  ;;  %2158 = vst.msk [vmem:[#allocation3 + $0x168] sm:$0xff] %vm1729_vm5, %v9439_v30  ;;  %5004 = vrot.lane.b32.xlu1 %v6387_v60, %s5858_s21 }
  0xfe   : > { %2159 = vst.msk [vmem:[#allocation3 + $0x170] sm:$0xff] %vm1729_vm5, %v9439_v30  ;;  %2161 = vst.msk [vmem:[#allocation3 + $0x180] sm:$0xff] %vm1729_vm5, %v9439_v30 }
  0xff   : > { %2162 = vst.msk [vmem:[#allocation3 + $0x188] sm:$0xff] %vm1729_vm5, %v9439_v30  ;;  %2164 = vst.msk [vmem:[#allocation3 + $0x198] sm:$0xff] %vm1729_vm5, %v9439_v30  ;;  %5009 = vrot.lane.b32.xlu0 %v6394_v3, %s5858_s21  ;;  %v6841_v16 = vpop.permute.xlu1 %4724 }
 0x100   : > { %2165 = vst.msk [vmem:[#allocation3 + $0x1a0] sm:$0xff] %vm1729_vm5, %v9439_v30  ;;  %9440 = vst [vmem:[#allocation19_spill] sm:$0xff] %v6825_v56  ;;  %v6827_v30 = vpop.permute.xlu0 %4709  ;;  %v4622_v56 = vunpack.i.h.bf16 %v6673_v61 }
 0x101   : > { %9441 = vst [vmem:[#allocation20_spill] sm:$0xff] %v6827_v30  ;;  %9442 = vst [vmem:[#allocation21_spill] sm:$0xff] %v6833_v14  ;;  %5014 = vrot.lane.b32.xlu1 %v6396_v63, %s5858_s21 }
 0x102   : > { %9444 = vst [vmem:[#allocation23_spill] sm:$0xff] %v6841_v16 }
 0x103   : > { %5019 = vrot.lane.b32.xlu0 %v6398_v44, %s5858_s21  ;;  %v6849_v27 = vpop.permute.xlu1 %4734 }
 0x104   : > { %v6835_v49 = vpop.permute.xlu0 %4719  ;;  %9446 = vst [vmem:[#allocation25_spill] sm:$0xff] %v6849_v27 }
 0x105   : > { %9443 = vst [vmem:[#allocation22_spill] sm:$0xff] %v6835_v49  ;;  %5024 = vrot.lane.b32.xlu1 %v9415_v29, %s5857_s20 }
 0x107   : > { %5029 = vrot.lane.b32.xlu0 %v6420_v57, %s5858_s21  ;;  %v6857_v60 = vpop.permute.xlu1 %4744 }
 0x108   : > { %v6843_v21 = vpop.permute.xlu0 %4729  ;;  %9448 = vst [vmem:[#allocation27_spill] sm:$0xff] %v6857_v60 }
 0x109   : > { %9445 = vst [vmem:[#allocation24_spill] sm:$0xff] %v6843_v21  ;;  %5034 = vrot.lane.b32.xlu1 %v6424_v40, %s5858_s21 }
 0x10b   : > { %5039 = vrot.lane.b32.xlu0 %v9416_v43, %s5857_s20  ;;  %v6865_v63 = vpop.permute.xlu1 %4754 }
 0x10c   : > { %v6851_v28 = vpop.permute.xlu0 %4739  ;;  %9450 = vst [vmem:[#allocation29_spill] sm:$0xff] %v6865_v63 }
 0x10d   : > { %9447 = vst [vmem:[#allocation26_spill] sm:$0xff] %v6851_v28  ;;  %5044 = vrot.lane.b32.xlu1 %v9417_v59, %s5857_s20  ;;  %v5809_v28 = vld [vmem:[#allocation2 + $0x120] sm:$0xff] }
 0x10f   : > { %5049 = vrot.lane.b32.xlu0 %v6439_v11, %s5858_s21  ;;  %v6873_v57 = vpop.permute.xlu1 %4764 }
 0x110   : > { %v6859_v3 = vpop.permute.xlu0 %4749  ;;  %9452 = vst [vmem:[#allocation31_spill] sm:$0xff] %v6873_v57  ;;  %v5804_v57 = vld [vmem:[#allocation2 + $0xf8] sm:$0xff] }
 0x111   : > { %9449 = vst [vmem:[#allocation28_spill] sm:$0xff] %v6859_v3  ;;  %5054 = vrot.lane.b32.xlu1 %v9423_v22, %s5858_s21 }
 0x113   : > { %5059 = vrot.lane.b32.xlu0 %v9418_v12, %s5857_s20  ;;  %v6881_v40 = vpop.permute.xlu1 %4774 }
 0x114   : > { %v6867_v44 = vpop.permute.xlu0 %4759  ;;  %9454 = vst [vmem:[#allocation33_spill] sm:$0xff] %v6881_v40  ;;  %v5786_v40 = vld [vmem:[#allocation2 + $0x38] sm:$0xff] }
 0x115   : > { %9451 = vst [vmem:[#allocation30_spill] sm:$0xff] %v6867_v44  ;;  %5064 = vrot.lane.b32.xlu1 %v9419_v20, %s5857_s20 }
 0x117   : > { %5069 = vrot.lane.b32.xlu0 %v9426_v39, %s5858_s21  ;;  %v6889_v11 = vpop.permute.xlu1 %4784  ;;  %v494_v39 = vld [vmem:[#allocation2 + $0x1a8] sm:$0x3] }
 0x118   : > { %v6875_v29 = vpop.permute.xlu0 %4769  ;;  %9456 = vst [vmem:[#allocation35_spill] sm:$0xff] %v6889_v11  ;;  %v5785_v11 = vld [vmem:[#allocation2] sm:$0xff] }
 0x119   : > { %9453 = vst [vmem:[#allocation32_spill] sm:$0xff] %v6875_v29  ;;  %5074 = vrot.lane.b32.xlu1 %v6450_v46, %s5858_s21  ;;  %v4501_v46 = vunpack.i.l.bf16 %v6584_v13  ;;  %v6932_v29 = vsel %vm320_vm0, %v5786_v40, %v4512_v62  ;;  %v4517_v40 = vunpack.i.h.bf16 %v6594_v47  ;;  %v4516_v62 = vunpack.i.l.bf16 %v6594_v47 }
 0x11a   : > { %v4531_v47 = vunpack.i.l.bf16 %v6602_v37 }
 0x11b   : > { %5079 = vrot.lane.b32.xlu0 %v6327_v50, %s5857_s20  ;;  %v6897_v12 = vpop.permute.xlu1 %4794  ;;  %v1298_v50 = vrot.slane %v6719_v48, 1 }
 0x11c   : > { %v6883_v43 = vpop.permute.xlu0 %4779  ;;  %9458 = vst [vmem:[#allocation37_spill] sm:$0xff] %v6897_v12  ;;  %v5784_v12 = vld [vmem:[#allocation2 + $0x8] sm:$0xff] }
 0x11d   : > { %9455 = vst [vmem:[#allocation34_spill] sm:$0xff] %v6883_v43  ;;  %5084 = vrot.lane.b32.xlu1 %v9420_v38, %s5857_s20  ;;  %v4511_v38 = vunpack.i.l.bf16 %v6588_v8  ;;  %v1398_v8 = vrot.slane %v6717_v42, 2  ;;  %v6929_v43 = vsel %vm320_vm0, %v5785_v11, %v4501_v46 }
 0x11f   : > { %5089 = vrot.lane.b32.xlu0 %v6460_v51, %s5858_s21  ;;  %v6905_v20 = vpop.permute.xlu1 %4804  ;;  %v4507_v51 = vunpack.i.h.bf16 %v6590_v33 }
 0x120   : > { %v6891_v59 = vpop.permute.xlu0 %4789  ;;  %9460 = vst [vmem:[#allocation39_spill] sm:$0xff] %v6905_v20  ;;  %v1297_v20 = vrot.slane %v6717_v42, 1 }
 0x121   : > { %9457 = vst [vmem:[#allocation36_spill] sm:$0xff] %v6891_v59  ;;  %5094 = vrot.lane.b32.xlu1 %v6480_v26, %s5858_s21  ;;  %v6923_v59 = vsel %vm320_vm0, %v5784_v12, %v4502_v41  ;;  %v1399_v26 = vrot.slane %v6719_v48, 2  ;;  %v1401_v12 = vrot.slane %v494_v39, 2  ;;  %v5787_v41 = vld [vmem:[#allocation2 + $0x30] sm:$0xff]  ;;  %v5788_v48 = vld [vmem:[#allocation2 + $0x20] sm:$0xff] }
 0x122   : > { %v6942_v42 = vsel %vm320_vm0, %v5788_v48, %v4507_v51  ;;  %v1299_v11 = vsel %vm543_vm2, %v1297_v20, %v1298_v50  ;;  %v4527_v20 = vunpack.i.h.bf16 %v6600_v23 }
 0x123   : > { %5099 = vrot.lane.b32.xlu0 %v9421_v36, %s5857_s20  ;;  %v6920_v13 = vpop.permute.xlu1 %4814  ;;  %v1402_v48 = vsel %vm720_vm3, %v1399_v26, %v1401_v12 }
 0x124   : > { %v6899_v22 = vpop.permute.xlu0 %4799  ;;  %9462 = vst [vmem:[#allocation41_spill] sm:$0xff] %v6920_v13  ;;  %v4522_v13 = vunpack.i.h.bf16 %v6596_v25 }
 0x125   : > { %9459 = vst [vmem:[#allocation38_spill] sm:$0xff] %v6899_v22  ;;  %v1300_v22 = vrot.slane %v494_v39, 1  ;;  %5104 = vrot.lane.b32.xlu1 %v6360_v35, %s5857_s20  ;;  %v4521_v35 = vunpack.i.l.bf16 %v6596_v25  ;;  %v1400_v25 = vsel %vm720_vm3, %v1398_v8, %v1399_v26  ;;  %v5793_v26 = vld [vmem:[#allocation2 + $0x60] sm:$0xff] }
 0x127   : > { %v1301_v46 = vsel %vm543_vm2, %v1298_v50, %v1300_v22  ;;  %5109 = vrot.lane.b32.xlu0 %v6486_v32, %s5858_s21  ;;  %v6952_v39 = vpop.permute.xlu1 %4824  ;;  %v4526_v22 = vunpack.i.l.bf16 %v6600_v23  ;;  %v4532_v50 = vunpack.i.h.bf16 %v6602_v37  ;;  %v4542_v23 = vunpack.i.h.bf16 %v6609_v45 }
 0x128   : > { %v6911_v55 = vpop.permute.xlu0 %4809  ;;  %9464 = vst [vmem:[#allocation43_spill] sm:$0xff] %v6952_v39  ;;  %v5123_v32 = vpack.i.bf16 %v1301_v46, %v1299_v11  ;;  %v4541_v39 = vunpack.i.l.bf16 %v6609_v45  ;;  %v5792_v11 = vld [vmem:[#allocation2 + $0x68] sm:$0xff]  ;;  %v6981_v12 = vsel %vm320_vm0, %v5793_v26, %v4521_v35  ;;  %v5794_v45 = vld [vmem:[#allocation2 + $0x80] sm:$0xff]  ;;  %v5795_v46 = vld [vmem:[#allocation2 + $0x78] sm:$0xff]  ;;  %v5133_v35 = vpack.i.bf16 %v1402_v48, %v1400_v25 }
 0x129   : > { %9461 = vst [vmem:[#allocation40_spill] sm:$0xff] %v6911_v55  ;;  %v4506_v55 = vunpack.i.l.bf16 %v6590_v33  ;;  %v6939_v33 = vsel %vm320_vm0, %v5787_v41, %v4511_v38  ;;  %v5789_v38 = vld [vmem:[#allocation2 + $0x18] sm:$0xff]  ;;  %5114 = vrot.lane.b32.xlu1 %v6490_v58, %s5858_s21  ;;  %v6978_v8 = vsel %vm320_vm0, %v5792_v11, %v4522_v13  ;;  %v4546_v26 = vunpack.i.l.bf16 %v6615_v34 }
 0x12a   : > { %v5796_v13 = vld [vmem:[#allocation2 + $0x98] sm:$0xff] }
 0x12b   : > { %v6955_v51 = vsel %vm320_vm0, %v5789_v38, %v4506_v55  ;;  %v4537_v55 = vunpack.i.h.bf16 %v6607_v18  ;;  %v4536_v38 = vunpack.i.l.bf16 %v6607_v18  ;;  %5119 = vrot.lane.b32.xlu0 %v6476_v24, %s5857_s20  ;;  %v6985_v18 = vpop.permute.xlu1 %4834  ;;  %v4547_v24 = vunpack.i.h.bf16 %v6615_v34 }
 0x12c   : > { %v6934_v36 = vpop.permute.xlu0 %4819  ;;  %9466 = vst [vmem:[#allocation45_spill] sm:$0xff] %v6985_v18 }
 0x12d   : > { %9463 = vst [vmem:[#allocation42_spill] sm:$0xff] %v6934_v36  ;;  %v5790_v36 = vld [vmem:[#allocation2 + $0x50] sm:$0xff]  ;;  %5124 = vrot.lane.b32.xlu1 %v5123_v32, %s5857_s20  ;;  %v4557_v32 = vunpack.i.h.bf16 %v6623_v0 }
 0x12e   : > { %v6972_v37 = vsel %vm320_vm0, %v5790_v36, %v4517_v40  ;;  %v6988_v36 = vsel %vm320_vm0, %v5794_v45, %v4527_v20  ;;  %v6991_v40 = vsel %vm320_vm0, %v5795_v46, %v4526_v22  ;;  %v4552_v20 = vunpack.i.h.bf16 %v6617_v19  ;;  %v5798_v22 = vld [vmem:[#allocation2 + $0xb0] sm:$0xff] }
 0x12f   : > { %v7006_v46 = vsel %vm320_vm0, %v5798_v22, %v4537_v55  ;;  %v4562_v55 = vunpack.i.h.bf16 %v6625_v17  ;;  %5129 = vrot.lane.b32.xlu0 %v6494_v1, %s5858_s21  ;;  %v4567_v22 = vunpack.i.h.bf16 %v6631_v52 }
 0x130   : > { %v6961_v41 = vpop.permute.xlu0 %4829  ;;  %v7036_v1 = vsel %vm320_vm0, %v5804_v57, %v4552_v20  ;;  %v5806_v57 = vld [vmem:[#allocation2 + $0x110] sm:$0xff] }
 0x131   : > { %9465 = vst [vmem:[#allocation44_spill] sm:$0xff] %v6961_v41  ;;  %v5791_v41 = vld [vmem:[#allocation2 + $0x48] sm:$0xff]  ;;  %5134 = vrot.lane.b32.xlu1 %v5133_v35, %s5858_s21  ;;  %v7050_v20 = vsel %vm320_vm0, %v5806_v57, %v4557_v32  ;;  %v5811_v32 = vld [vmem:[#allocation2 + $0x138] sm:$0xff] }
 0x132   : > { %v6975_v58 = vsel %vm320_vm0, %v5791_v41, %v4516_v62  ;;  %v6994_v62 = vsel %vm320_vm0, %v5796_v13, %v4532_v50  ;;  %v5797_v41 = vld [vmem:[#allocation2 + $0x90] sm:$0xff]  ;;  %v5799_v50 = vld [vmem:[#allocation2 + $0xa8] sm:$0xff]  ;;  %v5801_v13 = vld [vmem:[#allocation2 + $0xc0] sm:$0xff] }
 0x133   : > { %v6997_v11 = vsel %vm320_vm0, %v5797_v41, %v4531_v47  ;;  %v7009_v25 = vsel %vm320_vm0, %v5799_v50, %v4536_v38  ;;  %v5800_v47 = vld [vmem:[#allocation2 + $0xc8] sm:$0xff]  ;;  %v7015_v34 = vsel %vm320_vm0, %v5801_v13, %v4541_v39  ;;  %v4551_v41 = vunpack.i.l.bf16 %v6617_v19  ;;  %v7023_v38 = vpop.permute.xlu1 %4844  ;;  %v5802_v19 = vld [vmem:[#allocation2 + $0xe0] sm:$0xff] }
 0x134   : > { %v7002_v45 = vpop.permute.xlu0 %4839  ;;  %v7012_v48 = vsel %vm320_vm0, %v5800_v47, %v4542_v23  ;;  %9468 = vst [vmem:[#allocation47_spill] sm:$0xff] %v7023_v38  ;;  %v4561_v23 = vunpack.i.l.bf16 %v6625_v17  ;;  %v4566_v39 = vunpack.i.l.bf16 %v6631_v52  ;;  %v9469_v50 = vld [vmem:[#allocation17_spill] sm:$0xff]  ;;  %v7030_v13 = vsel %vm320_vm0, %v5802_v19, %v4547_v24  ;;  %v9471_v52 = vld [vmem:[#allocation4_spill] sm:$0xff] }
 0x135   : > { %9467 = vst [vmem:[#allocation46_spill] sm:$0xff] %v7002_v45  ;;  %v4556_v45 = vunpack.i.l.bf16 %v6623_v0  ;;  %v4572_v47 = vunpack.i.h.bf16 %v9469_v50  ;;  %v5803_v0 = vld [vmem:[#allocation2 + $0xd8] sm:$0xff]  ;;  %v4571_v17 = vunpack.i.l.bf16 %v9469_v50  ;;  %v4577_v44 = vunpack.i.h.bf16 %v9471_v52  ;;  %v9472_v24 = vld [vmem:[#allocation5_spill] sm:$0xff] }
 0x136   : > { %v7033_v18 = vsel %vm320_vm0, %v5803_v0, %v4546_v26  ;;  %v4576_v63 = vunpack.i.l.bf16 %v9471_v52  ;;  %v4582_v19 = vunpack.i.h.bf16 %v9472_v24  ;;  %v4581_v3 = vunpack.i.l.bf16 %v9472_v24  ;;  %v5805_v26 = vld [vmem:[#allocation2 + $0xf0] sm:$0xff]  ;;  %v5807_v50 = vld [vmem:[#allocation2 + $0x108] sm:$0xff] }
 0x137   : > { %v7047_v0 = vsel %vm320_vm0, %v5805_v26, %v4551_v41  ;;  %v5808_v35 = vld [vmem:[#allocation2 + $0x128] sm:$0xff]  ;;  %v7058_v52 = vpop.permute.xlu1 %4854  ;;  %v7061_v24 = vsel %vm320_vm0, %v5809_v28, %v4561_v23  ;;  %v5810_v41 = vld [vmem:[#allocation2 + $0x140] sm:$0xff]  ;;  %v7067_v57 = vsel %vm320_vm0, %v5811_v32, %v4566_v39  ;;  %v4592_v23 = vunpack.i.h.bf16 %v6649_v6 }
 0x138   : > { %v7039_v38 = vpop.permute.xlu0 %4849  ;;  %v7056_v60 = vsel %vm320_vm0, %v5808_v35, %v4562_v55  ;;  %9473 = vst [vmem:[#allocation4_spill] sm:$0xff] %v7058_v52  ;;  %v7064_v26 = vsel %vm320_vm0, %v5810_v41, %v4567_v22  ;;  %v5813_v55 = vld [vmem:[#allocation2 + $0x150] sm:$0xff]  ;;  %v9474_v52 = vld [vmem:[#allocation7_spill] sm:$0xff]  ;;  %v5815_v32 = vld [vmem:[#allocation2 + $0x168] sm:$0xff] }
 0x139   : > { %9470 = vst [vmem:[#allocation17_spill] sm:$0xff] %v7039_v38  ;;  %v7053_v38 = vsel %vm320_vm0, %v5807_v50, %v4556_v45  ;;  %v5812_v45 = vld [vmem:[#allocation2 + $0x158] sm:$0xff]  ;;  %v7073_v35 = vsel %vm320_vm0, %v5813_v55, %v4571_v17  ;;  %v4587_v27 = vunpack.i.h.bf16 %v9474_v52  ;;  %v4586_v28 = vunpack.i.l.bf16 %v9474_v52  ;;  %v5814_v41 = vld [vmem:[#allocation2 + $0x170] sm:$0xff] }
 0x13a   : > { %v7070_v50 = vsel %vm320_vm0, %v5812_v45, %v4572_v47  ;;  %v7081_v39 = vsel %vm320_vm0, %v5814_v41, %v4577_v44  ;;  %v7084_v47 = vsel %vm320_vm0, %v5815_v32, %v4576_v63  ;;  %v7088_v17 = vsel %vm1531_vm7, %v6923_v59, %v4582_v19  ;;  %v9476_v55 = vld [vmem:[#allocation6_spill] sm:$0xff]  ;;  %v9477_v44 = vld [vmem:[#allocation8_spill] sm:$0xff]  ;;  %v9479_v32 = vld [vmem:[#allocation9_spill] sm:$0xff] }
 0x13b   : > { %v7092_v45 = vsel %vm1531_vm7, %v6929_v43, %v4581_v3  ;;  %v4591_v52 = vunpack.i.l.bf16 %v6649_v6  ;;  %v4596_v21 = vunpack.i.l.bf16 %v9476_v55  ;;  %v4601_v41 = vunpack.i.l.bf16 %v9477_v44  ;;  %v7098_v16 = vpop.permute.xlu1 %4864  ;;  %v9480_v19 = vld [vmem:[#allocation10_spill] sm:$0xff] }
 0x13c   : > { %v7078_v22 = vpop.permute.xlu0 %4859  ;;  %9478 = vst [vmem:[#allocation7_spill] sm:$0xff] %v7098_v16  ;;  %v4602_v63 = vunpack.i.h.bf16 %v9477_v44  ;;  %v4607_v49 = vunpack.i.h.bf16 %v9479_v32  ;;  %v4606_v59 = vunpack.i.l.bf16 %v9479_v32  ;;  %v4611_v14 = vunpack.i.l.bf16 %v9480_v19  ;;  %v9481_v16 = vld [vmem:[#allocation11_spill] sm:$0xff] }
 0x13d   : > { %9475 = vst [vmem:[#allocation5_spill] sm:$0xff] %v7078_v22  ;;  %v4597_v22 = vunpack.i.h.bf16 %v9476_v55  ;;  %v7106_v3 = vsel %vm1531_vm7, %v6955_v51, %v4586_v28  ;;  %v7110_v6 = vsel %vm1531_vm7, %v6942_v42, %v4587_v27  ;;  %v7114_v43 = vsel %vm1531_vm7, %v6932_v29, %v4592_v23 }
 0x13e   : > { %v4612_v55 = vunpack.i.h.bf16 %v9480_v19  ;;  %v4617_v32 = vunpack.i.h.bf16 %v9481_v16  ;;  %v4616_v30 = vunpack.i.l.bf16 %v9481_v16  ;;  %v4621_v51 = vunpack.i.l.bf16 %v6673_v61 }
 0x13f   : > { %v7125_v27 = vsel %vm1531_vm7, %v6939_v33, %v4591_v52  ;;  %v7129_v29 = vsel %vm1531_vm7, %v6972_v37, %v4597_v22  ;;  %v7133_v42 = vsel %vm1531_vm7, %v6975_v58, %v4596_v21  ;;  %v7137_v28 = vsel %vm1531_vm7, %v6981_v12, %v4601_v41  ;;  %v7139_v16 = vpop.permute.xlu1 %4874 }
 0x140   : > { %v7117_v44 = vpop.permute.xlu0 %4869  ;;  %v7143_v61 = vsel %vm1531_vm7, %v6978_v8, %v4602_v63  ;;  %v7147_v33 = vsel %vm1531_vm7, %v6988_v36, %v4607_v49  ;;  %v7151_v37 = vsel %vm1531_vm7, %v6991_v40, %v4606_v59  ;;  %v7155_v21 = vsel %vm1531_vm7, %v6997_v11, %v4611_v14  ;;  %v9485_v59 = vld [vmem:[#allocation12_spill] sm:$0xff] }
 0x141   : > { %v7159_v58 = vsel %vm1531_vm7, %v6994_v62, %v4612_v55  ;;  %v4627_v12 = vunpack.i.h.bf16 %v6679_v53  ;;  %v4626_v8 = vunpack.i.l.bf16 %v6679_v53  ;;  %v4631_v23 = vunpack.i.l.bf16 %v6681_v2 }
 0x142   : > { %v7168_v36 = vsel %vm1531_vm7, %v7006_v46, %v4617_v32  ;;  %v7172_v14 = vsel %vm1531_vm7, %v7009_v25, %v4616_v30  ;;  %v7176_v40 = vsel %vm1531_vm7, %v7015_v34, %v4621_v51  ;;  %v7180_v62 = vsel %vm1531_vm7, %v7012_v48, %v4622_v56 }
 0x143   : > { %v4632_v53 = vunpack.i.h.bf16 %v6681_v2  ;;  %v4637_v11 = vunpack.i.h.bf16 %v6687_v54  ;;  %v4636_v22 = vunpack.i.l.bf16 %v6687_v54  ;;  %v4641_v46 = vunpack.i.l.bf16 %v6689_v7  ;;  %v7186_v52 = vpop.permute.xlu1 %4884 }
 0x144   : > { %v7164_v49 = vpop.permute.xlu0 %4879  ;;  %9483 = vst [vmem:[#allocation8_spill] sm:$0xff] %v7186_v52  ;;  %v4642_v30 = vunpack.i.h.bf16 %v6689_v7  ;;  %v4647_v25 = vunpack.i.h.bf16 %v6695_v15  ;;  %v4646_v34 = vunpack.i.l.bf16 %v6695_v15  ;;  %v4651_v41 = vunpack.i.l.bf16 %v6697_v9  ;;  %v9510_v52 = vld [vmem:[#allocation34_spill] sm:$0xff] }
 0x145   : > { %9482 = vst [vmem:[#allocation6_spill] sm:$0xff] %v7164_v49  ;;  %v7194_v56 = vsel %vm1531_vm7, %v7030_v13, %v4627_v12  ;;  %v7198_v2 = vsel %vm1531_vm7, %v7033_v18, %v4626_v8  ;;  %v7202_v54 = vsel %vm1531_vm7, %v7047_v0, %v4631_v23  ;;  %v4652_v7 = vunpack.i.h.bf16 %v6697_v9  ;;  %v9487_v12 = vld [vmem:[#allocation13_spill] sm:$0xff] }
 0x146   : > { %v4657_v15 = vunpack.i.h.bf16 %v6703_v10  ;;  %v4656_v63 = vunpack.i.l.bf16 %v6703_v10  ;;  %v4662_v19 = vunpack.i.h.bf16 %v9485_v59  ;;  %v4661_v13 = vunpack.i.l.bf16 %v9485_v59 }
 0x147   : > { %v7213_v18 = vsel %vm1531_vm7, %v7036_v1, %v4632_v53  ;;  %v7217_v0 = vsel %vm1531_vm7, %v7050_v20, %v4637_v11  ;;  %v7221_v9 = vsel %vm1531_vm7, %v7053_v38, %v4636_v22  ;;  %v7225_v55 = vsel %vm1531_vm7, %v7061_v24, %v4641_v46  ;;  %v7227_v10 = vpop.permute.xlu1 %4894  ;;  %v9488_v53 = vld [vmem:[#allocation14_spill] sm:$0xff] }
 0x148   : > { %v7205_v48 = vpop.permute.xlu0 %4889  ;;  %9486 = vst [vmem:[#allocation10_spill] sm:$0xff] %v7227_v10  ;;  %v7231_v32 = vsel %vm1531_vm7, %v7056_v60, %v4642_v30  ;;  %v7235_v1 = vsel %vm1531_vm7, %v7064_v26, %v4647_v25  ;;  %v7239_v20 = vsel %vm1531_vm7, %v7067_v57, %v4646_v34  ;;  %v7243_v38 = vsel %vm1531_vm7, %v7073_v35, %v4651_v41  ;;  %v9490_v25 = vld [vmem:[#allocation16_spill] sm:$0xff]  ;;  %v9491_v41 = vld [vmem:[#allocation18_spill] sm:$0xff] }
 0x149   : > { %9484 = vst [vmem:[#allocation9_spill] sm:$0xff] %v7205_v48  ;;  %v7247_v24 = vsel %vm1531_vm7, %v7070_v50, %v4652_v7  ;;  %v4667_v51 = vunpack.i.h.bf16 %v6711_v31  ;;  %v4666_v60 = vunpack.i.l.bf16 %v6711_v31  ;;  %v4671_v8 = vunpack.i.l.bf16 %v9487_v12  ;;  %v9499_v10 = vld [vmem:[#allocation26_spill] sm:$0xff] }
 0x14a   : > { %v7256_v57 = vsel %vm1531_vm7, %v7081_v39, %v4657_v15  ;;  %v7260_v35 = vsel %vm1531_vm7, %v7084_v47, %v4656_v63  ;;  %v7264_v50 = vsel %vm1564_vm8, %v7092_v45, %v4661_v13  ;;  %v7268_v23 = vsel %vm1564_vm8, %v7088_v17, %v4662_v19  ;;  %v9489_v39 = vld [vmem:[#allocation15_spill] sm:$0xff] }
 0x14b   : > { %v4672_v31 = vunpack.i.h.bf16 %v9487_v12  ;;  %v4677_v11 = vunpack.i.h.bf16 %v9488_v53  ;;  %v4676_v22 = vunpack.i.l.bf16 %v9488_v53  ;;  %v4681_v46 = vunpack.i.l.bf16 %v9489_v39  ;;  %v7274_v30 = vpop.permute.xlu1 %4904 }
 0x14c   : > { %v7252_v26 = vpop.permute.xlu0 %4899  ;;  %v4682_v47 = vunpack.i.h.bf16 %v9489_v39  ;;  %v4687_v34 = vunpack.i.h.bf16 %v9490_v25  ;;  %v4686_v45 = vunpack.i.l.bf16 %v9490_v25  ;;  %v4691_v7 = vunpack.i.l.bf16 %v9491_v41 }
 0x14d   : > { %v7282_v17 = vsel %vm1564_vm8, %v7106_v3, %v4666_v60  ;;  %v7286_v15 = vsel %vm1564_vm8, %v7110_v6, %v4667_v51  ;;  %v7290_v63 = vsel %vm1564_vm8, %v7125_v27, %v4671_v8  ;;  %v4692_v59 = vunpack.i.h.bf16 %v9491_v41  ;;  %v9492_v8 = vld [vmem:[#allocation19_spill] sm:$0xff] }
 0x14e   : > { %v4697_v13 = vunpack.i.h.bf16 %v6816_v5  ;;  %v4696_v12 = vunpack.i.l.bf16 %v6816_v5  ;;  %v4702_v53 = vunpack.i.h.bf16 %v6819_v4  ;;  %v4701_v3 = vunpack.i.l.bf16 %v6819_v4 }
 0x14f   : > { %v7301_v6 = vsel %vm1564_vm8, %v7114_v43, %v4672_v31  ;;  %v7305_v27 = vsel %vm1564_vm8, %v7133_v42, %v4676_v22  ;;  %v7309_v51 = vsel %vm1564_vm8, %v7129_v29, %v4677_v11  ;;  %v7313_v60 = vsel %vm1564_vm8, %v7137_v28, %v4681_v46  ;;  %v7315_v5 = vpop.permute.xlu1 %4914  ;;  %v9493_v11 = vld [vmem:[#allocation20_spill] sm:$0xff] }
 0x150   : > { %v7293_v19 = vpop.permute.xlu0 %4909  ;;  %v7319_v4 = vsel %vm1564_vm8, %v7143_v61, %v4682_v47  ;;  %v7323_v43 = vsel %vm1564_vm8, %v7151_v37, %v4686_v45  ;;  %v7327_v42 = vsel %vm1564_vm8, %v7147_v33, %v4687_v34  ;;  %v7331_v29 = vsel %vm1564_vm8, %v7155_v21, %v4691_v7  ;;  %v9494_v47 = vld [vmem:[#allocation21_spill] sm:$0xff]  ;;  %v9496_v7 = vld [vmem:[#allocation23_spill] sm:$0xff] }
 0x151   : > { %v7335_v28 = vsel %vm1564_vm8, %v7159_v58, %v4692_v59  ;;  %v4707_v31 = vunpack.i.h.bf16 %v9492_v8  ;;  %v4706_v61 = vunpack.i.l.bf16 %v9492_v8  ;;  %v4711_v22 = vunpack.i.l.bf16 %v9493_v11 }
 0x152   : > { %v7344_v33 = vsel %vm1564_vm8, %v7172_v14, %v4696_v12  ;;  %v7348_v21 = vsel %vm1564_vm8, %v7168_v36, %v4697_v13  ;;  %v7352_v58 = vsel %vm1564_vm8, %v7176_v40, %v4701_v3  ;;  %v7356_v39 = vsel %vm1564_vm8, %v7180_v62, %v4702_v53  ;;  %v9495_v14 = vld [vmem:[#allocation22_spill] sm:$0xff]  ;;  %v9497_v13 = vld [vmem:[#allocation24_spill] sm:$0xff] }
 0x153   : > { %v4712_v46 = vunpack.i.h.bf16 %v9493_v11  ;;  %v4717_v25 = vunpack.i.h.bf16 %v9494_v47  ;;  %v4716_v34 = vunpack.i.l.bf16 %v9494_v47  ;;  %v4721_v45 = vunpack.i.l.bf16 %v9495_v14  ;;  %v7362_v41 = vpop.permute.xlu1 %4924  ;;  %v9498_v47 = vld [vmem:[#allocation25_spill] sm:$0xff] }
 0x154   : > { %v7340_v37 = vpop.permute.xlu0 %4919  ;;  %v4722_v36 = vunpack.i.h.bf16 %v9495_v14  ;;  %v4727_v59 = vunpack.i.h.bf16 %v9496_v7  ;;  %v4726_v40 = vunpack.i.l.bf16 %v9496_v7  ;;  %v4731_v12 = vunpack.i.l.bf16 %v9497_v13 }
 0x155   : > { %v7370_v62 = vsel %vm1564_vm8, %v7198_v2, %v4706_v61  ;;  %v7374_v53 = vsel %vm1564_vm8, %v7194_v56, %v4707_v31  ;;  %v7378_v3 = vsel %vm1564_vm8, %v7202_v54, %v4711_v22  ;;  %v4732_v8 = vunpack.i.h.bf16 %v9497_v13 }
 0x156   : > { %v4737_v14 = vunpack.i.h.bf16 %v9498_v47  ;;  %v4736_v7 = vunpack.i.l.bf16 %v9498_v47  ;;  %v4742_v48 = vunpack.i.h.bf16 %v9499_v10  ;;  %v4741_v2 = vunpack.i.l.bf16 %v9499_v10 }
 0x157   : > { %v7389_v56 = vsel %vm1564_vm8, %v7213_v18, %v4712_v46  ;;  %v7393_v54 = vsel %vm1564_vm8, %v7221_v9, %v4716_v34  ;;  %v7397_v31 = vsel %vm1564_vm8, %v7217_v0, %v4717_v25  ;;  %v7401_v61 = vsel %vm1564_vm8, %v7225_v55, %v4721_v45  ;;  %v7403_v22 = vpop.permute.xlu1 %4934  ;;  %v9500_v46 = vld [vmem:[#allocation27_spill] sm:$0xff]  ;;  %v9501_v34 = vld [vmem:[#allocation28_spill] sm:$0xff] }
 0x158   : > { %v7381_v11 = vpop.permute.xlu0 %4929  ;;  %v7407_v10 = vsel %vm1564_vm8, %v7231_v32, %v4722_v36  ;;  %v7411_v18 = vsel %vm1564_vm8, %v7239_v20, %v4726_v40  ;;  %v7415_v9 = vsel %vm1564_vm8, %v7235_v1, %v4727_v59  ;;  %v7419_v0 = vsel %vm1564_vm8, %v7243_v38, %v4731_v12  ;;  %v9504_v40 = vld [vmem:[#allocation29_spill] sm:$0xff] }
 0x159   : > { %v7423_v55 = vsel %vm1564_vm8, %v7247_v24, %v4732_v8  ;;  %v4747_v25 = vunpack.i.h.bf16 %v9500_v46  ;;  %v4746_v32 = vunpack.i.l.bf16 %v9500_v46  ;;  %v4751_v45 = vunpack.i.l.bf16 %v9501_v34 }
 0x15a   : > { %v7432_v1 = vsel %vm1564_vm8, %v7260_v35, %v4736_v7  ;;  %v7436_v38 = vsel %vm1564_vm8, %v7256_v57, %v4737_v14  ;;  %v7440_v24 = vsel %vm1597_vm9, %v7264_v50, %v4741_v2  ;;  %v7444_v36 = vsel %vm1597_vm9, %v7268_v23, %v4742_v48  ;;  %v9505_v35 = vld [vmem:[#allocation30_spill] sm:$0xff]  ;;  %v9506_v14 = vld [vmem:[#allocation31_spill] sm:$0xff]  ;;  %v9507_v2 = vld [vmem:[#allocation32_spill] sm:$0xff] }
 0x15b   : > { %9502 = vst [vmem:[#allocation11_spill] sm:$0xff] %v7432_v1  ;;  %9503 = vst [vmem:[#allocation12_spill] sm:$0xff] %v7436_v38  ;;  %v4752_v59 = vunpack.i.h.bf16 %v9501_v34  ;;  %v4757_v13 = vunpack.i.h.bf16 %v9504_v40  ;;  %v4756_v12 = vunpack.i.l.bf16 %v9504_v40  ;;  %v4761_v8 = vunpack.i.l.bf16 %v9505_v35  ;;  %v7450_v47 = vpop.permute.xlu1 %4944  ;;  %v9509_v38 = vld [vmem:[#allocation33_spill] sm:$0xff] }
 0x15c   : > { %v7428_v20 = vpop.permute.xlu0 %4939  ;;  %v4762_v57 = vunpack.i.h.bf16 %v9505_v35  ;;  %v4767_v7 = vunpack.i.h.bf16 %v9506_v14  ;;  %v4766_v50 = vunpack.i.l.bf16 %v9506_v14  ;;  %v4771_v46 = vunpack.i.l.bf16 %v9507_v2 }
 0x15d   : > { %v7458_v48 = vsel %vm1597_vm9, %v7282_v17, %v4746_v32  ;;  %v7462_v23 = vsel %vm1597_vm9, %v7286_v15, %v4747_v25  ;;  %v7466_v34 = vsel %vm1597_vm9, %v7290_v63, %v4751_v45  ;;  %v4772_v40 = vunpack.i.h.bf16 %v9507_v2 }
 0x15e   : > { %v4777_v14 = vunpack.i.h.bf16 %v9509_v38  ;;  %v4776_v1 = vunpack.i.l.bf16 %v9509_v38  ;;  %v4782_v49 = vunpack.i.h.bf16 %v9510_v52  ;;  %v4781_v17 = vunpack.i.l.bf16 %v9510_v52  ;;  %v9512_v38 = vld [vmem:[#allocation35_spill] sm:$0xff] }
 0x15f   : > { %v7477_v15 = vsel %vm1597_vm9, %v7301_v6, %v4752_v59  ;;  %v7481_v63 = vsel %vm1597_vm9, %v7305_v27, %v4756_v12  ;;  %v7485_v25 = vsel %vm1597_vm9, %v7309_v51, %v4757_v13  ;;  %v7489_v32 = vsel %vm1597_vm9, %v7313_v60, %v4761_v8  ;;  %v7491_v45 = vpop.permute.xlu1 %4954  ;;  %v9513_v13 = vld [vmem:[#allocation36_spill] sm:$0xff] }
 0x160   : > { %v7469_v35 = vpop.permute.xlu0 %4949  ;;  %9511 = vst [vmem:[#allocation14_spill] sm:$0xff] %v7491_v45  ;;  %v7495_v52 = vsel %vm1597_vm9, %v7319_v4, %v4762_v57  ;;  %v7499_v6 = vsel %vm1597_vm9, %v7323_v43, %v4766_v50  ;;  %v7503_v27 = vsel %vm1597_vm9, %v7327_v42, %v4767_v7  ;;  %v7507_v51 = vsel %vm1597_vm9, %v7331_v29, %v4771_v46  ;;  %v9515_v7 = vld [vmem:[#allocation37_spill] sm:$0xff]  ;;  %v9521_v45 = vld [vmem:[#allocation43_spill] sm:$0xff] }
 0x161   : > { %9508 = vst [vmem:[#allocation13_spill] sm:$0xff] %v7469_v35  ;;  %v7511_v60 = vsel %vm1597_vm9, %v7335_v28, %v4772_v40  ;;  %v4787_v59 = vunpack.i.h.bf16 %v9512_v38  ;;  %v4786_v4 = vunpack.i.l.bf16 %v9512_v38  ;;  %v4791_v12 = vunpack.i.l.bf16 %v9513_v13  ;;  %v9518_v40 = vld [vmem:[#allocation39_spill] sm:$0xff] }
 0x162   : > { %v7520_v42 = vsel %vm1597_vm9, %v7344_v33, %v4776_v1  ;;  %v7524_v29 = vsel %vm1597_vm9, %v7348_v21, %v4777_v14  ;;  %v7528_v28 = vsel %vm1597_vm9, %v7352_v58, %v4781_v17  ;;  %v7532_v8 = vsel %vm1597_vm9, %v7356_v39, %v4782_v49  ;;  %v9516_v33 = vld [vmem:[#allocation38_spill] sm:$0xff]  ;;  %v9519_v17 = vld [vmem:[#allocation40_spill] sm:$0xff] }
 0x163   : > { %v4792_v57 = vunpack.i.h.bf16 %v9513_v13  ;;  %v4797_v50 = vunpack.i.h.bf16 %v9515_v7  ;;  %v4796_v2 = vunpack.i.l.bf16 %v9515_v7  ;;  %v4801_v1 = vunpack.i.l.bf16 %v9516_v33  ;;  %v7538_v46 = vpop.permute.xlu1 %4964 }
 0x164   : > { %v7516_v43 = vpop.permute.xlu0 %4959  ;;  %9517 = vst [vmem:[#allocation16_spill] sm:$0xff] %v7538_v46  ;;  %v4802_v21 = vunpack.i.h.bf16 %v9516_v33  ;;  %v4807_v14 = vunpack.i.h.bf16 %v9518_v40  ;;  %v4806_v58 = vunpack.i.l.bf16 %v9518_v40  ;;  %v4811_v38 = vunpack.i.l.bf16 %v9519_v17  ;;  %v9520_v46 = vld [vmem:[#allocation42_spill] sm:$0xff] }
 0x165   : > { %9514 = vst [vmem:[#allocation15_spill] sm:$0xff] %v7516_v43  ;;  %v7546_v49 = vsel %vm1597_vm9, %v7370_v62, %v4786_v4  ;;  %v7550_v39 = vsel %vm1597_vm9, %v7374_v53, %v4787_v59  ;;  %v7554_v13 = vsel %vm1597_vm9, %v7378_v3, %v4791_v12  ;;  %v4812_v7 = vunpack.i.h.bf16 %v9519_v17  ;;  %v9528_v17 = vld [vmem:[#allocation46_spill] sm:$0xff] }
 0x166   : > { %v4822_v40 = vunpack.i.h.bf16 %v9520_v46  ;;  %v4821_v43 = vunpack.i.l.bf16 %v9520_v46  ;;  %v4827_v35 = vunpack.i.h.bf16 %v9521_v45  ;;  %v4826_v62 = vunpack.i.l.bf16 %v9521_v45 }
 0x167   : > { %v7565_v53 = vsel %vm1597_vm9, %v7389_v56, %v4792_v57  ;;  %v7569_v3 = vsel %vm1597_vm9, %v7393_v54, %v4796_v2  ;;  %v7573_v59 = vsel %vm1597_vm9, %v7397_v31, %v4797_v50  ;;  %v7577_v4 = vsel %vm1597_vm9, %v7401_v61, %v4801_v1  ;;  %v7579_v12 = vpop.permute.xlu1 %4974  ;;  %v9525_v57 = vld [vmem:[#allocation41_spill] sm:$0xff] }
 0x168   : > { %v7557_v33 = vpop.permute.xlu0 %4969  ;;  %9522 = vst [vmem:[#allocation18_spill] sm:$0xff] %v7579_v12  ;;  %v7583_v45 = vsel %vm1597_vm9, %v7407_v10, %v4802_v21  ;;  %v7587_v56 = vsel %vm1597_vm9, %v7411_v18, %v4806_v58  ;;  %v7591_v54 = vsel %vm1597_vm9, %v7415_v9, %v4807_v14  ;;  %v7595_v31 = vsel %vm1597_vm9, %v7419_v0, %v4811_v38  ;;  %v9526_v10 = vld [vmem:[#allocation44_spill] sm:$0xff]  ;;  %v9527_v21 = vld [vmem:[#allocation45_spill] sm:$0xff] }
 0x169   : > { %9523 = vst [vmem:[#allocation19_spill] sm:$0xff] %v7595_v31  ;;  %v7599_v61 = vsel %vm1597_vm9, %v7423_v55, %v4812_v7  ;;  %v4832_v2 = vunpack.i.h.bf16 %v9526_v10  ;;  %v4831_v1 = vunpack.i.l.bf16 %v9526_v10  ;;  %v1631_v46 = vsel %vm1630_vm10, %v7440_v24, %v4821_v43  ;;  %v9529_v24 = vld [vmem:[#allocation47_spill] sm:$0xff] }
 0x16a   : > { %9524 = vst [vmem:[#allocation20_spill] sm:$0xff] %v7599_v61  ;;  %v1632_v9 = vsel %vm1630_vm10, %v7444_v36, %v4822_v40  ;;  %v1633_v0 = vsel %vm1630_vm10, %v7458_v48, %v4826_v62  ;;  %v1634_v55 = vsel %vm1630_vm10, %v7462_v23, %v4827_v35  ;;  %v4837_v14 = vunpack.i.h.bf16 %v9527_v21  ;;  %v9530_v40 = vld [vmem:[#allocation17_spill] sm:$0xff] }
 0x16b   : > { %v4836_v58 = vunpack.i.l.bf16 %v9527_v21  ;;  %v4842_v38 = vunpack.i.h.bf16 %v9528_v17  ;;  %v4841_v7 = vunpack.i.l.bf16 %v9528_v17  ;;  %v4985_v10 = vpop.permute.xlu1 %4984  ;;  %v4847_v43 = vunpack.i.h.bf16 %v9529_v24 }
 0x16c   : > { %v4980_v18 = vpop.permute.xlu0 %4979  ;;  %v4846_v36 = vunpack.i.l.bf16 %v9529_v24  ;;  %v4852_v50 = vunpack.i.h.bf16 %v9530_v40  ;;  %v4851_v48 = vunpack.i.l.bf16 %v9530_v40  ;;  %v1635_v23 = vsel %vm1630_vm10, %v7466_v34, %v4831_v1 }
 0x16d   : > { %v1636_v35 = vsel %vm1630_vm10, %v7477_v15, %v4832_v2  ;;  %v4902_v62 = vunpack.i.h.bf16 %v7252_v26  ;;  %v4901_v21 = vunpack.i.l.bf16 %v7252_v26  ;;  %v4907_v12 = vunpack.i.h.bf16 %v7274_v30 }
 0x16e   : > { %v4906_v61 = vunpack.i.l.bf16 %v7274_v30  ;;  %v4912_v24 = vunpack.i.h.bf16 %v7293_v19  ;;  %v4911_v31 = vunpack.i.l.bf16 %v7293_v19  ;;  %v7632_v34 = vsel %vm1630_vm10, %v7481_v63, %v4836_v58 }
 0x16f   : > { %v7636_v15 = vsel %vm1630_vm10, %v7485_v25, %v4837_v14  ;;  %v7640_v26 = vsel %vm1630_vm10, %v7489_v32, %v4841_v7  ;;  %v7644_v30 = vsel %vm1630_vm10, %v7495_v52, %v4842_v38  ;;  %v7646_v2 = vpop.permute.xlu1 %4994  ;;  %v7650_v19 = vsel %vm1630_vm10, %v7499_v6, %v4846_v36 }
 0x170   : > { %v4990_v17 = vpop.permute.xlu0 %4989  ;;  %v7654_v63 = vsel %vm1630_vm10, %v7503_v27, %v4847_v43  ;;  %v7658_v25 = vsel %vm1630_vm10, %v7507_v51, %v4851_v48  ;;  %v7662_v32 = vsel %vm1630_vm10, %v7511_v60, %v4852_v50  ;;  %v4982_v52 = vunpack.i.h.bf16 %v4980_v18 }
 0x171   : > { %v4981_v1 = vunpack.i.l.bf16 %v4980_v18  ;;  %v1664_v58 = vsel %vm1663_vm11, %v1631_v46, %v4901_v21  ;;  %v1665_v6 = vsel %vm1663_vm11, %v1632_v9, %v4902_v62  ;;  %v1666_v38 = vsel %vm1663_vm11, %v1633_v0, %v4906_v61 }
 0x172   : > { %v1667_v27 = vsel %vm1663_vm11, %v1634_v55, %v4907_v12  ;;  %v1668_v7 = vsel %vm1663_vm11, %v1635_v23, %v4911_v31  ;;  %v1669_v51 = vsel %vm1663_vm11, %v1636_v35, %v4912_v24  ;;  %v4917_v43 = vunpack.i.h.bf16 %v7315_v5 }
 0x173   : > { %v4987_v60 = vunpack.i.h.bf16 %v4985_v10  ;;  %v4986_v50 = vunpack.i.l.bf16 %v4985_v10  ;;  %v4991_v36 = vunpack.i.l.bf16 %v4990_v17  ;;  %v5005_v18 = vpop.permute.xlu1 %5004  ;;  %v4916_v40 = vunpack.i.l.bf16 %v7315_v5 }
 0x174   : > { %v7664_v14 = vpop.permute.xlu0 %4999  ;;  %v4922_v46 = vunpack.i.h.bf16 %v7340_v37  ;;  %v5007_v48 = vunpack.i.h.bf16 %v5005_v18  ;;  %v5006_v9 = vunpack.i.l.bf16 %v5005_v18  ;;  %v4921_v61 = vunpack.i.l.bf16 %v7340_v37 }
 0x175   : > { %v4992_v0 = vunpack.i.h.bf16 %v4990_v17  ;;  %v1697_v31 = vsel %vm1696_vm12, %v1664_v58, %v4981_v1  ;;  %v1698_v55 = vsel %vm1696_vm12, %v1665_v6, %v4982_v52  ;;  %v1699_v5 = vsel %vm1696_vm12, %v1666_v38, %v4986_v50 }
 0x176   : > { %v1730_v10 = vsel %vm1729_vm5, %v1697_v31, %v5006_v9  ;;  %v1731_v62 = vsel %vm1729_vm5, %v1698_v55, %v5007_v48  ;;  %v1700_v21 = vsel %vm1696_vm12, %v1667_v27, %v4987_v60  ;;  %v1701_v24 = vsel %vm1696_vm12, %v1668_v7, %v4991_v36  ;;  %v9531_v36 = vld [vmem:[#allocation4_spill] sm:$0xff] }
 0x177   : > { %v5015_v18 = vpop.permute.xlu1 %5014  ;;  %v1762_v37 = vpack.c.bf16 %v1731_v62, %v1730_v10  ;;  %v1702_v6 = vsel %vm1696_vm12, %v1669_v51, %v4992_v0  ;;  %v4997_v9 = vunpack.i.h.bf16 %v7646_v2  ;;  %v4996_v48 = vunpack.i.l.bf16 %v7646_v2 }
 0x178   : > { %v5010_v12 = vpop.permute.xlu0 %5009  ;;  %v5017_v58 = vunpack.i.h.bf16 %v5015_v18  ;;  %v5016_v52 = vunpack.i.l.bf16 %v5015_v18  ;;  %v4857_v31 = vunpack.i.h.bf16 %v9531_v36  ;;  %v5002_v55 = vunpack.i.h.bf16 %v7664_v14 }
 0x179   : > { %v5012_v23 = vunpack.i.h.bf16 %v5010_v12  ;;  %v5011_v35 = vunpack.i.l.bf16 %v5010_v12  ;;  %4387 = vmatprep.mubr.msk.bf16.mxu0 %vm1785_vm13, %v1762_v37  ;;  %v5001_v51 = vunpack.i.l.bf16 %v7664_v14  ;;  %v1670_v62 = vsel %vm1663_vm11, %v7632_v34, %v4916_v40 }
 0x17a   : > { %v1734_v27 = vsel %vm1729_vm5, %v1701_v24, %v5016_v52  ;;  %v1735_v7 = vsel %vm1729_vm5, %v1702_v6, %v5017_v58  ;;  %v1673_v14 = vsel %vm1663_vm11, %v7644_v30, %v4922_v46  ;;  %v1703_v24 = vsel %vm1696_vm12, %v1670_v62, %v4996_v48 }
 0x17b   : > { %v1732_v17 = vsel %vm1729_vm5, %v1699_v5, %v5011_v35  ;;  %v1733_v1 = vsel %vm1729_vm5, %v1700_v21, %v5012_v23  ;;  %v5025_v0 = vpop.permute.xlu1 %5024  ;;  %v1764_v2 = vpack.c.bf16 %v1735_v7, %v1734_v27  ;;  %v4856_v23 = vunpack.i.l.bf16 %v9531_v36  ;;  %v9532_v35 = vld [vmem:[#allocation5_spill] sm:$0xff] }
 0x17c   : > { %v5020_v12 = vpop.permute.xlu0 %5019  ;;  %v1763_v38 = vpack.c.bf16 %v1733_v1, %v1732_v17  ;;  %v4862_v10 = vunpack.i.h.bf16 %v9532_v35  ;;  %v1671_v5 = vsel %vm1663_vm11, %v7636_v15, %v4917_v43  ;;  %v1672_v21 = vsel %vm1663_vm11, %v7640_v26, %v4921_v61 }
 0x17d   : > { %v5022_v60 = vunpack.i.h.bf16 %v5020_v12  ;;  %v5021_v50 = vunpack.i.l.bf16 %v5020_v12  ;;  %v1704_v18 = vsel %vm1696_vm12, %v1671_v5, %v4997_v9  ;;  %v4861_v15 = vunpack.i.l.bf16 %v9532_v35  ;;  %v9533_v35 = vld [vmem:[#allocation7_spill] sm:$0xff] }
 0x17e   : > { %4388 = vmatmul.mubr.msk.bf16.vlgmr.msra.gmra.mxu0 %vm1785_vm13, %v1763_v38  ;;  %v4927_v26 = vunpack.i.h.bf16 %v7362_v41  ;;  %v1705_v43 = vsel %vm1696_vm12, %v1672_v21, %v5001_v51  ;;  %v1706_v30 = vsel %vm1696_vm12, %v1673_v14, %v5002_v55  ;;  %v4926_v61 = vunpack.i.l.bf16 %v7362_v41 }
 0x17f   : > { %4391 = vmatprep.mubr.msk.bf16.mxu0 %vm1785_vm13, %v1764_v2  ;;  %v1737_v17 = vsel %vm1729_vm5, %v1704_v18, %v5022_v60  ;;  %v1736_v34 = vsel %vm1729_vm5, %v1703_v24, %v5021_v50  ;;  %v5035_v46 = vpop.permute.xlu1 %5034  ;;  %v4932_v58 = vunpack.i.h.bf16 %v7381_v11  ;;  %v4931_v9 = vunpack.i.l.bf16 %v7381_v11 }
 0x180   : > { %v5030_v37 = vpop.permute.xlu0 %5029  ;;  %v5027_v48 = vunpack.i.h.bf16 %v5025_v0  ;;  %v5026_v12 = vunpack.i.l.bf16 %v5025_v0  ;;  %v1765_v27 = vpack.c.bf16 %v1737_v17, %v1736_v34  ;;  %v1645_v7 = vsel %vm1630_vm10, %v7520_v42, %v4856_v23 }
 0x181   : > { %v5032_v40 = vunpack.i.h.bf16 %v5030_v37  ;;  %v5031_v1 = vunpack.i.l.bf16 %v5030_v37  ;;  %v5037_v60 = vunpack.i.h.bf16 %v5035_v46  ;;  %v5036_v50 = vunpack.i.l.bf16 %v5035_v46 }
 0x182   : > { %v1646_v41 = vsel %vm1630_vm10, %v7524_v29, %v4857_v31  ;;  %v1647_v55 = vsel %vm1630_vm10, %v7528_v28, %v4861_v15  ;;  %v1648_v0 = vsel %vm1630_vm10, %v7532_v8, %v4862_v10  ;;  %v4866_v62 = vunpack.i.l.bf16 %v9533_v35 }
 0x183   : > { %v1738_v52 = vsel %vm1729_vm5, %v1705_v43, %v5031_v1  ;;  %v1739_v6 = vsel %vm1729_vm5, %v1706_v30, %v5032_v40  ;;  %v5045_v11 = vpop.permute.xlu1 %5044  ;;  %v1674_v42 = vsel %vm1663_vm11, %v7650_v19, %v4926_v61  ;;  %v1675_v23 = vsel %vm1663_vm11, %v7654_v63, %v4927_v26 }
 0x184   : > { %v5040_v38 = vpop.permute.xlu0 %5039  ;;  %v1766_v36 = vpack.c.bf16 %v1739_v6, %v1738_v52  ;;  %v1676_v29 = vsel %vm1663_vm11, %v7658_v25, %v4931_v9  ;;  %v1677_v28 = vsel %vm1663_vm11, %v7662_v32, %v4932_v58  ;;  %v1707_v31 = vsel %vm1696_vm12, %v1674_v42, %v5026_v12 }
 0x185   : > { %v5042_v51 = vunpack.i.h.bf16 %v5040_v38  ;;  %v5041_v2 = vunpack.i.l.bf16 %v5040_v38  ;;  %v1708_v8 = vsel %vm1696_vm12, %v1675_v23, %v5027_v48  ;;  %v1740_v5 = vsel %vm1729_vm5, %v1707_v31, %v5036_v50  ;;  %v9534_v23 = vld [vmem:[#allocation13_spill] sm:$0xff] }
 0x186   : > { %4392 = vmatmul.mubr.msk.bf16.gmra.mxu0 %vm1785_vm13, %v1765_v27  ;;  %v1741_v19 = vsel %vm1729_vm5, %v1708_v8, %v5037_v60  ;;  %v4867_v63 = vunpack.i.h.bf16 %v9533_v35  ;;  %v4937_v24 = vunpack.i.h.bf16 %v7403_v22  ;;  %v4936_v37 = vunpack.i.l.bf16 %v7403_v22 }
 0x187   : > { %4395 = vmatprep.mubr.msk.bf16.mxu0 %vm1785_vm13, %v1766_v36  ;;  %v1709_v25 = vsel %vm1696_vm12, %v1676_v29, %v5041_v2  ;;  %v1710_v18 = vsel %vm1696_vm12, %v1677_v28, %v5042_v51  ;;  %v5055_v32 = vpop.permute.xlu1 %5054  ;;  %v4942_v17 = vunpack.i.h.bf16 %v7428_v20  ;;  %v4941_v1 = vunpack.i.l.bf16 %v7428_v20 }
 0x188   : > { %v5050_v10 = vpop.permute.xlu0 %5049  ;;  %v5047_v15 = vunpack.i.h.bf16 %v5045_v11  ;;  %v5046_v26 = vunpack.i.l.bf16 %v5045_v11  ;;  %v1767_v30 = vpack.c.bf16 %v1741_v19, %v1740_v5  ;;  %v1649_v46 = vsel %vm1630_vm10, %v7546_v49, %v4866_v62 }
 0x189   : > { %v5052_v21 = vunpack.i.h.bf16 %v5050_v10  ;;  %v5051_v14 = vunpack.i.l.bf16 %v5050_v10  ;;  %v5057_v61 = vunpack.i.h.bf16 %v5055_v32  ;;  %v5056_v58 = vunpack.i.l.bf16 %v5055_v32 }
 0x18a   : > { %v1650_v22 = vsel %vm1630_vm10, %v7550_v39, %v4867_v63  ;;  %v4872_v6 = vunpack.i.h.bf16 %v7117_v44  ;;  %v4871_v12 = vunpack.i.l.bf16 %v7117_v44  ;;  %v4877_v38 = vunpack.i.h.bf16 %v7139_v16 }
 0x18b   : > { %v1742_v34 = vsel %vm1729_vm5, %v1709_v25, %v5051_v14  ;;  %v1743_v40 = vsel %vm1729_vm5, %v1710_v18, %v5052_v21  ;;  %v5065_v20 = vpop.permute.xlu1 %5064  ;;  %v1678_v27 = vsel %vm1663_vm11, %v1645_v7, %v4936_v37  ;;  %v1679_v49 = vsel %vm1663_vm11, %v1646_v41, %v4937_v24 }
 0x18c   : > { %v5060_v43 = vpop.permute.xlu0 %5059  ;;  %v1768_v52 = vpack.c.bf16 %v1743_v40, %v1742_v34  ;;  %v1680_v60 = vsel %vm1663_vm11, %v1647_v55, %v4941_v1  ;;  %v1681_v39 = vsel %vm1663_vm11, %v1648_v0, %v4942_v17  ;;  %v1711_v50 = vsel %vm1696_vm12, %v1678_v27, %v5046_v26  ;;  %v9535_v34 = vld [vmem:[#allocation6_spill] sm:$0xff] }
 0x18d   : > { %v5062_v9 = vunpack.i.h.bf16 %v5060_v43  ;;  %v5061_v48 = vunpack.i.l.bf16 %v5060_v43  ;;  %v1712_v36 = vsel %vm1696_vm12, %v1679_v49, %v5047_v15  ;;  %v1744_v2 = vsel %vm1729_vm5, %v1711_v50, %v5056_v58 }
 0x18e   : > { %4396 = vmatmul.mubr.msk.bf16.gmra.mxu0 %vm1785_vm13, %v1767_v30  ;;  %v1745_v44 = vsel %vm1729_vm5, %v1712_v36, %v5057_v61  ;;  %v4876_v7 = vunpack.i.l.bf16 %v7139_v16  ;;  %v4947_v41 = vunpack.i.h.bf16 %v7450_v47  ;;  %v4946_v42 = vunpack.i.l.bf16 %v7450_v47 }
 0x18f   : > { %4399 = vmatprep.mubr.msk.bf16.mxu0 %vm1785_vm13, %v1768_v52  ;;  %v1713_v62 = vsel %vm1696_vm12, %v1680_v60, %v5061_v48  ;;  %v1714_v55 = vsel %vm1696_vm12, %v1681_v39, %v5062_v9  ;;  %v5075_v0 = vpop.permute.xlu1 %5074  ;;  %v4952_v29 = vunpack.i.h.bf16 %v9534_v23  ;;  %v4951_v8 = vunpack.i.l.bf16 %v9534_v23  ;;  %v9536_v52 = vld [vmem:[#allocation14_spill] sm:$0xff] }
 0x190   : > { %v5070_v51 = vpop.permute.xlu0 %5069  ;;  %v5067_v10 = vunpack.i.h.bf16 %v5065_v20  ;;  %v5066_v5 = vunpack.i.l.bf16 %v5065_v20  ;;  %v1769_v19 = vpack.c.bf16 %v1745_v44, %v1744_v2  ;;  %v1651_v21 = vsel %vm1630_vm10, %v7554_v13, %v4871_v12  ;;  %v9537_v12 = vld [vmem:[#allocation15_spill] sm:$0xff] }
 0x191   : > { %v5072_v11 = vunpack.i.h.bf16 %v5070_v51  ;;  %v5071_v35 = vunpack.i.l.bf16 %v5070_v51  ;;  %v5077_v14 = vunpack.i.h.bf16 %v5075_v0  ;;  %v5076_v63 = vunpack.i.l.bf16 %v5075_v0 }
 0x192   : > { %v1652_v47 = vsel %vm1630_vm10, %v7565_v53, %v4872_v6  ;;  %v1653_v25 = vsel %vm1630_vm10, %v7569_v3, %v4876_v7  ;;  %v1654_v17 = vsel %vm1630_vm10, %v7573_v59, %v4877_v38  ;;  %v4881_v40 = vunpack.i.l.bf16 %v9535_v34 }
 0x193   : > { %v1746_v28 = vsel %vm1729_vm5, %v1713_v62, %v5071_v35  ;;  %v1747_v31 = vsel %vm1729_vm5, %v1714_v55, %v5072_v11  ;;  %v5085_v37 = vpop.permute.xlu1 %5084  ;;  %v1682_v13 = vsel %vm1663_vm11, %v1649_v46, %v4946_v42  ;;  %v1683_v1 = vsel %vm1663_vm11, %v1650_v22, %v4947_v41  ;;  %v9538_v41 = vld [vmem:[#allocation8_spill] sm:$0xff] }
 0x194   : > { %v5080_v16 = vpop.permute.xlu0 %5079  ;;  %v1770_v24 = vpack.c.bf16 %v1747_v31, %v1746_v28  ;;  %v1684_v53 = vsel %vm1663_vm11, %v1651_v21, %v4951_v8  ;;  %v1685_v3 = vsel %vm1663_vm11, %v1652_v47, %v4952_v29  ;;  %v1715_v15 = vsel %vm1696_vm12, %v1682_v13, %v5066_v5  ;;  %v9539_v29 = vld [vmem:[#allocation9_spill] sm:$0xff]  ;;  %v9540_v47 = vld [vmem:[#allocation16_spill] sm:$0xff] }
 0x195   : > { %v5082_v18 = vunpack.i.h.bf16 %v5080_v16  ;;  %v5081_v32 = vunpack.i.l.bf16 %v5080_v16  ;;  %v1716_v26 = vsel %vm1696_vm12, %v1683_v1, %v5067_v10  ;;  %v1748_v30 = vsel %vm1729_vm5, %v1715_v15, %v5076_v63 }
 0x196   : > { %4400 = vmatmul.mubr.msk.bf16.gmra.mxu0 %vm1785_vm13, %v1769_v19  ;;  %v1749_v59 = vsel %vm1729_vm5, %v1716_v26, %v5077_v14  ;;  %v4882_v46 = vunpack.i.h.bf16 %v9535_v34  ;;  %v4957_v22 = vunpack.i.h.bf16 %v9536_v52  ;;  %v4956_v20 = vunpack.i.l.bf16 %v9536_v52 }
 0x197   : > { %4403 = vmatprep.mubr.msk.bf16.mxu0 %vm1785_vm13, %v1770_v24  ;;  %v1717_v6 = vsel %vm1696_vm12, %v1684_v53, %v5081_v32  ;;  %v1718_v9 = vsel %vm1696_vm12, %v1685_v3, %v5082_v18  ;;  %v5095_v48 = vpop.permute.xlu1 %5094  ;;  %v4962_v38 = vunpack.i.h.bf16 %v9537_v12  ;;  %v4961_v60 = vunpack.i.l.bf16 %v9537_v12 }
 0x198   : > { %v5090_v43 = vpop.permute.xlu0 %5089  ;;  %v5087_v39 = vunpack.i.h.bf16 %v5085_v37  ;;  %v5086_v50 = vunpack.i.l.bf16 %v5085_v37  ;;  %v1771_v51 = vpack.c.bf16 %v1749_v59, %v1748_v30  ;;  %v1655_v2 = vsel %vm1630_vm10, %v7577_v4, %v4881_v40 }
 0x199   : > { %v5092_v61 = vunpack.i.h.bf16 %v5090_v43  ;;  %v5091_v58 = vunpack.i.l.bf16 %v5090_v43  ;;  %v5097_v44 = vunpack.i.h.bf16 %v5095_v48  ;;  %v5096_v11 = vunpack.i.l.bf16 %v5095_v48  ;;  %v9542_v48 = vld [vmem:[#allocation20_spill] sm:$0xff] }
 0x19a   : > { %v1656_v7 = vsel %vm1630_vm10, %v7583_v45, %v4882_v46  ;;  %v4887_v62 = vunpack.i.h.bf16 %v9538_v41  ;;  %v4886_v23 = vunpack.i.l.bf16 %v9538_v41  ;;  %v4892_v28 = vunpack.i.h.bf16 %v9539_v29 }
 0x19b   : > { %v1750_v27 = vsel %vm1729_vm5, %v1717_v6, %v5091_v58  ;;  %v1751_v49 = vsel %vm1729_vm5, %v1718_v9, %v5092_v61  ;;  %v5105_v42 = vpop.permute.xlu1 %5104  ;;  %v1686_v31 = vsel %vm1663_vm11, %v1653_v25, %v4956_v20  ;;  %v1687_v4 = vsel %vm1663_vm11, %v1654_v17, %v4957_v22  ;;  %v9541_v6 = vld [vmem:[#allocation19_spill] sm:$0xff] }
 0x19c   : > { %v5100_v36 = vpop.permute.xlu0 %5099  ;;  %v1772_v35 = vpack.c.bf16 %v1751_v49, %v1750_v27  ;;  %v1688_v8 = vsel %vm1663_vm11, %v1655_v2, %v4961_v60  ;;  %v1689_v45 = vsel %vm1663_vm11, %v1656_v7, %v4962_v38  ;;  %v1719_v10 = vsel %vm1696_vm12, %v1686_v31, %v5086_v50  ;;  %v9543_v2 = vld [vmem:[#allocation10_spill] sm:$0xff] }
 0x19d   : > { %v5102_v55 = vunpack.i.h.bf16 %v5100_v36  ;;  %v5101_v0 = vunpack.i.l.bf16 %v5100_v36  ;;  %v1720_v5 = vsel %vm1696_vm12, %v1687_v4, %v5087_v39  ;;  %v1752_v19 = vsel %vm1729_vm5, %v1719_v10, %v5096_v11  ;;  %v9547_v10 = vld [vmem:[#allocation12_spill] sm:$0xff] }
 0x19e   : > { %4404 = vmatmul.mubr.msk.bf16.gmra.mxu0 %vm1785_vm13, %v1771_v51  ;;  %v1753_v21 = vsel %vm1729_vm5, %v1720_v5, %v5097_v44  ;;  %v4891_v24 = vunpack.i.l.bf16 %v9539_v29  ;;  %v4967_v25 = vunpack.i.h.bf16 %v9540_v47  ;;  %v4966_v17 = vunpack.i.l.bf16 %v9540_v47  ;;  %v9545_v29 = vld [vmem:[#allocation11_spill] sm:$0xff] }
 0x19f   : > { %4407 = vmatprep.mubr.msk.bf16.mxu0 %vm1785_vm13, %v1772_v35  ;;  %v1721_v18 = vsel %vm1696_vm12, %v1688_v8, %v5101_v0  ;;  %v1722_v32 = vsel %vm1696_vm12, %v1689_v45, %v5102_v55  ;;  %v5115_v37 = vpop.permute.xlu1 %5114  ;;  %v4972_v34 = vunpack.i.h.bf16 %v7557_v33  ;;  %v4971_v1 = vunpack.i.l.bf16 %v7557_v33 }
 0x1a0   : > { %v5110_v16 = vpop.permute.xlu0 %5109  ;;  %v5107_v53 = vunpack.i.h.bf16 %v5105_v42  ;;  %v5106_v3 = vunpack.i.l.bf16 %v5105_v42  ;;  %v1773_v26 = vpack.c.bf16 %v1753_v21, %v1752_v19  ;;  %v4816_v43 = vunpack.i.l.bf16 %v9525_v57 }
 0x1a1   : > { %v5112_v14 = vunpack.i.h.bf16 %v5110_v16  ;;  %v5111_v63 = vunpack.i.l.bf16 %v5110_v16  ;;  %v5117_v30 = vunpack.i.h.bf16 %v5115_v37  ;;  %v5116_v59 = vunpack.i.l.bf16 %v5115_v37 }
 0x1a2   : > { %v1657_v58 = vsel %vm1630_vm10, %v7587_v56, %v4886_v23  ;;  %v1658_v46 = vsel %vm1630_vm10, %v7591_v54, %v4887_v62  ;;  %v1659_v9 = vsel %vm1630_vm10, %v9541_v6, %v4891_v24  ;;  %v1660_v20 = vsel %vm1630_vm10, %v9542_v48, %v4892_v28  ;;  %v9544_v62 = vld [vmem:[#allocation18_spill] sm:$0xff]  ;;  %v7925_v6 = vld [vmem:[%s9279_s3] ss:$0 sm:$0xff] }
 0x1a3   : > { %v1754_v40 = vsel %vm1729_vm5, %v1721_v18, %v5111_v63  ;;  %v1755_v13 = vsel %vm1729_vm5, %v1722_v32, %v5112_v14  ;;  %v5125_v33 = vpop.permute.xlu1 %5124  ;;  %v1690_v12 = vsel %vm1663_vm11, %v1657_v58, %v4966_v17  ;;  %v1691_v38 = vsel %vm1663_vm11, %v1658_v46, %v4967_v25 }
 0x1a4   : > { %v5120_v15 = vpop.permute.xlu0 %5119  ;;  %v1774_v61 = vpack.c.bf16 %v1755_v13, %v1754_v40  ;;  %v1692_v56 = vsel %vm1663_vm11, %v1659_v9, %v4971_v1  ;;  %v1693_v54 = vsel %vm1663_vm11, %v1660_v20, %v4972_v34  ;;  %v1723_v27 = vsel %vm1696_vm12, %v1690_v12, %v5106_v3  ;;  %v2200_v34 = vld [vmem:[#allocation3] sm:$0xff]  ;;  %v2201_v40 = vld [vmem:[#allocation3 + $0x8] sm:$0xff] }
 0x1a5   : > { %v5122_v52 = vunpack.i.h.bf16 %v5120_v15  ;;  %v5121_v22 = vunpack.i.l.bf16 %v5120_v15  ;;  %v1724_v49 = vsel %vm1696_vm12, %v1691_v38, %v5107_v53  ;;  %v1756_v39 = vsel %vm1729_vm5, %v1723_v27, %v5116_v59 }
 0x1a6   : > { %4408 = vmatmul.mubr.msk.bf16.gmra.mxu0 %vm1785_vm13, %v1773_v26  ;;  %v1757_v50 = vsel %vm1729_vm5, %v1724_v49, %v5117_v30  ;;  %v4897_v44 = vunpack.i.h.bf16 %v9543_v2  ;;  %v4896_v11 = vunpack.i.l.bf16 %v9543_v2  ;;  %v4977_v55 = vunpack.i.h.bf16 %v9544_v62 }
 0x1a7   : > { %4411 = vmatprep.mubr.msk.bf16.mxu0 %vm1785_vm13, %v1774_v61  ;;  %v1725_v35 = vsel %vm1696_vm12, %v1692_v56, %v5121_v22  ;;  %v1726_v7 = vsel %vm1696_vm12, %v1693_v54, %v5122_v52  ;;  %v5135_v41 = vpop.permute.xlu1 %5134  ;;  %v4976_v0 = vunpack.i.l.bf16 %v9544_v62  ;;  %v1628_v28 = vsel %vm1597_vm9, %v9545_v29, %v4816_v43  ;;  %v7920_v22 = vld [vmem:[%s9278_s2] ss:$0 sm:$0xff] }
 0x1a8   : > { %v5130_v60 = vpop.permute.xlu0 %5129  ;;  %v5127_v31 = vunpack.i.h.bf16 %v5125_v33  ;;  %v5126_v4 = vunpack.i.l.bf16 %v5125_v33  ;;  %v1775_v8 = vpack.c.bf16 %v1757_v50, %v1756_v39  ;;  %v9546_v45 = vunpack.i.h.bf16 %v9525_v57 }
 0x1a9   : > { %v5132_v36 = vunpack.i.h.bf16 %v5130_v60  ;;  %v5131_v51 = vunpack.i.l.bf16 %v5130_v60  ;;  %v5137_v16 = vunpack.i.h.bf16 %v5135_v41  ;;  %v5136_v19 = vunpack.i.l.bf16 %v5135_v41 }
 0x1aa   : > { %v1629_v5 = vsel %vm1597_vm9, %v9547_v10, %v9546_v45  ;;  %v1661_v14 = vsel %vm1630_vm10, %v1628_v28, %v4896_v11  ;;  %v9548_v17 = vmov 0.0   ;;  %v2302_v1 = vrot.slane %v2200_v34, 1 }
 0x1ab   : > { %v1758_v42 = vsel %vm1729_vm5, %v1725_v35, %v5131_v51  ;;  %v1759_v23 = vsel %vm1729_vm5, %v1726_v7, %v5132_v36  ;;  %v1662_v63 = vsel %vm1630_vm10, %v1629_v5, %v4897_v44  ;;  %v1694_v24 = vsel %vm1663_vm11, %v1661_v14, %v4976_v0  ;;  %2121 = vst.msk [vmem:[#allocation3 + $0x40] sm:$0x3] %vm2114_vm14, %v9548_v17 }
 0x1ac   : > { %v1776_v21 = vpack.c.bf16 %v1759_v23, %v1758_v42  ;;  %v1695_v47 = vsel %vm1663_vm11, %v1662_v63, %v4977_v55  ;;  %v1727_v57 = vsel %vm1696_vm12, %v1694_v24, %v5126_v4  ;;  %2115 = vst.msk [vmem:[#allocation3 + $0x10] sm:$0x3] %vm2114_vm14, %v9548_v17  ;;  %2118 = vst.msk [vmem:[#allocation3 + $0x28] sm:$0x3] %vm2114_vm14, %v9548_v17  ;;  %v2303_v53 = vrot.slane %v2201_v40, 1 }
 0x1ad   : > { %v1728_v25 = vsel %vm1696_vm12, %v1695_v47, %v5127_v31  ;;  %v1760_v18 = vsel %vm1729_vm5, %v1727_v57, %v5136_v19  ;;  %2124 = vst.msk [vmem:[#allocation3 + $0x58] sm:$0x3] %vm2114_vm14, %v9548_v17  ;;  %2127 = vst.msk [vmem:[#allocation3 + $0x70] sm:$0x3] %vm2114_vm14, %v9548_v17  ;;  %v2478_v30 = vrot.slane %v2200_v34, 2  ;;  %v2479_v59 = vrot.slane %v2201_v40, 2 }
 0x1ae   : > { %4412 = vmatmul.mubr.msk.bf16.gmra.mxu0 %vm1785_vm13, %v1775_v8  ;;  %v1761_v32 = vsel %vm1729_vm5, %v1728_v25, %v5137_v16  ;;  %2130 = vst.msk [vmem:[#allocation3 + $0x88] sm:$0x3] %vm2114_vm14, %v9548_v17  ;;  %2133 = vst.msk [vmem:[#allocation3 + $0xa0] sm:$0x3] %vm2114_vm14, %v9548_v17  ;;  %v2304_v15 = vsel %vm543_vm2, %v2302_v1, %v2303_v53  ;;  %vm3321_vm0 = vcmask 195584   ;;  %vm3387_vm7 = vcmask 326656  }
 0x1af   : > { %4415 = vmatprep.mubr.msk.bf16.mxu0 %vm1785_vm13, %v1776_v21  ;;  %v1777_v37 = vpack.c.bf16 %v1761_v32, %v1760_v18  ;;  %2136 = vst.msk [vmem:[#allocation3 + $0xb8] sm:$0x3] %vm2114_vm14, %v9548_v17  ;;  %2139 = vst.msk [vmem:[#allocation3 + $0xd0] sm:$0x3] %vm2114_vm14, %v9548_v17  ;;  %v2480_v58 = vsel %vm720_vm3, %v2478_v30, %v2479_v59  ;;  %vm3420_vm8 = vcmask 392192   ;;  %vm3453_vm9 = vcmask 457728  }
 0x1b0   : > { %2142 = vst.msk [vmem:[#allocation3 + $0xe8] sm:$0x3] %vm2114_vm14, %v9548_v17  ;;  %2145 = vst.msk [vmem:[#allocation3 + $0x100] sm:$0x3] %vm2114_vm14, %v9548_v17  ;;  %vm3486_vm10 = vcmask 523264   ;;  %vm3571_vm11 = vcmask 588800  }
 0x1b1   : > { %2148 = vst.msk [vmem:[#allocation3 + $0x118] sm:$0x3] %vm2114_vm14, %v9548_v17  ;;  %2151 = vst.msk [vmem:[#allocation3 + $0x130] sm:$0x3] %vm2114_vm14, %v9548_v17  ;;  %vm4134_vm12 = vcmask 1040384  }
 0x1b2   : > { %2154 = vst.msk [vmem:[#allocation3 + $0x148] sm:$0x3] %vm2114_vm14, %v9548_v17  ;;  %2157 = vst.msk [vmem:[#allocation3 + $0x160] sm:$0x3] %vm2114_vm14, %v9548_v17 }
 0x1b3   : > { %2160 = vst.msk [vmem:[#allocation3 + $0x178] sm:$0x3] %vm2114_vm14, %v9548_v17  ;;  %2163 = vst.msk [vmem:[#allocation3 + $0x190] sm:$0x3] %vm2114_vm14, %v9548_v17  ;;  %v2202_v13 = vld [vmem:[#allocation3 + $0x10] sm:$0x3] }
 0x1b4   : > { %2166 = vst.msk [vmem:[#allocation3 + $0x1a8] sm:$0x3] %vm2114_vm14, %v9548_v17  ;;  %v2305_v3 = vrot.slane %v2202_v13, 1  ;;  %v2481_v61 = vrot.slane %v2202_v13, 2  ;;  %vm4152_vm14 = vcmask 1042432  }
 0x1b6   : > { %4416 = vmatmul.mubr.msk.bf16.gmra.mxu0 %vm1785_vm13, %v1777_v37  ;;  %v2306_v26 = vsel %vm543_vm2, %v2303_v53, %v2305_v3  ;;  %v2482_v46 = vsel %vm720_vm3, %v2479_v59, %v2481_v61  ;;  %vm4143_vm13 = vcmask 1041408  }
 0x1b7   : > { %v5138_v43 = vpack.i.bf16 %v2306_v26, %v2304_v15  ;;  %v5143_v52 = vpack.i.bf16 %v2482_v46, %v2480_v58 }
 0x1b9   : > { %5139 = vrot.lane.b32.xlu0 %v5138_v43, %s5858_s21 }
 0x1bd   : > { %5144 = vrot.lane.b32.xlu0 %v5143_v52, %s5859_s22 }
 0x23e   : > { %v4389_v33 = vpop.f32.mrf.mxu0 }
 0x23f   : > { %v2011_v9 = vmul.f32 %v4389_v33, %v7920_v22 }
 0x240   : > { %v1875_v48 = vpop.f32.mrf.mxu0 }
 0x241   : > { %v2050_v20 = vadd.f32 %v7925_v6, %v2011_v9  ;;  %v2009_v12 = vmul.f32 %v7920_v22, %v1875_v48 }
 0x242   : > { %v4390_v38 = vpop.f32.mrf.mxu0 }
 0x243   : > { %v2082_v56 = vmax.f32 %v2050_v20, 0.0  ;;  %v2048_v54 = vadd.f32 %v7925_v6, %v2009_v12  ;;  %v2012_v27 = vmul.f32 %v4390_v38, %v7920_v22 }
 0x244   : > { %v1878_v49 = vpop.f32.mrf.mxu0 }
 0x245   : > { %2170 = vst.msk [vmem:[#allocation3 + $0x31] sm:$0xff] %vm1729_vm5, %v2082_v56  ;;  %v2080_v60 = vmax.f32 %v2048_v54, 0.0  ;;  %v2051_v39 = vadd.f32 %v7925_v6, %v2012_v27  ;;  %v2010_v50 = vmul.f32 %v7920_v22, %v1878_v49 }
 0x246   : > { %v4393_v36 = vpop.f32.mrf.mxu0 }
 0x247   : > { %2168 = vst.msk [vmem:[#allocation3 + $0x19] sm:$0xff] %vm1729_vm5, %v2080_v60  ;;  %v2083_v51 = vmax.f32 %v2051_v39, 0.0  ;;  %v2049_v2 = vadd.f32 %v7925_v6, %v2010_v50  ;;  %v2015_v44 = vmul.f32 %v4393_v36, %v7920_v22 }
 0x248   : > { %v1891_v11 = vpop.f32.mrf.mxu0 }
 0x249   : > { %2171 = vst.msk [vmem:[#allocation3 + $0x39] sm:$0xff] %vm1729_vm5, %v2083_v51  ;;  %v2081_v35 = vmax.f32 %v2049_v2, 0.0  ;;  %v2054_v7 = vadd.f32 %v7925_v6, %v2015_v44  ;;  %v2013_v41 = vmul.f32 %v7920_v22, %v1891_v11 }
 0x24a   : > { %v4394_v62 = vpop.f32.mrf.mxu0 }
 0x24b   : > { %2169 = vst.msk [vmem:[#allocation3 + $0x21] sm:$0xff] %vm1729_vm5, %v2081_v35  ;;  %v2086_v55 = vmax.f32 %v2054_v7, 0.0  ;;  %v2052_v0 = vadd.f32 %v7925_v6, %v2013_v41  ;;  %v2016_v42 = vmul.f32 %v4394_v62, %v7920_v22 }
 0x24c   : > { %v1894_v23 = vpop.f32.mrf.mxu0  ;;  %v2206_v29 = vld [vmem:[#allocation3 + $0x30] sm:$0xff] }
 0x24d   : > { %2174 = vst.msk [vmem:[#allocation3 + $0x61] sm:$0xff] %vm1729_vm5, %v2086_v55  ;;  %v2084_v28 = vmax.f32 %v2052_v0, 0.0  ;;  %v2055_v31 = vadd.f32 %v7925_v6, %v2016_v42  ;;  %v2014_v4 = vmul.f32 %v7920_v22, %v1894_v23  ;;  %v2312_v19 = vrot.slane %v2206_v29, 1 }
 0x24e   : > { %v4397_v8 = vpop.f32.mrf.mxu0  ;;  %v2203_v45 = vld [vmem:[#allocation3 + $0x18] sm:$0xff]  ;;  %v2488_v57 = vrot.slane %v2206_v29, 2 }
 0x24f   : > { %2172 = vst.msk [vmem:[#allocation3 + $0x49] sm:$0xff] %vm1729_vm5, %v2084_v28  ;;  %v2087_v10 = vmax.f32 %v2055_v31, 0.0  ;;  %v2053_v5 = vadd.f32 %v7925_v6, %v2014_v4  ;;  %v2019_v16 = vmul.f32 %v4397_v8, %v7920_v22  ;;  %v2307_v63 = vrot.slane %v2203_v45, 1 }
 0x250   : > { %v1907_v21 = vpop.f32.mrf.mxu0  ;;  %v2207_v14 = vld [vmem:[#allocation3 + $0x38] sm:$0xff]  ;;  %v2208_v24 = vld [vmem:[#allocation3 + $0x40] sm:$0x3]  ;;  %v2483_v47 = vrot.slane %v2203_v45, 2 }
 0x251   : > { %2175 = vst.msk [vmem:[#allocation3 + $0x69] sm:$0xff] %vm1729_vm5, %v2087_v10  ;;  %v2085_v25 = vmax.f32 %v2053_v5, 0.0  ;;  %v2058_v18 = vadd.f32 %v7925_v6, %v2019_v16  ;;  %v2017_v32 = vmul.f32 %v7920_v22, %v1907_v21  ;;  %v5148_v37 = vpack.i.bf16 %v2207_v14, %v2206_v29 }
 0x252   : > { %v4398_v17 = vpop.f32.mrf.mxu0  ;;  %v2204_v34 = vld [vmem:[#allocation3 + $0x20] sm:$0xff]  ;;  %v2205_v40 = vld [vmem:[#allocation3 + $0x28] sm:$0x3]  ;;  %v2313_v13 = vrot.slane %v2207_v14, 1  ;;  %v2315_v1 = vrot.slane %v2208_v24, 1  ;;  %v2489_v53 = vrot.slane %v2207_v14, 2 }
 0x253   : > { %2173 = vst.msk [vmem:[#allocation3 + $0x51] sm:$0xff] %vm1729_vm5, %v2085_v25  ;;  %v2090_v3 = vmax.f32 %v2058_v18, 0.0  ;;  %v2056_v15 = vadd.f32 %v7925_v6, %v2017_v32  ;;  %v2020_v26 = vmul.f32 %v4398_v17, %v7920_v22  ;;  %5149 = vrot.lane.b32.xlu1 %v5148_v37, %s5860_s29  ;;  %v5153_v43 = vpack.i.bf16 %v2204_v34, %v2203_v45 }
 0x254   : > { %v1910_v30 = vpop.f32.mrf.mxu0  ;;  %v2308_v59 = vrot.slane %v2204_v34, 1  ;;  %v2310_v61 = vrot.slane %v2205_v40, 1  ;;  %v2314_v58 = vsel %vm543_vm2, %v2312_v19, %v2313_v13  ;;  %v2316_v46 = vsel %vm543_vm2, %v2313_v13, %v2315_v1  ;;  %v2212_v4 = vld [vmem:[#allocation3 + $0x60] sm:$0xff] }
 0x255   : > { %2178 = vst.msk [vmem:[#allocation3 + $0x91] sm:$0xff] %vm1729_vm5, %v2090_v3  ;;  %v2088_v52 = vmax.f32 %v2056_v15, 0.0  ;;  %v2059_v33 = vadd.f32 %v7925_v6, %v2020_v26  ;;  %v2018_v9 = vmul.f32 %v7920_v22, %v1910_v30  ;;  %5154 = vrot.lane.b32.xlu0 %v5153_v43, %s5860_s29  ;;  %v7963_v48 = vpack.i.bf16 %v2316_v46, %v2314_v58 }
 0x256   : > { %v4401_v20 = vpop.f32.mrf.mxu0  ;;  %v2309_v12 = vsel %vm543_vm2, %v2307_v63, %v2308_v59  ;;  %v2311_v38 = vsel %vm543_vm2, %v2308_v59, %v2310_v61  ;;  %v2484_v56 = vrot.slane %v2204_v34, 2  ;;  %v2486_v54 = vrot.slane %v2205_v40, 2 }
 0x257   : > { %2176 = vst.msk [vmem:[#allocation3 + $0x79] sm:$0xff] %vm1729_vm5, %v2088_v52  ;;  %v2091_v27 = vmax.f32 %v2059_v33, 0.0  ;;  %v2057_v49 = vadd.f32 %v7925_v6, %v2018_v9  ;;  %v2023_v60 = vmul.f32 %v4401_v20, %v7920_v22  ;;  %v7970_v39 = vpack.i.bf16 %v2311_v38, %v2309_v12 }
 0x258   : > { %v1923_v50 = vpop.f32.mrf.mxu0  ;;  %v2485_v36 = vsel %vm720_vm3, %v2483_v47, %v2484_v56  ;;  %v2487_v51 = vsel %vm720_vm3, %v2484_v56, %v2486_v54  ;;  %v2490_v2 = vsel %vm720_vm3, %v2488_v57, %v2489_v53  ;;  %v2491_v44 = vrot.slane %v2208_v24, 2  ;;  %v2213_v41 = vld [vmem:[#allocation3 + $0x68] sm:$0xff]  ;;  %v2214_v62 = vld [vmem:[#allocation3 + $0x70] sm:$0x3] }
 0x259   : > { %2179 = vst.msk [vmem:[#allocation3 + $0x99] sm:$0xff] %vm1729_vm5, %v2091_v27  ;;  %v2089_v11 = vmax.f32 %v2057_v49, 0.0  ;;  %v2062_v35 = vadd.f32 %v7925_v6, %v2023_v60  ;;  %5169 = vrot.lane.b32.xlu1 %v7970_v39, %s5858_s21  ;;  %v2021_v7 = vmul.f32 %v7920_v22, %v1923_v50  ;;  %5159 = vrot.lane.b32.xlu0 %v7963_v48, %s5858_s21  ;;  %v2323_v45 = vrot.slane %v2213_v41, 1 }
 0x25a   : > { %v4402_v55 = vpop.f32.mrf.mxu0  ;;  %v7982_v0 = vpack.i.bf16 %v2487_v51, %v2485_v36  ;;  %v2492_v42 = vsel %vm720_vm3, %v2489_v53, %v2491_v44  ;;  %v2325_v10 = vrot.slane %v2214_v62, 1  ;;  %v5178_v14 = vpack.i.bf16 %v2213_v41, %v2212_v4  ;;  %v8000_v25 = vld [vmem:[#allocation3 + $0x50] sm:$0xff]  ;;  %v8009_v53 = vld [vmem:[#allocation3 + $0x48] sm:$0xff]  ;;  %v2211_v3 = vld [vmem:[#allocation3 + $0x58] sm:$0x3] }
 0x25b   : > { %2177 = vst.msk [vmem:[#allocation3 + $0x81] sm:$0xff] %vm1729_vm5, %v2089_v11  ;;  %v2094_v23 = vmax.f32 %v2062_v35, 0.0  ;;  %v2060_v29 = vadd.f32 %v7925_v6, %v2021_v7  ;;  %v2024_v28 = vmul.f32 %v4402_v55, %v7920_v22  ;;  %v7988_v31 = vpack.i.bf16 %v2492_v42, %v2490_v2 }
 0x25c   : > { %v1926_v8 = vpop.f32.mrf.mxu0  ;;  %v2322_v63 = vrot.slane %v2212_v4, 1  ;;  %v2326_v37 = vsel %vm543_vm2, %v2323_v45, %v2325_v10  ;;  %v2499_v17 = vrot.slane %v2213_v41, 2  ;;  %v2501_v34 = vrot.slane %v2214_v62, 2 }
 0x25d   : > { %2182 = vst.msk [vmem:[#allocation3 + $0xc1] sm:$0xff] %vm1729_vm5, %v2094_v23  ;;  %v2092_v5 = vmax.f32 %v2060_v29, 0.0  ;;  %v2063_v16 = vadd.f32 %v7925_v6, %v2024_v28  ;;  %5174 = vrot.lane.b32.xlu1 %v7982_v0, %s5859_s22  ;;  %v2022_v19 = vmul.f32 %v7920_v22, %v1926_v8  ;;  %5164 = vrot.lane.b32.xlu0 %v7988_v31, %s5859_s22  ;;  %v2498_v43 = vrot.slane %v2212_v4, 2 }
 0x25e   : > { %v4405_v21 = vpop.f32.mrf.mxu0  ;;  %v2324_v32 = vsel %vm543_vm2, %v2322_v63, %v2323_v45  ;;  %v5188_v26 = vpack.i.bf16 %v8000_v25, %v8009_v53  ;;  %v2502_v33 = vsel %vm720_vm3, %v2499_v17, %v2501_v34  ;;  %v2318_v9 = vrot.slane %v8000_v25, 1  ;;  %v2218_v34 = vld [vmem:[#allocation3 + $0x90] sm:$0xff] }
 0x25f   : > { %2180 = vst.msk [vmem:[#allocation3 + $0xa9] sm:$0xff] %vm1729_vm5, %v2092_v5  ;;  %v2095_v24 = vmax.f32 %v2063_v16, 0.0  ;;  %v2061_v47 = vadd.f32 %v7925_v6, %v2022_v19  ;;  %v2027_v57 = vmul.f32 %v4405_v21, %v7920_v22  ;;  %v5203_v58 = vpack.i.bf16 %v2326_v37, %v2324_v32 }
 0x260   : > { %v1939_v18 = vpop.f32.mrf.mxu0  ;;  %v2500_v52 = vsel %vm720_vm3, %v2498_v43, %v2499_v17  ;;  %v2320_v20 = vrot.slane %v2211_v3, 1  ;;  %v2317_v27 = vrot.slane %v8009_v53, 1  ;;  %v2494_v11 = vrot.slane %v8000_v25, 2 }
 0x261   : > { %2183 = vst.msk [vmem:[#allocation3 + $0xc9] sm:$0xff] %vm1729_vm5, %v2095_v24  ;;  %v2093_v40 = vmax.f32 %v2061_v47, 0.0  ;;  %v2066_v13 = vadd.f32 %v7925_v6, %v2027_v57  ;;  %5179 = vrot.lane.b32.xlu1 %v5178_v14, %s5860_s29  ;;  %v2025_v1 = vmul.f32 %v7920_v22, %v1939_v18  ;;  %5184 = vrot.lane.b32.xlu0 %v5178_v14, %s5861_s9  ;;  %v2496_v35 = vrot.slane %v2211_v3, 2  ;;  %v2219_v57 = vld [vmem:[#allocation3 + $0x98] sm:$0xff] }
 0x262   : > { %v4406_v15 = vpop.f32.mrf.mxu0  ;;  %v5208_v36 = vpack.i.bf16 %v2502_v33, %v2500_v52  ;;  %v2319_v2 = vsel %vm543_vm2, %v2317_v27, %v2318_v9  ;;  %v2321_v44 = vsel %vm543_vm2, %v2318_v9, %v2320_v20  ;;  %v2493_v42 = vrot.slane %v8009_v53, 2  ;;  %v8066_v43 = vld [vmem:[#allocation3 + $0x80] sm:$0xff]  ;;  %v8079_v9 = vld [vmem:[#allocation3 + $0x78] sm:$0xff] }
 0x263   : > { %2181 = vst.msk [vmem:[#allocation3 + $0xb1] sm:$0xff] %vm1729_vm5, %v2093_v40  ;;  %v2098_v30 = vmax.f32 %v2066_v13, 0.0  ;;  %v2064_v59 = vadd.f32 %v7925_v6, %v2025_v1  ;;  %v2028_v61 = vmul.f32 %v4406_v15, %v7920_v22  ;;  %v8040_v4 = vpack.i.bf16 %v2321_v44, %v2319_v2  ;;  %v2220_v40 = vld [vmem:[#allocation3 + $0xa0] sm:$0x3] }
 0x264   : > { %v1942_v46 = vpop.f32.mrf.mxu0  ;;  %v2495_v45 = vsel %vm720_vm3, %v2493_v42, %v2494_v11  ;;  %v2497_v10 = vsel %vm720_vm3, %v2494_v11, %v2496_v35  ;;  %v8061_v1 = vpack.i.bf16 %v2219_v57, %v2218_v34  ;;  %v2217_v35 = vld [vmem:[#allocation3 + $0x88] sm:$0x3] }
 0x265   : > { %2186 = vst.msk [vmem:[#allocation3 + $0xf1] sm:$0xff] %vm1729_vm5, %v2098_v30  ;;  %v2096_v12 = vmax.f32 %v2064_v59, 0.0  ;;  %v2067_v38 = vadd.f32 %v7925_v6, %v2028_v61  ;;  %5204 = vrot.lane.b32.xlu1 %v5203_v58, %s5862_s10  ;;  %v2026_v56 = vmul.f32 %v7920_v22, %v1942_v46  ;;  %5189 = vrot.lane.b32.xlu0 %v5188_v26, %s5860_s29  ;;  %v2333_v59 = vrot.slane %v2219_v57, 1 }
 0x266   : > { %v4409_v54 = vpop.f32.mrf.mxu0  ;;  %v8053_v47 = vpack.i.bf16 %v2497_v10, %v2495_v45  ;;  %v2335_v61 = vrot.slane %v2220_v40, 1  ;;  %v2328_v45 = vrot.slane %v8066_v43, 1  ;;  %v2330_v10 = vrot.slane %v2217_v35, 1 }
 0x267   : > { %2184 = vst.msk [vmem:[#allocation3 + $0xd9] sm:$0xff] %vm1729_vm5, %v2096_v12  ;;  %v2099_v49 = vmax.f32 %v2067_v38, 0.0  ;;  %v2065_v60 = vadd.f32 %v7925_v6, %v2026_v56  ;;  %v2031_v50 = vmul.f32 %v4409_v54, %v7920_v22  ;;  %v5258_v12 = vpack.i.bf16 %v8066_v43, %v8079_v9 }
 0x268   : > { %v1955_v51 = vpop.f32.mrf.mxu0  ;;  %9549 = vst [vmem:[#allocation21_spill] sm:$0xff] %v8053_v47  ;;  %v2332_v38 = vrot.slane %v2218_v34, 1 }
 0x269   : > { %2187 = vst.msk [vmem:[#allocation3 + $0xf9] sm:$0xff] %vm1729_vm5, %v2099_v49  ;;  %v2097_v7 = vmax.f32 %v2065_v60, 0.0  ;;  %v2070_v41 = vadd.f32 %v7925_v6, %v2031_v50  ;;  %5209 = vrot.lane.b32.xlu1 %v5208_v36, %s5863_s11  ;;  %v2029_v62 = vmul.f32 %v7920_v22, %v1955_v51  ;;  %5194 = vrot.lane.b32.xlu0 %v5203_v58, %s5858_s21  ;;  %v2511_v51 = vrot.slane %v2220_v40, 2 }
 0x26a   : > { %v4410_v55 = vpop.f32.mrf.mxu0  ;;  %v2334_v60 = vsel %vm543_vm2, %v2332_v38, %v2333_v59  ;;  %v2336_v50 = vsel %vm543_vm2, %v2333_v59, %v2335_v61  ;;  %v2221_v61 = vld [vmem:[#allocation3 + $0xa8] sm:$0xff] }
 0x26b   : > { %2185 = vst.msk [vmem:[#allocation3 + $0xe1] sm:$0xff] %vm1729_vm5, %v2097_v7  ;;  %v2102_v23 = vmax.f32 %v2070_v41, 0.0  ;;  %v2068_v29 = vadd.f32 %v7925_v6, %v2029_v62  ;;  %v2032_v28 = vmul.f32 %v4410_v55, %v7920_v22  ;;  %v2508_v41 = vrot.slane %v2218_v34, 2 }
 0x26c   : > { %v1958_v8 = vpop.f32.mrf.mxu0 }
 0x26d   : > { %2190 = vst.msk [vmem:[#allocation3 + $0x121] sm:$0xff] %vm1729_vm5, %v2102_v23  ;;  %v2100_v5 = vmax.f32 %v2068_v29, 0.0  ;;  %v2071_v16 = vadd.f32 %v7925_v6, %v2032_v28  ;;  %5224 = vrot.lane.b32.xlu1 %v8040_v4, %s5858_s21  ;;  %v2030_v19 = vmul.f32 %v7920_v22, %v1958_v8  ;;  %5199 = vrot.lane.b32.xlu0 %v5208_v36, %s5859_s22 }
 0x26e   : > { %v4413_v21 = vpop.f32.mrf.mxu0  ;;  %v5273_v23 = vpack.i.bf16 %v2336_v50, %v2334_v60  ;;  %v5780_v60 = vld [vmem:[%s9280_s4 + $0x18] sm:$0xff]  }
 0x26f   : > { %2188 = vst.msk [vmem:[#allocation3 + $0x109] sm:$0xff] %vm1729_vm5, %v2100_v5  ;;  %v2103_v14 = vmax.f32 %v2071_v16, 0.0  ;;  %v2069_v63 = vadd.f32 %v7925_v6, %v2030_v19  ;;  %v2035_v24 = vmul.f32 %v4413_v21, %v7920_v22  ;;  %v2327_v21 = vrot.slane %v8079_v9, 1 }
 0x270   : > { %v1971_v18 = vpop.f32.mrf.mxu0 }
 0x271   : > { %2191 = vst.msk [vmem:[#allocation3 + $0x129] sm:$0xff] %vm1729_vm5, %v2103_v14  ;;  %v2101_v32 = vmax.f32 %v2069_v63, 0.0  ;;  %v2074_v37 = vadd.f32 %v7925_v6, %v2035_v24  ;;  %5229 = vrot.lane.b32.xlu1 %v8053_v47, %s5859_s22  ;;  %v2033_v17 = vmul.f32 %v7920_v22, %v1971_v18  ;;  %5214 = vrot.lane.b32.xlu0 %v5203_v58, %s5864_s12  ;;  %v8071_v58 = vld [vmem:[%s9280_s4 + $0x20] ss:$0 sps:$4 sm:$0xff]  }
 0x272   : > { %v4414_v13 = vpop.f32.mrf.mxu0  ;;  %4472 = vmatprep.subr.msk.bf16.mxu1 %vm1834_vm4, %v8071_v58  ;;  %4471 = vmatprep.subr.msk.bf16.mxu0 %vm1834_vm4, %v8071_v58  ;;  %v2331_v18 = vsel %vm543_vm2, %v2328_v45, %v2330_v10 }
 0x273   : > { %2189 = vst.msk [vmem:[#allocation3 + $0x111] sm:$0xff] %vm1729_vm5, %v2101_v32  ;;  %v2106_v3 = vmax.f32 %v2074_v37, 0.0  ;;  %v2072_v15 = vadd.f32 %v7925_v6, %v2033_v17  ;;  %v2036_v26 = vmul.f32 %v4414_v13, %v7920_v22  ;;  %v2504_v32 = vrot.slane %v8066_v43, 2  ;;  %v2222_v43 = vld [vmem:[#allocation3 + $0xb0] sm:$0xff] }
 0x274   : > { %v1974_v30 = vpop.f32.mrf.mxu0  ;;  %v2506_v37 = vrot.slane %v2217_v35, 2  ;;  %v2503_v17 = vrot.slane %v8079_v9, 2 }
 0x275   : > { %2194 = vst.msk [vmem:[#allocation3 + $0x151] sm:$0xff] %vm1729_vm5, %v2106_v3  ;;  %v2104_v46 = vmax.f32 %v2072_v15, 0.0  ;;  %v2075_v52 = vadd.f32 %v7925_v6, %v2036_v26  ;;  %5244 = vrot.lane.b32.xlu1 %v8061_v1, %s5860_s29  ;;  %v2034_v33 = vmul.f32 %v7920_v22, %v1974_v30  ;;  %5219 = vrot.lane.b32.xlu0 %v5208_v36, %s5865_s15  ;;  %v2509_v36 = vrot.slane %v2219_v57, 2  ;;  %v2226_v3 = vld [vmem:[#allocation3 + $0xd0] sm:$0x3]  ;;  %v8134_v15 = vld [vmem:[#allocation3 + $0xc0] sm:$0xff] }
 0x276   : > { %v4417_v20 = vpop.f32.mrf.mxu0  ;;  %v2329_v57 = vsel %vm543_vm2, %v2327_v21, %v2328_v45  ;;  %v2505_v34 = vsel %vm720_vm3, %v2503_v17, %v2504_v32  ;;  %v2507_v40 = vsel %vm720_vm3, %v2504_v32, %v2506_v37  ;;  %v2345_v59 = vrot.slane %v2226_v3, 1 }
 0x277   : > { %2192 = vst.msk [vmem:[#allocation3 + $0x139] sm:$0xff] %vm1729_vm5, %v2104_v46  ;;  %v2107_v56 = vmax.f32 %v2075_v52, 0.0  ;;  %v2073_v54 = vadd.f32 %v7925_v6, %v2034_v33  ;;  %v2039_v27 = vmul.f32 %v4417_v20, %v7920_v22  ;;  %v2510_v28 = vsel %vm720_vm3, %v2508_v41, %v2509_v36 }
 0x278   : > { %v1987_v49 = vpop.f32.mrf.mxu0  ;;  %v2512_v8 = vsel %vm720_vm3, %v2509_v36, %v2511_v51  ;;  %v5298_v13 = vpack.i.bf16 %v2507_v40, %v2505_v34  ;;  %v2342_v46 = vrot.slane %v8134_v15, 1  ;;  %v5338_v52 = vpack.i.bf16 %v2222_v43, %v2221_v61  ;;  %v2231_v34 = vld [vmem:[#allocation3 + $0xf8] sm:$0xff]  ;;  %v2228_v40 = vld [vmem:[#allocation3 + $0xe0] sm:$0xff] }
 0x279   : > { %2195 = vst.msk [vmem:[#allocation3 + $0x159] sm:$0xff] %vm1729_vm5, %v2107_v56  ;;  %v2105_v2 = vmax.f32 %v2073_v54, 0.0  ;;  %v2078_v44 = vadd.f32 %v7925_v6, %v2039_v27  ;;  %5259 = vrot.lane.b32.xlu1 %v5258_v12, %s5861_s9  ;;  %v2037_v11 = vmul.f32 %v7920_v22, %v1987_v49  ;;  %5234 = vrot.lane.b32.xlu0 %v8040_v4, %s5862_s10  ;;  %v2521_v38 = vrot.slane %v2226_v3, 2  ;;  %v2223_v56 = vld [vmem:[#allocation3 + $0xb8] sm:$0x3]  ;;  %v2230_v3 = vld [vmem:[#allocation3 + $0xf0] sm:$0xff] }
 0x27a   : > { %v4418_v7 = vpop.f32.mrf.mxu0  ;;  %v5278_v24 = vpack.i.bf16 %v2512_v8, %v2510_v28  ;;  %v2518_v54 = vrot.slane %v8134_v15, 2  ;;  %v3621_v36 = vsel %vm1834_vm4, %v8071_v58, 0  ;;  %v5781_v58 = vld [vmem:[%s9280_s4 + $0x10] sm:$0xff]   ;;  %v2514_v45 = vrot.slane %v2222_v43, 2 }
 0x27b   : > { %2193 = vst.msk [vmem:[#allocation3 + $0x141] sm:$0xff] %vm1729_vm5, %v2105_v2  ;;  %v2110_v62 = vmax.f32 %v2078_v44, 0.0  ;;  %v2076_v55 = vadd.f32 %v7925_v6, %v2037_v11  ;;  %v2040_v42 = vmul.f32 %v4418_v7, %v7920_v22  ;;  %v2338_v44 = vrot.slane %v2222_v43, 1  ;;  %4466 = vmatpush3.bf16.msra.mxu1 %v3621_v36  ;;  %4420 = vmatpush3.bf16.msra.mxu0 %v3621_v36  ;;  %v2227_v43 = vld [vmem:[#allocation3 + $0xd8] sm:$0xff] }
 0x27c   : > { %v1990_v29 = vpop.f32.mrf.mxu0  ;;  %v2340_v11 = vrot.slane %v2223_v56, 1  ;;  %4462 = vmatprep.subr.bf16.mxu1 %v5780_v60  ;;  %v2516_v10 = vrot.slane %v2223_v56, 2  ;;  %v2513_v21 = vrot.slane %v2221_v61, 2  ;;  %4421 = vmatprep.subr.bf16.mxu0 %v5780_v60  ;;  %v2523_v56 = vrot.slane %v2227_v43, 2 }
 0x27d   : > { %2198 = vst.msk [vmem:[#allocation3 + $0x181] sm:$0xff] %vm1729_vm5, %v2110_v62  ;;  %v2108_v5 = vmax.f32 %v2076_v55, 0.0  ;;  %v2079_v16 = vadd.f32 %v7925_v6, %v2040_v42  ;;  %5274 = vrot.lane.b32.xlu1 %v5273_v23, %s5862_s10  ;;  %v2038_v19 = vmul.f32 %v7920_v22, %v1990_v29  ;;  %5239 = vrot.lane.b32.xlu0 %v8053_v47, %s5863_s11  ;;  %v2337_v62 = vrot.slane %v2221_v61, 1 }
 0x27e   : > { %v2341_v8 = vsel %vm543_vm2, %v2338_v44, %v2340_v11  ;;  %v2517_v32 = vsel %vm720_vm3, %v2514_v45, %v2516_v10  ;;  %v2347_v61 = vrot.slane %v2227_v43, 1  ;;  %v2353_v36 = vrot.slane %v2231_v34, 1 }
 0x27f   : > { %2196 = vst.msk [vmem:[#allocation3 + $0x169] sm:$0xff] %vm1729_vm5, %v2108_v5  ;;  %v2111_v14 = vmax.f32 %v2079_v16, 0.0  ;;  %v2077_v63 = vadd.f32 %v7925_v6, %v2038_v19  ;;  %v5293_v6 = vpack.i.bf16 %v2331_v18, %v2329_v57  ;;  %v2339_v28 = vsel %vm543_vm2, %v2337_v62, %v2338_v44  ;;  %4467 = vmatpush3.bf16.msra.mxu1 %v5780_v60 }
 0x280   : > { %4463 = vmatprep.subr.bf16.mxu1 %v5781_v58  ;;  %v2515_v18 = vsel %vm720_vm3, %v2513_v21, %v2514_v45  ;;  %4422 = vmatpush3.bf16.msra.mxu0 %v5780_v60  ;;  %v2235_v45 = vld [vmem:[#allocation3 + $0x118] sm:$0x3] }
 0x281   : > { %2199 = vst.msk [vmem:[#allocation3 + $0x189] sm:$0xff] %vm1729_vm5, %v2111_v14  ;;  %v2109_v22 = vmax.f32 %v2077_v63, 0.0  ;;  %5279 = vrot.lane.b32.xlu1 %v5278_v24, %s5863_s11  ;;  %5249 = vrot.lane.b32.xlu0 %v8061_v1, %s5861_s9  ;;  %v8130_v1 = vld [vmem:[#allocation3 + $0xc8] sm:$0xff]  ;;  %v5782_v14 = vld [vmem:[%s9280_s4 + $0x8] sm:$0xff]   ;;  %v5373_v63 = vpack.i.bf16 %v2341_v8, %v2339_v28  ;;  %v2234_v8 = vld [vmem:[#allocation3 + $0x110] sm:$0xff] }
 0x282   : > { %v5323_v26 = vpack.i.bf16 %v8130_v1, %v8134_v15  ;;  %v2343_v30 = vrot.slane %v8130_v1, 1  ;;  %4423 = vmatprep.subr.bf16.mxu0 %v5781_v58  ;;  %v8227_v28 = vld [vmem:[#allocation3 + $0x128] sm:$0xff] }
 0x283   : > { %2197 = vst.msk [vmem:[#allocation3 + $0x171] sm:$0xff] %vm1729_vm5, %v2109_v22  ;;  %4468 = vmatpush3.bf16.msra.mxu1 %v5781_v58  ;;  %v5783_v22 = vld [vmem:[%s9280_s4] sm:$0xff]  }
 0x284   : > { %v2344_v33 = vsel %vm543_vm2, %v2342_v46, %v2343_v30  ;;  %v2346_v20 = vsel %vm543_vm2, %v2343_v30, %v2345_v59  ;;  %4464 = vmatprep.subr.bf16.mxu1 %v5782_v14  ;;  %4424 = vmatpush3.bf16.msra.mxu0 %v5781_v58  ;;  %v2348_v30 = vrot.slane %v2228_v40, 1  ;;  %v5413_v46 = vpack.i.bf16 %v2228_v40, %v2227_v43 }
 0x285   : > { %5294 = vrot.lane.b32.xlu1 %v5293_v6, %s5858_s21  ;;  %5254 = vrot.lane.b32.xlu0 %v5258_v12, %s5860_s29  ;;  %v2519_v12 = vrot.slane %v8130_v1, 2  ;;  %v5353_v50 = vpack.i.bf16 %v2346_v20, %v2344_v33  ;;  %v2524_v20 = vrot.slane %v2228_v40, 2 }
 0x286   : > { %v8157_v35 = vld [vmem:[#allocation3 + $0x168] sm:$0xff]  ;;  %4425 = vmatprep.subr.bf16.mxu0 %v5782_v14 }
 0x287   : > { %v2520_v51 = vsel %vm720_vm3, %v2518_v54, %v2519_v12  ;;  %v2522_v2 = vsel %vm720_vm3, %v2519_v12, %v2521_v38  ;;  %v2377_v42 = vrot.slane %v8157_v35, 1  ;;  %v2553_v19 = vrot.slane %v8157_v35, 2  ;;  %4469 = vmatpush3.bf16.msra.mxu1 %v5782_v14  ;;  %v2232_v38 = vld [vmem:[#allocation3 + $0x100] sm:$0x3] }
 0x288   : > { %v5358_v55 = vpack.i.bf16 %v2522_v2, %v2520_v51  ;;  %4465 = vmatprep.subr.bf16.mxu1 %v5783_v22  ;;  %4426 = vmatpush3.bf16.msra.mxu0 %v5782_v14  ;;  %v2525_v60 = vsel %vm720_vm3, %v2523_v56, %v2524_v20  ;;  %v2355_v51 = vrot.slane %v2232_v38, 1  ;;  %v2352_v2 = vrot.slane %v2230_v3, 1 }
 0x289   : > { %5299 = vrot.lane.b32.xlu1 %v5298_v13, %s5859_s22  ;;  %5264 = vrot.lane.b32.xlu0 %v5273_v23, %s5858_s21  ;;  %v2531_v62 = vrot.slane %v2232_v38, 2 }
 0x28a   : > { %v8148_v27 = vld [vmem:[#allocation3 + $0x170] sm:$0xff]  ;;  %v2247_v49 = vld [vmem:[#allocation3 + $0x178] sm:$0x3]  ;;  %4427 = vmatprep.subr.bf16.mxu0 %v5783_v22  ;;  %v2354_v11 = vsel %vm543_vm2, %v2352_v2, %v2353_v36 }
 0x28b   : > { %v2378_v7 = vrot.slane %v8148_v27, 1  ;;  %v2380_v41 = vrot.slane %v2247_v49, 1  ;;  %v2556_v29 = vrot.slane %v2247_v49, 2  ;;  %4470 = vmatpush3.bf16.msra.mxu1 %v5783_v22  ;;  %v8207_v49 = vpop.permute.xlu0 %5139 }
 0x28c   : > { %4428 = vmatpush3.bf16.msra.mxu0 %v5783_v22  ;;  %9550 = vst [vmem:[#allocation22_spill] sm:$0xff] %v8207_v49 }
 0x28d   : > { %5304 = vrot.lane.b32.xlu1 %v5293_v6, %s5864_s12  ;;  %5269 = vrot.lane.b32.xlu0 %v5278_v24, %s5859_s22  ;;  %v2379_v5 = vsel %vm543_vm2, %v2377_v42, %v2378_v7  ;;  %v2381_v16 = vsel %vm543_vm2, %v2378_v7, %v2380_v41  ;;  %v2356_v7 = vsel %vm543_vm2, %v2353_v36, %v2355_v51  ;;  %v2529_v41 = vrot.slane %v2231_v34, 2 }
 0x28e   : > { %v8181_v37 = vpack.i.bf16 %v2381_v16, %v2379_v5  ;;  %v8223_v42 = vpack.i.bf16 %v2356_v7, %v2354_v11  ;;  %v2238_v5 = vld [vmem:[#allocation3 + $0x130] sm:$0x3]  ;;  %v8235_v16 = vld [vmem:[#allocation3 + $0x120] sm:$0xff]  ;;  %v8283_v7 = vld [vmem:[#allocation3 + $0x158] sm:$0xff] }
 0x28f   : > { %v8221_v58 = vpop.permute.xlu0 %5144  ;;  %v2362_v22 = vrot.slane %v8235_v16, 1  ;;  %9556 = vst [vmem:[#allocation28_spill] sm:$0xff] %v8283_v7 }
 0x290   : > { %9551 = vst [vmem:[#allocation23_spill] sm:$0xff] %v8221_v58 }
 0x291   : > { %5309 = vrot.lane.b32.xlu1 %v5298_v13, %s5865_s15  ;;  %5284 = vrot.lane.b32.xlu0 %v5273_v23, %s5864_s12  ;;  %v2554_v23 = vrot.slane %v8148_v27, 2 }
 0x293   : > { %v2557_v57 = vsel %vm720_vm3, %v2554_v23, %v2556_v29  ;;  %v2532_v29 = vsel %vm720_vm3, %v2529_v41, %v2531_v62 }
 0x295   : > { %5324 = vrot.lane.b32.xlu1 %v5323_v26, %s5860_s29  ;;  %5289 = vrot.lane.b32.xlu0 %v5278_v24, %s5865_s15  ;;  %v2555_v24 = vsel %vm720_vm3, %v2553_v19, %v2554_v23  ;;  %v2233_v19 = vld [vmem:[#allocation3 + $0x108] sm:$0xff] }
 0x296   : > { %v8188_v17 = vpack.i.bf16 %v2557_v57, %v2555_v24  ;;  %v2360_v24 = vrot.slane %v2235_v45, 1  ;;  %v2363_v57 = vrot.slane %v8227_v28, 1 }
 0x299   : > { %5339 = vrot.lane.b32.xlu1 %v5338_v52, %s5861_s9  ;;  %5314 = vrot.lane.b32.xlu0 %v5293_v6, %s5862_s10  ;;  %v5378_v6 = vpack.i.bf16 %v2517_v32, %v2515_v18  ;;  %v2365_v18 = vrot.slane %v2238_v5, 1  ;;  %v2357_v32 = vrot.slane %v2233_v19, 1 }
 0x29d   : > { %5354 = vrot.lane.b32.xlu1 %v5353_v50, %s5862_s10  ;;  %5319 = vrot.lane.b32.xlu0 %v5298_v13, %s5863_s11  ;;  %v2229_v13 = vld [vmem:[#allocation3 + $0xe8] sm:$0x3] }
 0x29e   : > { %v2350_v59 = vrot.slane %v2229_v13, 1  ;;  %v2526_v12 = vrot.slane %v2229_v13, 2 }
 0x2a0   : > { %v2351_v33 = vsel %vm543_vm2, %v2348_v30, %v2350_v59  ;;  %v2534_v59 = vrot.slane %v2234_v8, 2 }
 0x2a1   : > { %5359 = vrot.lane.b32.xlu1 %v5358_v55, %s5863_s11  ;;  %5329 = vrot.lane.b32.xlu0 %v5323_v26, %s5861_s9  ;;  %v8196_v26 = vpack.i.bf16 %v2231_v34, %v2230_v3  ;;  %v8251_v34 = vpack.i.bf16 %v2234_v8, %v2233_v19 }
 0x2a5   : > { %5374 = vrot.lane.b32.xlu1 %v5373_v63, %s5858_s21  ;;  %5334 = vrot.lane.b32.xlu0 %v5338_v52, %s5860_s29  ;;  %v2349_v52 = vsel %vm543_vm2, %v2347_v61, %v2348_v30  ;;  %v2364_v30 = vsel %vm543_vm2, %v2362_v22, %v2363_v57  ;;  %v2366_v61 = vsel %vm543_vm2, %v2363_v57, %v2365_v18 }
 0x2a6   : > { %v8205_v54 = vpack.i.bf16 %v2351_v33, %v2349_v52  ;;  %v2539_v52 = vrot.slane %v8227_v28, 2  ;;  %v2541_v33 = vrot.slane %v2238_v5, 2  ;;  %v2373_v5 = vrot.slane %v8283_v7, 1 }
 0x2a8   : > { %v2542_v11 = vsel %vm720_vm3, %v2539_v52, %v2541_v33 }
 0x2a9   : > { %5379 = vrot.lane.b32.xlu1 %v5378_v6, %s5859_s22  ;;  %5344 = vrot.lane.b32.xlu0 %v5353_v50, %s5858_s21 }
 0x2ad   : > { %5384 = vrot.lane.b32.xlu1 %v5373_v63, %s5864_s12  ;;  %5349 = vrot.lane.b32.xlu0 %v5358_v55, %s5859_s22 }
 0x2b1   : > { %5389 = vrot.lane.b32.xlu1 %v5378_v6, %s5865_s15  ;;  %5364 = vrot.lane.b32.xlu0 %v5353_v50, %s5864_s12  ;;  %v2527_v50 = vsel %vm720_vm3, %v2524_v20, %v2526_v12  ;;  %v2533_v20 = vrot.slane %v2233_v19, 2  ;;  %v2538_v12 = vrot.slane %v8235_v16, 2 }
 0x2b2   : > { %v8214_v44 = vpack.i.bf16 %v2527_v50, %v2525_v60  ;;  %v8273_v50 = vpack.i.bf16 %v2366_v61, %v2364_v30  ;;  %v2549_v30 = vrot.slane %v8283_v7, 2  ;;  %v2241_v61 = vld [vmem:[#allocation3 + $0x148] sm:$0x3] }
 0x2b3   : > { %v2535_v36 = vsel %vm720_vm3, %v2533_v20, %v2534_v59  ;;  %v2540_v2 = vsel %vm720_vm3, %v2538_v12, %v2539_v52 }
 0x2b5   : > { %5404 = vrot.lane.b32.xlu1 %v8196_v26, %s5860_s29  ;;  %5369 = vrot.lane.b32.xlu0 %v5358_v55, %s5865_s15  ;;  %v2528_v55 = vrot.slane %v2230_v3, 2 }
 0x2b7   : > { %v2530_v23 = vsel %vm720_vm3, %v2528_v55, %v2529_v41  ;;  %v2244_v41 = vld [vmem:[#allocation3 + $0x160] sm:$0x3] }
 0x2b8   : > { %v8239_v14 = vpack.i.bf16 %v2532_v29, %v2530_v23  ;;  %v8291_v29 = vpack.i.bf16 %v2542_v11, %v2540_v2  ;;  %v2375_v19 = vrot.slane %v2244_v41, 1  ;;  %v2370_v2 = vrot.slane %v2241_v61, 1 }
 0x2b9   : > { %5414 = vrot.lane.b32.xlu1 %v5413_v46, %s5861_s9  ;;  %5394 = vrot.lane.b32.xlu0 %v5373_v63, %s5862_s10  ;;  %v2358_v63 = vrot.slane %v2234_v8, 1  ;;  %v8293_v8 = vld [vmem:[#allocation3 + $0x150] sm:$0xff] }
 0x2ba   : > { %9557 = vst [vmem:[#allocation29_spill] sm:$0xff] %v8293_v8 }
 0x2bb   : > { %v2359_v3 = vsel %vm543_vm2, %v2357_v32, %v2358_v63  ;;  %v2361_v43 = vsel %vm543_vm2, %v2358_v63, %v2360_v24  ;;  %v2239_v63 = vld [vmem:[#allocation3 + $0x138] sm:$0xff]  ;;  %v2372_v24 = vrot.slane %v8293_v8, 1  ;;  %v8307_v32 = vpack.i.bf16 %v8283_v7, %v8293_v8 }
 0x2bc   : > { %v8271_v60 = vpack.i.bf16 %v2361_v43, %v2359_v3  ;;  %v2376_v43 = vsel %vm543_vm2, %v2373_v5, %v2375_v19  ;;  %v2367_v11 = vrot.slane %v2239_v63, 1 }
 0x2bd   : > { %5429 = vrot.lane.b32.xlu1 %v8205_v54, %s5858_s21  ;;  %5399 = vrot.lane.b32.xlu0 %v5378_v6, %s5863_s11  ;;  %v8249_v6 = vpack.i.bf16 %v8227_v28, %v8235_v16  ;;  %v2374_v3 = vsel %vm543_vm2, %v2372_v24, %v2373_v5 }
 0x2be   : > { %v8323_v20 = vpack.i.bf16 %v2376_v43, %v2374_v3 }
 0x2c1   : > { %5434 = vrot.lane.b32.xlu1 %v8214_v44, %s5859_s22  ;;  %5409 = vrot.lane.b32.xlu0 %v5413_v46, %s5860_s29  ;;  %v2536_v46 = vrot.slane %v2235_v45, 2  ;;  %v2240_v45 = vld [vmem:[#allocation3 + $0x140] sm:$0xff] }
 0x2c2   : > { %v8309_v22 = vpack.i.bf16 %v2240_v45, %v2239_v63  ;;  %v2544_v43 = vrot.slane %v2240_v45, 2 }
 0x2c3   : > { %v2537_v51 = vsel %vm720_vm3, %v2534_v59, %v2536_v46  ;;  %v2551_v59 = vrot.slane %v2244_v41, 2  ;;  %v2548_v46 = vrot.slane %v8293_v8, 2 }
 0x2c4   : > { %v8289_v23 = vpack.i.bf16 %v2537_v51, %v2535_v36  ;;  %v2368_v51 = vrot.slane %v2240_v45, 1 }
 0x2c5   : > { %5439 = vrot.lane.b32.xlu1 %v8205_v54, %s5864_s12  ;;  %v8231_v10 = vpop.permute.xlu1 %5149  ;;  %5419 = vrot.lane.b32.xlu0 %v8223_v42, %s5858_s21  ;;  %v2550_v12 = vsel %vm720_vm3, %v2548_v46, %v2549_v30  ;;  %v2552_v36 = vsel %vm720_vm3, %v2549_v30, %v2551_v59  ;;  %v2546_v30 = vrot.slane %v2241_v61, 2  ;;  %v2543_v59 = vrot.slane %v2239_v63, 2 }
 0x2c6   : > { %9552 = vst [vmem:[#allocation24_spill] sm:$0xff] %v8231_v10  ;;  %v8335_v19 = vpack.i.bf16 %v2552_v36, %v2550_v12  ;;  %v2369_v24 = vsel %vm543_vm2, %v2367_v11, %v2368_v51  ;;  %v2371_v3 = vsel %vm543_vm2, %v2368_v51, %v2370_v2 }
 0x2c7   : > { %v8237_v21 = vpop.permute.xlu0 %5154  ;;  %v2545_v12 = vsel %vm720_vm3, %v2543_v59, %v2544_v43  ;;  %v2547_v36 = vsel %vm720_vm3, %v2544_v43, %v2546_v30 }
 0x2c8   : > { %9553 = vst [vmem:[#allocation25_spill] sm:$0xff] %v8237_v21  ;;  %v8347_v21 = vpack.i.bf16 %v2371_v3, %v2369_v24  ;;  %v8359_v63 = vpack.i.bf16 %v2547_v36, %v2545_v12  ;;  %v8381_v12 = vld [vmem:[#allocation3 + $0x30] sm:$0xff] }
 0x2c9   : > { %5444 = vrot.lane.b32.xlu1 %v8214_v44, %s5865_s15  ;;  %5424 = vrot.lane.b32.xlu0 %v8239_v14, %s5859_s22 }
 0x2cb   : > { %v8253_v40 = vpop.permute.xlu1 %5169  ;;  %v8255_v13 = vpop.permute.xlu0 %5159 }
 0x2cc   : > { %9554 = vst [vmem:[#allocation26_spill] sm:$0xff] %v8253_v40  ;;  %v5162_v51 = vunpack.i.h.bf16 %v8255_v13  ;;  %v5161_v2 = vunpack.i.l.bf16 %v8255_v13  ;;  %v8377_v13 = vld [vmem:[#allocation3 + $0x38] sm:$0xff] }
 0x2cd   : > { %5449 = vrot.lane.b32.xlu1 %v8249_v6, %s5860_s29  ;;  %5454 = vrot.lane.b32.xlu0 %v8251_v34, %s5860_s29 }
 0x2cf   : > { %v8267_v38 = vpop.permute.xlu1 %5174  ;;  %v8269_v56 = vpop.permute.xlu0 %5164 }
 0x2d0   : > { %9555 = vst [vmem:[#allocation27_spill] sm:$0xff] %v8267_v38  ;;  %v5167_v11 = vunpack.i.h.bf16 %v8269_v56 }
 0x2d1   : > { %5469 = vrot.lane.b32.xlu1 %v8271_v60, %s5858_s21  ;;  %5459 = vrot.lane.b32.xlu0 %v8273_v50, %s5858_s21 }
 0x2d3   : > { %v8285_v62 = vpop.permute.xlu1 %5179  ;;  %v8287_v55 = vpop.permute.xlu0 %5184 }
 0x2d4   : > { %v5186_v7 = vunpack.i.l.bf16 %v8287_v55 }
 0x2d5   : > { %5474 = vrot.lane.b32.xlu1 %v8289_v23, %s5859_s22  ;;  %5464 = vrot.lane.b32.xlu0 %v8291_v29, %s5859_s22 }
 0x2d7   : > { %v8301_v57 = vpop.permute.xlu1 %5204  ;;  %v8303_v18 = vpop.permute.xlu0 %5189 }
 0x2d8   : > { %v5192_v43 = vunpack.i.h.bf16 %v8303_v18  ;;  %v5191_v30 = vunpack.i.l.bf16 %v8303_v18  ;;  %v3260_v18 = vsel %vm1729_vm5, %v8381_v12, %v5161_v2 }
 0x2d9   : > { %5479 = vrot.lane.b32.xlu1 %v8307_v32, %s5860_s29  ;;  %5484 = vrot.lane.b32.xlu0 %v8309_v22, %s5860_s29 }
 0x2db   : > { %v8319_v52 = vpop.permute.xlu1 %5209  ;;  %v8321_v33 = vpop.permute.xlu0 %5194 }
 0x2dd   : > { %5504 = vrot.lane.b32.xlu1 %v8223_v42, %s5862_s10  ;;  %5489 = vrot.lane.b32.xlu0 %v8323_v20, %s5858_s21 }
 0x2df   : > { %v8331_v41 = vpop.permute.xlu1 %5224  ;;  %v8333_v5 = vpop.permute.xlu0 %5199 }
 0x2e1   : > { %5514 = vrot.lane.b32.xlu1 %v8239_v14, %s5863_s11  ;;  %5494 = vrot.lane.b32.xlu0 %v8335_v19, %s5859_s22 }
 0x2e3   : > { %v8343_v46 = vpop.permute.xlu1 %5229  ;;  %v8345_v10 = vpop.permute.xlu0 %5214 }
 0x2e5   : > { %5524 = vrot.lane.b32.xlu1 %v8347_v21, %s5858_s21  ;;  %5499 = vrot.lane.b32.xlu0 %v8205_v54, %s5862_s10  ;;  %v5166_v54 = vunpack.i.l.bf16 %v8269_v56  ;;  %v3261_v56 = vsel %vm1729_vm5, %v8377_v13, %v5162_v51  ;;  %v5187_v51 = vunpack.i.h.bf16 %v8287_v55  ;;  %v5216_v55 = vunpack.i.l.bf16 %v8345_v10 }
 0x2e7   : > { %v8355_v45 = vpop.permute.xlu1 %5244  ;;  %v8357_v61 = vpop.permute.xlu0 %5219  ;;  %v3293_v36 = vsel %vm3288_vm15, %v3260_v18, %v5166_v54 }
 0x2e9   : > { %5529 = vrot.lane.b32.xlu1 %v8359_v63, %s5859_s22  ;;  %5509 = vrot.lane.b32.xlu0 %v8214_v44, %s5863_s11 }
 0x2eb   : > { %v8369_v24 = vpop.permute.xlu1 %5259  ;;  %v5235_v3 = vpop.permute.xlu0 %5234 }
 0x2ec   : > { %v5237_v44 = vunpack.i.h.bf16 %v5235_v3  ;;  %v5236_v59 = vunpack.i.l.bf16 %v5235_v3  ;;  %v3294_v3 = vsel %vm3288_vm15, %v3261_v56, %v5167_v11  ;;  %v5231_v56 = vunpack.i.l.bf16 %v8343_v46 }
 0x2ed   : > { %5534 = vrot.lane.b32.xlu1 %v8181_v37, %s5858_s21  ;;  %5519 = vrot.lane.b32.xlu0 %v8196_v26, %s5861_s9  ;;  %v3327_v58 = vsel %vm3321_vm0, %v3294_v3, %v5192_v43  ;;  %v3326_v26 = vsel %vm3321_vm0, %v3293_v36, %v5191_v30 }
 0x2ee   : > { %v3360_v47 = vsel %vm3354_vm1, %v3327_v58, %v5237_v44  ;;  %v3359_v2 = vsel %vm3354_vm1, %v3326_v26, %v5236_v59  ;;  %v5232_v59 = vunpack.i.h.bf16 %v8343_v46 }
 0x2ef   : > { %v8387_v38 = vpop.permute.xlu1 %5274  ;;  %v5240_v40 = vpop.permute.xlu0 %5239 }
 0x2f0   : > { %v5242_v49 = vunpack.i.h.bf16 %v5240_v40  ;;  %v5241_v8 = vunpack.i.l.bf16 %v5240_v40  ;;  %v5217_v40 = vunpack.i.h.bf16 %v8345_v10 }
 0x2f1   : > { %5539 = vrot.lane.b32.xlu1 %v8188_v17, %s5859_s22  ;;  %5549 = vrot.lane.b32.xlu0 %v8223_v42, %s5864_s12  ;;  %v5222_v42 = vunpack.i.h.bf16 %v8357_v61 }
 0x2f2   : > { %v3392_v11 = vsel %vm3387_vm7, %v3359_v2, %v5241_v8  ;;  %v3393_v54 = vsel %vm3387_vm7, %v3360_v47, %v5242_v49  ;;  %v5221_v8 = vunpack.i.l.bf16 %v8357_v61  ;;  %v5227_v47 = vunpack.i.h.bf16 %v8331_v41 }
 0x2f3   : > { %v8403_v43 = vpop.permute.xlu1 %5279  ;;  %v8405_v58 = vpop.permute.xlu0 %5249  ;;  %v3425_v30 = vsel %vm3420_vm8, %v3392_v11, %v5186_v7  ;;  %v3426_v44 = vsel %vm3420_vm8, %v3393_v54, %v5187_v51  ;;  %v5226_v49 = vunpack.i.l.bf16 %v8331_v41  ;;  %v5182_v51 = vunpack.i.h.bf16 %v8285_v62 }
 0x2f4   : > { %v3458_v10 = vsel %vm3453_vm9, %v3425_v30, %v5216_v55  ;;  %v3459_v7 = vsel %vm3453_vm9, %v3426_v44, %v5217_v40  ;;  %v5181_v2 = vunpack.i.l.bf16 %v8285_v62  ;;  %v5207_v40 = vunpack.i.h.bf16 %v8301_v57 }
 0x2f5   : > { %5544 = vrot.lane.b32.xlu1 %v8251_v34, %s5861_s9  ;;  %5559 = vrot.lane.b32.xlu0 %v8239_v14, %s5865_s15  ;;  %v3491_v61 = vsel %vm3486_vm10, %v3458_v10, %v5221_v8  ;;  %v3492_v18 = vsel %vm3486_vm10, %v3459_v7, %v5222_v42  ;;  %v3263_v14 = vsel %vm1729_vm5, %v8000_v25, %v5227_v47  ;;  %v5206_v55 = vunpack.i.l.bf16 %v8301_v57 }
 0x2f6   : > { %v3521_v34 = vpack.c.bf16 %v3492_v18, %v3491_v61  ;;  %v3262_v3 = vsel %vm1729_vm5, %v8009_v53, %v5226_v49  ;;  %v3296_v26 = vsel %vm3288_vm15, %v3263_v14, %v5232_v59  ;;  %v5262_v42 = vunpack.i.h.bf16 %v8369_v24 }
 0x2f7   : > { %v8423_v36 = vpop.permute.xlu1 %5294  ;;  %v8425_v41 = vpop.permute.xlu0 %5254  ;;  %v3295_v46 = vsel %vm3288_vm15, %v3262_v3, %v5231_v56  ;;  %v3329_v54 = vsel %vm3321_vm0, %v3296_v26, %v5182_v51  ;;  %v5261_v8 = vunpack.i.l.bf16 %v8369_v24  ;;  %v5212_v47 = vunpack.i.h.bf16 %v8319_v52 }
 0x2f8   : > { %4433 = vmatprep.mubr.msk.bf16.mxu1 %vm3571_vm11, %v3521_v34  ;;  %v3328_v53 = vsel %vm3321_vm0, %v3295_v46, %v5181_v2  ;;  %v3362_v44 = vsel %vm3354_vm1, %v3329_v54, %v5207_v40  ;;  %v5211_v49 = vunpack.i.l.bf16 %v8319_v52  ;;  %v5197_v2 = vunpack.i.h.bf16 %v8321_v33 }
 0x2f9   : > { %5554 = vrot.lane.b32.xlu1 %v8271_v60, %s5864_s12  ;;  %5569 = vrot.lane.b32.xlu0 %v8271_v60, %s5862_s10  ;;  %v3361_v30 = vsel %vm3354_vm1, %v3328_v53, %v5206_v55  ;;  %v3395_v7 = vsel %vm3387_vm7, %v3362_v44, %v5212_v47  ;;  %v5196_v53 = vunpack.i.l.bf16 %v8321_v33  ;;  %v5202_v54 = vunpack.i.h.bf16 %v8333_v5  ;;  %v5818_v33 = vld [vmem:[#allocation3 + $0x68] sm:$0xff] }
 0x2fa   : > { %v3428_v24 = vsel %vm3420_vm8, %v3395_v7, %v5262_v42  ;;  %v3265_v42 = vsel %vm1729_vm5, %v5818_v33, %v5197_v2  ;;  %v5297_v2 = vunpack.i.h.bf16 %v8423_v36 }
 0x2fb   : > { %v8440_v25 = vpop.permute.xlu1 %5299  ;;  %v8442_v11 = vpop.permute.xlu0 %5264  ;;  %v3298_v47 = vsel %vm3288_vm15, %v3265_v42, %v5202_v54 }
 0x2fd   : > { %5564 = vrot.lane.b32.xlu1 %v8289_v23, %s5865_s15  ;;  %5579 = vrot.lane.b32.xlu0 %v8289_v23, %s5863_s11  ;;  %v3394_v23 = vsel %vm3387_vm7, %v3361_v30, %v5211_v49  ;;  %v5256_v30 = vunpack.i.l.bf16 %v8425_v41 }
 0x2fe   : > { %v3427_v61 = vsel %vm3420_vm8, %v3394_v23, %v5261_v8 }
 0x2ff   : > { %v5305_v60 = vpop.permute.xlu1 %5304  ;;  %v8452_v62 = vpop.permute.xlu0 %5269 }
 0x300   : > { %v5307_v10 = vunpack.i.h.bf16 %v5305_v60  ;;  %v5306_v57 = vunpack.i.l.bf16 %v5305_v60  ;;  %v5257_v60 = vunpack.i.h.bf16 %v8425_v41 }
 0x301   : > { %5574 = vrot.lane.b32.xlu1 %v8273_v50, %s5862_s10  ;;  %5589 = vrot.lane.b32.xlu0 %v8249_v6, %s5861_s9 }
 0x302   : > { %v3461_v34 = vsel %vm3453_vm9, %v3428_v24, %v5307_v10  ;;  %v3460_v14 = vsel %vm3453_vm9, %v3427_v61, %v5306_v57  ;;  %v3331_v10 = vsel %vm3321_vm0, %v3298_v47, %v5257_v60  ;;  %v5251_v24 = vunpack.i.l.bf16 %v8405_v58 }
 0x303   : > { %v5310_v59 = vpop.permute.xlu1 %5309  ;;  %v8466_v56 = vpop.permute.xlu0 %5284 }
 0x304   : > { %v5312_v52 = vunpack.i.h.bf16 %v5310_v59  ;;  %v5311_v18 = vunpack.i.l.bf16 %v5310_v59  ;;  %v5252_v59 = vunpack.i.h.bf16 %v8405_v58 }
 0x305   : > { %5584 = vrot.lane.b32.xlu1 %v8291_v29, %s5863_s11  ;;  %5599 = vrot.lane.b32.xlu0 %v8273_v50, %s5864_s12  ;;  %v5201_v50 = vunpack.i.l.bf16 %v8333_v5 }
 0x306   : > { %v3493_v6 = vsel %vm3486_vm10, %v3460_v14, %v5311_v18  ;;  %v3494_v3 = vsel %vm3486_vm10, %v3461_v34, %v5312_v52  ;;  %v5287_v34 = vunpack.i.h.bf16 %v8466_v56  ;;  %v5286_v14 = vunpack.i.l.bf16 %v8466_v56 }
 0x307   : > { %v3522_v46 = vpack.c.bf16 %v3494_v3, %v3493_v6  ;;  %v8478_v26 = vpop.permute.xlu1 %5324  ;;  %v5290_v51 = vpop.permute.xlu0 %5289 }
 0x308   : > { %v5292_v54 = vunpack.i.h.bf16 %v5290_v51 }
 0x309   : > { %4434 = vmatmul.mubr.msk.bf16.vlgmr.msra.gmra.mxu1 %vm3571_vm11, %v3522_v46  ;;  %5594 = vrot.lane.b32.xlu1 %v8309_v22, %s5861_s9 }
 0x30a   : > { %5609 = vrot.lane.b32.xlu0 %v8291_v29, %s5865_s15  ;;  %v5819_v29 = vld [vmem:[#allocation3 + $0x60] sm:$0xff] }
 0x30b   : > { %v8489_v40 = vpop.permute.xlu1 %5339  ;;  %v5315_v55 = vpop.permute.xlu0 %5314  ;;  %v3264_v8 = vsel %vm1729_vm5, %v5819_v29, %v5196_v53  ;;  %v5296_v53 = vunpack.i.l.bf16 %v8423_v36 }
 0x30c   : > { %v5317_v44 = vunpack.i.h.bf16 %v5315_v55  ;;  %v5316_v22 = vunpack.i.l.bf16 %v5315_v55  ;;  %v3297_v5 = vsel %vm3288_vm15, %v3264_v8, %v5201_v50  ;;  %v5291_v50 = vunpack.i.l.bf16 %v5290_v51 }
 0x30d   : > { %5604 = vrot.lane.b32.xlu1 %v8347_v21, %s5864_s12  ;;  %v3330_v57 = vsel %vm3321_vm0, %v3297_v5, %v5256_v30  ;;  %v5301_v55 = vunpack.i.l.bf16 %v8440_v25  ;;  %v3266_v42 = vsel %vm1729_vm5, %v8079_v9, %v5296_v53  ;;  %v5246_v5 = vunpack.i.l.bf16 %v8355_v45 }
 0x30e   : > { %5619 = vrot.lane.b32.xlu0 %v8347_v21, %s5862_s10  ;;  %v3364_v61 = vsel %vm3354_vm1, %v3331_v10, %v5317_v44  ;;  %v3363_v21 = vsel %vm3354_vm1, %v3330_v57, %v5316_v22  ;;  %v5643_v9 = vpack.i.bf16 %v8148_v27, %v8157_v35 }
 0x30f   : > { %v8501_v49 = vpop.permute.xlu1 %5354  ;;  %v5320_v41 = vpop.permute.xlu0 %5319  ;;  %v3299_v29 = vsel %vm3288_vm15, %v3266_v42, %v5301_v55 }
 0x310   : > { %v5322_v23 = vunpack.i.h.bf16 %v5320_v41  ;;  %v5321_v7 = vunpack.i.l.bf16 %v5320_v41  ;;  %v3332_v10 = vsel %vm3321_vm0, %v3299_v29, %v5246_v5 }
 0x311   : > { %5614 = vrot.lane.b32.xlu1 %v8359_v63, %s5865_s15 }
 0x312   : > { %v3396_v52 = vsel %vm3387_vm7, %v3363_v21, %v5321_v7  ;;  %v3397_v18 = vsel %vm3387_vm7, %v3364_v61, %v5322_v23  ;;  %5629 = vrot.lane.b32.xlu0 %v8359_v63, %s5863_s11  ;;  %v5302_v63 = vunpack.i.h.bf16 %v8440_v25  ;;  %v5820_v25 = vld [vmem:[#allocation3 + $0x80] sm:$0xff]  ;;  %v5277_v23 = vunpack.i.h.bf16 %v8387_v38 }
 0x313   : > { %v3429_v58 = vsel %vm3420_vm8, %v3396_v52, %v5251_v24  ;;  %v3430_v6 = vsel %vm3420_vm8, %v3397_v18, %v5252_v59  ;;  %v8519_v3 = vpop.permute.xlu1 %5359  ;;  %v8521_v46 = vpop.permute.xlu0 %5329  ;;  %v3267_v33 = vsel %vm1729_vm5, %v5820_v25, %v5297_v2  ;;  %v5276_v7 = vunpack.i.l.bf16 %v8387_v38 }
 0x314   : > { %v3462_v56 = vsel %vm3453_vm9, %v3429_v58, %v5286_v14  ;;  %v3463_v60 = vsel %vm3453_vm9, %v3430_v6, %v5287_v34  ;;  %v3300_v8 = vsel %vm3288_vm15, %v3267_v33, %v5302_v63  ;;  %v5342_v52 = vunpack.i.h.bf16 %v8489_v40  ;;  %v8599_v33 = vld [vmem:[#allocation3 + $0x180] sm:$0xff] }
 0x315   : > { %5624 = vrot.lane.b32.xlu1 %v8323_v20, %s5862_s10  ;;  %v3495_v30 = vsel %vm3486_vm10, %v3462_v56, %v5291_v50  ;;  %v3496_v36 = vsel %vm3486_vm10, %v3463_v60, %v5292_v54  ;;  %v3365_v27 = vsel %vm3354_vm1, %v3332_v10, %v5276_v7  ;;  %v5341_v38 = vunpack.i.l.bf16 %v8489_v40  ;;  %v8587_v56 = vld [vmem:[#allocation3 + $0x188] sm:$0xff]  ;;  %v8589_v60 = vld [vmem:[#allocation3 + $0x190] sm:$0x3] }
 0x316   : > { %5639 = vrot.lane.b32.xlu0 %v8307_v32, %s5861_s9  ;;  %v3523_v22 = vpack.c.bf16 %v3496_v36, %v3495_v30  ;;  %v5247_v32 = vunpack.i.h.bf16 %v8355_v45  ;;  %v5281_v45 = vunpack.i.l.bf16 %v8403_v43  ;;  %v2754_v5 = vrot.slane %v8587_v56, 1 }
 0x317   : > { %v8535_v44 = vpop.permute.xlu1 %5374  ;;  %v8537_v51 = vpop.permute.xlu0 %5334  ;;  %v5266_v10 = vunpack.i.l.bf16 %v8442_v11  ;;  %v5271_v7 = vunpack.i.l.bf16 %v8452_v62 }
 0x318   : > { %4437 = vmatprep.mubr.msk.bf16.mxu1 %vm3571_vm11, %v3523_v22  ;;  %v3333_v57 = vsel %vm3321_vm0, %v3300_v8, %v5247_v32  ;;  %v3398_v40 = vsel %vm3387_vm7, %v3365_v27, %v5281_v45  ;;  %v8607_v32 = vpack.i.bf16 %v8587_v56, %v8599_v33 }
 0x319   : > { %5634 = vrot.lane.b32.xlu1 %v8335_v19, %s5863_s11  ;;  %v3366_v35 = vsel %vm3354_vm1, %v3333_v57, %v5277_v23  ;;  %v3431_v50 = vsel %vm3420_vm8, %v3398_v40, %v5341_v38  ;;  %v5718_v57 = vpack.i.bf16 %v8377_v13, %v8381_v12  ;;  %v5272_v23 = vunpack.i.h.bf16 %v8452_v62 }
 0x31a   : > { %5649 = vrot.lane.b32.xlu0 %v8323_v20, %s5864_s12  ;;  %v5282_v20 = vunpack.i.h.bf16 %v8403_v43 }
 0x31b   : > { %v8551_v47 = vpop.permute.xlu1 %5379  ;;  %v5345_v41 = vpop.permute.xlu0 %5344 }
 0x31c   : > { %v5347_v59 = vunpack.i.h.bf16 %v5345_v41  ;;  %v5346_v24 = vunpack.i.l.bf16 %v5345_v41  ;;  %v2756_v41 = vrot.slane %v8589_v60, 1 }
 0x31d   : > { %5644 = vrot.lane.b32.xlu1 %v5643_v9, %s5861_s9 }
 0x31e   : > { %5659 = vrot.lane.b32.xlu0 %v8335_v19, %s5865_s15  ;;  %v3273_v14 = vsel %vm1729_vm5, %v8130_v1, %v5347_v59  ;;  %v3272_v19 = vsel %vm1729_vm5, %v8134_v15, %v5346_v24  ;;  %v3399_v1 = vsel %vm3387_vm7, %v3366_v35, %v5282_v20  ;;  %v2854_v59 = vrot.slane %v8599_v33, 2 }
 0x31f   : > { %v5385_v61 = vpop.permute.xlu1 %5384  ;;  %v5350_v21 = vpop.permute.xlu0 %5349  ;;  %v3432_v15 = vsel %vm3420_vm8, %v3399_v1, %v5342_v52  ;;  %v5377_v24 = vunpack.i.h.bf16 %v8535_v44  ;;  %v5376_v20 = vunpack.i.l.bf16 %v8535_v44  ;;  %v5822_v52 = vld [vmem:[#allocation3 + $0x90] sm:$0xff]  ;;  %v5381_v44 = vunpack.i.l.bf16 %v8551_v47 }
 0x320   : > { %v5352_v18 = vunpack.i.h.bf16 %v5350_v21  ;;  %v5351_v34 = vunpack.i.l.bf16 %v5350_v21  ;;  %v5387_v58 = vunpack.i.h.bf16 %v5385_v61  ;;  %v5386_v43 = vunpack.i.l.bf16 %v5385_v61  ;;  %v5821_v21 = vld [vmem:[#allocation3 + $0x98] sm:$0xff] }
 0x321   : > { %5654 = vrot.lane.b32.xlu1 %v8181_v37, %s5864_s12  ;;  %v2757_v61 = vsel %vm543_vm2, %v2754_v5, %v2756_v41  ;;  %v3268_v38 = vsel %vm1729_vm5, %v5822_v52, %v5266_v10 }
 0x322   : > { %v8575_v6 = vsel %vm3288_vm15, %v3272_v19, %v5351_v34  ;;  %v8578_v2 = vsel %vm3288_vm15, %v3273_v14, %v5352_v18  ;;  %5669 = vrot.lane.b32.xlu0 %v5643_v9, %s5860_s29  ;;  %v3465_v30 = vsel %vm3453_vm9, %v3432_v15, %v5387_v58  ;;  %v3464_v36 = vsel %vm3453_vm9, %v3431_v50, %v5386_v43  ;;  %v5823_v15 = vld [vmem:[#allocation3 + $0xb0] sm:$0xff] }
 0x323   : > { %v5390_v53 = vpop.permute.xlu1 %5389  ;;  %v8583_v54 = vpop.permute.xlu0 %5364  ;;  %v5267_v9 = vunpack.i.h.bf16 %v8442_v11  ;;  %v2855_v11 = vrot.slane %v8587_v56, 2  ;;  %v5337_v18 = vunpack.i.h.bf16 %v8537_v51  ;;  %v5336_v34 = vunpack.i.l.bf16 %v8537_v51 }
 0x324   : > { %v5392_v63 = vunpack.i.h.bf16 %v5390_v53  ;;  %v5391_v55 = vunpack.i.l.bf16 %v5390_v53  ;;  %v5382_v14 = vunpack.i.h.bf16 %v8551_v47  ;;  %v3301_v43 = vsel %vm3288_vm15, %v3268_v38, %v5271_v7 }
 0x325   : > { %5664 = vrot.lane.b32.xlu1 %v8188_v17, %s5865_s15  ;;  %v3269_v62 = vsel %vm1729_vm5, %v5821_v21, %v5267_v9  ;;  %v2857_v51 = vrot.slane %v8589_v60, 2  ;;  %v5332_v53 = vunpack.i.h.bf16 %v8521_v46  ;;  %v5331_v47 = vunpack.i.l.bf16 %v8521_v46 }
 0x326   : > { %v3497_v22 = vsel %vm3486_vm10, %v3464_v36, %v5391_v55  ;;  %v3498_v25 = vsel %vm3486_vm10, %v3465_v30, %v5392_v63  ;;  %5679 = vrot.lane.b32.xlu0 %v7970_v39, %s5862_s10  ;;  %v2753_v39 = vrot.slane %v8599_v33, 1  ;;  %v3302_v40 = vsel %vm3288_vm15, %v3269_v62, %v5272_v23  ;;  %v5824_v63 = vld [vmem:[#allocation3 + $0xa8] sm:$0xff] }
 0x327   : > { %v3524_v42 = vpack.c.bf16 %v3498_v25, %v3497_v22  ;;  %v8601_v29 = vpop.permute.xlu1 %5404  ;;  %v8603_v8 = vpop.permute.xlu0 %5369  ;;  %v3271_v50 = vsel %vm1729_vm5, %v5823_v15, %v5377_v24  ;;  %v3335_v30 = vsel %vm3321_vm0, %v3302_v40, %v5337_v18  ;;  %v5367_v10 = vunpack.i.h.bf16 %v8583_v54  ;;  %v2252_v15 = vld [vmem:[#allocation3 + $0x1a0] sm:$0xff] }
 0x328   : > { %v2755_v35 = vsel %vm543_vm2, %v2753_v39, %v2754_v5  ;;  %v3304_v25 = vsel %vm3288_vm15, %v3271_v50, %v5382_v14  ;;  %v5326_v5 = vunpack.i.l.bf16 %v8478_v26  ;;  %v5366_v39 = vunpack.i.l.bf16 %v8583_v54 }
 0x329   : > { %4438 = vmatmul.mubr.msk.bf16.gmra.mxu1 %vm3571_vm11, %v3524_v42  ;;  %5674 = vrot.lane.b32.xlu1 %v8607_v32, %s5860_s29  ;;  %v8643_v1 = vpack.i.bf16 %v2757_v61, %v2755_v35  ;;  %v5327_v42 = vunpack.i.h.bf16 %v8478_v26  ;;  %v2856_v35 = vsel %vm720_vm3, %v2854_v59, %v2855_v11  ;;  %v2858_v61 = vsel %vm720_vm3, %v2855_v11, %v2857_v51  ;;  %v5825_v59 = vld [vmem:[#allocation3 + $0x50] sm:$0xff]  ;;  %v5826_v11 = vld [vmem:[#allocation3 + $0x48] sm:$0xff] }
 0x32a   : > { %5689 = vrot.lane.b32.xlu0 %v7963_v48, %s5862_s10  ;;  %v5372_v21 = vunpack.i.h.bf16 %v8603_v8  ;;  %v5371_v54 = vunpack.i.l.bf16 %v8603_v8  ;;  %v5357_v38 = vunpack.i.h.bf16 %v8501_v49  ;;  %v5356_v18 = vunpack.i.l.bf16 %v8501_v49 }
 0x32b   : > { %v8627_v45 = vpop.permute.xlu1 %5414  ;;  %v5395_v27 = vpop.permute.xlu0 %5394  ;;  %v5362_v8 = vunpack.i.h.bf16 %v8519_v3 }
 0x32c   : > { %v5397_v19 = vunpack.i.h.bf16 %v5395_v27  ;;  %v5396_v58 = vunpack.i.l.bf16 %v5395_v27  ;;  %v3337_v27 = vsel %vm3321_vm0, %v3304_v25, %v5327_v42  ;;  %v5417_v13 = vunpack.i.h.bf16 %v8627_v45 }
 0x32d   : > { %5684 = vrot.lane.b32.xlu1 %v8181_v37, %s5862_s10  ;;  %v3270_v37 = vsel %vm1729_vm5, %v5824_v63, %v5376_v20  ;;  %v5416_v12 = vunpack.i.l.bf16 %v8627_v45  ;;  %v3055_v25 = vrot.slane %v2252_v15, 1 }
 0x32e   : > { %5699 = vrot.lane.b32.xlu0 %v7982_v0, %s5863_s11  ;;  %v3334_v0 = vsel %vm3321_vm0, %v3301_v43, %v5336_v34  ;;  %v3303_v60 = vsel %vm3288_vm15, %v3270_v37, %v5381_v44  ;;  %v3368_v46 = vsel %vm3354_vm1, %v3335_v30, %v5397_v19  ;;  %v5728_v34 = vpack.i.bf16 %v5825_v59, %v5826_v11 }
 0x32f   : > { %v8650_v55 = vpop.permute.xlu1 %5429  ;;  %v5400_v56 = vpop.permute.xlu0 %5399  ;;  %v3367_v33 = vsel %vm3354_vm1, %v3334_v0, %v5396_v58  ;;  %v3336_v26 = vsel %vm3321_vm0, %v3303_v60, %v5326_v5  ;;  %v8695_v58 = vpack.i.bf16 %v2858_v61, %v2856_v35  ;;  %v3370_v43 = vsel %vm3354_vm1, %v3337_v27, %v5357_v38 }
 0x330   : > { %v5402_v36 = vunpack.i.h.bf16 %v5400_v56  ;;  %v5401_v22 = vunpack.i.l.bf16 %v5400_v56  ;;  %v3369_v49 = vsel %vm3354_vm1, %v3336_v26, %v5356_v18  ;;  %v3403_v63 = vsel %vm3387_vm7, %v3370_v43, %v5362_v8 }
 0x331   : > { %5694 = vrot.lane.b32.xlu1 %v8643_v1, %s5862_s10  ;;  %v3436_v56 = vsel %vm3420_vm8, %v3403_v63, %v5417_v13  ;;  %v3156_v61 = vrot.slane %v2252_v15, 2  ;;  %v9560_v63 = vld [vmem:[#allocation29_spill] sm:$0xff] }
 0x332   : > { %v3400_v41 = vsel %vm3387_vm7, %v3367_v33, %v5401_v22  ;;  %v3401_v9 = vsel %vm3387_vm7, %v3368_v46, %v5402_v36  ;;  %5709 = vrot.lane.b32.xlu0 %v7988_v31, %s5863_s11 }
 0x333   : > { %v3433_v23 = vsel %vm3420_vm8, %v3400_v41, %v5331_v47  ;;  %v3434_v7 = vsel %vm3420_vm8, %v3401_v9, %v5332_v53  ;;  %v8670_v24 = vpop.permute.xlu1 %5434  ;;  %v8672_v20 = vpop.permute.xlu0 %5409  ;;  %v2251_v47 = vld [vmem:[#allocation3 + $0x198] sm:$0xff] }
 0x334   : > { %v3466_v62 = vsel %vm3453_vm9, %v3433_v23, %v5366_v39  ;;  %v3467_v52 = vsel %vm3453_vm9, %v3434_v7, %v5367_v10  ;;  %v5733_v46 = vpack.i.bf16 %v2252_v15, %v2251_v47  ;;  %v3054_v5 = vrot.slane %v2251_v47, 1 }
 0x335   : > { %5704 = vrot.lane.b32.xlu1 %v8188_v17, %s5863_s11  ;;  %v3499_v44 = vsel %vm3486_vm10, %v3466_v62, %v5371_v54  ;;  %v3500_v19 = vsel %vm3486_vm10, %v3467_v52, %v5372_v21  ;;  %v3155_v21 = vrot.slane %v2251_v47, 2 }
 0x336   : > { %5719 = vrot.lane.b32.xlu0 %v5718_v57, %s5861_s9  ;;  %v5361_v57 = vunpack.i.l.bf16 %v8519_v3  ;;  %v3525_v53 = vpack.c.bf16 %v3500_v19, %v3499_v44  ;;  %v2253_v3 = vld [vmem:[#allocation3 + $0x1a8] sm:$0x3] }
 0x337   : > { %v5440_v14 = vpop.permute.xlu1 %5439  ;;  %v8691_v17 = vpop.permute.xlu0 %5419  ;;  %v3057_v41 = vrot.slane %v2253_v3, 1  ;;  %v3158_v54 = vrot.slane %v2253_v3, 2 }
 0x338   : > { %v5442_v40 = vunpack.i.h.bf16 %v5440_v14  ;;  %v5441_v51 = vunpack.i.l.bf16 %v5440_v14  ;;  %v3402_v50 = vsel %vm3387_vm7, %v3369_v49, %v5361_v57  ;;  %4441 = vmatprep.mubr.msk.bf16.mxu1 %vm3571_vm11, %v3525_v53 }
 0x339   : > { %5714 = vrot.lane.b32.xlu1 %v8695_v58, %s5863_s11  ;;  %v3435_v30 = vsel %vm3420_vm8, %v3402_v50, %v5416_v12  ;;  %v3058_v23 = vsel %vm543_vm2, %v3055_v25, %v3057_v41  ;;  %v3159_v8 = vsel %vm720_vm3, %v3156_v61, %v3158_v54  ;;  %v5431_v41 = vunpack.i.l.bf16 %v8650_v55  ;;  %s9068_s11 = scalar_lea.vmem %s9283_s7, %s4344_s30  ;;  %s4346_s30 = sshll.u32 %s9568_s28, 6 }
 0x33a   : > { %5729 = vrot.lane.b32.xlu0 %v5728_v34, %s5861_s9  ;;  %v3469_v22 = vsel %vm3453_vm9, %v3436_v56, %v5442_v40  ;;  %v3468_v60 = vsel %vm3453_vm9, %v3435_v30, %v5441_v51  ;;  %v3157_v34 = vsel %vm720_vm3, %v3155_v21, %v3156_v61  ;;  %s9091_s14 = scalar_lea.vmem %s9284_s8, %s4346_s30 }
 0x33b   : > { %v5445_v37 = vpop.permute.xlu1 %5444  ;;  %v8708_v45 = vpop.permute.xlu0 %5424 }
 0x33c   : > { %v5447_v0 = vunpack.i.h.bf16 %v5445_v37  ;;  %v5446_v36 = vunpack.i.l.bf16 %v5445_v37 }
 0x33d   : > { %5724 = vrot.lane.b32.xlu1 %v8607_v32, %s5861_s9  ;;  %v3056_v32 = vsel %vm543_vm2, %v3054_v5, %v3055_v25  ;;  %v5411_v25 = vunpack.i.l.bf16 %v8672_v20  ;;  %v5432_v5 = vunpack.i.h.bf16 %v8650_v55 }
 0x33e   : > { %v3501_v33 = vsel %vm3486_vm10, %v3468_v60, %v5446_v36  ;;  %v3502_v42 = vsel %vm3486_vm10, %v3469_v22, %v5447_v0  ;;  %5739 = vrot.lane.b32.xlu0 %v7963_v48, %s5864_s12  ;;  %v5753_v35 = vpack.i.bf16 %v3058_v23, %v3056_v32  ;;  %v5412_v60 = vunpack.i.h.bf16 %v8672_v20 }
 0x33f   : > { %v3526_v9 = vpack.c.bf16 %v3502_v42, %v3501_v33  ;;  %v8720_v10 = vpop.permute.xlu1 %5449  ;;  %v8722_v39 = vpop.permute.xlu0 %5454  ;;  %v5407_v42 = vunpack.i.h.bf16 %v8601_v29  ;;  %v5437_v23 = vunpack.i.h.bf16 %v8670_v24  ;;  %v3338_v20 = vsel %vm3321_vm0, %v8575_v6, %v5411_v25 }
 0x341   : > { %4442 = vmatmul.mubr.msk.bf16.gmra.mxu1 %vm3571_vm11, %v3526_v9  ;;  %5734 = vrot.lane.b32.xlu1 %v5733_v46, %s5861_s9 }
 0x342   : > { %5749 = vrot.lane.b32.xlu0 %v8040_v4, %s5864_s12 }
 0x343   : > { %v8730_v7 = vpop.permute.xlu1 %5469  ;;  %v5460_v48 = vpop.permute.xlu0 %5459 }
 0x344   : > { %v5462_v26 = vunpack.i.h.bf16 %v5460_v48  ;;  %v5461_v27 = vunpack.i.l.bf16 %v5460_v48  ;;  %v5436_v48 = vunpack.i.l.bf16 %v8670_v24  ;;  %v5828_v24 = vld [vmem:[#allocation3 + $0x168] sm:$0xff] }
 0x345   : > { %5744 = vrot.lane.b32.xlu1 %v8643_v1, %s5864_s12 }
 0x346   : > { %5759 = vrot.lane.b32.xlu0 %v7988_v31, %s5865_s15  ;;  %v3281_v18 = vsel %vm1729_vm5, %v8227_v28, %v5462_v26  ;;  %v3280_v59 = vsel %vm1729_vm5, %v8235_v16, %v5461_v27  ;;  %v9558_v31 = vld [vmem:[#allocation21_spill] sm:$0xff]  ;;  %v5773_v16 = vpack.i.bf16 %v3159_v8, %v3157_v34 }
 0x347   : > { %v8736_v4 = vpop.permute.xlu1 %5474  ;;  %v5465_v62 = vpop.permute.xlu0 %5464 }
 0x348   : > { %v5467_v52 = vunpack.i.h.bf16 %v5465_v62  ;;  %v5466_v38 = vunpack.i.l.bf16 %v5465_v62 }
 0x349   : > { %5754 = vrot.lane.b32.xlu1 %v5753_v35, %s5864_s12  ;;  %v3339_v35 = vsel %vm3321_vm0, %v8578_v2, %v5412_v60 }
 0x34a   : > { %v3313_v1 = vsel %vm3288_vm15, %v3280_v59, %v5466_v38  ;;  %v3314_v11 = vsel %vm3288_vm15, %v3281_v18, %v5467_v52  ;;  %5769 = vrot.lane.b32.xlu0 %v9558_v31, %s5865_s15  ;;  %v5827_v59 = vld [vmem:[#allocation3 + $0x170] sm:$0xff] }
 0x34b   : > { %v8749_v14 = vpop.permute.xlu1 %5479  ;;  %v5485_v44 = vpop.permute.xlu0 %5484 }
 0x34c   : > { %v5487_v28 = vunpack.i.h.bf16 %v5485_v44  ;;  %v5486_v19 = vunpack.i.l.bf16 %v5485_v44 }
 0x34d   : > { %5764 = vrot.lane.b32.xlu1 %v8695_v58, %s5865_s15  ;;  %v9559_v58 = vld [vmem:[#allocation28_spill] sm:$0xff] }
 0x34e   : > { %v8754_v49 = vsel %vm3321_vm0, %v3314_v11, %v5487_v28  ;;  %v8757_v43 = vsel %vm3321_vm0, %v3313_v1, %v5486_v19  ;;  %v5829_v28 = vld [vmem:[#allocation3 + $0xe0] sm:$0xff] }
 0x34f   : > { %v8759_v13 = vpop.permute.xlu1 %5504  ;;  %v5490_v12 = vpop.permute.xlu0 %5489  ;;  %v3275_v19 = vsel %vm1729_vm5, %v5829_v28, %v5432_v5 }
 0x350   : > { %v5492_v57 = vunpack.i.h.bf16 %v5490_v12  ;;  %v5491_v40 = vunpack.i.l.bf16 %v5490_v12  ;;  %v5507_v25 = vunpack.i.h.bf16 %v8759_v13 }
 0x351   : > { %5774 = vrot.lane.b32.xlu1 %v5773_v16, %s5865_s15  ;;  %v5830_v16 = vld [vmem:[#allocation3 + $0xd8] sm:$0xff] }
 0x352   : > { %v3285_v50 = vsel %vm1729_vm5, %v9559_v58, %v5492_v57  ;;  %v3284_v37 = vsel %vm1729_vm5, %v9560_v63, %v5491_v40  ;;  %v3274_v12 = vsel %vm1729_vm5, %v5830_v16, %v5431_v41  ;;  %v5406_v41 = vunpack.i.l.bf16 %v8601_v29 }
 0x353   : > { %v8762_v51 = vpop.permute.xlu1 %5514  ;;  %v5495_v53 = vpop.permute.xlu0 %5494 }
 0x354   : > { %v5497_v47 = vunpack.i.h.bf16 %v5495_v53  ;;  %v5496_v15 = vunpack.i.l.bf16 %v5495_v53 }
 0x356   : > { %v8769_v3 = vsel %vm3288_vm15, %v3284_v37, %v5496_v15  ;;  %v8772_v56 = vsel %vm3288_vm15, %v3285_v50, %v5497_v47  ;;  %v3307_v37 = vsel %vm3288_vm15, %v3274_v12, %v5436_v48 }
 0x357   : > { %v8774_v30 = vpop.permute.xlu1 %5524  ;;  %v5500_v0 = vpop.permute.xlu0 %5499 }
 0x358   : > { %v5502_v26 = vunpack.i.h.bf16 %v5500_v0  ;;  %v5501_v27 = vunpack.i.l.bf16 %v5500_v0  ;;  %v3308_v0 = vsel %vm3288_vm15, %v3275_v19, %v5437_v23 }
 0x35a   : > { %v3372_v2 = vsel %vm3354_vm1, %v3339_v35, %v5502_v26  ;;  %v3371_v6 = vsel %vm3354_vm1, %v3338_v20, %v5501_v27  ;;  %v3340_v20 = vsel %vm3321_vm0, %v3307_v37, %v5406_v41  ;;  %v5452_v41 = vunpack.i.h.bf16 %v8720_v10 }
 0x35b   : > { %v8776_v36 = vpop.permute.xlu1 %5529  ;;  %v5510_v22 = vpop.permute.xlu0 %5509 }
 0x35c   : > { %v5512_v61 = vunpack.i.h.bf16 %v5510_v22  ;;  %v5511_v21 = vunpack.i.l.bf16 %v5510_v22 }
 0x35e   : > { %v3404_v57 = vsel %vm3387_vm7, %v3371_v6, %v5511_v21  ;;  %v3405_v40 = vsel %vm3387_vm7, %v3372_v2, %v5512_v61  ;;  %v3341_v61 = vsel %vm3321_vm0, %v3308_v0, %v5407_v42  ;;  %v5426_v2 = vunpack.i.l.bf16 %v8708_v45 }
 0x35f   : > { %v5535_v46 = vpop.permute.xlu1 %5534  ;;  %v5520_v33 = vpop.permute.xlu0 %5519 }
 0x360   : > { %v5537_v9 = vunpack.i.h.bf16 %v5535_v46  ;;  %v5536_v32 = vunpack.i.l.bf16 %v5535_v46  ;;  %v5522_v52 = vunpack.i.h.bf16 %v5520_v33  ;;  %v5521_v55 = vunpack.i.l.bf16 %v5520_v33 }
 0x361   : > { %v5506_v46 = vunpack.i.l.bf16 %v8759_v13 }
 0x362   : > { %v3287_v1 = vsel %vm1729_vm5, %v5827_v59, %v5537_v9  ;;  %v3286_v11 = vsel %vm1729_vm5, %v5828_v24, %v5536_v32  ;;  %v3437_v15 = vsel %vm3420_vm8, %v3404_v57, %v5521_v55  ;;  %v3438_v58 = vsel %vm3420_vm8, %v3405_v40, %v5522_v52  ;;  %v5831_v57 = vld [vmem:[#allocation3 + $0xf8] sm:$0xff] }
 0x363   : > { %v5540_v54 = vpop.permute.xlu1 %5539  ;;  %v5550_v62 = vpop.permute.xlu0 %5549  ;;  %v5517_v9 = vunpack.i.h.bf16 %v8762_v51  ;;  %v5516_v32 = vunpack.i.l.bf16 %v8762_v51  ;;  %v3373_v29 = vsel %vm3354_vm1, %v3340_v20, %v5506_v46  ;;  %v5421_v24 = vunpack.i.l.bf16 %v8691_v17  ;;  %v5834_v20 = vld [vmem:[#allocation3 + $0x108] sm:$0xff] }
 0x364   : > { %v5542_v38 = vunpack.i.h.bf16 %v5540_v54  ;;  %v5541_v18 = vunpack.i.l.bf16 %v5540_v54  ;;  %v5552_v31 = vunpack.i.h.bf16 %v5550_v62  ;;  %v5551_v34 = vunpack.i.l.bf16 %v5550_v62 }
 0x365   : > { %v3374_v54 = vsel %vm3354_vm1, %v3341_v61, %v5507_v25  ;;  %v3406_v62 = vsel %vm3387_vm7, %v3373_v29, %v5516_v32  ;;  %v5476_v25 = vunpack.i.l.bf16 %v8736_v4 }
 0x366   : > { %v8794_v8 = vsel %vm3288_vm15, %v3286_v11, %v5541_v18  ;;  %v8797_v44 = vsel %vm3288_vm15, %v3287_v1, %v5542_v38  ;;  %v3470_v22 = vsel %vm3453_vm9, %v3437_v15, %v5551_v34  ;;  %v3471_v60 = vsel %vm3453_vm9, %v3438_v58, %v5552_v31 }
 0x367   : > { %v5545_v53 = vpop.permute.xlu1 %5544  ;;  %v5560_v47 = vpop.permute.xlu0 %5559  ;;  %v3407_v51 = vsel %vm3387_vm7, %v3374_v54, %v5517_v9  ;;  %v5422_v1 = vunpack.i.h.bf16 %v8691_v17  ;;  %v5427_v34 = vunpack.i.h.bf16 %v8708_v45  ;;  %v5832_v17 = vld [vmem:[#allocation3 + $0xf0] sm:$0xff]  ;;  %v5457_v15 = vunpack.i.h.bf16 %v8722_v39 }
 0x368   : > { %v5562_v50 = vunpack.i.h.bf16 %v5560_v47  ;;  %v5561_v63 = vunpack.i.l.bf16 %v5560_v47  ;;  %v5547_v26 = vunpack.i.h.bf16 %v5545_v53  ;;  %v5546_v27 = vunpack.i.l.bf16 %v5545_v53 }
 0x369   : > { %v3277_v40 = vsel %vm1729_vm5, %v5831_v57, %v5422_v1  ;;  %v3276_v53 = vsel %vm1729_vm5, %v5832_v17, %v5421_v24  ;;  %v5456_v58 = vunpack.i.l.bf16 %v8722_v39  ;;  %v5451_v9 = vunpack.i.l.bf16 %v8720_v10 }
 0x36a   : > { %v3503_v33 = vsel %vm3486_vm10, %v3470_v22, %v5561_v63  ;;  %v3504_v5 = vsel %vm3486_vm10, %v3471_v60, %v5562_v50  ;;  %v3440_v55 = vsel %vm3420_vm8, %v3407_v51, %v5547_v26  ;;  %v3439_v38 = vsel %vm3420_vm8, %v3406_v62, %v5546_v27  ;;  %v5833_v27 = vld [vmem:[#allocation3 + $0x110] sm:$0xff] }
 0x36b   : > { %v3527_v48 = vpack.c.bf16 %v3504_v5, %v3503_v33  ;;  %v5555_v23 = vpop.permute.xlu1 %5554  ;;  %v5570_v35 = vpop.permute.xlu0 %5569  ;;  %v3309_v47 = vsel %vm3288_vm15, %v3276_v53, %v5426_v2  ;;  %v3310_v45 = vsel %vm3288_vm15, %v3277_v40, %v5427_v34  ;;  %v5472_v50 = vunpack.i.h.bf16 %v8730_v7 }
 0x36c   : > { %v5557_v13 = vunpack.i.h.bf16 %v5555_v23  ;;  %v5556_v21 = vunpack.i.l.bf16 %v5555_v23  ;;  %v5471_v63 = vunpack.i.l.bf16 %v8730_v7  ;;  %v5572_v37 = vunpack.i.h.bf16 %v5570_v35 }
 0x36d   : > { %4445 = vmatprep.mubr.msk.bf16.mxu1 %vm3571_vm11, %v3527_v48  ;;  %v5571_v0 = vunpack.i.l.bf16 %v5570_v35  ;;  %v5477_v60 = vunpack.i.h.bf16 %v8736_v4  ;;  %v3343_v48 = vsel %vm3321_vm0, %v3310_v45, %v5457_v15  ;;  %v3342_v7 = vsel %vm3321_vm0, %v3309_v47, %v5456_v58 }
 0x36e   : > { %v3472_v11 = vsel %vm3453_vm9, %v3439_v38, %v5556_v21  ;;  %v3473_v31 = vsel %vm3453_vm9, %v3440_v55, %v5557_v13  ;;  %v3279_v35 = vsel %vm1729_vm5, %v5833_v27, %v5472_v50  ;;  %v3278_v4 = vsel %vm1729_vm5, %v5834_v20, %v5471_v63 }
 0x36f   : > { %v5565_v52 = vpop.permute.xlu1 %5564  ;;  %v5580_v42 = vpop.permute.xlu0 %5579  ;;  %v3376_v61 = vsel %vm3354_vm1, %v3343_v48, %v5572_v37  ;;  %v3375_v13 = vsel %vm3354_vm1, %v3342_v7, %v5571_v0  ;;  %v3311_v10 = vsel %vm3288_vm15, %v3278_v4, %v5476_v25  ;;  %v3312_v54 = vsel %vm3288_vm15, %v3279_v35, %v5477_v60 }
 0x370   : > { %v5567_v18 = vunpack.i.h.bf16 %v5565_v52  ;;  %v5566_v59 = vunpack.i.l.bf16 %v5565_v52  ;;  %v5582_v46 = vunpack.i.h.bf16 %v5580_v42  ;;  %v5581_v33 = vunpack.i.l.bf16 %v5580_v42 }
 0x371   : > { %v3344_v40 = vsel %vm3321_vm0, %v3311_v10, %v5451_v9  ;;  %v3345_v17 = vsel %vm3321_vm0, %v3312_v54, %v5452_v41  ;;  %v5526_v48 = vunpack.i.l.bf16 %v8774_v30  ;;  %v5532_v27 = vunpack.i.h.bf16 %v8776_v36 }
 0x372   : > { %v3505_v6 = vsel %vm3486_vm10, %v3472_v11, %v5566_v59  ;;  %v3506_v28 = vsel %vm3486_vm10, %v3473_v31, %v5567_v18  ;;  %v3408_v29 = vsel %vm3387_vm7, %v3375_v13, %v5581_v33  ;;  %v3409_v62 = vsel %vm3387_vm7, %v3376_v61, %v5582_v46 }
 0x373   : > { %v3528_v19 = vpack.c.bf16 %v3506_v28, %v3505_v6  ;;  %v8833_v16 = vpop.permute.xlu1 %5574  ;;  %v5590_v12 = vpop.permute.xlu0 %5589  ;;  %v5531_v35 = vunpack.i.l.bf16 %v8776_v36  ;;  %v5482_v10 = vunpack.i.h.bf16 %v8749_v14  ;;  %v5481_v54 = vunpack.i.l.bf16 %v8749_v14 }
 0x374   : > { %v5592_v32 = vunpack.i.h.bf16 %v5590_v12  ;;  %v5591_v39 = vunpack.i.l.bf16 %v5590_v12  ;;  %v5577_v59 = vunpack.i.h.bf16 %v8833_v16  ;;  %v5576_v42 = vunpack.i.l.bf16 %v8833_v16 }
 0x375   : > { %4446 = vmatmul.mubr.msk.bf16.gmra.mxu1 %vm3571_vm11, %v3528_v19 }
 0x376   : > { %v3441_v52 = vsel %vm3420_vm8, %v3408_v29, %v5591_v39  ;;  %v3442_v55 = vsel %vm3420_vm8, %v3409_v62, %v5592_v32  ;;  %v3378_v47 = vsel %vm3354_vm1, %v3345_v17, %v5577_v59  ;;  %v3377_v45 = vsel %vm3354_vm1, %v3344_v40, %v5576_v42 }
 0x377   : > { %v5585_v22 = vpop.permute.xlu1 %5584  ;;  %v5600_v5 = vpop.permute.xlu0 %5599  ;;  %v5527_v39 = vunpack.i.h.bf16 %v8774_v30 }
 0x378   : > { %v5602_v23 = vunpack.i.h.bf16 %v5600_v5  ;;  %v5601_v26 = vunpack.i.l.bf16 %v5600_v5  ;;  %v5587_v11 = vunpack.i.h.bf16 %v5585_v22  ;;  %v5586_v31 = vunpack.i.l.bf16 %v5585_v22 }
 0x37a   : > { %v3474_v1 = vsel %vm3453_vm9, %v3441_v52, %v5601_v26  ;;  %v3475_v24 = vsel %vm3453_vm9, %v3442_v55, %v5602_v23  ;;  %v3410_v15 = vsel %vm3387_vm7, %v3377_v45, %v5586_v31  ;;  %v3411_v58 = vsel %vm3387_vm7, %v3378_v47, %v5587_v11  ;;  %v5836_v52 = vld [vmem:[#allocation3 + $0x138] sm:$0xff] }
 0x37b   : > { %v5595_v21 = vpop.permute.xlu1 %5594  ;;  %v3282_v55 = vsel %vm1729_vm5, %v5836_v52, %v5526_v48 }
 0x37c   : > { %v5610_v51 = vpop.permute.xlu0 %5609  ;;  %v5597_v28 = vunpack.i.h.bf16 %v5595_v21  ;;  %v5596_v19 = vunpack.i.l.bf16 %v5595_v21  ;;  %v3315_v59 = vsel %vm3288_vm15, %v3282_v55, %v5531_v35 }
 0x37d   : > { %v5612_v38 = vunpack.i.h.bf16 %v5610_v51  ;;  %v5611_v18 = vunpack.i.l.bf16 %v5610_v51  ;;  %v5835_v51 = vld [vmem:[#allocation3 + $0x140] sm:$0xff] }
 0x37e   : > { %v3443_v63 = vsel %vm3420_vm8, %v3410_v15, %v5596_v19  ;;  %v3444_v37 = vsel %vm3420_vm8, %v3411_v58, %v5597_v28  ;;  %v3283_v30 = vsel %vm1729_vm5, %v5835_v51, %v5527_v39  ;;  %v3348_v15 = vsel %vm3321_vm0, %v3315_v59, %v5481_v54  ;;  %v5838_v59 = vld [vmem:[#allocation3] sm:$0xff] }
 0x37f   : > { %v3507_v34 = vsel %vm3486_vm10, %v3474_v1, %v5611_v18  ;;  %v3508_v2 = vsel %vm3486_vm10, %v3475_v24, %v5612_v38  ;;  %v5605_v6 = vpop.permute.xlu1 %5604  ;;  %v3316_v42 = vsel %vm3288_vm15, %v3283_v30, %v5532_v27  ;;  %v9563_v30 = vld [vmem:[#allocation26_spill] sm:$0xff] }
 0x380   : > { %v3529_v12 = vpack.c.bf16 %v3508_v2, %v3507_v34  ;;  %v5620_v57 = vpop.permute.xlu0 %5619  ;;  %v5607_v16 = vunpack.i.h.bf16 %v5605_v6  ;;  %v5606_v53 = vunpack.i.l.bf16 %v5605_v6  ;;  %v3349_v58 = vsel %vm3321_vm0, %v3316_v42, %v5482_v10 }
 0x381   : > { %v5622_v7 = vunpack.i.h.bf16 %v5620_v57  ;;  %v5621_v23 = vunpack.i.l.bf16 %v5620_v57  ;;  %v5172_v52 = vunpack.i.h.bf16 %v9563_v30  ;;  %v5171_v55 = vunpack.i.l.bf16 %v9563_v30 }
 0x382   : > { %4449 = vmatprep.mubr.msk.bf16.mxu1 %vm3571_vm11, %v3529_v12  ;;  %v3476_v25 = vsel %vm3453_vm9, %v3443_v63, %v5606_v53  ;;  %v3477_v46 = vsel %vm3453_vm9, %v3444_v37, %v5607_v16 }
 0x383   : > { %v5615_v50 = vpop.permute.xlu1 %5614  ;;  %v3380_v36 = vsel %vm3354_vm1, %v8754_v49, %v5622_v7  ;;  %v3379_v38 = vsel %vm3354_vm1, %v8757_v43, %v5621_v23 }
 0x384   : > { %v5617_v0 = vunpack.i.h.bf16 %v5615_v50  ;;  %v5616_v22 = vunpack.i.l.bf16 %v5615_v50  ;;  %v5630_v60 = vpop.permute.xlu0 %5629 }
 0x385   : > { %v5632_v20 = vunpack.i.h.bf16 %v5630_v60  ;;  %v5631_v4 = vunpack.i.l.bf16 %v5630_v60 }
 0x386   : > { %v3509_v33 = vsel %vm3486_vm10, %v3476_v25, %v5616_v22  ;;  %v3510_v5 = vsel %vm3486_vm10, %v3477_v46, %v5617_v0 }
 0x387   : > { %v3530_v41 = vpack.c.bf16 %v3510_v5, %v3509_v33  ;;  %v5625_v9 = vpop.permute.xlu1 %5624  ;;  %v3412_v14 = vsel %vm3387_vm7, %v3379_v38, %v5631_v4  ;;  %v3413_v1 = vsel %vm3387_vm7, %v3380_v36, %v5632_v20  ;;  %v5837_v38 = vld [vmem:[#allocation3 + $0x8] sm:$0xff] }
 0x388   : > { %v5640_v32 = vpop.permute.xlu0 %5639  ;;  %v5627_v49 = vunpack.i.h.bf16 %v5625_v9  ;;  %v5626_v6 = vunpack.i.l.bf16 %v5625_v9 }
 0x389   : > { %4450 = vmatmul.mubr.msk.bf16.gmra.mxu1 %vm3571_vm11, %v3530_v41  ;;  %v5642_v13 = vunpack.i.h.bf16 %v5640_v32  ;;  %v5641_v21 = vunpack.i.l.bf16 %v5640_v32 }
 0x38a   : > { %v3382_v37 = vsel %vm3354_vm1, %v3349_v58, %v5627_v49  ;;  %v3381_v0 = vsel %vm3354_vm1, %v3348_v15, %v5626_v6 }
 0x38b   : > { %v5635_v26 = vpop.permute.xlu1 %5634  ;;  %v3445_v11 = vsel %vm3420_vm8, %v3412_v14, %v5641_v21  ;;  %v3446_v31 = vsel %vm3420_vm8, %v3413_v1, %v5642_v13  ;;  %v9561_v13 = vld [vmem:[#allocation22_spill] sm:$0xff]  ;;  %v9564_v14 = vld [vmem:[#allocation27_spill] sm:$0xff] }
 0x38c   : > { %v5650_v61 = vpop.permute.xlu0 %5649  ;;  %v5637_v19 = vunpack.i.h.bf16 %v5635_v26  ;;  %v5636_v12 = vunpack.i.l.bf16 %v5635_v26  ;;  %v5142_v21 = vunpack.i.h.bf16 %v9561_v13  ;;  %v5141_v10 = vunpack.i.l.bf16 %v9561_v13 }
 0x38d   : > { %v5652_v29 = vunpack.i.h.bf16 %v5650_v61  ;;  %v5651_v62 = vunpack.i.l.bf16 %v5650_v61  ;;  %v5177_v1 = vunpack.i.h.bf16 %v9564_v14 }
 0x38e   : > { %v3414_v22 = vsel %vm3387_vm7, %v3381_v0, %v5636_v12  ;;  %v3415_v60 = vsel %vm3387_vm7, %v3382_v37, %v5637_v19  ;;  %v3256_v42 = vsel %vm1729_vm5, %v5838_v59, %v5141_v10  ;;  %v5840_v19 = vld [vmem:[#allocation3 + $0x18] sm:$0xff] }
 0x38f   : > { %v5645_v18 = vpop.permute.xlu1 %5644  ;;  %v3478_v43 = vsel %vm3453_vm9, %v3445_v11, %v5651_v62  ;;  %v3479_v28 = vsel %vm3453_vm9, %v3446_v31, %v5652_v29  ;;  %v9562_v29 = vld [vmem:[#allocation23_spill] sm:$0xff]  ;;  %v9565_v11 = vld [vmem:[#allocation25_spill] sm:$0xff]  ;;  %v3258_v12 = vsel %vm1729_vm5, %v5840_v19, %v5171_v55 }
 0x390   : > { %v5660_v24 = vpop.permute.xlu0 %5659  ;;  %v5647_v16 = vunpack.i.h.bf16 %v5645_v18  ;;  %v5646_v53 = vunpack.i.l.bf16 %v5645_v18  ;;  %v5147_v62 = vunpack.i.h.bf16 %v9562_v29  ;;  %v5146_v51 = vunpack.i.l.bf16 %v9562_v29 }
 0x391   : > { %v5662_v34 = vunpack.i.h.bf16 %v5660_v24  ;;  %v5661_v2 = vunpack.i.l.bf16 %v5660_v24  ;;  %v3257_v18 = vsel %vm1729_vm5, %v5837_v38, %v5142_v21  ;;  %v5176_v24 = vunpack.i.l.bf16 %v9564_v14 }
 0x392   : > { %v3447_v46 = vsel %vm3420_vm8, %v3414_v22, %v5646_v53  ;;  %v3448_v33 = vsel %vm3420_vm8, %v3415_v60, %v5647_v16  ;;  %v5157_v31 = vunpack.i.h.bf16 %v9565_v11  ;;  %v3289_v49 = vsel %vm3288_vm15, %v3256_v42, %v5146_v51 }
 0x393   : > { %v3511_v57 = vsel %vm3486_vm10, %v3478_v43, %v5661_v2  ;;  %v3512_v40 = vsel %vm3486_vm10, %v3479_v28, %v5662_v34  ;;  %v5655_v17 = vpop.permute.xlu1 %5654  ;;  %v5156_v34 = vunpack.i.l.bf16 %v9565_v11  ;;  %v3290_v6 = vsel %vm3288_vm15, %v3257_v18, %v5147_v62  ;;  %v5839_v43 = vld [vmem:[#allocation3 + $0x20] sm:$0xff] }
 0x394   : > { %v3531_v47 = vpack.c.bf16 %v3512_v40, %v3511_v57  ;;  %v8902_v45 = vpop.permute.xlu0 %5669  ;;  %v5657_v50 = vunpack.i.h.bf16 %v5655_v17  ;;  %v5656_v63 = vunpack.i.l.bf16 %v5655_v17  ;;  %v3259_v28 = vsel %vm1729_vm5, %v5839_v43, %v5172_v52  ;;  %v9566_v40 = vld [vmem:[#allocation24_spill] sm:$0xff] }
 0x395   : > { %v5152_v17 = vunpack.i.h.bf16 %v9566_v40  ;;  %v3291_v16 = vsel %vm3288_vm15, %v3258_v12, %v5176_v24  ;;  %v3292_v53 = vsel %vm3288_vm15, %v3259_v28, %v5177_v1  ;;  %v5151_v15 = vunpack.i.l.bf16 %v9566_v40 }
 0x396   : > { %4453 = vmatprep.mubr.msk.bf16.mxu1 %vm3571_vm11, %v3531_v47  ;;  %v3480_v32 = vsel %vm3453_vm9, %v3447_v46, %v5656_v63  ;;  %v3481_v39 = vsel %vm3453_vm9, %v3448_v33, %v5657_v50  ;;  %v5672_v47 = vunpack.i.h.bf16 %v8902_v45  ;;  %v5671_v58 = vunpack.i.l.bf16 %v8902_v45 }
 0x397   : > { %v5665_v25 = vpop.permute.xlu1 %5664  ;;  %v3323_v37 = vsel %vm3321_vm0, %v3290_v6, %v5157_v31  ;;  %v3322_v0 = vsel %vm3321_vm0, %v3289_v49, %v5156_v34  ;;  %v3324_v46 = vsel %vm3321_vm0, %v3291_v16, %v5151_v15  ;;  %v3325_v33 = vsel %vm3321_vm0, %v3292_v53, %v5152_v17 }
 0x398   : > { %v5667_v5 = vunpack.i.h.bf16 %v5665_v25  ;;  %v5666_v41 = vunpack.i.l.bf16 %v5665_v25  ;;  %v8913_v9 = vpop.permute.xlu0 %5679 }
 0x399   : > { %v5682_v50 = vunpack.i.h.bf16 %v8913_v9  ;;  %v5681_v63 = vunpack.i.l.bf16 %v8913_v9  ;;  %v3351_v9 = vsel %vm3321_vm0, %v8772_v56, %v5672_v47 }
 0x39a   : > { %v3513_v48 = vsel %vm3486_vm10, %v3480_v32, %v5666_v41  ;;  %v3514_v7 = vsel %vm3486_vm10, %v3481_v39, %v5667_v5 }
 0x39b   : > { %v3532_v23 = vpack.c.bf16 %v3514_v7, %v3513_v48  ;;  %v5675_v26 = vpop.permute.xlu1 %5674  ;;  %v3350_v7 = vsel %vm3321_vm0, %v8769_v3, %v5671_v58 }
 0x39c   : > { %v8919_v27 = vpop.permute.xlu0 %5689  ;;  %v5677_v22 = vunpack.i.h.bf16 %v5675_v26  ;;  %v5676_v60 = vunpack.i.l.bf16 %v5675_v26  ;;  %v3355_v26 = vsel %vm3354_vm1, %v3322_v0, %v5681_v63 }
 0x39d   : > { %4454 = vmatmul.mubr.msk.bf16.gmra.mxu1 %vm3571_vm11, %v3532_v23  ;;  %v5692_v5 = vunpack.i.h.bf16 %v8919_v27  ;;  %v5691_v45 = vunpack.i.l.bf16 %v8919_v27  ;;  %v3356_v23 = vsel %vm3354_vm1, %v3323_v37, %v5682_v50 }
 0x39e   : > { %v8982_v27 = vsel %vm3321_vm0, %v8794_v8, %v5676_v60  ;;  %v8986_v56 = vsel %vm3321_vm0, %v8797_v44, %v5677_v22 }
 0x39f   : > { %v8922_v35 = vpop.permute.xlu1 %5684  ;;  %v3358_v3 = vsel %vm3354_vm1, %v3325_v33, %v5692_v5  ;;  %v3357_v29 = vsel %vm3354_vm1, %v3324_v46, %v5691_v45 }
 0x3a0   : > { %v8924_v20 = vpop.permute.xlu0 %5699  ;;  %v5687_v32 = vunpack.i.h.bf16 %v8922_v35  ;;  %v5686_v39 = vunpack.i.l.bf16 %v8922_v35 }
 0x3a1   : > { %v5701_v48 = vunpack.i.l.bf16 %v8924_v20  ;;  %v5702_v13 = vunpack.i.h.bf16 %v8924_v20 }
 0x3a2   : > { %v3384_v51 = vsel %vm3354_vm1, %v3351_v9, %v5687_v32  ;;  %v3383_v44 = vsel %vm3354_vm1, %v3350_v7, %v5686_v39 }
 0x3a3   : > { %v8926_v4 = vpop.permute.xlu1 %5694  ;;  %v3388_v30 = vsel %vm3387_vm7, %v3355_v26, %v5701_v48 }
 0x3a4   : > { %v8928_v61 = vpop.permute.xlu0 %5709  ;;  %v5697_v55 = vunpack.i.h.bf16 %v8926_v4  ;;  %v5696_v59 = vunpack.i.l.bf16 %v8926_v4 }
 0x3a5   : > { %v5712_v35 = vunpack.i.h.bf16 %v8928_v61  ;;  %v5711_v21 = vunpack.i.l.bf16 %v8928_v61  ;;  %v3389_v61 = vsel %vm3387_vm7, %v3356_v23, %v5702_v13 }
 0x3a7   : > { %v8932_v54 = vpop.permute.xlu1 %5704  ;;  %v3390_v42 = vsel %vm3387_vm7, %v3357_v29, %v5711_v21  ;;  %v3391_v14 = vsel %vm3387_vm7, %v3358_v3, %v5712_v35  ;;  %v3385_v29 = vsel %vm3354_vm1, %v8982_v27, %v5696_v59 }
 0x3a8   : > { %v8938_v36 = vpop.permute.xlu0 %5719  ;;  %v5706_v20 = vunpack.i.l.bf16 %v8932_v54  ;;  %v5707_v1 = vunpack.i.h.bf16 %v8932_v54 }
 0x3a9   : > { %v5721_v62 = vunpack.i.l.bf16 %v8938_v36  ;;  %v5722_v52 = vunpack.i.h.bf16 %v8938_v36 }
 0x3aa   : > { %v3416_v11 = vsel %vm3387_vm7, %v3383_v44, %v5706_v20  ;;  %v3417_v17 = vsel %vm3387_vm7, %v3384_v51, %v5707_v1  ;;  %v3386_v20 = vsel %vm3354_vm1, %v8986_v56, %v5697_v55 }
 0x3ab   : > { %v8946_v2 = vpop.permute.xlu1 %5714  ;;  %v3421_v31 = vsel %vm3420_vm8, %v3388_v30, %v5721_v62  ;;  %v3422_v6 = vsel %vm3420_vm8, %v3389_v61, %v5722_v52 }
 0x3ac   : > { %v8952_v57 = vpop.permute.xlu0 %5729  ;;  %v5717_v15 = vunpack.i.h.bf16 %v8946_v2  ;;  %v5716_v33 = vunpack.i.l.bf16 %v8946_v2 }
 0x3ad   : > { %v5732_v36 = vunpack.i.h.bf16 %v8952_v57  ;;  %v5731_v34 = vunpack.i.l.bf16 %v8952_v57 }
 0x3ae   : > { %v3419_v51 = vsel %vm3387_vm7, %v3386_v20, %v5717_v15 }
 0x3af   : > { %v8964_v25 = vpop.permute.xlu1 %5724  ;;  %v3423_v58 = vsel %vm3420_vm8, %v3390_v42, %v5731_v34  ;;  %v3424_v50 = vsel %vm3420_vm8, %v3391_v14, %v5732_v36  ;;  %v9052_v14 = vld [vmem:[%s9281_s5] ss:$0 sm:$0xff] }
 0x3b0   : > { %v5740_v41 = vpop.permute.xlu0 %5739  ;;  %v5726_v4 = vunpack.i.l.bf16 %v8964_v25  ;;  %v5727_v16 = vunpack.i.h.bf16 %v8964_v25 }
 0x3b1   : > { %v5742_v38 = vunpack.i.h.bf16 %v5740_v41  ;;  %v5741_v18 = vunpack.i.l.bf16 %v5740_v41 }
 0x3b2   : > { %v3449_v25 = vsel %vm3420_vm8, %v3416_v11, %v5726_v4  ;;  %v3450_v41 = vsel %vm3420_vm8, %v3417_v17, %v5727_v16 }
 0x3b3   : > { %v8990_v10 = vpop.permute.xlu1 %5734  ;;  %v3454_v19 = vsel %vm3453_vm9, %v3421_v31, %v5741_v18  ;;  %v3455_v54 = vsel %vm3453_vm9, %v3422_v6, %v5742_v38 }
 0x3b4   : > { %v5750_v8 = vpop.permute.xlu0 %5749  ;;  %v5737_v9 = vunpack.i.h.bf16 %v8990_v10  ;;  %v5736_v7 = vunpack.i.l.bf16 %v8990_v10  ;;  %v3418_v10 = vsel %vm3387_vm7, %v3385_v29, %v5716_v33 }
 0x3b5   : > { %v5752_v12 = vunpack.i.h.bf16 %v5750_v8  ;;  %v5751_v40 = vunpack.i.l.bf16 %v5750_v8 }
 0x3b6   : > { %v3451_v52 = vsel %vm3420_vm8, %v3418_v10, %v5736_v7  ;;  %v3452_v61 = vsel %vm3420_vm8, %v3419_v51, %v5737_v9 }
 0x3b7   : > { %v5745_v24 = vpop.permute.xlu1 %5744  ;;  %v3456_v5 = vsel %vm3453_vm9, %v3423_v58, %v5751_v40  ;;  %v3457_v45 = vsel %vm3453_vm9, %v3424_v50, %v5752_v12 }
 0x3b8   : > { %v5760_v49 = vpop.permute.xlu0 %5759  ;;  %v5747_v0 = vunpack.i.h.bf16 %v5745_v24  ;;  %v5746_v22 = vunpack.i.l.bf16 %v5745_v24  ;;  %v9057_v24 = vld [vmem:[%s9282_s6] ss:$0 sm:$0xff] }
 0x3b9   : > { %v5762_v43 = vunpack.i.h.bf16 %v5760_v49  ;;  %v5761_v28 = vunpack.i.l.bf16 %v5760_v49 }
 0x3ba   : > { %v3482_v13 = vsel %vm3453_vm9, %v3449_v25, %v5746_v22  ;;  %v3483_v35 = vsel %vm3453_vm9, %v3450_v41, %v5747_v0 }
 0x3bb   : > { %v3487_v53 = vsel %vm3486_vm10, %v3454_v19, %v5761_v28  ;;  %v3488_v57 = vsel %vm3486_vm10, %v3455_v54, %v5762_v43  ;;  %v5755_v47 = vpop.permute.xlu1 %5754 }
 0x3bc   : > { %v3519_v63 = vpack.c.bf16 %v3488_v57, %v3487_v53  ;;  %v5770_v37 = vpop.permute.xlu0 %5769  ;;  %v5757_v21 = vunpack.i.h.bf16 %v5755_v47  ;;  %v5756_v3 = vunpack.i.l.bf16 %v5755_v47 }
 0x3bd   : > { %v5772_v60 = vunpack.i.h.bf16 %v5770_v37  ;;  %v5771_v46 = vunpack.i.l.bf16 %v5770_v37 }
 0x3be   : > { %4429 = vmatprep.mubr.msk.bf16.mxu0 %vm3571_vm11, %v3519_v63  ;;  %v3484_v56 = vsel %vm3453_vm9, %v3451_v52, %v5756_v3  ;;  %v3485_v55 = vsel %vm3453_vm9, %v3452_v61, %v5757_v21 }
 0x3bf   : > { %v3489_v32 = vsel %vm3486_vm10, %v3456_v5, %v5771_v46  ;;  %v3490_v39 = vsel %vm3486_vm10, %v3457_v45, %v5772_v60  ;;  %v5765_v48 = vpop.permute.xlu1 %5764 }
 0x3c0   : > { %v3520_v2 = vpack.c.bf16 %v3490_v39, %v3489_v32  ;;  %v5767_v23 = vunpack.i.h.bf16 %v5765_v48  ;;  %v5766_v26 = vunpack.i.l.bf16 %v5765_v48 }
 0x3c2   : > { %v3515_v62 = vsel %vm3486_vm10, %v3482_v13, %v5766_v26  ;;  %v3516_v8 = vsel %vm3486_vm10, %v3483_v35, %v5767_v23  ;;  %4430 = vmatmul.mubr.msk.bf16.vlgmr.msra.gmra.mxu0 %vm3571_vm11, %v3520_v2 }
 0x3c3   : > { %v3533_v44 = vpack.c.bf16 %v3516_v8, %v3515_v62  ;;  %v5775_v30 = vpop.permute.xlu1 %5774 }
 0x3c4   : > { %v5777_v27 = vunpack.i.h.bf16 %v5775_v30  ;;  %v5776_v38 = vunpack.i.l.bf16 %v5775_v30 }
 0x3c5   : > { %4457 = vmatprep.mubr.msk.bf16.mxu1 %vm3571_vm11, %v3533_v44 }
 0x3c6   : > { %v3517_v18 = vsel %vm3486_vm10, %v3484_v56, %v5776_v38  ;;  %v3518_v59 = vsel %vm3486_vm10, %v3485_v55, %v5777_v27 }
 0x3c7   : > { %v3534_v42 = vpack.c.bf16 %v3518_v59, %v3517_v18 }
 0x3c9   : > { %v4435_v1 = vpop.f32.mrf.mxu1  ;;  %4458 = vmatmul.mubr.msk.bf16.gmra.mxu1 %vm3571_vm11, %v3534_v42 }
 0x3ca   : > { %v3797_v11 = vmul.f32 %v4435_v1, %v9052_v14 }
 0x3cb   : > { %v3673_v31 = vpop.f32.mrf.mxu1 }
 0x3cc   : > { %v3836_v36 = vadd.f32 %v9057_v24, %v3797_v11  ;;  %v3795_v34 = vmul.f32 %v9052_v14, %v3673_v31 }
 0x3cd   : > { %v4436_v49 = vpop.f32.mrf.mxu1 }
 0x3ce   : > { %v3868_v6 = vmax.f32 %v3836_v36, 0.0  ;;  %v3834_v4 = vadd.f32 %v9057_v24, %v3795_v34  ;;  %v3798_v43 = vmul.f32 %v4436_v49, %v9052_v14 }
 0x3cf   : > { %v3676_v28 = vpop.f32.mrf.mxu1 }
 0x3d0   : > { %3900 = vst.msk [vmem:[%s9068_s11 + $0x30] sm:$0xff] %vm1729_vm5, %v3868_v6  ;;  %v3866_v19 = vmax.f32 %v3834_v4, 0.0  ;;  %v3837_v54 = vadd.f32 %v9057_v24, %v3798_v43  ;;  %v3796_v12 = vmul.f32 %v9052_v14, %v3676_v28 }
 0x3d2   : > { %3898 = vst.msk [vmem:[%s9068_s11 + $0x20] sm:$0xff] %vm1729_vm5, %v3866_v19  ;;  %v3928_v40 = vmax.f32 %v3866_v19, %v3868_v6  ;;  %v3869_v17 = vmax.f32 %v3837_v54, 0.0  ;;  %v3835_v16 = vadd.f32 %v9057_v24, %v3796_v12 }
 0x3d4   : > { %v3951_v53 = vrot.slane %v3928_v40, 1  ;;  %3901 = vst.msk [vmem:[%s9068_s11 + $0x38] sm:$0xff] %vm1729_vm5, %v3869_v17  ;;  %v3867_v57 = vmax.f32 %v3835_v16, 0.0 }
 0x3d6   : > { %v3967_v47 = vmax.f32 %v3928_v40, %v3951_v53  ;;  %3899 = vst.msk [vmem:[%s9068_s11 + $0x28] sm:$0xff] %vm1729_vm5, %v3867_v57  ;;  %v3929_v15 = vmax.f32 %v3867_v57, %v3869_v17 }
 0x3d8   : > { %v4015_v58 = vrot.slane %v3967_v47, 1  ;;  %v4031_v50 = vrot.slane %v3967_v47, 2  ;;  %v3983_v63 = vrot.slane %v3929_v15, 1  ;;  %v4047_v37 = vrot.slane %v3967_v47, 3 }
 0x3da   : > { %v4136_v0 = vsel %vm4134_vm12, %v3967_v47, %v4015_v58  ;;  %v3999_v22 = vmax.f32 %v3929_v15, %v3983_v63 }
 0x3db   : > { %v4145_v60 = vsel %vm4143_vm13, %v4136_v0, %v4031_v50 }
 0x3dc   : > { %v4154_v46 = vsel %vm4152_vm14, %v4145_v60, %v4047_v37  ;;  %v4071_v33 = vrot.slane %v3999_v22, 4  ;;  %v4087_v25 = vrot.slane %v3999_v22, 5  ;;  %v4103_v5 = vrot.slane %v3999_v22, 6 }
 0x3dd   : > { %v4119_v41 = vrot.slane %v3999_v22, 7 }
 0x3de   : > { %v4162_v45 = vsel %vm1834_vm4, %v4154_v46, %v4071_v33 }
 0x3df   : > { %v4170_v9 = vsel %vm1835_vm6, %v4162_v45, %v4087_v25 }
 0x3e0   : > { %v4178_v32 = vsel %vm720_vm3, %v4170_v9, %v4103_v5 }
 0x3e1   : > { %v4186_v39 = vsel %vm543_vm2, %v4178_v32, %v4119_v41 }
 0x3e2   : > { %4194 = vst.msk [vmem:[%s9091_s14 + $0x8] sm:$0xff] %vm1729_vm5, %v4186_v39 }
 0x3e9   : > { %v4439_v48 = vpop.f32.mrf.mxu1 }
 0x3ea   : > { %v3801_v7 = vmul.f32 %v4439_v48, %v9052_v14 }
 0x3eb   : > { %v3689_v2 = vpop.f32.mrf.mxu1 }
 0x3ec   : > { %v3840_v23 = vadd.f32 %v9057_v24, %v3801_v7  ;;  %v3799_v26 = vmul.f32 %v9052_v14, %v3689_v2 }
 0x3ed   : > { %v4440_v13 = vpop.f32.mrf.mxu1 }
 0x3ee   : > { %v3872_v35 = vmax.f32 %v3840_v23, 0.0  ;;  %v3838_v21 = vadd.f32 %v9057_v24, %v3799_v26  ;;  %v3802_v3 = vmul.f32 %v4440_v13, %v9052_v14 }
 0x3ef   : > { %v3692_v29 = vpop.f32.mrf.mxu1 }
 0x3f0   : > { %3904 = vst.msk [vmem:[%s9068_s11 + $0x50] sm:$0xff] %vm1729_vm5, %v3872_v35  ;;  %v3870_v20 = vmax.f32 %v3838_v21, 0.0  ;;  %v3841_v62 = vadd.f32 %v9057_v24, %v3802_v3  ;;  %v3800_v8 = vmul.f32 %v9052_v14, %v3692_v29 }
 0x3f2   : > { %3902 = vst.msk [vmem:[%s9068_s11 + $0x40] sm:$0xff] %vm1729_vm5, %v3870_v20  ;;  %v3930_v10 = vmax.f32 %v3870_v20, %v3872_v35  ;;  %v3873_v51 = vmax.f32 %v3841_v62, 0.0  ;;  %v3839_v44 = vadd.f32 %v9057_v24, %v3800_v8 }
 0x3f4   : > { %v3952_v30 = vrot.slane %v3930_v10, 1  ;;  %3905 = vst.msk [vmem:[%s9068_s11 + $0x58] sm:$0xff] %vm1729_vm5, %v3873_v51  ;;  %v3871_v52 = vmax.f32 %v3839_v44, 0.0 }
 0x3f6   : > { %v3968_v61 = vmax.f32 %v3930_v10, %v3952_v30  ;;  %3903 = vst.msk [vmem:[%s9068_s11 + $0x48] sm:$0xff] %vm1729_vm5, %v3871_v52  ;;  %v3931_v27 = vmax.f32 %v3871_v52, %v3873_v51 }
 0x3f8   : > { %v4016_v38 = vrot.slane %v3968_v61, 1  ;;  %v4032_v56 = vrot.slane %v3968_v61, 2  ;;  %v3984_v55 = vrot.slane %v3931_v27, 1  ;;  %v4048_v18 = vrot.slane %v3968_v61, 3 }
 0x3fa   : > { %v4137_v59 = vsel %vm4134_vm12, %v3968_v61, %v4016_v38  ;;  %v4000_v42 = vmax.f32 %v3931_v27, %v3984_v55 }
 0x3fb   : > { %v4146_v1 = vsel %vm4143_vm13, %v4137_v59, %v4032_v56 }
 0x3fc   : > { %v4155_v11 = vsel %vm4152_vm14, %v4146_v1, %v4048_v18  ;;  %v4072_v31 = vrot.slane %v4000_v42, 4  ;;  %v4088_v36 = vrot.slane %v4000_v42, 5  ;;  %v4104_v34 = vrot.slane %v4000_v42, 6 }
 0x3fd   : > { %v4120_v6 = vrot.slane %v4000_v42, 7 }
 0x3fe   : > { %v4163_v49 = vsel %vm1834_vm4, %v4155_v11, %v4072_v31 }
 0x3ff   : > { %v4171_v4 = vsel %vm1835_vm6, %v4163_v49, %v4088_v36 }
 0x400   : > { %v4179_v43 = vsel %vm720_vm3, %v4171_v4, %v4104_v34 }
 0x401   : > { %v4187_v28 = vsel %vm543_vm2, %v4179_v43, %v4120_v6  ;;  %v4443_v19 = vpop.f32.mrf.mxu1 }
 0x402   : > { %4195 = vst.msk [vmem:[%s9091_s14 + $0x10] sm:$0xff] %vm1729_vm5, %v4187_v28  ;;  %v3805_v54 = vmul.f32 %v4443_v19, %v9052_v14 }
 0x403   : > { %v3705_v12 = vpop.f32.mrf.mxu1 }
 0x404   : > { %v3844_v40 = vadd.f32 %v9057_v24, %v3805_v54  ;;  %v3803_v17 = vmul.f32 %v9052_v14, %v3705_v12 }
 0x405   : > { %v4444_v16 = vpop.f32.mrf.mxu1 }
 0x406   : > { %v3876_v53 = vmax.f32 %v3844_v40, 0.0  ;;  %v3842_v57 = vadd.f32 %v9057_v24, %v3803_v17  ;;  %v3806_v47 = vmul.f32 %v4444_v16, %v9052_v14 }
 0x407   : > { %v3708_v15 = vpop.f32.mrf.mxu1 }
 0x408   : > { %3908 = vst.msk [vmem:[%s9068_s11 + $0x70] sm:$0xff] %vm1729_vm5, %v3876_v53  ;;  %v3874_v58 = vmax.f32 %v3842_v57, 0.0  ;;  %v3845_v50 = vadd.f32 %v9057_v24, %v3806_v47  ;;  %v3804_v63 = vmul.f32 %v9052_v14, %v3708_v15 }
 0x40a   : > { %3906 = vst.msk [vmem:[%s9068_s11 + $0x60] sm:$0xff] %vm1729_vm5, %v3874_v58  ;;  %v3932_v37 = vmax.f32 %v3874_v58, %v3876_v53  ;;  %v3877_v0 = vmax.f32 %v3845_v50, 0.0  ;;  %v3843_v22 = vadd.f32 %v9057_v24, %v3804_v63 }
 0x40c   : > { %v3953_v60 = vrot.slane %v3932_v37, 1  ;;  %3909 = vst.msk [vmem:[%s9068_s11 + $0x78] sm:$0xff] %vm1729_vm5, %v3877_v0  ;;  %v3875_v46 = vmax.f32 %v3843_v22, 0.0 }
 0x40e   : > { %v3969_v33 = vmax.f32 %v3932_v37, %v3953_v60  ;;  %3907 = vst.msk [vmem:[%s9068_s11 + $0x68] sm:$0xff] %vm1729_vm5, %v3875_v46  ;;  %v3933_v25 = vmax.f32 %v3875_v46, %v3877_v0 }
 0x410   : > { %v4017_v5 = vrot.slane %v3969_v33, 1  ;;  %v4033_v45 = vrot.slane %v3969_v33, 2  ;;  %v3985_v41 = vrot.slane %v3933_v25, 1  ;;  %v4049_v9 = vrot.slane %v3969_v33, 3 }
 0x412   : > { %v4138_v32 = vsel %vm4134_vm12, %v3969_v33, %v4017_v5  ;;  %v4001_v39 = vmax.f32 %v3933_v25, %v3985_v41 }
 0x413   : > { %v4147_v48 = vsel %vm4143_vm13, %v4138_v32, %v4033_v45 }
 0x414   : > { %v4156_v7 = vsel %vm4152_vm14, %v4147_v48, %v4049_v9  ;;  %v4073_v2 = vrot.slane %v4001_v39, 4  ;;  %v4089_v23 = vrot.slane %v4001_v39, 5  ;;  %v4105_v26 = vrot.slane %v4001_v39, 6 }
 0x415   : > { %v4121_v35 = vrot.slane %v4001_v39, 7 }
 0x416   : > { %v4164_v13 = vsel %vm1834_vm4, %v4156_v7, %v4073_v2 }
 0x417   : > { %v4172_v21 = vsel %vm1835_vm6, %v4164_v13, %v4089_v23 }
 0x418   : > { %v4180_v3 = vsel %vm720_vm3, %v4172_v21, %v4105_v26 }
 0x419   : > { %v4188_v29 = vsel %vm543_vm2, %v4180_v3, %v4121_v35 }
 0x41a   : > { %4196 = vst.msk [vmem:[%s9091_s14 + $0x18] sm:$0xff] %vm1729_vm5, %v4188_v29 }
 0x435   : > { %v4447_v20 = vpop.f32.mrf.mxu1 }
 0x436   : > { %v3809_v62 = vmul.f32 %v4447_v20, %v9052_v14 }
 0x437   : > { %v3721_v8 = vpop.f32.mrf.mxu1 }
 0x438   : > { %v3848_v10 = vadd.f32 %v9057_v24, %v3809_v62  ;;  %v3807_v51 = vmul.f32 %v9052_v14, %v3721_v8 }
 0x439   : > { %v4448_v44 = vpop.f32.mrf.mxu1 }
 0x43a   : > { %v3880_v30 = vmax.f32 %v3848_v10, 0.0  ;;  %v3846_v52 = vadd.f32 %v9057_v24, %v3807_v51  ;;  %v3810_v61 = vmul.f32 %v4448_v44, %v9052_v14 }
 0x43b   : > { %v3724_v27 = vpop.f32.mrf.mxu1 }
 0x43c   : > { %3912 = vst.msk [vmem:[%s9068_s11 + $0x90] sm:$0xff] %vm1729_vm5, %v3880_v30  ;;  %v3878_v38 = vmax.f32 %v3846_v52, 0.0  ;;  %v3849_v56 = vadd.f32 %v9057_v24, %v3810_v61  ;;  %v3808_v55 = vmul.f32 %v9052_v14, %v3724_v27 }
 0x43e   : > { %3910 = vst.msk [vmem:[%s9068_s11 + $0x80] sm:$0xff] %vm1729_vm5, %v3878_v38  ;;  %v3934_v18 = vmax.f32 %v3878_v38, %v3880_v30  ;;  %v3881_v59 = vmax.f32 %v3849_v56, 0.0  ;;  %v3847_v42 = vadd.f32 %v9057_v24, %v3808_v55 }
 0x440   : > { %v3954_v1 = vrot.slane %v3934_v18, 1  ;;  %3913 = vst.msk [vmem:[%s9068_s11 + $0x98] sm:$0xff] %vm1729_vm5, %v3881_v59  ;;  %v3879_v11 = vmax.f32 %v3847_v42, 0.0 }
 0x442   : > { %v3970_v31 = vmax.f32 %v3934_v18, %v3954_v1  ;;  %3911 = vst.msk [vmem:[%s9068_s11 + $0x88] sm:$0xff] %vm1729_vm5, %v3879_v11  ;;  %v3935_v36 = vmax.f32 %v3879_v11, %v3881_v59 }
 0x444   : > { %v4018_v34 = vrot.slane %v3970_v31, 1  ;;  %v4034_v49 = vrot.slane %v3970_v31, 2  ;;  %v3986_v6 = vrot.slane %v3935_v36, 1  ;;  %v4050_v4 = vrot.slane %v3970_v31, 3 }
 0x446   : > { %v4139_v43 = vsel %vm4134_vm12, %v3970_v31, %v4018_v34  ;;  %v4002_v28 = vmax.f32 %v3935_v36, %v3986_v6 }
 0x447   : > { %v4148_v19 = vsel %vm4143_vm13, %v4139_v43, %v4034_v49 }
 0x448   : > { %v4157_v54 = vsel %vm4152_vm14, %v4148_v19, %v4050_v4  ;;  %v4074_v12 = vrot.slane %v4002_v28, 4  ;;  %v4090_v40 = vrot.slane %v4002_v28, 5  ;;  %v4106_v16 = vrot.slane %v4002_v28, 6 }
 0x449   : > { %v4451_v17 = vpop.f32.mrf.mxu1  ;;  %v4122_v47 = vrot.slane %v4002_v28, 7 }
 0x44a   : > { %v4165_v53 = vsel %vm1834_vm4, %v4157_v54, %v4074_v12  ;;  %v3813_v57 = vmul.f32 %v4451_v17, %v9052_v14 }
 0x44b   : > { %v4173_v15 = vsel %vm1835_vm6, %v4165_v53, %v4090_v40  ;;  %v3737_v58 = vpop.f32.mrf.mxu1 }
 0x44c   : > { %v4181_v50 = vsel %vm720_vm3, %v4173_v15, %v4106_v16  ;;  %v3852_v63 = vadd.f32 %v9057_v24, %v3813_v57  ;;  %v3811_v37 = vmul.f32 %v9052_v14, %v3737_v58 }
 0x44d   : > { %v4189_v0 = vsel %vm543_vm2, %v4181_v50, %v4122_v47  ;;  %v4452_v22 = vpop.f32.mrf.mxu1 }
 0x44e   : > { %4197 = vst.msk [vmem:[%s9091_s14 + $0x20] sm:$0xff] %vm1729_vm5, %v4189_v0  ;;  %v3884_v60 = vmax.f32 %v3852_v63, 0.0  ;;  %v3850_v46 = vadd.f32 %v9057_v24, %v3811_v37  ;;  %v3814_v33 = vmul.f32 %v4452_v22, %v9052_v14 }
 0x44f   : > { %v3740_v25 = vpop.f32.mrf.mxu1 }
 0x450   : > { %3916 = vst.msk [vmem:[%s9068_s11 + $0xb0] sm:$0xff] %vm1729_vm5, %v3884_v60  ;;  %v3882_v5 = vmax.f32 %v3850_v46, 0.0  ;;  %v3853_v45 = vadd.f32 %v9057_v24, %v3814_v33  ;;  %v3812_v41 = vmul.f32 %v9052_v14, %v3740_v25 }
 0x452   : > { %3914 = vst.msk [vmem:[%s9068_s11 + $0xa0] sm:$0xff] %vm1729_vm5, %v3882_v5  ;;  %v3936_v9 = vmax.f32 %v3882_v5, %v3884_v60  ;;  %v3885_v32 = vmax.f32 %v3853_v45, 0.0  ;;  %v3851_v39 = vadd.f32 %v9057_v24, %v3812_v41 }
 0x454   : > { %v3955_v48 = vrot.slane %v3936_v9, 1  ;;  %3917 = vst.msk [vmem:[%s9068_s11 + $0xb8] sm:$0xff] %vm1729_vm5, %v3885_v32  ;;  %v3883_v7 = vmax.f32 %v3851_v39, 0.0 }
 0x456   : > { %v3971_v2 = vmax.f32 %v3936_v9, %v3955_v48  ;;  %3915 = vst.msk [vmem:[%s9068_s11 + $0xa8] sm:$0xff] %vm1729_vm5, %v3883_v7  ;;  %v3937_v23 = vmax.f32 %v3883_v7, %v3885_v32 }
 0x458   : > { %v4019_v26 = vrot.slane %v3971_v2, 1  ;;  %v4035_v13 = vrot.slane %v3971_v2, 2  ;;  %v3987_v35 = vrot.slane %v3937_v23, 1  ;;  %v4051_v21 = vrot.slane %v3971_v2, 3 }
 0x45a   : > { %v4140_v3 = vsel %vm4134_vm12, %v3971_v2, %v4019_v26  ;;  %v4003_v29 = vmax.f32 %v3937_v23, %v3987_v35 }
 0x45b   : > { %v4149_v20 = vsel %vm4143_vm13, %v4140_v3, %v4035_v13 }
 0x45c   : > { %v4158_v62 = vsel %vm4152_vm14, %v4149_v20, %v4051_v21  ;;  %v4075_v8 = vrot.slane %v4003_v29, 4  ;;  %v4091_v10 = vrot.slane %v4003_v29, 5  ;;  %v4107_v44 = vrot.slane %v4003_v29, 6 }
 0x45d   : > { %v4455_v51 = vpop.f32.mrf.mxu1  ;;  %v4123_v61 = vrot.slane %v4003_v29, 7 }
 0x45e   : > { %v4166_v30 = vsel %vm1834_vm4, %v4158_v62, %v4075_v8  ;;  %v3817_v52 = vmul.f32 %v4455_v51, %v9052_v14 }
 0x45f   : > { %v4174_v27 = vsel %vm1835_vm6, %v4166_v30, %v4091_v10  ;;  %v3753_v38 = vpop.f32.mrf.mxu1 }
 0x460   : > { %v4182_v56 = vsel %vm720_vm3, %v4174_v27, %v4107_v44  ;;  %v3856_v55 = vadd.f32 %v9057_v24, %v3817_v52  ;;  %v3815_v18 = vmul.f32 %v9052_v14, %v3753_v38 }
 0x461   : > { %v4190_v59 = vsel %vm543_vm2, %v4182_v56, %v4123_v61  ;;  %v4456_v42 = vpop.f32.mrf.mxu1 }
 0x462   : > { %4198 = vst.msk [vmem:[%s9091_s14 + $0x28] sm:$0xff] %vm1729_vm5, %v4190_v59  ;;  %v3888_v1 = vmax.f32 %v3856_v55, 0.0  ;;  %v3854_v11 = vadd.f32 %v9057_v24, %v3815_v18  ;;  %v3818_v31 = vmul.f32 %v4456_v42, %v9052_v14 }
 0x463   : > { %v3756_v36 = vpop.f32.mrf.mxu1 }
 0x464   : > { %3920 = vst.msk [vmem:[%s9068_s11 + $0xd0] sm:$0xff] %vm1729_vm5, %v3888_v1  ;;  %v3886_v34 = vmax.f32 %v3854_v11, 0.0  ;;  %v3857_v49 = vadd.f32 %v9057_v24, %v3818_v31  ;;  %v3816_v6 = vmul.f32 %v9052_v14, %v3756_v36 }
 0x466   : > { %3918 = vst.msk [vmem:[%s9068_s11 + $0xc0] sm:$0xff] %vm1729_vm5, %v3886_v34  ;;  %v3938_v4 = vmax.f32 %v3886_v34, %v3888_v1  ;;  %v3889_v43 = vmax.f32 %v3857_v49, 0.0  ;;  %v3855_v28 = vadd.f32 %v9057_v24, %v3816_v6 }
 0x468   : > { %v3956_v19 = vrot.slane %v3938_v4, 1  ;;  %3921 = vst.msk [vmem:[%s9068_s11 + $0xd8] sm:$0xff] %vm1729_vm5, %v3889_v43  ;;  %v3887_v54 = vmax.f32 %v3855_v28, 0.0 }
 0x46a   : > { %v3972_v12 = vmax.f32 %v3938_v4, %v3956_v19  ;;  %3919 = vst.msk [vmem:[%s9068_s11 + $0xc8] sm:$0xff] %vm1729_vm5, %v3887_v54  ;;  %v3939_v40 = vmax.f32 %v3887_v54, %v3889_v43 }
 0x46c   : > { %v4020_v17 = vrot.slane %v3972_v12, 1  ;;  %v4036_v16 = vrot.slane %v3972_v12, 2  ;;  %v3988_v53 = vrot.slane %v3939_v40, 1  ;;  %v4052_v57 = vrot.slane %v3972_v12, 3 }
 0x46e   : > { %v4141_v47 = vsel %vm4134_vm12, %v3972_v12, %v4020_v17  ;;  %v4004_v15 = vmax.f32 %v3939_v40, %v3988_v53 }
 0x46f   : > { %v4150_v58 = vsel %vm4143_vm13, %v4141_v47, %v4036_v16 }
 0x470   : > { %v4159_v50 = vsel %vm4152_vm14, %v4150_v58, %v4052_v57  ;;  %v4076_v63 = vrot.slane %v4004_v15, 4  ;;  %v4092_v37 = vrot.slane %v4004_v15, 5  ;;  %v4108_v0 = vrot.slane %v4004_v15, 6 }
 0x471   : > { %v4124_v60 = vrot.slane %v4004_v15, 7 }
 0x472   : > { %v4167_v22 = vsel %vm1834_vm4, %v4159_v50, %v4076_v63 }
 0x473   : > { %v4175_v46 = vsel %vm1835_vm6, %v4167_v22, %v4092_v37 }
 0x474   : > { %v4183_v33 = vsel %vm720_vm3, %v4175_v46, %v4108_v0 }
 0x475   : > { %v4191_v25 = vsel %vm543_vm2, %v4183_v33, %v4124_v60 }
 0x476   : > { %4199 = vst.msk [vmem:[%s9091_s14 + $0x30] sm:$0xff] %vm1729_vm5, %v4191_v25 }
 0x482   : > { %v4431_v5 = vpop.f32.mrf.mxu0 }
 0x483   : > { %v3793_v45 = vmul.f32 %v4431_v5, %v9052_v14 }
 0x484   : > { %v3657_v41 = vpop.f32.mrf.mxu0 }
 0x485   : > { %v3832_v9 = vadd.f32 %v9057_v24, %v3793_v45  ;;  %v3791_v32 = vmul.f32 %v9052_v14, %v3657_v41 }
 0x486   : > { %v4432_v39 = vpop.f32.mrf.mxu0 }
 0x487   : > { %v3864_v48 = vmax.f32 %v3832_v9, 0.0  ;;  %v3830_v7 = vadd.f32 %v9057_v24, %v3791_v32  ;;  %v3794_v2 = vmul.f32 %v4432_v39, %v9052_v14 }
 0x488   : > { %v3660_v23 = vpop.f32.mrf.mxu0 }
 0x489   : > { %3896 = vst.msk [vmem:[%s9068_s11 + $0x10] sm:$0xff] %vm1729_vm5, %v3864_v48  ;;  %v3862_v26 = vmax.f32 %v3830_v7, 0.0  ;;  %v3833_v13 = vadd.f32 %v9057_v24, %v3794_v2  ;;  %v3792_v35 = vmul.f32 %v9052_v14, %v3660_v23  ;;  %v4459_v21 = vpop.f32.mrf.mxu1 }
 0x48a   : > { %v3821_v3 = vmul.f32 %v4459_v21, %v9052_v14 }
 0x48b   : > { %3894 = vst.msk [vmem:[%s9068_s11] sm:$0xff] %vm1729_vm5, %v3862_v26  ;;  %v3926_v29 = vmax.f32 %v3862_v26, %v3864_v48  ;;  %v3865_v20 = vmax.f32 %v3833_v13, 0.0  ;;  %v3831_v62 = vadd.f32 %v9057_v24, %v3792_v35  ;;  %v3769_v8 = vpop.f32.mrf.mxu1 }
 0x48c   : > { %v3860_v10 = vadd.f32 %v9057_v24, %v3821_v3  ;;  %v3819_v51 = vmul.f32 %v9052_v14, %v3769_v8 }
 0x48d   : > { %v3950_v44 = vrot.slane %v3926_v29, 1  ;;  %3897 = vst.msk [vmem:[%s9068_s11 + $0x18] sm:$0xff] %vm1729_vm5, %v3865_v20  ;;  %v3863_v30 = vmax.f32 %v3831_v62, 0.0  ;;  %v4460_v52 = vpop.f32.mrf.mxu1 }
 0x48e   : > { %v3892_v61 = vmax.f32 %v3860_v10, 0.0  ;;  %v3858_v27 = vadd.f32 %v9057_v24, %v3819_v51  ;;  %v3822_v38 = vmul.f32 %v4460_v52, %v9052_v14 }
 0x48f   : > { %v3966_v56 = vmax.f32 %v3926_v29, %v3950_v44  ;;  %3895 = vst.msk [vmem:[%s9068_s11 + $0x8] sm:$0xff] %vm1729_vm5, %v3863_v30  ;;  %v3927_v55 = vmax.f32 %v3863_v30, %v3865_v20  ;;  %v3772_v18 = vpop.f32.mrf.mxu1 }
 0x490   : > { %3924 = vst.msk [vmem:[%s9068_s11 + $0xf0] sm:$0xff] %vm1729_vm5, %v3892_v61  ;;  %v3890_v59 = vmax.f32 %v3858_v27, 0.0  ;;  %v3861_v42 = vadd.f32 %v9057_v24, %v3822_v38  ;;  %v3820_v1 = vmul.f32 %v9052_v14, %v3772_v18 }
 0x491   : > { %v4014_v11 = vrot.slane %v3966_v56, 1  ;;  %v4030_v31 = vrot.slane %v3966_v56, 2  ;;  %v3982_v36 = vrot.slane %v3927_v55, 1  ;;  %v4046_v4 = vrot.slane %v3966_v56, 3 }
 0x492   : > { %3922 = vst.msk [vmem:[%s9068_s11 + $0xe0] sm:$0xff] %vm1729_vm5, %v3890_v59  ;;  %v3940_v34 = vmax.f32 %v3890_v59, %v3892_v61  ;;  %v3893_v49 = vmax.f32 %v3861_v42, 0.0  ;;  %v3859_v6 = vadd.f32 %v9057_v24, %v3820_v1 }
 0x493   : > { %v4135_v43 = vsel %vm4134_vm12, %v3966_v56, %v4014_v11  ;;  %v3998_v28 = vmax.f32 %v3927_v55, %v3982_v36 }
 0x494   : > { %v4144_v19 = vsel %vm4143_vm13, %v4135_v43, %v4030_v31  ;;  %v3957_v54 = vrot.slane %v3940_v34, 1  ;;  %3925 = vst.msk [vmem:[%s9068_s11 + $0xf8] sm:$0xff] %vm1729_vm5, %v3893_v49  ;;  %v3891_v14 = vmax.f32 %v3859_v6, 0.0 }
 0x495   : > { %v4153_v12 = vsel %vm4152_vm14, %v4144_v19, %v4046_v4  ;;  %v4070_v40 = vrot.slane %v3998_v28, 4  ;;  %v4086_v17 = vrot.slane %v3998_v28, 5  ;;  %v4102_v24 = vrot.slane %v3998_v28, 6 }
 0x496   : > { %v3973_v16 = vmax.f32 %v3940_v34, %v3957_v54  ;;  %3923 = vst.msk [vmem:[%s9068_s11 + $0xe8] sm:$0xff] %vm1729_vm5, %v3891_v14  ;;  %v3941_v53 = vmax.f32 %v3891_v14, %v3893_v49  ;;  %v4118_v47 = vrot.slane %v3998_v28, 7 }
 0x497   : > { %v4161_v57 = vsel %vm1834_vm4, %v4153_v12, %v4070_v40 }
 0x498   : > { %v4169_v15 = vsel %vm1835_vm6, %v4161_v57, %v4086_v17  ;;  %v4021_v58 = vrot.slane %v3973_v16, 1  ;;  %v4037_v50 = vrot.slane %v3973_v16, 2  ;;  %v3989_v37 = vrot.slane %v3941_v53, 1 }
 0x499   : > { %v4177_v63 = vsel %vm720_vm3, %v4169_v15, %v4102_v24  ;;  %v4053_v22 = vrot.slane %v3973_v16, 3 }
 0x49a   : > { %v4185_v0 = vsel %vm543_vm2, %v4177_v63, %v4118_v47  ;;  %v4142_v60 = vsel %vm4134_vm12, %v3973_v16, %v4021_v58  ;;  %v4005_v33 = vmax.f32 %v3941_v53, %v3989_v37 }
 0x49b   : > { %4193 = vst.msk [vmem:[%s9091_s14] sm:$0xff] %vm1729_vm5, %v4185_v0  ;;  %v4151_v46 = vsel %vm4143_vm13, %v4142_v60, %v4037_v50 }
 0x49c   : > { %v4160_v25 = vsel %vm4152_vm14, %v4151_v46, %v4053_v22  ;;  %v4077_v5 = vrot.slane %v4005_v33, 4  ;;  %v4093_v45 = vrot.slane %v4005_v33, 5  ;;  %v4109_v41 = vrot.slane %v4005_v33, 6 }
 0x49d   : > { %v4125_v32 = vrot.slane %v4005_v33, 7 }
 0x49e   : > { %v4168_v9 = vsel %vm1834_vm4, %v4160_v25, %v4077_v5 }
 0x49f   : > { %v4176_v39 = vsel %vm1835_vm6, %v4168_v9, %v4093_v45 }
 0x4a0   : > { %v4184_v48 = vsel %vm720_vm3, %v4176_v39, %v4109_v41 }
 0x4a1   : > { %v4192_v7 = vsel %vm543_vm2, %v4184_v48, %v4125_v32 }
 0x4a2   : > { %4200 = vst.msk [vmem:[%s9091_s14 + $0x38] sm:$0xff] %vm1729_vm5, %v4192_v7 }
 0x4a3 PF: > { %s19_s27 = sadd.s32 1, %s5847_s27  }
 0x4a4   : > { %p16_p4 = scmp.ge.s32.totalorder %s19_s27, 4  }
 0x4a6   :  { %18 = sbr.rel (!%p16_p4) target bundleno = 1 (0x1), region = 92 }

// kernel: encoder_forward.9
= control target key start
LH: loop header
LB: loop body
LE: loop exit
PB: predicated region body
PF: predicated region fallthrough
CT: control target
= control target key end

     0   :  { %12 = vsyncpa [#allocation5], 0  ;;  %s2648_s0 = inlined_call_operand.vmem [shape: f32[2,1,1,64], index: 0, kind: input, shape index: {}]   ;;  %s2649_s1 = inlined_call_operand.vmem [shape: bf16[576,128], index: 1, kind: input, shape index: {}]   ;;  %s2650_s2 = inlined_call_operand.vmem [shape: f32[1,128], index: 2, kind: input, shape index: {}]   ;;  %s2651_s3 = inlined_call_operand.vmem [shape: f32[1,128], index: 3, kind: input, shape index: {}]   ;;  %s2652_s4 = inlined_call_operand.vmem [shape: bf16[1152,128], index: 4, kind: input, shape index: {}]   ;;  %s2653_s5 = inlined_call_operand.vmem [shape: f32[1,128], index: 5, kind: input, shape index: {}]   ;;  %s2654_s6 = inlined_call_operand.vmem [shape: f32[1,128], index: 6, kind: input, shape index: {}]   ;;  %s2655_s7 = inlined_call_operand.hbm [shape: f32[2,1,1,128], index: 7, kind: output, shape index: {}]  }
   0x1   :  { %14 = vsyncpa [#allocation5 + $0x1], 0  ;;  %s2171_s24 = smov 0   ;;  %s2173_s25 = smov 0  }
   0x2   :  { %s2175_s26 = smov 0   ;;  %s2177_s27 = smov 0  }
   0x3 LB: > { %s2192_s28 = sadd.s32 4294967295, %s2125_s27   ;;  %s1611_s29 = sadd.s32 4294967294, %s2125_s27   ;;  %s2125_s27 = sphi %s2177_s27, %s2661_s27   ;;  %s2121_s26 = sphi %s2175_s26, %s2660_s26   ;;  %s2117_s25 = sphi %s2173_s25, %s2659_s25   ;;  %s2113_s24 = sphi %s2171_s24, %s2658_s24  }
   0x4   : > { %s2196_s30 = sadd.s32 1, %s2125_s27   ;;  %s179_s8 = sadd.s32 1, %s2121_s26 }
   0x5   : > { %s176_s9 = ssub.s32 %s2125_s27, %s2196_s30  ;;  %p189_p0 = scmp.ne.s32.totalorder %s2121_s26, %s2117_s25 }
   0x6   : > { %p177_p1 = scmp.eq.s32.totalorder %s176_s9, 0  ;;  %p190_p2 = scmp.eq.s32.totalorder %s2192_s28, 1 }
   0x7   : > { %p195_p3 = scmp.ne.s32.totalorder %s2117_s25, %s2113_s24  ;;  %p196_p4 = scmp.eq.s32.totalorder %s1611_s29, 1 }
   0x8   : > { %s2207_s10 = scalar_select %p177_p1, %s2121_s26, %s179_s8  }
   0x9   : > { %p2209_p5 = por %p190_p2, %p189_p0  ;;  %p2213_p6 = por %p196_p4, %p195_p3 }
   0xa   : > { %p1614_p7 = scmp.ge.s32.totalorder %s2125_s27, 1  ;;  %p238_p8 = scmp.lt.s32.totalorder %s2125_s27, 3 }
   0xc   : > { %p239_p9 = pnand %p1614_p7, %p238_p8 }
   0xd   : > { %p267_p10 = scmp.lt.s32.totalorder (!%p239_p9), %s2192_s28, 1  ;;  %s2128_s16 = smov (!%p239_p9), 64  }
   0xe   : > { %242 = sbr.rel (%p239_p9) target bundleno = 634 (0x27a), region = 48  ;;  %s265_s14 = sand.u32 (!%p239_p9), 1, %s2117_s25  }
   0xf   : > { %s1724_s19 = sshll.u32 (!%p239_p9), %s2192_s28, 4  ;;  %s266_s20 = scalar_lea.vmem (!%p239_p9), [#allocation4], %s265_s14 }
  0x10   : > { %s1559_s21 = sshll.u32 (!%p239_p9), %s266_s20, 4  ;;  %s1557_s29 = scalar_lea.hbm (!%p239_p9), %s2655_s7, %s1724_s19  ;;  %s1560_s21 = int_to_ptr.vmem [resolvable:$true] %s1559_s21 }
  0x11   : > { %s1547_s8 = scalar_lea.sflag (!%p239_p9), [#allocation5], %s265_s14  ;;  %s2065_s9 = scalar_lea.vmem (!%p239_p9), %s1560_s21, 16 }
  0x12   : > { %p2066_p11 = scmp.ne.s32.totalorder (!%p239_p9), %s1560_s21, %s2065_s9  ;;  %s2130_s13 = smov (!%p239_p9), [#allocation4]  }
  0x13   : > { %vm271_vm0 = vcmask 518144   ;;  %v1957_v0 = vld [vmem:[%s2649_s1 + $0x78] sm:$0xff]   ;;  %v2127_v1 = vmov 0.0   ;;  %s268_s15 = scalar_select %p267_p10, %s2192_s28, 1  ;;  %vm277_vm1 = vcmask 516096   ;;  %v1959_v3 = vld [vmem:[%s2649_s1 + $0x70] sm:$0xff]  }
  0x14   : > { %272 = vst.msk [vmem:[#allocation2] sm:$0x7] %vm271_vm0, %v2127_v1  ;;  %273 = vst.msk [vmem:[#allocation2 + $0x4] sm:$0x7] %vm271_vm0, %v2127_v1  ;;  %1727 = vmatprep.subr.bf16.mxu0 %v1957_v0  ;;  %v1958_v2 = vld [vmem:[%s2649_s1 + $0x38] sm:$0xff]   ;;  %v1960_v4 = vld [vmem:[%s2649_s1 + $0x30] sm:$0xff]   ;;  %p2067_p12 = pnand %p2066_p11, %p2209_p5 }
  0x15   : > { %274 = vst.msk [vmem:[#allocation2 + $0x8] sm:$0x7] %vm271_vm0, %v2127_v1  ;;  %732 = vst [vmem:[#allocation3] sm:$0x7] %v2127_v1  ;;  %s269_s22 = scalar_lea.vmem %s2648_s0, %s268_s15  ;;  %1728 = vmatpush3.bf16.msra.mxu0 %v1958_v2  ;;  %v1961_v6 = vld [vmem:[%s2649_s1 + $0xf8] sm:$0xff]   ;;  %v1963_v8 = vld [vmem:[%s2649_s1 + $0x68] sm:$0xff]  }
  0x16   : > { %733 = vst [vmem:[#allocation3 + $0x4] sm:$0x7] %v2127_v1  ;;  %734 = vst [vmem:[#allocation3 + $0x8] sm:$0x7] %v2127_v1  ;;  %v275_v5 = vld [vmem:[%s269_s22] sm:$0x1]  ;;  %1729 = vmatprep.subr.bf16.mxu0 %v1959_v3  ;;  %1749 = vmatprep.subr.bf16.mxu1 %v1961_v6  ;;  %p2068_p13 = pneg %p2067_p12 }
  0x17   : > { %278 = vst.msk [vmem:[#allocation2 + $0x5] sm:$0x1] %vm277_vm1, %v275_v5  ;;  %v1962_v7 = vld [vmem:[%s2649_s1 + $0xb8] sm:$0xff]   ;;  %v1964_v11 = vld [vmem:[%s2649_s1 + $0x28] sm:$0xff]   ;;  %v1965_v13 = vld [vmem:[%s2649_s1 + $0xf0] sm:$0xff]   ;;  %vm306_vm2 = vcmask 523264  }
  0x18   : > { %1750 = vmatpush3.bf16.msra.mxu1 %v1962_v7  ;;  %v1966_v14 = vld [vmem:[%s2649_s1 + $0xb0] sm:$0xff]   ;;  %v1967_v16 = vld [vmem:[%s2649_s1 + $0x60] sm:$0xff]   ;;  %v1969_v21 = vld [vmem:[%s2649_s1 + $0xe8] sm:$0xff]   ;;  %vm2129_vm3 = vmmov 0   ;;  %s2069_s17 = sshll.u32 %s2130_s13, 4  ;;  %s2070_s17 = int_to_ptr.vmem [resolvable:$false] %s2069_s17 }
  0x19   : > { %1730 = vmatpush3.bf16.msra.mxu0 %v1960_v4  ;;  %1751 = vmatprep.subr.bf16.mxu1 %v1965_v13  ;;  %v1968_v20 = vld [vmem:[%s2649_s1 + $0x20] sm:$0xff]   ;;  %v1970_v23 = vld [vmem:[%s2649_s1 + $0xa8] sm:$0xff]   ;;  %v1971_v24 = vld [vmem:[%s2649_s1 + $0x58] sm:$0xff]   ;;  %s2071_s28 = scalar_lea.vmem %s2070_s17, 32  ;;  %p2072_p0 = scmp.lt.s32.totalorder %s1560_s21, %s2070_s17 }
  0x1a   : > { %1731 = vmatprep.subr.bf16.mxu0 %v1963_v8  ;;  %v1972_v25 = vld [vmem:[%s2649_s1 + $0x18] sm:$0xff]   ;;  %v1973_v26 = vld [vmem:[%s2649_s1 + $0xe0] sm:$0xff]   ;;  %v1975_v28 = vld [vmem:[%s2649_s1 + $0x50] sm:$0xff]   ;;  %p2073_p1 = scmp.lt.s32.totalorder %s2071_s28, %s2065_s9 }
  0x1b   : > { %v2251_v9 = vld [vmem:[#allocation2] sm:$0x7]  ;;  %v1976_v29 = vld [vmem:[%s2649_s1 + $0x10] sm:$0xff]   ;;  %v1977_v30 = vld [vmem:[%s2649_s1 + $0xd8] sm:$0xff]  }
  0x1c   : > { %v2253_v10 = vld [vmem:[#allocation2 + $0x8] sm:$0x7]  ;;  %v283_v12 = vrot.slane %v2251_v9, 1  ;;  %1752 = vmatpush3.bf16.msra.mxu1 %v1966_v14  ;;  %v1974_v27 = vld [vmem:[%s2649_s1 + $0xa0] sm:$0xff]   ;;  %v1978_v31 = vld [vmem:[%s2649_s1 + $0x98] sm:$0xff]   ;;  %v287_v43 = vrot.slane %v2251_v9, 2  ;;  %p2074_p2 = por %p2073_p1, %p2072_p0 }
  0x1d   : > { %v300_v15 = vrot.slane %v2253_v10, 1  ;;  %1732 = vmatpush3.bf16.msra.mxu0 %v1964_v11  ;;  %1753 = vmatprep.subr.bf16.mxu1 %v1969_v21  ;;  %v1979_v32 = vld [vmem:[%s2649_s1 + $0x48] sm:$0xff]   ;;  %v1981_v34 = vld [vmem:[%s2649_s1 + $0xd0] sm:$0xff]   ;;  %v1983_v36 = vld [vmem:[%s2649_s1 + $0x40] sm:$0xff]   ;;  %v304_v3 = vrot.slane %v2253_v10, 2 }
  0x1e   : > { %v2269_v17 = vld [vmem:[#allocation2 + $0x4] sm:$0x7]  ;;  %1733 = vmatprep.subr.bf16.mxu0 %v1967_v16  ;;  %v1980_v33 = vld [vmem:[%s2649_s1 + $0x8] sm:$0xff]   ;;  %v1982_v35 = vld [vmem:[%s2649_s1 + $0x90] sm:$0xff]   ;;  %p2075_p3 = pnand %p2074_p2, %p2068_p13 }
  0x1f   : > { %v1947_v18 = vpack.i.bf16 %v283_v12, %v2269_v17  ;;  %v295_v19 = vrot.slane %v2269_v17, 2  ;;  %v1984_v37 = vld [vmem:[%s2649_s1] sm:$0xff]   ;;  %v1985_v38 = vld [vmem:[%s2649_s1 + $0xc8] sm:$0xff]   ;;  %v1993_v42 = vld [vmem:[%s2652_s4 + $0x78] sm:$0xff]   ;;  %v293_v47 = vrot.slane %v2269_v17, 1  ;;  %v315_v7 = vpack.c.bf16 %v304_v3, %v304_v3 }
  0x20   : > { %1754 = vmatpush3.bf16.msra.mxu1 %v1970_v23  ;;  %v1986_v39 = vld [vmem:[%s2649_s1 + $0x88] sm:$0xff]   ;;  %v1987_v40 = vld [vmem:[%s2649_s1 + $0xc0] sm:$0xff]   ;;  %v1988_v53 = vld [vmem:[%s2649_s1 + $0x118] sm:$0xff]  }
  0x21   : > { %1948 = vrot.lane.b32.xlu0 %v1947_v18, %s2128_s16  ;;  %v1952_v22 = vpack.i.bf16 %v295_v19, %v300_v15  ;;  %1734 = vmatpush3.bf16.msra.mxu0 %v1968_v20  ;;  %v1989_v41 = vld [vmem:[%s2649_s1 + $0x80] sm:$0xff]   ;;  %v1990_v60 = vld [vmem:[%s2649_s1 + $0x110] sm:$0xff]   ;;  %v1994_v61 = vld [vmem:[%s2652_s4 + $0x38] sm:$0xff]  }
  0x22   : > { %1735 = vmatprep.subr.bf16.mxu0 %v1971_v24  ;;  %1755 = vmatprep.subr.bf16.mxu1 %v1973_v26  ;;  %v1995_v62 = vld [vmem:[%s2652_s4 + $0x70] sm:$0xff]   ;;  %v1991_v63 = vld [vmem:[%s2649_s1 + $0x108] sm:$0xff]   ;;  %v1992_v4 = vld [vmem:[%s2649_s1 + $0x100] sm:$0xff]  }
  0x23   : > { %v1996_v0 = vld [vmem:[%s2652_s4 + $0x30] sm:$0xff]   ;;  %v1997_v2 = vld [vmem:[%s2652_s4 + $0x68] sm:$0xff]   ;;  %v1999_v6 = vld [vmem:[%s2652_s4 + $0x60] sm:$0xff]  }
  0x24   : > { %1756 = vmatpush3.bf16.msra.mxu1 %v1974_v27  ;;  %v1998_v5 = vld [vmem:[%s2652_s4 + $0x28] sm:$0xff]   ;;  %v2000_v8 = vld [vmem:[%s2652_s4 + $0x20] sm:$0xff]   ;;  %v2003_v11 = vld [vmem:[%s2652_s4 + $0x50] sm:$0xff]  }
  0x25   : > { %1953 = vrot.lane.b32.xlu0 %v1952_v22, %s2128_s16  ;;  %1736 = vmatpush3.bf16.msra.mxu0 %v1972_v25  ;;  %v2004_v12 = vld [vmem:[%s2652_s4 + $0x10] sm:$0xff]   ;;  %v2005_v13 = vld [vmem:[%s2652_s4 + $0x48] sm:$0xff]   ;;  %v2007_v15 = vld [vmem:[%s2652_s4 + $0x40] sm:$0xff]  }
  0x26   : > { %1737 = vmatprep.subr.bf16.mxu0 %v1975_v28  ;;  %1757 = vmatprep.subr.bf16.mxu1 %v1977_v30  ;;  %v2006_v14 = vld [vmem:[%s2652_s4 + $0x8] sm:$0xff]   ;;  %v2008_v17 = vld [vmem:[%s2652_s4] sm:$0xff]   ;;  %v2009_v20 = vld [vmem:[%s2652_s4 + $0xf8] sm:$0xff]  }
  0x27   : > { %v2409_v16 = vld [vmem:[#allocation3] sm:$0x7]  ;;  %v2010_v22 = vld [vmem:[%s2652_s4 + $0xb8] sm:$0xff]   ;;  %v2013_v25 = vld [vmem:[%s2652_s4 + $0xf0] sm:$0xff]  }
  0x28   : > { %1758 = vmatpush3.bf16.msra.mxu1 %v1978_v31  ;;  %v741_v18 = vrot.slane %v2409_v16, 1  ;;  %v755_v21 = vpack.c.bf16 %v2409_v16, %v2409_v16  ;;  %v2011_v23 = vld [vmem:[%s2652_s4 + $0x178] sm:$0xff]   ;;  %v2014_v26 = vld [vmem:[%s2652_s4 + $0xb0] sm:$0xff]   ;;  %v2018_v30 = vld [vmem:[%s2652_s4 + $0xa8] sm:$0xff]  }
  0x29   : > { %1738 = vmatpush3.bf16.msra.mxu0 %v1976_v29  ;;  %1759 = vmatprep.subr.bf16.mxu1 %v1981_v34  ;;  %v2012_v24 = vld [vmem:[%s2652_s4 + $0x138] sm:$0xff]   ;;  %v2015_v27 = vld [vmem:[%s2652_s4 + $0x170] sm:$0xff]   ;;  %v2017_v29 = vld [vmem:[%s2652_s4 + $0xe8] sm:$0xff]  }
  0x2a   : > { %1739 = vmatprep.subr.bf16.mxu0 %v1979_v32  ;;  %v756_v19 = vpack.c.bf16 %v741_v18, %v741_v18  ;;  %v2016_v28 = vld [vmem:[%s2652_s4 + $0x130] sm:$0xff]   ;;  %v2019_v31 = vld [vmem:[%s2652_s4 + $0x168] sm:$0xff]   ;;  %v2022_v34 = vld [vmem:[%s2652_s4 + $0xa0] sm:$0xff]  }
  0x2b   : > { %v2020_v32 = vld [vmem:[%s2652_s4 + $0x128] sm:$0xff]   ;;  %v727_v3 = vld [vmem:[%s2650_s2] sm:$0x1] }
  0x2c   : > { %1760 = vmatpush3.bf16.msra.mxu1 %v1982_v35  ;;  %v2023_v35 = vld [vmem:[%s2652_s4 + $0x160] sm:$0xff]  }
  0x2d   : > { %1740 = vmatpush3.bf16.msra.mxu0 %v1980_v33  ;;  %1761 = vmatprep.subr.bf16.mxu1 %v1985_v38  ;;  %v2021_v33 = vld [vmem:[%s2652_s4 + $0xe0] sm:$0xff]   ;;  %v2026_v38 = vld [vmem:[%s2652_s4 + $0x98] sm:$0xff]  }
  0x2e   : > { %1741 = vmatprep.subr.bf16.mxu0 %v1983_v36  ;;  %v2024_v36 = vld [vmem:[%s2652_s4 + $0x120] sm:$0xff]  }
  0x30   : > { %1762 = vmatpush3.bf16.msra.mxu1 %v1986_v39  ;;  %v2027_v39 = vld [vmem:[%s2652_s4 + $0x158] sm:$0xff]  }
  0x31   : > { %1742 = vmatpush3.bf16.msra.mxu0 %v1984_v37  ;;  %1763 = vmatprep.subr.bf16.mxu1 %v1987_v40  ;;  %v2025_v37 = vld [vmem:[%s2652_s4 + $0xd8] sm:$0xff]  }
  0x32   : > { %1873 = vmatprep.subr.bf16.mxu0 %v2127_v1  ;;  %v2028_v40 = vld [vmem:[%s2652_s4 + $0x118] sm:$0xff]  }
  0x34   : > { %1764 = vmatpush3.bf16.msra.mxu1 %v1989_v41  ;;  %v2029_v41 = vld [vmem:[%s2652_s4 + $0xd0] sm:$0xff]  }
  0x35   : > { %1776 = vmatprep.subr.bf16.mxu1 %v1993_v42  ;;  %v2030_v42 = vld [vmem:[%s2652_s4 + $0x90] sm:$0xff]  }
  0x93   : > { %v1949_v44 = vpop.permute.xlu0 %1948 }
  0x94   : > { %v1951_v45 = vunpack.i.h.bf16 %v1949_v44  ;;  %v1950_v46 = vunpack.i.l.bf16 %v1949_v44  ;;  %v2032_v44 = vld [vmem:[%s2652_s4 + $0x110] sm:$0xff]  }
  0x96   : > { %v308_v48 = vsel %vm306_vm2, %v287_v43, %v1950_v46  ;;  %v307_v49 = vsel %vm306_vm2, %v2251_v9, %v1951_v45  ;;  %v2001_v9 = vld [vmem:[%s2652_s4 + $0x58] sm:$0xff]   ;;  %v2031_v43 = vld [vmem:[%s2652_s4 + $0x150] sm:$0xff]   ;;  %v2033_v45 = vld [vmem:[%s2652_s4 + $0xc8] sm:$0xff]  }
  0x97   : > { %v1954_v50 = vpop.permute.xlu0 %1953  ;;  %v312_v51 = vpack.c.bf16 %v308_v48, %v308_v48  ;;  %v311_v52 = vpack.c.bf16 %v307_v49, %v307_v49  ;;  %v2034_v46 = vld [vmem:[%s2652_s4 + $0x88] sm:$0xff]   ;;  %v2037_v49 = vld [vmem:[%s2652_s4 + $0xc0] sm:$0xff]  }
  0x98   : > { %v1956_v54 = vunpack.i.h.bf16 %v1954_v50  ;;  %v1955_v55 = vunpack.i.l.bf16 %v1954_v50  ;;  %v2036_v48 = vld [vmem:[%s2652_s4 + $0x108] sm:$0xff]   ;;  %v2039_v50 = vld [vmem:[%s2652_s4 + $0x140] sm:$0xff]  }
  0x99   : > { %639 = vmatprep.mubr.bf16.mxu0 %v312_v51  ;;  %v2038_v51 = vld [vmem:[%s2652_s4 + $0x80] sm:$0xff]  }
  0x9a   : > { %640 = vmatmul.mubr.bf16.vlgmr.msra.gmra.mxu0 %v311_v52  ;;  %v310_v56 = vsel %vm306_vm2, %v2253_v10, %v1955_v55  ;;  %v309_v57 = vsel %vm306_vm2, %v293_v47, %v1956_v54  ;;  %v2002_v10 = vld [vmem:[%s2652_s4 + $0x18] sm:$0xff]   ;;  %v2035_v47 = vld [vmem:[%s2652_s4 + $0x148] sm:$0xff]   ;;  %v2040_v52 = vld [vmem:[%s2652_s4 + $0x100] sm:$0xff]  }
  0x9b   : > { %1874 = vmatpush3.bf16.msra.mxu0 %v1988_v53  ;;  %v314_v58 = vpack.c.bf16 %v310_v56, %v310_v56  ;;  %v313_v59 = vpack.c.bf16 %v309_v57, %v309_v57  ;;  %1881 = vmatprep.mubr.msk.bf16.mxu0 %vm2129_vm3, %v2127_v1  ;;  %v2041_v53 = vld [vmem:[%s2652_s4 + $0x1f8] sm:$0xff]  }
  0x9c   : > { %1875 = vmatprep.subr.bf16.mxu0 %v2127_v1 }
  0x9d   : > { %679 = vmatprep.mubr.bf16.mxu1 %v314_v58 }
  0x9e   : > { %680 = vmatmul.mubr.bf16.vlgmr.msra.gmra.mxu1 %v313_v59 }
  0x9f   : > { %1876 = vmatpush3.bf16.msra.mxu0 %v1990_v60  ;;  %1777 = vmatpush3.bf16.msra.mxu1 %v1994_v61 }
  0xa0   : > { %1877 = vmatprep.subr.bf16.mxu0 %v2127_v1  ;;  %1778 = vmatprep.subr.bf16.mxu1 %v1995_v62 }
  0xa1   : > { %1372 = vmatprep.mubr.bf16.mxu1 %v756_v19  ;;  %v2042_v19 = vld [vmem:[%s2652_s4 + $0x1b8] sm:$0xff]  }
  0xa3   : > { %1878 = vmatpush3.bf16.msra.mxu0 %v1991_v63  ;;  %1779 = vmatpush3.bf16.msra.mxu1 %v1996_v0 }
  0xa4   : > { %1879 = vmatprep.subr.bf16.mxu0 %v2127_v1  ;;  %1780 = vmatprep.subr.bf16.mxu1 %v1997_v2 }
  0xa7   : > { %1880 = vmatpush3.bf16.msra.mxu0 %v1992_v4  ;;  %1781 = vmatpush3.bf16.msra.mxu1 %v1998_v5  ;;  %v729_v5 = vld [vmem:[%s2651_s3] sm:$0x1] }
  0xa8   : > { %1782 = vmatprep.subr.bf16.mxu1 %v1999_v6  ;;  %1798 = vmatprep.subr.bf16.mxu0 %v2009_v20 }
  0xaa   : > { %1882 = vmatmul.mubr.msk.bf16.vlgmr.msra.gmra.mxu0 %vm306_vm2, %v315_v7 }
  0xab   : > { %1783 = vmatpush3.bf16.msra.mxu1 %v2000_v8  ;;  %1799 = vmatpush3.bf16.msra.mxu0 %v2010_v22  ;;  %v2044_v22 = vld [vmem:[%s2652_s4 + $0x1f0] sm:$0xff]  }
  0xac   : > { %1784 = vmatprep.subr.bf16.mxu1 %v2001_v9  ;;  %1800 = vmatprep.subr.bf16.mxu0 %v2013_v25 }
  0xaf   : > { %1785 = vmatpush3.bf16.msra.mxu1 %v2002_v10  ;;  %1801 = vmatpush3.bf16.msra.mxu0 %v2014_v26  ;;  %v2045_v26 = vld [vmem:[%s2652_s4 + $0x1b0] sm:$0xff]  }
  0xb0   : > { %1786 = vmatprep.subr.bf16.mxu1 %v2003_v11  ;;  %1802 = vmatprep.subr.bf16.mxu0 %v2017_v29  ;;  %v2048_v29 = vld [vmem:[%s2652_s4 + $0x1a8] sm:$0xff]  }
  0xb3   : > { %1787 = vmatpush3.bf16.msra.mxu1 %v2004_v12  ;;  %1803 = vmatpush3.bf16.msra.mxu0 %v2018_v30  ;;  %v743_v12 = vrot.slane %v2409_v16, 2  ;;  %v2050_v30 = vld [vmem:[%s2652_s4 + $0x1e0] sm:$0xff]  }
  0xb4   : > { %1788 = vmatprep.subr.bf16.mxu1 %v2005_v13  ;;  %1804 = vmatprep.subr.bf16.mxu0 %v2021_v33  ;;  %v2524_v13 = vld [vmem:[#allocation3 + $0x8] sm:$0x7]  ;;  %v2053_v33 = vld [vmem:[%s2652_s4 + $0x1d8] sm:$0xff]  }
  0xb7   : > { %1789 = vmatpush3.bf16.msra.mxu1 %v2006_v14  ;;  %1805 = vmatpush3.bf16.msra.mxu0 %v2022_v34  ;;  %v751_v14 = vrot.slane %v2524_v13, 1  ;;  %v2052_v34 = vld [vmem:[%s2652_s4 + $0x220] sm:$0xff]  }
  0xb8   : > { %1790 = vmatprep.subr.bf16.mxu1 %v2007_v15  ;;  %1806 = vmatprep.subr.bf16.mxu0 %v2025_v37  ;;  %v2055_v37 = vld [vmem:[%s2652_s4 + $0x218] sm:$0xff]  }
  0xb9   : > { %v762_v25 = vpack.c.bf16 %v751_v14, %v751_v14 }
  0xbb   : > { %1791 = vmatpush3.bf16.msra.mxu1 %v2008_v17  ;;  %1807 = vmatpush3.bf16.msra.mxu0 %v2026_v38  ;;  %v757_v17 = vpack.c.bf16 %v743_v12, %v743_v12  ;;  %v2057_v38 = vld [vmem:[%s2652_s4 + $0x190] sm:$0xff]  }
  0xbc   : > { %1820 = vmatprep.subr.bf16.mxu1 %v2011_v23  ;;  %1808 = vmatprep.subr.bf16.mxu0 %v2029_v41  ;;  %v2060_v41 = vld [vmem:[%s2652_s4 + $0x188] sm:$0xff]  }
  0xbe   : > { %1373 = vmatmul.mubr.bf16.vlgmr.msra.gmra.mxu1 %v755_v21 }
  0xbf   : > { %1821 = vmatpush3.bf16.msra.mxu1 %v2012_v24  ;;  %1809 = vmatpush3.bf16.msra.mxu0 %v2030_v42  ;;  %v2043_v24 = vld [vmem:[%s2652_s4 + $0x238] sm:$0xff]   ;;  %v2062_v42 = vld [vmem:[%s2652_s4 + $0x1c0] sm:$0xff]  }
  0xc0   : > { %1822 = vmatprep.subr.bf16.mxu1 %v2015_v27  ;;  %1810 = vmatprep.subr.bf16.mxu0 %v2033_v45  ;;  %v2047_v27 = vld [vmem:[%s2652_s4 + $0x1e8] sm:$0xff]   ;;  %v753_v45 = vrot.slane %v2524_v13, 2 }
  0xc3   : > { %1823 = vmatpush3.bf16.msra.mxu1 %v2016_v28  ;;  %1811 = vmatpush3.bf16.msra.mxu0 %v2034_v46  ;;  %v2046_v28 = vld [vmem:[%s2652_s4 + $0x230] sm:$0xff]   ;;  %v2064_v46 = vld [vmem:[%s2652_s4 + $0x200] sm:$0xff]  }
  0xc4   : > { %1824 = vmatprep.subr.bf16.mxu1 %v2019_v31  ;;  %1812 = vmatprep.subr.bf16.mxu0 %v2037_v49  ;;  %v2049_v31 = vld [vmem:[%s2652_s4 + $0x228] sm:$0xff]  }
  0xc7   : > { %1825 = vmatpush3.bf16.msra.mxu1 %v2020_v32  ;;  %1813 = vmatpush3.bf16.msra.mxu0 %v2038_v51  ;;  %v2051_v32 = vld [vmem:[%s2652_s4 + $0x1a0] sm:$0xff]  }
  0xc8   : > { %1826 = vmatprep.subr.bf16.mxu1 %v2023_v35  ;;  %1842 = vmatprep.subr.bf16.mxu0 %v2041_v53  ;;  %v2054_v35 = vld [vmem:[%s2652_s4 + $0x198] sm:$0xff]  }
  0xcb   : > { %1827 = vmatpush3.bf16.msra.mxu1 %v2024_v36  ;;  %v2056_v36 = vld [vmem:[%s2652_s4 + $0x1d0] sm:$0xff]  }
  0xcc   : > { %1828 = vmatprep.subr.bf16.mxu1 %v2027_v39  ;;  %v2059_v39 = vld [vmem:[%s2652_s4 + $0x1c8] sm:$0xff]  }
  0xcf   : > { %1829 = vmatpush3.bf16.msra.mxu1 %v2028_v40  ;;  %v2058_v40 = vld [vmem:[%s2652_s4 + $0x210] sm:$0xff]  }
  0xd0   : > { %1830 = vmatprep.subr.bf16.mxu1 %v2031_v43  ;;  %v2061_v43 = vld [vmem:[%s2652_s4 + $0x208] sm:$0xff]  }
  0xd3   : > { %1831 = vmatpush3.bf16.msra.mxu1 %v2032_v44  ;;  %v2063_v44 = vld [vmem:[%s2652_s4 + $0x180] sm:$0xff]  }
  0xd4   : > { %1832 = vmatprep.subr.bf16.mxu1 %v2035_v47  ;;  %v761_v47 = vpack.c.bf16 %v2524_v13, %v2524_v13  ;;  %v1542_v13 = vld [vmem:[%s2654_s6] sm:$0x1] }
  0xd7   : > { %1833 = vmatpush3.bf16.msra.mxu1 %v2036_v48  ;;  %v763_v48 = vpack.c.bf16 %v753_v45, %v753_v45 }
  0xd8   : > { %1834 = vmatprep.subr.bf16.mxu1 %v2039_v50 }
  0xdb   : > { %1835 = vmatpush3.bf16.msra.mxu1 %v2040_v52 }
  0xdc   : > { %1885 = vmatprep.subr.bf16.mxu1 %v2127_v1 }
 0x15a   : > { %v1743_v54 = vpop.f32.mrf.mxu0 }
 0x15c   : > { %v1744_v55 = vpop.f32.mrf.mxu0 }
 0x15d   : > { %v1745_v63 = vadd.f32 %v1744_v55, %v1743_v54 }
 0x15e   : > { %v1746_v56 = vpop.f32.mrf.mxu0  ;;  %v1765_v57 = vpop.f32.mrf.mxu1 }
 0x160   : > { %v1747_v58 = vpop.f32.mrf.mxu0  ;;  %v1766_v59 = vpop.f32.mrf.mxu1 }
 0x161   : > { %v1767_v62 = vadd.f32 %v1766_v59, %v1765_v57 }
 0x162   : > { %v1768_v60 = vpop.f32.mrf.mxu1 }
 0x163   : > { %v682_v0 = vadd.f32 %v1767_v62, %v1745_v63 }
 0x164   : > { %v1769_v61 = vpop.f32.mrf.mxu1 }
 0x16a   : > { %v721_v2 = vpop.f32.mrf.mxu0 }
 0x16b   : > { %v722_v4 = vadd.f32 %v721_v2, %v682_v0 }
 0x16c   : > { %v1883_v6 = vpop.f32.mrf.mxu0 }
 0x16d   : > { %v728_v7 = vmul.f32 %v727_v3, %v722_v4 }
 0x16e   : > { %v724_v8 = vpop.f32.mrf.mxu0 }
 0x16f   : > { %v730_v9 = vadd.f32 %v729_v5, %v728_v7 }
 0x170   : > { %v1884_v10 = vpop.f32.mrf.mxu0 }
 0x171   : > { %v731_v11 = vmax.f32 %v730_v9, 0.0  ;;  %v1540_v9 = vld [vmem:[%s2653_s5] sm:$0x1] }
 0x173   : > { %736 = vst [vmem:[#allocation3 + $0x5] sm:$0x1] %v731_v11 }
 0x17a   : > { %v738_v15 = vld [vmem:[#allocation3 + $0x4] sm:$0x7] }
 0x17b   : > { %v758_v18 = vpack.c.bf16 %v738_v15, %v738_v15  ;;  %v748_v20 = vrot.slane %v738_v15, 2  ;;  %v746_v21 = vrot.slane %v738_v15, 1 }
 0x17d   : > { %1412 = vmatprep.mubr.bf16.mxu0 %v758_v18  ;;  %v760_v23 = vpack.c.bf16 %v748_v20, %v748_v20  ;;  %v759_v16 = vpack.c.bf16 %v746_v21, %v746_v21 }
 0x17e   : > { %1413 = vmatmul.mubr.bf16.vlgmr.msra.gmra.mxu0 %v757_v17  ;;  %v1792_v49 = vpop.f32.mrf.mxu1 }
 0x17f   : > { %1843 = vmatpush3.bf16.msra.mxu0 %v2042_v19  ;;  %1452 = vmatprep.mubr.bf16.mxu1 %v760_v23 }
 0x180   : > { %1453 = vmatmul.mubr.bf16.vlgmr.msra.gmra.mxu1 %v759_v16  ;;  %1844 = vmatprep.subr.bf16.mxu0 %v2044_v22  ;;  %v1793_v50 = vpop.f32.mrf.mxu1 }
 0x181   : > { %1886 = vmatpush3.bf16.msra.mxu1 %v2043_v24  ;;  %1492 = vmatprep.mubr.bf16.mxu0 %v762_v25  ;;  %v1794_v51 = vadd.f32 %v1793_v50, %v1792_v49 }
 0x182   : > { %1887 = vmatprep.subr.bf16.mxu1 %v2127_v1  ;;  %1901 = vmatprep.mubr.msk.bf16.mxu1 %vm2129_vm3, %v2127_v1  ;;  %v1795_v52 = vpop.f32.mrf.mxu1 }
 0x183   : > { %1845 = vmatpush3.bf16.msra.mxu0 %v2045_v26 }
 0x184   : > { %1846 = vmatprep.subr.bf16.mxu0 %v2047_v27  ;;  %v1796_v53 = vpop.f32.mrf.mxu1 }
 0x185   : > { %1888 = vmatpush3.bf16.msra.mxu1 %v2046_v28 }
 0x186   : > { %1889 = vmatprep.subr.bf16.mxu1 %v2127_v1 }
 0x187   : > { %1847 = vmatpush3.bf16.msra.mxu0 %v2048_v29 }
 0x188   : > { %1848 = vmatprep.subr.bf16.mxu0 %v2050_v30 }
 0x189   : > { %1890 = vmatpush3.bf16.msra.mxu1 %v2049_v31 }
 0x18a   : > { %1891 = vmatprep.subr.bf16.mxu1 %v2127_v1 }
 0x18b   : > { %1849 = vmatpush3.bf16.msra.mxu0 %v2051_v32 }
 0x18c   : > { %1850 = vmatprep.subr.bf16.mxu0 %v2053_v33 }
 0x18d   : > { %1892 = vmatpush3.bf16.msra.mxu1 %v2052_v34 }
 0x18e   : > { %1893 = vmatprep.subr.bf16.mxu1 %v2127_v1 }
 0x18f   : > { %1851 = vmatpush3.bf16.msra.mxu0 %v2054_v35 }
 0x190   : > { %1852 = vmatprep.subr.bf16.mxu0 %v2056_v36 }
 0x191   : > { %1894 = vmatpush3.bf16.msra.mxu1 %v2055_v37 }
 0x192   : > { %1895 = vmatprep.subr.bf16.mxu1 %v2127_v1 }
 0x193   : > { %1853 = vmatpush3.bf16.msra.mxu0 %v2057_v38 }
 0x194   : > { %1854 = vmatprep.subr.bf16.mxu0 %v2059_v39 }
 0x195   : > { %1896 = vmatpush3.bf16.msra.mxu1 %v2058_v40 }
 0x196   : > { %1897 = vmatprep.subr.bf16.mxu1 %v2127_v1 }
 0x197   : > { %1855 = vmatpush3.bf16.msra.mxu0 %v2060_v41 }
 0x198   : > { %1856 = vmatprep.subr.bf16.mxu0 %v2062_v42 }
 0x199   : > { %1898 = vmatpush3.bf16.msra.mxu1 %v2061_v43 }
 0x19a   : > { %1899 = vmatprep.subr.bf16.mxu1 %v2127_v1 }
 0x19b   : > { %1857 = vmatpush3.bf16.msra.mxu0 %v2063_v44 }
 0x19d   : > { %1900 = vmatpush3.bf16.msra.mxu1 %v2064_v46 }
 0x19e   : > { %1493 = vmatmul.mubr.bf16.vlgmr.msra.gmra.mxu0 %v761_v47 }
 0x1a0   : > { %1902 = vmatmul.mubr.bf16.vlgmr.msra.gmra.mxu1 %v763_v48 }
 0x23e   : > { %v1814_v54 = vpop.f32.mrf.mxu0 }
 0x240   : > { %v1815_v55 = vpop.f32.mrf.mxu0  ;;  %v1836_v56 = vpop.f32.mrf.mxu1 }
 0x241   : > { %v1816_v61 = vadd.f32 %v1815_v55, %v1814_v54 }
 0x242   : > { %v1817_v57 = vpop.f32.mrf.mxu0  ;;  %v1837_v58 = vpop.f32.mrf.mxu1 }
 0x243   : > { %v1415_v62 = vadd.f32 %v1816_v61, %v1794_v51  ;;  %v1838_v63 = vadd.f32 %v1837_v58, %v1836_v56 }
 0x244   : > { %v1818_v1 = vpop.f32.mrf.mxu0  ;;  %v1839_v59 = vpop.f32.mrf.mxu1 }
 0x245   : > { %v1455_v4 = vadd.f32 %v1838_v63, %v1415_v62 }
 0x246   : > { %v1840_v60 = vpop.f32.mrf.mxu1 }
 0x25e   : > { %v1858_v0 = vpop.f32.mrf.mxu0 }
 0x260   : > { %v1859_v2 = vpop.f32.mrf.mxu0  ;;  %v1534_v3 = vpop.f32.mrf.mxu1 }
 0x261   : > { %v1860_v5 = vadd.f32 %v1859_v2, %v1858_v0 }
 0x262   : > { %v1861_v6 = vpop.f32.mrf.mxu0  ;;  %v1903_v7 = vpop.f32.mrf.mxu1 }
 0x263   : > { %v1495_v8 = vadd.f32 %v1860_v5, %v1455_v4 }
 0x264   : > { %v1862_v10 = vpop.f32.mrf.mxu0  ;;  %v1537_v11 = vpop.f32.mrf.mxu1 }
 0x265   : > { %v1535_v12 = vadd.f32 %v1534_v3, %v1495_v8 }
 0x266   : > { %v1904_v14 = vpop.f32.mrf.mxu1 }
 0x267   : > { %v1541_v15 = vmul.f32 %v1540_v9, %v1535_v12 }
 0x269   : > { %v1543_v17 = vadd.f32 %v1542_v13, %v1541_v15 }
 0x26b   : > { %v1544_v18 = vmax.f32 %v1543_v17, 0.0 }
 0x26d   : > { %1545 = vst [vmem:[%s266_s20] sm:$0x1] %v1544_v18 }
 0x26e   : > { %2078 = shalt.err (!%p2075_p3)
}
 0x26f   : > { %s2079_s15 = scalar_lea.hbm %s1557_s29, 16  ;;  %s2083_s16 = scalar_lea.hbm %s2655_s7, 32 }
 0x270   : > { %p2080_p4 = scmp.ne.s32.totalorder %s1557_s29, %s2079_s15  ;;  %p2084_p9 = scmp.lt.s32.totalorder %s1557_s29, %s2655_s7 }
 0x271   : > { %p2085_p10 = scmp.lt.s32.totalorder %s2083_s16, %s2079_s15 }
 0x272   : > { %p2081_p7 = pnand %p2080_p4, %p2209_p5 }
 0x273   : > { %p2086_p11 = por %p2085_p10, %p2084_p9 }
 0x274   : > { %p2082_p8 = pneg %p2081_p7 }
 0x276   : > { %p2087_p12 = pnand %p2086_p11, %p2082_p8 }
 0x278   : > { %2090 = shalt.err (!%p2087_p12)
}
 0x279   : > { %1905 = dma.vmem_to_hbm [thread:$0]  (%p2209_p5), %s1560_s21, 16, %s1557_s29, %s1547_s8  }
 0x27a PF: > { %p1911_p13 = scmp.ge.s32.totalorder %s2125_s27, 2  ;;  %s1571_s22 = sand.u32 1, %s2113_s24  }
 0x27b   : > { %s1572_s23 = scalar_lea.sflag [#allocation5], %s1571_s22 }
 0x27c   : > { %p1908_p0 = pnand %p1911_p13, %p2213_p6 }
 0x27e   : > { %p1909_p1 = pneg %p1908_p0 }
 0x280   : > { %2108 = dma.done.wait (%p1909_p1), %s1572_s23, 16  }
 0x281   : > { %2110 = vsyncadd (%p1909_p1), %s1572_s23, 4294967280  ;;  %p17_p2 = scmp.ge.s32.totalorder %s2196_s30, 4   ;;  %s2658_s24 = smov %s2117_s25 }
 0x282   : > { %s2659_s25 = smov %s2121_s26  ;;  %s2660_s26 = smov %s2207_s10 }
 0x283   : > { %s2661_s27 = smov %s2196_s30  ;;  %19 = sbr.rel (!%p17_p2) target bundleno = 3 (0x3), region = 85 }
 0x288   :  { %1576 = vsyncpa [#allocation5], 1 }
 0x289   :  { %1578 = vsyncpa [#allocation5 + $0x1], 1 }

</bundles_post_ra>
